<compile_context>
chip_gen: v7x
topology: tpu7x:2x2x1
jax: 0.10.0
libtpu: 0.0.40
codegen_flags: <defaults>
</compile_context>

<pallas_src>
import functools

import jax
import jax.numpy as jnp
import numpy as np
from jax.experimental import pallas as pl
from jax.experimental.pallas import tpu as pltpu

EPS = 1e-5


def _round_up(x, m):
    return (x + m - 1) // m * m


def _vmem_limit_bytes():
    # ~3/4 of physical VMEM per generation (v5e/v6e: 96 MiB, v7x: 48 MiB); safe fallback 48 MiB.
    try:
        cap = getattr(pltpu.get_tpu_info(), "vmem_capacity_bytes", None)
        if cap:
            return int(min(cap * 3 // 4, 96 * 1024 * 1024))
    except Exception:
        pass
    return 48 * 1024 * 1024


_VMEM_LIMIT = _vmem_limit_bytes()


# --------------------------------------------------------------------------------------
# Pass 1: 3x3x3 conv as matmul (all 27 taps per step) + streamed BN partial sums.
#   grid = (N, D), both "parallel".
#   x{0,1,2}_ref : (H+2, W+2, Cin)       haloed planes d, d+1, d+2 (compute dtype)
#   w_ref        : (27*Cin, Cout_pad) or (27, Cin, Cout_pad)   grid-invariant weights
#   y_ref        : (Cout_keep, hw_pad)   transposed conv activation tile
#   sums_ref     : (2, Cout_pad) f32     per-(n, d) [sum(y); sum(y^2)]
# --------------------------------------------------------------------------------------
def _conv_stats_kernel(x0_ref, x1_ref, x2_ref, w_ref, y_ref, sums_ref, *,
                       H, W, hw_pad, cout_keep, per_tap):
    planes = (x0_ref[...], x1_ref[...], x2_ref[...])   # each (H+2, W+2, Cin)

    if per_tap:
        # 27 per-tap (H*W, Cin) x (Cin, Cout_pad) matmuls; no patch slab in VMEM.
        acc = None
        for kd in range(3):
            xp = planes[kd]
            cin = xp.shape[-1]
            for kh in range(3):
                for kw in range(3):
                    t = kd * 9 + kh * 3 + kw
                    patch = xp[kh:kh + H, kw:kw + W, :].reshape(H * W, cin)
                    c = jnp.dot(patch, w_ref[t], preferred_element_type=jnp.float32)
                    acc = c if acc is None else acc + c
    else:
        # Tiny Cin: build (H*W, 27*Cin) patches in registers, one MXU matmul with K=27*Cin.
        cols = []
        for kd in range(3):
            xp = planes[kd]
            cin = xp.shape[-1]
            for kh in range(3):
                for kw in range(3):
                    cols.append(xp[kh:kh + H, kw:kw + W, :].reshape(H * W, cin))
        patches = jnp.concatenate(cols, axis=-1)
        acc = jnp.dot(patches, w_ref[...], preferred_element_type=jnp.float32)

    # f32 partial BN statistics of this (n, d) plane (before the bf16 store).
    s1 = jnp.sum(acc, axis=0, keepdims=True)
    s2 = jnp.sum(acc * acc, axis=0, keepdims=True)
    sums_ref[...] = jnp.concatenate([s1, s2], axis=0)

    # Transposed store: (Cout_keep, H*W) -> NCDHW later via metadata-only reshape.
    acc_t = acc.T[:cout_keep]                          # XLU transpose + sublane slice
    if hw_pad != H * W:
        acc_t = jnp.pad(acc_t, ((0, 0), (0, hw_pad - H * W)))
    y_ref[...] = acc_t.astype(y_ref.dtype)


# --------------------------------------------------------------------------------------
# Pass 2: y * scale + shift, ReLU.  Tiles are (Cout_keep, dt*hw_pad), lane-dense and large.
# --------------------------------------------------------------------------------------
def _bn_relu_kernel(y_ref, scale_ref, shift_ref, o_ref):
    y = y_ref[...].astype(jnp.float32)                 # (Cout_keep, L)
    z = y * scale_ref[...] + shift_ref[...]            # per-sublane FMA
    o_ref[...] = jnp.maximum(z, 0.0)


@functools.partial(jax.jit, static_argnames=("compute_dtype",))
def convblock_forward(x_ncdhw, weight_oidhw, gamma, beta, compute_dtype=jnp.bfloat16):
    """ConvBlock.forward: Conv3d(bias=False, k=3, s=1, p=1) + BatchNorm3d(train) + ReLU.

    x_ncdhw:      (N, Cin, D, H, W) float32
    weight_oidhw: (Cout, Cin, 3, 3, 3)
    gamma, beta:  (Cout,)
    returns:      (N, Cout, D, H, W) float32
    """
    n, cin, d, h, w = x_ncdhw.shape
    cout = weight_oidhw.shape[0]
    assert weight_oidhw.shape == (cout, cin, 3, 3, 3), "ConvBlock kernel assumes k=3,s=1,p=1"

    cout_pad = _round_up(cout, 128)        # MXU N dim / lane-dense matmul only (never hits HBM)
    cout_keep = _round_up(cout, 8)         # stored channels (sublane dim of transposed layout)
    hw = h * w
    hw_pad = _round_up(hw, 128)            # lane dim of transposed layout
    per_tap = (cin >= 32) and (cin % 8 == 0)

    # ---- glue: layout, halo padding, compute-dtype cast (halves halo DMA bytes) -------------
    x_ndhwc = jnp.transpose(x_ncdhw, (0, 2, 3, 4, 1)).astype(compute_dtype)
    x_pad = jnp.pad(x_ndhwc, ((0, 0), (1, 1), (1, 1), (1, 1), (0, 0)))   # (N, D+2, H+2, W+2, Cin)

    w_t = jnp.transpose(weight_oidhw, (2, 3, 4, 1, 0)).astype(compute_dtype)   # (3,3,3,Cin,Cout)
    w_t = jnp.pad(w_t, ((0, 0), (0, 0), (0, 0), (0, 0), (0, cout_pad - cout)))
    if per_tap:
        w_mat = w_t.reshape(27, cin, cout_pad)
        w_spec = pl.BlockSpec((27, cin, cout_pad), lambda i, j: (0, 0, 0))     # grid-invariant
    else:
        w_mat = w_t.reshape(27 * cin, cout_pad)
        w_spec = pl.BlockSpec((27 * cin, cout_pad), lambda i, j: (0, 0))       # grid-invariant

    def plane_spec(off):
        return pl.BlockSpec((None, None, h + 2, w + 2, cin),
                            lambda i, j, o=off: (i, j + o, 0, 0, 0))

    # ---- pass 1: conv + partial BN sums -------------------------------------------------------
    kernel1 = functools.partial(_conv_stats_kernel, H=h, W=w, hw_pad=hw_pad,
                                cout_keep=cout_keep, per_tap=per_tap)
    y, psums = pl.pallas_call(
        kernel1,
        out_shape=(
            jax.ShapeDtypeStruct((n, cout_keep, d * hw_pad), compute_dtype),   # conv activation
            jax.ShapeDtypeStruct((n, d, 2, cout_pad), jnp.float32),            # [sum; sum^2]
        ),
        grid=(n, d),
        in_specs=[plane_spec(0), plane_spec(1), plane_spec(2), w_spec],
        out_specs=(
            pl.BlockSpec((None, cout_keep, hw_pad), lambda i, j: (i, 0, j)),
            pl.BlockSpec((None, None, 2, cout_pad), lambda i, j: (i, j, 0, 0)),
        ),
        compiler_params=pltpu.CompilerParams(
            dimension_semantics=("parallel", "parallel"),
            vmem_limit_bytes=_VMEM_LIMIT,
        ),
    )(x_pad, x_pad, x_pad, w_mat)

    # ---- glue: global batch statistics (Chan merge of per-plane partials) + hoisted affine ----
    cnt = float(hw)
    total = float(n * d) * cnt
    s1 = psums[:, :, 0, :]                                   # (n, d, cout_pad)
    s2 = psums[:, :, 1, :]
    mean_i = s1 / cnt
    m2_i = s2 - cnt * jnp.square(mean_i)                     # per-plane sum of squared deviations
    mean = jnp.sum(s1, axis=(0, 1)) / total                  # (cout_pad,)
    m2 = jnp.sum(m2_i, axis=(0, 1)) + cnt * jnp.sum(jnp.square(mean_i - mean), axis=(0, 1))
    var = jnp.maximum(m2 / total, 0.0)                       # biased var (BN training mode)
    inv = jax.lax.rsqrt(var + EPS)

    gamma_k = jnp.pad(gamma.astype(jnp.float32), (0, cout_keep - cout))   # padded lanes -> 0
    beta_k = jnp.pad(beta.astype(jnp.float32), (0, cout_keep - cout))
    scale_vec = gamma_k * inv[:cout_keep]
    shift_vec = beta_k - mean[:cout_keep] * scale_vec
    scale = scale_vec.reshape(cout_keep, 1)
    shift = shift_vec.reshape(cout_keep, 1)

    # ---- pass 2: normalize + ReLU with large lane-dense tiles ---------------------------------
    bytes_per_plane = cout_keep * hw_pad * (jnp.dtype(compute_dtype).itemsize + 4)
    budget = 8 * 1024 * 1024
    dt = 1
    for cand in range(d, 0, -1):
        if d % cand == 0 and 2 * cand * bytes_per_plane <= budget:
            dt = cand
            break
    L = dt * hw_pad

    out_flat = pl.pallas_call(
        _bn_relu_kernel,
        out_shape=jax.ShapeDtypeStruct((n, cout_keep, d * hw_pad), jnp.float32),
        grid=(n, d // dt),
        in_specs=[
            pl.BlockSpec((None, cout_keep, L), lambda i, j: (i, 0, j)),
            pl.BlockSpec((cout_keep, 1), lambda i, j: (0, 0)),
            pl.BlockSpec((cout_keep, 1), lambda i, j: (0, 0)),
        ],
        out_specs=pl.BlockSpec((None, cout_keep, L), lambda i, j: (i, 0, j)),
        compiler_params=pltpu.CompilerParams(
            dimension_semantics=("parallel", "parallel"),
            vmem_limit_bytes=_VMEM_LIMIT,
        ),
    )(y, scale, shift)

    # NCDHW via metadata-only reshape; slices are no-ops when cout % 8 == 0 and h*w % 128 == 0.
    out = out_flat.reshape(n, cout_keep, d, hw_pad)
    out = out[:, :cout, :, :hw].reshape(n, cout, d, h, w)
    return out


def _reference(x, weight, gamma, beta):
    y = jax.lax.conv_general_dilated(
        x, weight, window_strides=(1, 1, 1),
        padding=((1, 1), (1, 1), (1, 1)),
        dimension_numbers=("NCDHW", "OIDHW", "NCDHW"))
    mean = y.mean(axis=(0, 2, 3, 4), keepdims=True)
    var = jnp.square(y - mean).mean(axis=(0, 2, 3, 4), keepdims=True)
    z = (y - mean) * jax.lax.rsqrt(var + EPS)
    z = z * gamma.reshape(1, -1, 1, 1, 1) + beta.reshape(1, -1, 1, 1, 1)
    return jnp.maximum(z, 0.0)


if __name__ == "__main__":
    key = jax.random.PRNGKey(0)
    k_x, k_w, k_g, k_b = jax.random.split(key, 4)

    N, C_IN, C_OUT, D, H, W = 2, 4, 8, 16, 16, 16

    x = jax.random.normal(k_x, (N, C_IN, D, H, W), dtype=jnp.float32)
    fan_in = C_IN * 3 * 3 * 3
    weight = jax.random.normal(k_w, (C_OUT, C_IN, 3, 3, 3), dtype=jnp.float32) / np.sqrt(fan_in)
    gamma = 1.0 + 0.1 * jax.random.normal(k_g, (C_OUT,), dtype=jnp.float32)
    beta = 0.1 * jax.random.normal(k_b, (C_OUT,), dtype=jnp.float32)

    ref = jax.block_until_ready(_reference(x, weight, gamma, beta))

    # f32 path: bit-faithful to the reference conv+BN+ReLU.
    out_f32 = jax.block_until_ready(
        convblock_forward(x, weight, gamma, beta, compute_dtype=jnp.float32))
    np.testing.assert_allclose(np.asarray(out_f32), np.asarray(ref), rtol=2e-4, atol=2e-4)

    # bf16 performance default (f32 MXU accumulation), looser tolerance.
    out_bf16 = jax.block_until_ready(convblock_forward(x, weight, gamma, beta))
    np.testing.assert_allclose(np.asarray(out_bf16), np.asarray(ref), rtol=5e-2, atol=5e-2)

    print("KERNEL_OK")
</pallas_src>

<mosaic_0001>
module attributes {stable_mosaic.version = 11 : i64} {
  func.func @_conv_stats_kernel(%arg0: i32, %arg1: i32, %arg2: memref<1x1x18x18x4xf32, #tpu.memory_space<vmem>>, %arg3: memref<1x1x18x18x4xf32, #tpu.memory_space<vmem>>, %arg4: memref<1x1x18x18x4xf32, #tpu.memory_space<vmem>>, %arg5: memref<108x128xf32, #tpu.memory_space<vmem>>, %arg6: memref<1x8x256xf32, #tpu.memory_space<vmem>>, %arg7: memref<1x1x2x128xf32, #tpu.memory_space<vmem>>) attributes {dimension_semantics = [#tpu.dimension_semantics<parallel>, #tpu.dimension_semantics<parallel>], iteration_bounds = array<i64: 2, 16>, scalar_prefetch = 0 : i64, scratch_operands = 0 : i64, tpu.core_type = #tpu.core_type<tc>, window_params = [{transform_indices = @transform_0, window_bounds = array<i64: 1, 1, 18, 18, 4>}, {transform_indices = @transform_1, window_bounds = array<i64: 1, 1, 18, 18, 4>}, {transform_indices = @transform_2, window_bounds = array<i64: 1, 1, 18, 18, 4>}, {pipeline_mode = #tpu.pipeline_mode<synchronous>, transform_indices = @transform_3, window_bounds = array<i64: 108, 128>}, {transform_indices = @transform_4, window_bounds = array<i64: 1, 8, 256>}, {transform_indices = @transform_5, window_bounds = array<i64: 1, 1, 2, 128>}]} {
    %c0 = arith.constant 0 : index
    %c0_0 = arith.constant 0 : index
    %c0_1 = arith.constant 0 : index
    %c0_2 = arith.constant 0 : index
    %c0_3 = arith.constant 0 : index
    %0 = vector.load %arg2[%c0, %c0_0, %c0_1, %c0_2, %c0_3] : memref<1x1x18x18x4xf32, #tpu.memory_space<vmem>>, vector<1x1x18x18x4xf32>
    %1 = vector.shape_cast %0 : vector<1x1x18x18x4xf32> to vector<18x18x4xf32>
    %c0_4 = arith.constant 0 : index
    %c0_5 = arith.constant 0 : index
    %c0_6 = arith.constant 0 : index
    %c0_7 = arith.constant 0 : index
    %c0_8 = arith.constant 0 : index
    %2 = vector.load %arg3[%c0_4, %c0_5, %c0_6, %c0_7, %c0_8] : memref<1x1x18x18x4xf32, #tpu.memory_space<vmem>>, vector<1x1x18x18x4xf32>
    %3 = vector.shape_cast %2 : vector<1x1x18x18x4xf32> to vector<18x18x4xf32>
    %c0_9 = arith.constant 0 : index
    %c0_10 = arith.constant 0 : index
    %c0_11 = arith.constant 0 : index
    %c0_12 = arith.constant 0 : index
    %c0_13 = arith.constant 0 : index
    %4 = vector.load %arg4[%c0_9, %c0_10, %c0_11, %c0_12, %c0_13] : memref<1x1x18x18x4xf32, #tpu.memory_space<vmem>>, vector<1x1x18x18x4xf32>
    %5 = vector.shape_cast %4 : vector<1x1x18x18x4xf32> to vector<18x18x4xf32>
    %6 = vector.extract_strided_slice %1 {offsets = [0, 0, 0], sizes = [16, 16, 4], strides = [1, 1, 1]} : vector<18x18x4xf32> to vector<16x16x4xf32>
    %7 = vector.shape_cast %6 : vector<16x16x4xf32> to vector<256x4xf32>
    %8 = vector.extract_strided_slice %1 {offsets = [0, 1, 0], sizes = [16, 16, 4], strides = [1, 1, 1]} : vector<18x18x4xf32> to vector<16x16x4xf32>
    %9 = vector.shape_cast %8 : vector<16x16x4xf32> to vector<256x4xf32>
    %10 = vector.extract_strided_slice %1 {offsets = [0, 2, 0], sizes = [16, 16, 4], strides = [1, 1, 1]} : vector<18x18x4xf32> to vector<16x16x4xf32>
    %11 = vector.shape_cast %10 : vector<16x16x4xf32> to vector<256x4xf32>
    %12 = vector.extract_strided_slice %1 {offsets = [1, 0, 0], sizes = [16, 16, 4], strides = [1, 1, 1]} : vector<18x18x4xf32> to vector<16x16x4xf32>
    %13 = vector.shape_cast %12 : vector<16x16x4xf32> to vector<256x4xf32>
    %14 = vector.extract_strided_slice %1 {offsets = [1, 1, 0], sizes = [16, 16, 4], strides = [1, 1, 1]} : vector<18x18x4xf32> to vector<16x16x4xf32>
    %15 = vector.shape_cast %14 : vector<16x16x4xf32> to vector<256x4xf32>
    %16 = vector.extract_strided_slice %1 {offsets = [1, 2, 0], sizes = [16, 16, 4], strides = [1, 1, 1]} : vector<18x18x4xf32> to vector<16x16x4xf32>
    %17 = vector.shape_cast %16 : vector<16x16x4xf32> to vector<256x4xf32>
    %18 = vector.extract_strided_slice %1 {offsets = [2, 0, 0], sizes = [16, 16, 4], strides = [1, 1, 1]} : vector<18x18x4xf32> to vector<16x16x4xf32>
    %19 = vector.shape_cast %18 : vector<16x16x4xf32> to vector<256x4xf32>
    %20 = vector.extract_strided_slice %1 {offsets = [2, 1, 0], sizes = [16, 16, 4], strides = [1, 1, 1]} : vector<18x18x4xf32> to vector<16x16x4xf32>
    %21 = vector.shape_cast %20 : vector<16x16x4xf32> to vector<256x4xf32>
    %22 = vector.extract_strided_slice %1 {offsets = [2, 2, 0], sizes = [16, 16, 4], strides = [1, 1, 1]} : vector<18x18x4xf32> to vector<16x16x4xf32>
    %23 = vector.shape_cast %22 : vector<16x16x4xf32> to vector<256x4xf32>
    %24 = vector.extract_strided_slice %3 {offsets = [0, 0, 0], sizes = [16, 16, 4], strides = [1, 1, 1]} : vector<18x18x4xf32> to vector<16x16x4xf32>
    %25 = vector.shape_cast %24 : vector<16x16x4xf32> to vector<256x4xf32>
    %26 = vector.extract_strided_slice %3 {offsets = [0, 1, 0], sizes = [16, 16, 4], strides = [1, 1, 1]} : vector<18x18x4xf32> to vector<16x16x4xf32>
    %27 = vector.shape_cast %26 : vector<16x16x4xf32> to vector<256x4xf32>
    %28 = vector.extract_strided_slice %3 {offsets = [0, 2, 0], sizes = [16, 16, 4], strides = [1, 1, 1]} : vector<18x18x4xf32> to vector<16x16x4xf32>
    %29 = vector.shape_cast %28 : vector<16x16x4xf32> to vector<256x4xf32>
    %30 = vector.extract_strided_slice %3 {offsets = [1, 0, 0], sizes = [16, 16, 4], strides = [1, 1, 1]} : vector<18x18x4xf32> to vector<16x16x4xf32>
    %31 = vector.shape_cast %30 : vector<16x16x4xf32> to vector<256x4xf32>
    %32 = vector.extract_strided_slice %3 {offsets = [1, 1, 0], sizes = [16, 16, 4], strides = [1, 1, 1]} : vector<18x18x4xf32> to vector<16x16x4xf32>
    %33 = vector.shape_cast %32 : vector<16x16x4xf32> to vector<256x4xf32>
    %34 = vector.extract_strided_slice %3 {offsets = [1, 2, 0], sizes = [16, 16, 4], strides = [1, 1, 1]} : vector<18x18x4xf32> to vector<16x16x4xf32>
    %35 = vector.shape_cast %34 : vector<16x16x4xf32> to vector<256x4xf32>
    %36 = vector.extract_strided_slice %3 {offsets = [2, 0, 0], sizes = [16, 16, 4], strides = [1, 1, 1]} : vector<18x18x4xf32> to vector<16x16x4xf32>
    %37 = vector.shape_cast %36 : vector<16x16x4xf32> to vector<256x4xf32>
    %38 = vector.extract_strided_slice %3 {offsets = [2, 1, 0], sizes = [16, 16, 4], strides = [1, 1, 1]} : vector<18x18x4xf32> to vector<16x16x4xf32>
    %39 = vector.shape_cast %38 : vector<16x16x4xf32> to vector<256x4xf32>
    %40 = vector.extract_strided_slice %3 {offsets = [2, 2, 0], sizes = [16, 16, 4], strides = [1, 1, 1]} : vector<18x18x4xf32> to vector<16x16x4xf32>
    %41 = vector.shape_cast %40 : vector<16x16x4xf32> to vector<256x4xf32>
    %42 = vector.extract_strided_slice %5 {offsets = [0, 0, 0], sizes = [16, 16, 4], strides = [1, 1, 1]} : vector<18x18x4xf32> to vector<16x16x4xf32>
    %43 = vector.shape_cast %42 : vector<16x16x4xf32> to vector<256x4xf32>
    %44 = vector.extract_strided_slice %5 {offsets = [0, 1, 0], sizes = [16, 16, 4], strides = [1, 1, 1]} : vector<18x18x4xf32> to vector<16x16x4xf32>
    %45 = vector.shape_cast %44 : vector<16x16x4xf32> to vector<256x4xf32>
    %46 = vector.extract_strided_slice %5 {offsets = [0, 2, 0], sizes = [16, 16, 4], strides = [1, 1, 1]} : vector<18x18x4xf32> to vector<16x16x4xf32>
    %47 = vector.shape_cast %46 : vector<16x16x4xf32> to vector<256x4xf32>
    %48 = vector.extract_strided_slice %5 {offsets = [1, 0, 0], sizes = [16, 16, 4], strides = [1, 1, 1]} : vector<18x18x4xf32> to vector<16x16x4xf32>
    %49 = vector.shape_cast %48 : vector<16x16x4xf32> to vector<256x4xf32>
    %50 = vector.extract_strided_slice %5 {offsets = [1, 1, 0], sizes = [16, 16, 4], strides = [1, 1, 1]} : vector<18x18x4xf32> to vector<16x16x4xf32>
    %51 = vector.shape_cast %50 : vector<16x16x4xf32> to vector<256x4xf32>
    %52 = vector.extract_strided_slice %5 {offsets = [1, 2, 0], sizes = [16, 16, 4], strides = [1, 1, 1]} : vector<18x18x4xf32> to vector<16x16x4xf32>
    %53 = vector.shape_cast %52 : vector<16x16x4xf32> to vector<256x4xf32>
    %54 = vector.extract_strided_slice %5 {offsets = [2, 0, 0], sizes = [16, 16, 4], strides = [1, 1, 1]} : vector<18x18x4xf32> to vector<16x16x4xf32>
    %55 = vector.shape_cast %54 : vector<16x16x4xf32> to vector<256x4xf32>
    %56 = vector.extract_strided_slice %5 {offsets = [2, 1, 0], sizes = [16, 16, 4], strides = [1, 1, 1]} : vector<18x18x4xf32> to vector<16x16x4xf32>
    %57 = vector.shape_cast %56 : vector<16x16x4xf32> to vector<256x4xf32>
    %58 = vector.extract_strided_slice %5 {offsets = [2, 2, 0], sizes = [16, 16, 4], strides = [1, 1, 1]} : vector<18x18x4xf32> to vector<16x16x4xf32>
    %59 = vector.shape_cast %58 : vector<16x16x4xf32> to vector<256x4xf32>
    %60 = tpu.concatenate %7, %9, %11, %13, %15, %17, %19, %21, %23, %25, %27, %29, %31, %33, %35, %37 in 1 : vector<256x4xf32>, vector<256x4xf32>, vector<256x4xf32>, vector<256x4xf32>, vector<256x4xf32>, vector<256x4xf32>, vector<256x4xf32>, vector<256x4xf32>, vector<256x4xf32>, vector<256x4xf32>, vector<256x4xf32>, vector<256x4xf32>, vector<256x4xf32>, vector<256x4xf32>, vector<256x4xf32>, vector<256x4xf32> -> vector<256x64xf32>
    %61 = tpu.concatenate %39, %41, %43, %45, %47, %49, %51, %53, %55, %57, %59 in 1 : vector<256x4xf32>, vector<256x4xf32>, vector<256x4xf32>, vector<256x4xf32>, vector<256x4xf32>, vector<256x4xf32>, vector<256x4xf32>, vector<256x4xf32>, vector<256x4xf32>, vector<256x4xf32>, vector<256x4xf32> -> vector<256x44xf32>
    %62 = tpu.concatenate %60, %61 in 1 : vector<256x64xf32>, vector<256x44xf32> -> vector<256x108xf32>
    %c0_14 = arith.constant 0 : index
    %c0_15 = arith.constant 0 : index
    %63 = vector.load %arg5[%c0_14, %c0_15] : memref<108x128xf32, #tpu.memory_space<vmem>>, vector<108x128xf32>
    %cst = arith.constant dense<0.000000e+00> : vector<256x128xf32>
    %64 = tpu.matmul %62, %63, %cst {dimension_numbers = #tpu.dot_dimension_numbers<[1], [0], [0], [1], [0, 0, 1, 1], [], []>} : vector<256x108xf32>, vector<108x128xf32>, vector<256x128xf32> -> vector<256x128xf32>
    %cst_16 = arith.constant dense<0.000000e+00> : vector<128xf32>
    %65 = vector.multi_reduction <add>, %64, %cst_16 [0] : vector<256x128xf32> to vector<128xf32>
    %66 = vector.shape_cast %65 : vector<128xf32> to vector<1x128xf32>
    %67 = arith.mulf %64, %64 : vector<256x128xf32>
    %cst_17 = arith.constant dense<0.000000e+00> : vector<128xf32>
    %68 = vector.multi_reduction <add>, %67, %cst_17 [0] : vector<256x128xf32> to vector<128xf32>
    %69 = vector.shape_cast %68 : vector<128xf32> to vector<1x128xf32>
    %70 = tpu.concatenate %66, %69 in 0 : vector<1x128xf32>, vector<1x128xf32> -> vector<2x128xf32>
    %c0_18 = arith.constant 0 : index
    %c0_19 = arith.constant 0 : index
    %c0_20 = arith.constant 0 : index
    %c0_21 = arith.constant 0 : index
    %71 = vector.load %arg7[%c0_18, %c0_19, %c0_20, %c0_21] : memref<1x1x2x128xf32, #tpu.memory_space<vmem>>, vector<1x1x2x128xf32>
    %72 = vector.shape_cast %71 : vector<1x1x2x128xf32> to vector<2x128xf32>
    %73 = vector.shape_cast %70 : vector<2x128xf32> to vector<1x1x2x128xf32>
    tpu.vector_store %arg7[%c0_18, %c0_19, %c0_20, %c0_21], %73 {strides = array<i32>} : memref<1x1x2x128xf32, #tpu.memory_space<vmem>>, vector<1x1x2x128xf32>,
    %74 = tpu.transpose %64, [1, 0] : vector<256x128xf32> -> vector<128x256xf32>
    %75 = vector.extract_strided_slice %74 {offsets = [0, 0], sizes = [8, 256], strides = [1, 1]} : vector<128x256xf32> to vector<8x256xf32>
    %c0_22 = arith.constant 0 : index
    %c0_23 = arith.constant 0 : index
    %c0_24 = arith.constant 0 : index
    %76 = vector.load %arg6[%c0_22, %c0_23, %c0_24] : memref<1x8x256xf32, #tpu.memory_space<vmem>>, vector<1x8x256xf32>
    %77 = vector.shape_cast %76 : vector<1x8x256xf32> to vector<8x256xf32>
    %78 = vector.shape_cast %75 : vector<8x256xf32> to vector<1x8x256xf32>
    tpu.vector_store %arg6[%c0_22, %c0_23, %c0_24], %78 {strides = array<i32>} : memref<1x8x256xf32, #tpu.memory_space<vmem>>, vector<1x8x256xf32>,
    return
  }
  func.func @transform_0(%arg0: i32, %arg1: i32) -> (i32, i32, i32, i32, i32) {
    %c0_i32 = arith.constant 0 : i32
    %0 = arith.addi %arg1, %c0_i32 : i32
    %c0_i32_0 = arith.constant 0 : i32
    %c0_i32_1 = arith.constant 0 : i32
    %c0_i32_2 = arith.constant 0 : i32
    %c0_i32_3 = arith.constant 0 : i32
    return %arg0, %0, %c0_i32_0, %c0_i32_1, %c0_i32_2 : i32, i32, i32, i32, i32
  }
  func.func @transform_1(%arg0: i32, %arg1: i32) -> (i32, i32, i32, i32, i32) {
    %c1_i32 = arith.constant 1 : i32
    %0 = arith.addi %arg1, %c1_i32 : i32
    %c0_i32 = arith.constant 0 : i32
    %c0_i32_0 = arith.constant 0 : i32
    %c0_i32_1 = arith.constant 0 : i32
    %c0_i32_2 = arith.constant 0 : i32
    return %arg0, %0, %c0_i32, %c0_i32_0, %c0_i32_1 : i32, i32, i32, i32, i32
  }
  func.func @transform_2(%arg0: i32, %arg1: i32) -> (i32, i32, i32, i32, i32) {
    %c2_i32 = arith.constant 2 : i32
    %0 = arith.addi %arg1, %c2_i32 : i32
    %c0_i32 = arith.constant 0 : i32
    %c0_i32_0 = arith.constant 0 : i32
    %c0_i32_1 = arith.constant 0 : i32
    %c0_i32_2 = arith.constant 0 : i32
    return %arg0, %0, %c0_i32, %c0_i32_0, %c0_i32_1 : i32, i32, i32, i32, i32
  }
  func.func @transform_3(%arg0: i32, %arg1: i32) -> (i32, i32) {
    %c0_i32 = arith.constant 0 : i32
    %c0_i32_0 = arith.constant 0 : i32
    %c0_i32_1 = arith.constant 0 : i32
    return %c0_i32, %c0_i32_0 : i32, i32
  }
  func.func @transform_4(%arg0: i32, %arg1: i32) -> (i32, i32, i32) {
    %c0_i32 = arith.constant 0 : i32
    %c0_i32_0 = arith.constant 0 : i32
    return %arg0, %c0_i32, %arg1 : i32, i32, i32
  }
  func.func @transform_5(%arg0: i32, %arg1: i32) -> (i32, i32, i32, i32) {
    %c0_i32 = arith.constant 0 : i32
    %c0_i32_0 = arith.constant 0 : i32
    %c0_i32_1 = arith.constant 0 : i32
    return %arg0, %arg1, %c0_i32, %c0_i32_0 : i32, i32, i32, i32
  }
}

module attributes {stable_mosaic.version = 11 : i64} {
  func.func @_bn_relu_kernel(%arg0: i32, %arg1: i32, %arg2: memref<1x8x4096xf32, #tpu.memory_space<vmem>>, %arg3: memref<8x1xf32, #tpu.memory_space<vmem>>, %arg4: memref<8x1xf32, #tpu.memory_space<vmem>>, %arg5: memref<1x8x4096xf32, #tpu.memory_space<vmem>>) attributes {dimension_semantics = [#tpu.dimension_semantics<parallel>, #tpu.dimension_semantics<parallel>], iteration_bounds = array<i64: 2, 1>, scalar_prefetch = 0 : i64, scratch_operands = 0 : i64, tpu.core_type = #tpu.core_type<tc>, window_params = [{transform_indices = @transform_0, window_bounds = array<i64: 1, 8, 4096>}, {pipeline_mode = #tpu.pipeline_mode<synchronous>, transform_indices = @transform_1, window_bounds = array<i64: 8, 1>}, {pipeline_mode = #tpu.pipeline_mode<synchronous>, transform_indices = @transform_2, window_bounds = array<i64: 8, 1>}, {transform_indices = @transform_3, window_bounds = array<i64: 1, 8, 4096>}]} {
    %c0 = arith.constant 0 : index
    %c0_0 = arith.constant 0 : index
    %c0_1 = arith.constant 0 : index
    %0 = vector.load %arg2[%c0, %c0_0, %c0_1] : memref<1x8x4096xf32, #tpu.memory_space<vmem>>, vector<1x8x4096xf32>
    %1 = vector.shape_cast %0 : vector<1x8x4096xf32> to vector<8x4096xf32>
    %c0_2 = arith.constant 0 : index
    %c0_3 = arith.constant 0 : index
    %2 = vector.load %arg3[%c0_2, %c0_3] : memref<8x1xf32, #tpu.memory_space<vmem>>, vector<8x1xf32>
    %3 = vector.broadcast %2 : vector<8x1xf32> to vector<8x4096xf32>
    %4 = arith.mulf %1, %3 : vector<8x4096xf32>
    %c0_4 = arith.constant 0 : index
    %c0_5 = arith.constant 0 : index
    %5 = vector.load %arg4[%c0_4, %c0_5] : memref<8x1xf32, #tpu.memory_space<vmem>>, vector<8x1xf32>
    %6 = vector.broadcast %5 : vector<8x1xf32> to vector<8x4096xf32>
    %7 = arith.addf %4, %6 : vector<8x4096xf32>
    %cst = arith.constant 0.000000e+00 : f32
    %8 = vector.broadcast %cst : f32 to vector<8x4096xf32>
    %9 = arith.maximumf %7, %8 : vector<8x4096xf32>
    %c0_6 = arith.constant 0 : index
    %c0_7 = arith.constant 0 : index
    %c0_8 = arith.constant 0 : index
    %10 = vector.load %arg5[%c0_6, %c0_7, %c0_8] : memref<1x8x4096xf32, #tpu.memory_space<vmem>>, vector<1x8x4096xf32>
    %11 = vector.shape_cast %10 : vector<1x8x4096xf32> to vector<8x4096xf32>
    %12 = vector.shape_cast %9 : vector<8x4096xf32> to vector<1x8x4096xf32>
    tpu.vector_store %arg5[%c0_6, %c0_7, %c0_8], %12 {strides = array<i32>} : memref<1x8x4096xf32, #tpu.memory_space<vmem>>, vector<1x8x4096xf32>,
    return
  }
  func.func @transform_0(%arg0: i32, %arg1: i32) -> (i32, i32, i32) {
    %c0_i32 = arith.constant 0 : i32
    %c0_i32_0 = arith.constant 0 : i32
    return %arg0, %c0_i32, %arg1 : i32, i32, i32
  }
  func.func @transform_1(%arg0: i32, %arg1: i32) -> (i32, i32) {
    %c0_i32 = arith.constant 0 : i32
    %c0_i32_0 = arith.constant 0 : i32
    %c0_i32_1 = arith.constant 0 : i32
    return %c0_i32, %c0_i32_0 : i32, i32
  }
  func.func @transform_2(%arg0: i32, %arg1: i32) -> (i32, i32) {
    %c0_i32 = arith.constant 0 : i32
    %c0_i32_0 = arith.constant 0 : i32
    %c0_i32_1 = arith.constant 0 : i32
    return %c0_i32, %c0_i32_0 : i32, i32
  }
  func.func @transform_3(%arg0: i32, %arg1: i32) -> (i32, i32, i32) {
    %c0_i32 = arith.constant 0 : i32
    %c0_i32_0 = arith.constant 0 : i32
    return %arg0, %c0_i32, %arg1 : i32, i32, i32
  }
}

</mosaic_0001>

<bundles_post_ra>
// kernel: convblock_forward.3
= control target key start
LH: loop header
LB: loop body
LE: loop exit
PB: predicated region body
PF: predicated region fallthrough
CT: control target
= control target key end

     0   :  { %s553_s12 = smov 0   ;;  %s555_s13 = smov 0   ;;  %s703_s0 = inlined_call_operand.vmem [shape: f32[2,8,4096], index: 0, kind: input, shape index: {}]   ;;  %s704_s1 = inlined_call_operand.vmem [shape: f32[8,1], index: 1, kind: input, shape index: {}]   ;;  %s705_s2 = inlined_call_operand.vmem [shape: f32[8,1], index: 2, kind: input, shape index: {}]   ;;  %s706_s3 = inlined_call_operand.vmem [shape: f32[2,8,4096], index: 3, kind: output, shape index: {}]  }
   0x1   :  { %s557_s14 = smov 0  }
   0x2 LB: > { %s25_s15 = sadd.s32 1, %s526_s13  ;;  %p473_p0 = scmp.ge.s32.totalorder %s530_s14, 1  ;;  %s530_s14 = sphi %s557_s14, %s13_s14   ;;  %s526_s13 = sphi %s555_s13, %s708_s13   ;;  %s522_s12 = sphi %s553_s12, %s707_s12  }
   0x3   : > { %p27_p1 = scmp.ge.s32.totalorder %s25_s15, 2  ;;  %p158_p2 = scmp.lt.s32.totalorder %s530_s14, 3 }
   0x5   : > { %s710_s15 = smov (%p27_p1, %s25_s15), 0  ;;  %p159_p3 = pnand %p473_p0, %p158_p2 }
   0x6   : > { %v242_v0 = vld [vmem:[%s704_s1] sm:$0xff] (!%p159_p3)  ;;  %v532_v1 = vmov (!%p159_p3), 0   ;;  %p191_p4 = scmp.lt.s32.totalorder (!%p159_p3), %s522_s12, 1 }
   0x7   : > { %162 = sbr.rel (%p159_p3) target bundleno = 170 (0xaa), region = 32  ;;  %507 = vset.pattern.permute.xlu0 (!%p159_p3), %v532_v1  ;;  %v280_v2 = vld [vmem:[%s705_s2] sm:$0xff] (!%p159_p3) }
   0x8   : > { %245 = vperm.xlu0 (!%p159_p3), %507, %v242_v0  }
   0xc   : > { %283 = vperm.xlu0 (!%p159_p3), %507, %v280_v2  }
   0xe   : > { %s712_s12 = smov (!%p191_p4, %s522_s12), 1 }
   0xf   : > { %s480_s20 = sshll.u32 %s712_s12, 8 }
  0x10   : > { %s585_s23 = scalar_lea.vmem %s703_s0, %s480_s20  ;;  %s640_s26 = scalar_lea.vmem %s706_s3, %s480_s20 }
  0x11   : > { %v210_v3 = vld [vmem:[%s585_s23] sm:$0xff]  ;;  %v211_v4 = vld [vmem:[%s585_s23 + $0x8] sm:$0xff]  ;;  %v212_v5 = vld [vmem:[%s585_s23 + $0x10] sm:$0xff] }
  0x12   : > { %v213_v6 = vld [vmem:[%s585_s23 + $0x18] sm:$0xff]  ;;  %v214_v7 = vld [vmem:[%s585_s23 + $0x20] sm:$0xff]  ;;  %v215_v8 = vld [vmem:[%s585_s23 + $0x28] sm:$0xff] }
  0x13   : > { %v216_v9 = vld [vmem:[%s585_s23 + $0x30] sm:$0xff]  ;;  %v217_v10 = vld [vmem:[%s585_s23 + $0x38] sm:$0xff]  ;;  %v218_v11 = vld [vmem:[%s585_s23 + $0x40] sm:$0xff] }
  0x14   : > { %v219_v12 = vld [vmem:[%s585_s23 + $0x48] sm:$0xff]  ;;  %v220_v13 = vld [vmem:[%s585_s23 + $0x50] sm:$0xff]  ;;  %v221_v14 = vld [vmem:[%s585_s23 + $0x58] sm:$0xff] }
  0x15   : > { %v222_v15 = vld [vmem:[%s585_s23 + $0x60] sm:$0xff]  ;;  %v223_v16 = vld [vmem:[%s585_s23 + $0x68] sm:$0xff]  ;;  %v224_v18 = vld [vmem:[%s585_s23 + $0x70] sm:$0xff] }
  0x16   : > { %v225_v19 = vld [vmem:[%s585_s23 + $0x78] sm:$0xff]  ;;  %v226_v20 = vld [vmem:[%s585_s23 + $0x80] sm:$0xff]  ;;  %v227_v21 = vld [vmem:[%s585_s23 + $0x88] sm:$0xff] }
  0x17   : > { %v228_v22 = vld [vmem:[%s585_s23 + $0x90] sm:$0xff]  ;;  %v229_v23 = vld [vmem:[%s585_s23 + $0x98] sm:$0xff]  ;;  %v230_v28 = vld [vmem:[%s585_s23 + $0xa0] sm:$0xff] }
  0x18   : > { %v231_v29 = vld [vmem:[%s585_s23 + $0xa8] sm:$0xff]  ;;  %v232_v30 = vld [vmem:[%s585_s23 + $0xb0] sm:$0xff]  ;;  %v233_v35 = vld [vmem:[%s585_s23 + $0xb8] sm:$0xff] }
  0x19   : > { %v234_v36 = vld [vmem:[%s585_s23 + $0xc0] sm:$0xff]  ;;  %v235_v37 = vld [vmem:[%s585_s23 + $0xc8] sm:$0xff]  ;;  %v236_v42 = vld [vmem:[%s585_s23 + $0xd0] sm:$0xff] }
  0x1a   : > { %v237_v43 = vld [vmem:[%s585_s23 + $0xd8] sm:$0xff]  ;;  %v238_v44 = vld [vmem:[%s585_s23 + $0xe0] sm:$0xff]  ;;  %v239_v49 = vld [vmem:[%s585_s23 + $0xe8] sm:$0xff] }
  0x1b   : > { %v240_v50 = vld [vmem:[%s585_s23 + $0xf0] sm:$0xff]  ;;  %v241_v51 = vld [vmem:[%s585_s23 + $0xf8] sm:$0xff] }
  0x87   : > { %v246_v17 = vpop.permute.xlu0 %245 }
  0x88   : > { %v248_v24 = vmul.f32 %v246_v17, %v210_v3  ;;  %v249_v25 = vmul.f32 %v246_v17, %v211_v4  ;;  %v250_v26 = vmul.f32 %v246_v17, %v212_v5  ;;  %v251_v27 = vmul.f32 %v246_v17, %v213_v6 }
  0x89   : > { %v252_v31 = vmul.f32 %v246_v17, %v214_v7  ;;  %v253_v32 = vmul.f32 %v246_v17, %v215_v8  ;;  %v254_v33 = vmul.f32 %v246_v17, %v216_v9  ;;  %v255_v34 = vmul.f32 %v246_v17, %v217_v10 }
  0x8a   : > { %v256_v38 = vmul.f32 %v246_v17, %v218_v11  ;;  %v257_v39 = vmul.f32 %v246_v17, %v219_v12  ;;  %v258_v40 = vmul.f32 %v246_v17, %v220_v13  ;;  %v259_v41 = vmul.f32 %v246_v17, %v221_v14 }
  0x8b   : > { %v260_v45 = vmul.f32 %v246_v17, %v222_v15  ;;  %v261_v46 = vmul.f32 %v246_v17, %v223_v16  ;;  %v262_v47 = vmul.f32 %v246_v17, %v224_v18  ;;  %v263_v48 = vmul.f32 %v246_v17, %v225_v19  ;;  %v284_v56 = vpop.permute.xlu0 %283 }
  0x8c   : > { %v264_v52 = vmul.f32 %v246_v17, %v226_v20  ;;  %v265_v53 = vmul.f32 %v246_v17, %v227_v21  ;;  %v266_v54 = vmul.f32 %v246_v17, %v228_v22  ;;  %v267_v55 = vmul.f32 %v246_v17, %v229_v23 }
  0x8d   : > { %v268_v57 = vmul.f32 %v246_v17, %v230_v28  ;;  %v269_v58 = vmul.f32 %v246_v17, %v231_v29  ;;  %v270_v59 = vmul.f32 %v246_v17, %v232_v30  ;;  %v271_v60 = vmul.f32 %v246_v17, %v233_v35 }
  0x8e   : > { %v272_v61 = vmul.f32 %v246_v17, %v234_v36  ;;  %v273_v62 = vmul.f32 %v246_v17, %v235_v37  ;;  %v274_v63 = vmul.f32 %v246_v17, %v236_v42  ;;  %v275_v0 = vmul.f32 %v246_v17, %v237_v43 }
  0x8f   : > { %v276_v1 = vmul.f32 %v246_v17, %v238_v44  ;;  %v277_v2 = vmul.f32 %v246_v17, %v239_v49  ;;  %v278_v3 = vmul.f32 %v246_v17, %v240_v50  ;;  %v279_v4 = vmul.f32 %v246_v17, %v241_v51 }
  0x90   : > { %v286_v5 = vadd.f32 %v284_v56, %v248_v24  ;;  %v287_v6 = vadd.f32 %v284_v56, %v249_v25  ;;  %v288_v7 = vadd.f32 %v284_v56, %v250_v26  ;;  %v289_v8 = vadd.f32 %v284_v56, %v251_v27 }
  0x91   : > { %v290_v9 = vadd.f32 %v284_v56, %v252_v31  ;;  %v291_v10 = vadd.f32 %v284_v56, %v253_v32  ;;  %v292_v11 = vadd.f32 %v284_v56, %v254_v33  ;;  %v293_v12 = vadd.f32 %v284_v56, %v255_v34 }
  0x92   : > { %v294_v13 = vadd.f32 %v284_v56, %v256_v38  ;;  %v295_v14 = vadd.f32 %v284_v56, %v257_v39  ;;  %v296_v15 = vadd.f32 %v284_v56, %v258_v40  ;;  %v297_v16 = vadd.f32 %v284_v56, %v259_v41 }
  0x93   : > { %v298_v18 = vadd.f32 %v284_v56, %v260_v45  ;;  %v299_v19 = vadd.f32 %v284_v56, %v261_v46  ;;  %v300_v20 = vadd.f32 %v284_v56, %v262_v47  ;;  %v301_v21 = vadd.f32 %v284_v56, %v263_v48 }
  0x94   : > { %v302_v22 = vadd.f32 %v284_v56, %v264_v52  ;;  %v303_v23 = vadd.f32 %v284_v56, %v265_v53  ;;  %v304_v17 = vadd.f32 %v284_v56, %v266_v54  ;;  %v305_v24 = vadd.f32 %v284_v56, %v267_v55 }
  0x95   : > { %v619_v25 = vadd.f32 %v284_v56, %v268_v57  ;;  %v621_v26 = vadd.f32 %v284_v56, %v269_v58  ;;  %v623_v27 = vadd.f32 %v284_v56, %v270_v59  ;;  %v625_v28 = vadd.f32 %v284_v56, %v271_v60 }
  0x96   : > { %v627_v29 = vadd.f32 %v284_v56, %v272_v61  ;;  %v629_v30 = vadd.f32 %v284_v56, %v273_v62  ;;  %v631_v31 = vadd.f32 %v284_v56, %v274_v63  ;;  %v633_v32 = vadd.f32 %v284_v56, %v275_v0 }
  0x97   : > { %v642_v33 = vadd.f32 %v284_v56, %v276_v1  ;;  %v644_v34 = vadd.f32 %v284_v56, %v277_v2  ;;  %v646_v35 = vadd.f32 %v284_v56, %v278_v3  ;;  %v648_v36 = vadd.f32 %v284_v56, %v279_v4 }
  0x98   : > { %v318_v37 = vmax.f32 %v286_v5, 0.0  ;;  %v319_v38 = vmax.f32 %v287_v6, 0.0  ;;  %v320_v39 = vmax.f32 %v288_v7, 0.0  ;;  %v321_v40 = vmax.f32 %v289_v8, 0.0 }
  0x99   : > { %v322_v41 = vmax.f32 %v290_v9, 0.0  ;;  %v323_v42 = vmax.f32 %v291_v10, 0.0  ;;  %v324_v43 = vmax.f32 %v292_v11, 0.0  ;;  %v325_v44 = vmax.f32 %v293_v12, 0.0 }
  0x9a   : > { %v326_v45 = vmax.f32 %v294_v13, 0.0  ;;  %v327_v46 = vmax.f32 %v295_v14, 0.0  ;;  %v328_v47 = vmax.f32 %v296_v15, 0.0  ;;  %v329_v48 = vmax.f32 %v297_v16, 0.0  ;;  %350 = vst [vmem:[%s640_s26] sm:$0xff] %v318_v37  ;;  %351 = vst [vmem:[%s640_s26 + $0x8] sm:$0xff] %v319_v38 }
  0x9b   : > { %352 = vst [vmem:[%s640_s26 + $0x10] sm:$0xff] %v320_v39  ;;  %353 = vst [vmem:[%s640_s26 + $0x18] sm:$0xff] %v321_v40  ;;  %v330_v49 = vmax.f32 %v298_v18, 0.0  ;;  %v331_v50 = vmax.f32 %v299_v19, 0.0  ;;  %v332_v51 = vmax.f32 %v300_v20, 0.0  ;;  %v333_v52 = vmax.f32 %v301_v21, 0.0 }
  0x9c   : > { %354 = vst [vmem:[%s640_s26 + $0x20] sm:$0xff] %v322_v41  ;;  %355 = vst [vmem:[%s640_s26 + $0x28] sm:$0xff] %v323_v42  ;;  %v334_v53 = vmax.f32 %v302_v22, 0.0  ;;  %v335_v54 = vmax.f32 %v303_v23, 0.0  ;;  %v336_v55 = vmax.f32 %v304_v17, 0.0  ;;  %v337_v56 = vmax.f32 %v305_v24, 0.0 }
  0x9d   : > { %356 = vst [vmem:[%s640_s26 + $0x30] sm:$0xff] %v324_v43  ;;  %357 = vst [vmem:[%s640_s26 + $0x38] sm:$0xff] %v325_v44  ;;  %v338_v57 = vmax.f32 %v619_v25, 0.0  ;;  %v339_v58 = vmax.f32 %v621_v26, 0.0  ;;  %v340_v59 = vmax.f32 %v623_v27, 0.0  ;;  %v341_v60 = vmax.f32 %v625_v28, 0.0 }
  0x9e   : > { %358 = vst [vmem:[%s640_s26 + $0x40] sm:$0xff] %v326_v45  ;;  %359 = vst [vmem:[%s640_s26 + $0x48] sm:$0xff] %v327_v46  ;;  %v342_v61 = vmax.f32 %v627_v29, 0.0  ;;  %v343_v62 = vmax.f32 %v629_v30, 0.0  ;;  %v344_v63 = vmax.f32 %v631_v31, 0.0  ;;  %v345_v0 = vmax.f32 %v633_v32, 0.0 }
  0x9f   : > { %360 = vst [vmem:[%s640_s26 + $0x50] sm:$0xff] %v328_v47  ;;  %361 = vst [vmem:[%s640_s26 + $0x58] sm:$0xff] %v329_v48  ;;  %v346_v1 = vmax.f32 %v642_v33, 0.0  ;;  %v347_v2 = vmax.f32 %v644_v34, 0.0  ;;  %v348_v3 = vmax.f32 %v646_v35, 0.0  ;;  %v349_v4 = vmax.f32 %v648_v36, 0.0 }
  0xa0   : > { %362 = vst [vmem:[%s640_s26 + $0x60] sm:$0xff] %v330_v49  ;;  %363 = vst [vmem:[%s640_s26 + $0x68] sm:$0xff] %v331_v50 }
  0xa1   : > { %364 = vst [vmem:[%s640_s26 + $0x70] sm:$0xff] %v332_v51  ;;  %365 = vst [vmem:[%s640_s26 + $0x78] sm:$0xff] %v333_v52 }
  0xa2   : > { %366 = vst [vmem:[%s640_s26 + $0x80] sm:$0xff] %v334_v53  ;;  %367 = vst [vmem:[%s640_s26 + $0x88] sm:$0xff] %v335_v54 }
  0xa3   : > { %368 = vst [vmem:[%s640_s26 + $0x90] sm:$0xff] %v336_v55  ;;  %369 = vst [vmem:[%s640_s26 + $0x98] sm:$0xff] %v337_v56 }
  0xa4   : > { %370 = vst [vmem:[%s640_s26 + $0xa0] sm:$0xff] %v338_v57  ;;  %371 = vst [vmem:[%s640_s26 + $0xa8] sm:$0xff] %v339_v58 }
  0xa5   : > { %372 = vst [vmem:[%s640_s26 + $0xb0] sm:$0xff] %v340_v59  ;;  %373 = vst [vmem:[%s640_s26 + $0xb8] sm:$0xff] %v341_v60 }
  0xa6   : > { %374 = vst [vmem:[%s640_s26 + $0xc0] sm:$0xff] %v342_v61  ;;  %375 = vst [vmem:[%s640_s26 + $0xc8] sm:$0xff] %v343_v62 }
  0xa7   : > { %376 = vst [vmem:[%s640_s26 + $0xd0] sm:$0xff] %v344_v63  ;;  %377 = vst [vmem:[%s640_s26 + $0xd8] sm:$0xff] %v345_v0 }
  0xa8   : > { %378 = vst [vmem:[%s640_s26 + $0xe0] sm:$0xff] %v346_v1  ;;  %379 = vst [vmem:[%s640_s26 + $0xe8] sm:$0xff] %v347_v2 }
  0xa9   : > { %380 = vst [vmem:[%s640_s26 + $0xf0] sm:$0xff] %v348_v3  ;;  %381 = vst [vmem:[%s640_s26 + $0xf8] sm:$0xff] %v349_v4 }
  0xaa PF: > { %s13_s14 = sadd.s32 1, %s530_s14   ;;  %s707_s12 = smov %s526_s13 }
  0xab   : > { %p10_p5 = scmp.ge.s32.totalorder %s13_s14, 4   ;;  %s708_s13 = smov %s710_s15 }
  0xad   :  { %12 = sbr.rel (!%p10_p5) target bundleno = 2 (0x2), region = 62 }

// kernel: convblock_forward.2
= control target key start
LH: loop header
LB: loop body
LE: loop exit
PB: predicated region body
PF: predicated region fallthrough
CT: control target
= control target key end

     0   :  { %s5789_s18 = smov 0   ;;  %s5791_s19 = smov 0   ;;  %s12340_s0 = inlined_call_operand.vmem [shape: f32[2,18,18,18,4], index: 0, kind: input, shape index: {}, may-alias: {0,1,2}]   ;;  %s12341_s1 = inlined_call_operand.vmem [shape: f32[2,18,18,18,4], index: 1, kind: input, shape index: {}, may-alias: {0,1,2}]   ;;  %s12342_s2 = inlined_call_operand.vmem [shape: f32[2,18,18,18,4], index: 2, kind: input, shape index: {}, may-alias: {0,1,2}]   ;;  %s12343_s3 = inlined_call_operand.vmem [shape: f32[108,128], index: 3, kind: input, shape index: {}]   ;;  %s12344_s4 = inlined_call_operand.vmem [shape: f32[2,8,4096], index: 4, kind: output, shape index: {0}]   ;;  %s12345_s5 = inlined_call_operand.vmem [shape: f32[2,16,2,128], index: 5, kind: output, shape index: {1}]  }
   0x1   :  { %s5793_s20 = smov 0   ;;  %s5795_s21 = smov 0  }
   0x2   :  { %s5797_s22 = smov 0  }
   0x3 LB: > { %s25_s23 = sadd.s32 1, %s5732_s20  ;;  %s28_s24 = sadd.s32 1, %s5736_s21  ;;  %s5740_s22 = sphi %s5797_s22, %s16_s22   ;;  %s5736_s21 = sphi %s5795_s21, %s14341_s21   ;;  %s5732_s20 = sphi %s5793_s20, %s14340_s20   ;;  %s5728_s19 = sphi %s5791_s19, %s14339_s19   ;;  %s5724_s18 = sphi %s5789_s18, %s14338_s18  }
   0x4   : > { %p26_p0 = scmp.ge.s32.totalorder %s25_s23, 16  ;;  %p5340_p1 = scmp.ge.s32.totalorder %s5740_s22, 1 }
   0x5   : > { %p252_p2 = scmp.lt.s32.totalorder %s5740_s22, 33 }
   0x6   : > { %s14343_s23 = smov (%p26_p0, %s25_s23), 0  ;;  %s14345_s24 = smov (!%p26_p0, %s28_s24), %s5736_s21 }
   0x7   : > { %p253_p3 = pnand %p5340_p1, %p252_p2  ;;  %p30_p4 = scmp.ge.s32.totalorder %s14345_s24, 2 }
   0x9   : > { %s14347_s24 = smov (%p30_p4, %s14345_s24), 0  ;;  %256 = sbr.rel (%p253_p3) target bundleno = 2180 (0x884), region = 36 }
  0x10   : > { %p316_p5 = scmp.lt.s32.totalorder %s5728_s19, 1  ;;  %p318_p6 = scmp.lt.s32.totalorder %s5724_s18, 17  ;;  %vm575_vm0 = vcmask 1046528   ;;  %vm656_vm1 = vcmask 1045504   ;;  %vm2703_vm2 = vcmask 31744   ;;  %vm2736_vm3 = vcmask 64512  }
  0x11   : > { %s5742_s8 = smov 4   ;;  %s5743_s9 = smov 8   ;;  %vm2769_vm4 = vcmask 97280   ;;  %vm12567_vm5 = vcmask 130048   ;;  %vm2835_vm6 = vcmask 162816   ;;  %vm2868_vm7 = vcmask 195584  }
  0x12   : > { %s14349_s19 = smov (!%p316_p5, %s5728_s19), 1  ;;  %s5744_s10 = smov 12   ;;  %vm2901_vm8 = vcmask 228352   ;;  %vm2934_vm9 = vcmask 261120   ;;  %vm2967_vm10 = vcmask 293888   ;;  %vm3000_vm11 = vcmask 326656  }
  0x13   : > { %s319_s25 = scalar_select %p318_p6, %s5724_s18, 17  ;;  %vm3033_vm12 = vcmask 359424   ;;  %vm12566_vm13 = vcmask 392192   ;;  %vm12565_vm14 = vcmask 424960   ;;  %vm12492_vm15 = vcmask 457728  }
  0x14   : > { %s5826_s26 = smul.u32 972, %s14349_s19  ;;  %s5745_s11 = smov 16  }
  0x15   : > { %s5550_s27 = smul.u32 54, %s319_s25  ;;  %s5746_s12 = smov 20  }
  0x16   : > { %s5747_s13 = smov 24   ;;  %s5748_s14 = smov 28  }
  0x17   : > { %s322_s28 = sadd.s32 %s5826_s26, %s5550_s27  ;;  %s5749_s15 = smov 32  }
  0x18   : > { %s5341_s29 = sshll.u32 %s322_s28, 3  ;;  %s325_s16 = sadd.s32 1, %s5724_s18 }
  0x19   : > { %s5832_s7 = scalar_lea.vmem %s12340_s0, %s5341_s29  ;;  %p328_p7 = scmp.lt.s32.totalorder %s325_s16, 17 }
  0x1a   : > { %v5835_v0 = vld [vmem:[%s5832_s7 + $0x18] sm:$0xff]  ;;  %v5838_v1 = vld [vmem:[%s5832_s7 + $0x20] sm:$0xff]  ;;  %v5846_v5 = vld [vmem:[%s5832_s7 + $0x8] sm:$0xff]  ;;  %s5750_s6 = smov 36   ;;  %s5755_s28 = smov 56  }
  0x1b   : > { %v5841_v2 = vld [vmem:[%s5832_s7] sm:$0xff]  ;;  %v581_v3 = vrot.slane %v5835_v0, 1  ;;  %v582_v4 = vrot.slane %v5838_v1, 1  ;;  %v5850_v7 = vld [vmem:[%s5832_s7 + $0x28] sm:$0x3]  ;;  %v577_v8 = vrot.slane %v5846_v5, 1 }
  0x1c   : > { %v576_v6 = vrot.slane %v5841_v2, 1  ;;  %v584_v9 = vrot.slane %v5850_v7, 1  ;;  %v5855_v10 = vld [vmem:[%s5832_s7 + $0x10] sm:$0x3]  ;;  %v5858_v11 = vld [vmem:[%s5832_s7 + $0x38] sm:$0xff]  ;;  %v5888_v24 = vld [vmem:[%s5832_s7 + $0x48] sm:$0xff] }
  0x1d   : > { %v5861_v12 = vsel %vm575_vm0, %v581_v3, %v582_v4  ;;  %v579_v13 = vrot.slane %v5855_v10, 1  ;;  %v5865_v14 = vld [vmem:[%s5832_s7 + $0x40] sm:$0x3]  ;;  %v5868_v15 = vld [vmem:[%s5832_s7 + $0x30] sm:$0xff]  ;;  %v587_v18 = vrot.slane %v5858_v11, 1  ;;  %v591_v29 = vrot.slane %v5888_v24, 1 }
  0x1e   : > { %1267 = vrot.lane.b32.xlu1 %v5861_v12, %s5742_s8  ;;  %v578_v16 = vsel %vm575_vm0, %v576_v6, %v577_v8  ;;  %v5875_v17 = vsel %vm575_vm0, %v582_v4, %v584_v9  ;;  %v589_v19 = vrot.slane %v5865_v14, 1  ;;  %v586_v21 = vrot.slane %v5868_v15, 1  ;;  %v5882_v22 = vld [vmem:[%s5832_s7 + $0x50] sm:$0xff]  ;;  %v5885_v23 = vld [vmem:[%s5832_s7 + $0x58] sm:$0x3]  ;;  %v5903_v30 = vld [vmem:[%s5832_s7 + $0x68] sm:$0xff] }
  0x1f   : > { %1263 = vrot.lane.b32.xlu0 %v578_v16, %s5742_s8  ;;  %v580_v20 = vsel %vm575_vm0, %v577_v8, %v579_v13  ;;  %v592_v26 = vrot.slane %v5882_v22, 1  ;;  %v594_v27 = vrot.slane %v5885_v23, 1  ;;  %v5906_v31 = vld [vmem:[%s5832_s7 + $0x70] sm:$0x3]  ;;  %v5909_v32 = vld [vmem:[%s5832_s7 + $0x60] sm:$0xff]  ;;  %v597_v34 = vrot.slane %v5903_v30, 1 }
  0x20   : > { %v5894_v25 = vsel %vm575_vm0, %v587_v18, %v589_v19  ;;  %v5899_v28 = vsel %vm575_vm0, %v586_v21, %v587_v18  ;;  %v599_v35 = vrot.slane %v5906_v31, 1  ;;  %v596_v37 = vrot.slane %v5909_v32, 1  ;;  %v5925_v38 = vld [vmem:[%s5832_s7 + $0x80] sm:$0xff]  ;;  %v5928_v39 = vld [vmem:[%s5832_s7 + $0x88] sm:$0x3]  ;;  %v5931_v40 = vld [vmem:[%s5832_s7 + $0x78] sm:$0xff] }
  0x21   : > { %v5916_v33 = vsel %vm575_vm0, %v592_v26, %v594_v27  ;;  %v5921_v36 = vsel %vm575_vm0, %v591_v29, %v592_v26  ;;  %v602_v42 = vrot.slane %v5925_v38, 1  ;;  %v604_v43 = vrot.slane %v5928_v39, 1  ;;  %v5947_v46 = vld [vmem:[%s5832_s7 + $0x98] sm:$0xff]  ;;  %v5950_v47 = vld [vmem:[%s5832_s7 + $0xa0] sm:$0x3]  ;;  %v5953_v48 = vld [vmem:[%s5832_s7 + $0x90] sm:$0xff] }
  0x22   : > { %1269 = vrot.lane.b32.xlu1 %v5875_v17, %s5742_s8  ;;  %12568 = vst [vmem:[#allocation2_spill] sm:$0xff] %v5921_v36  ;;  %v5938_v41 = vsel %vm575_vm0, %v597_v34, %v599_v35  ;;  %v5943_v44 = vsel %vm575_vm0, %v596_v37, %v597_v34  ;;  %v601_v45 = vrot.slane %v5931_v40, 1  ;;  %v607_v50 = vrot.slane %v5947_v46, 1  ;;  %v5969_v54 = vld [vmem:[%s5832_s7 + $0xb0] sm:$0xff]  ;;  %v5972_v55 = vld [vmem:[%s5832_s7 + $0xb8] sm:$0x3] }
  0x23   : > { %1265 = vrot.lane.b32.xlu0 %v580_v20, %s5742_s8  ;;  %12569 = vst [vmem:[#allocation3_spill] sm:$0xff] %v5938_v41  ;;  %12570 = vst [vmem:[#allocation4_spill] sm:$0xff] %v5943_v44  ;;  %v5960_v49 = vsel %vm575_vm0, %v602_v42, %v604_v43  ;;  %v609_v51 = vrot.slane %v5950_v47, 1  ;;  %v606_v53 = vrot.slane %v5953_v48, 1  ;;  %v5975_v56 = vld [vmem:[%s5832_s7 + $0xa8] sm:$0xff]  ;;  %v612_v58 = vrot.slane %v5969_v54, 1 }
  0x24   : > { %12571 = vst [vmem:[#allocation5_spill] sm:$0xff] %v5960_v49  ;;  %v5965_v52 = vsel %vm575_vm0, %v601_v45, %v602_v42  ;;  %v614_v59 = vrot.slane %v5972_v55, 1  ;;  %v611_v61 = vrot.slane %v5975_v56, 1  ;;  %v5991_v62 = vld [vmem:[%s5832_s7 + $0xc8] sm:$0xff]  ;;  %v5994_v63 = vld [vmem:[%s5832_s7 + $0xd0] sm:$0x3] }
  0x25   : > { %12572 = vst [vmem:[#allocation6_spill] sm:$0xff] %v5965_v52  ;;  %v5982_v57 = vsel %vm575_vm0, %v607_v50, %v609_v51  ;;  %v5987_v60 = vsel %vm575_vm0, %v606_v53, %v607_v50  ;;  %v5997_v3 = vld [vmem:[%s5832_s7 + $0xc0] sm:$0xff]  ;;  %v617_v6 = vrot.slane %v5991_v62, 1  ;;  %v619_v8 = vrot.slane %v5994_v63, 1  ;;  %v6016_v18 = vld [vmem:[%s5832_s7 + $0xe8] sm:$0x3] }
  0x26   : > { %1273 = vrot.lane.b32.xlu1 %v5894_v25, %s5742_s8  ;;  %12573 = vst [vmem:[#allocation7_spill] sm:$0xff] %v5982_v57  ;;  %12574 = vst [vmem:[#allocation8_spill] sm:$0xff] %v5987_v60  ;;  %v6004_v4 = vsel %vm575_vm0, %v612_v58, %v614_v59  ;;  %v6009_v9 = vsel %vm575_vm0, %v611_v61, %v612_v58  ;;  %v616_v13 = vrot.slane %v5997_v3, 1  ;;  %v6013_v16 = vld [vmem:[%s5832_s7 + $0xe0] sm:$0xff]  ;;  %v6019_v19 = vld [vmem:[%s5832_s7 + $0xd8] sm:$0xff]  ;;  %v624_v26 = vrot.slane %v6016_v18, 1 }
  0x27   : > { %1271 = vrot.lane.b32.xlu0 %v5899_v28, %s5742_s8  ;;  %12575 = vst [vmem:[#allocation9_spill] sm:$0xff] %v6004_v4  ;;  %12576 = vst [vmem:[#allocation10_spill] sm:$0xff] %v6009_v9  ;;  %v6026_v20 = vsel %vm575_vm0, %v617_v6, %v619_v8  ;;  %v622_v21 = vrot.slane %v6013_v16, 1  ;;  %v621_v29 = vrot.slane %v6019_v19, 1  ;;  %v6035_v34 = vld [vmem:[%s5832_s7 + $0xf8] sm:$0xff]  ;;  %v6041_v37 = vld [vmem:[%s5832_s7 + $0xf0] sm:$0xff] }
  0x28   : > { %12577 = vst [vmem:[#allocation11_spill] sm:$0xff] %v6026_v20  ;;  %v6031_v27 = vsel %vm575_vm0, %v616_v13, %v617_v6  ;;  %v6038_v35 = vld [vmem:[%s5832_s7 + $0x100] sm:$0x3]  ;;  %v627_v43 = vrot.slane %v6035_v34, 1  ;;  %v626_v51 = vrot.slane %v6041_v37, 1  ;;  %v6057_v53 = vld [vmem:[%s5832_s7 + $0x110] sm:$0xff] }
  0x29   : > { %12578 = vst [vmem:[#allocation12_spill] sm:$0xff] %v6031_v27  ;;  %v6048_v42 = vsel %vm575_vm0, %v622_v21, %v624_v26  ;;  %v629_v45 = vrot.slane %v6038_v35, 1  ;;  %v6053_v50 = vsel %vm575_vm0, %v621_v29, %v622_v21  ;;  %v6060_v58 = vld [vmem:[%s5832_s7 + $0x118] sm:$0x3]  ;;  %v6063_v59 = vld [vmem:[%s5832_s7 + $0x108] sm:$0xff]  ;;  %v632_v6 = vrot.slane %v6057_v53, 1 }
  0x2a   : > { %1277 = vrot.lane.b32.xlu1 %v5916_v33, %s5742_s8  ;;  %12579 = vst [vmem:[#allocation13_spill] sm:$0xff] %v6048_v42  ;;  %12580 = vst [vmem:[#allocation14_spill] sm:$0xff] %v6053_v50  ;;  %v634_v8 = vrot.slane %v6060_v58, 1  ;;  %v6075_v13 = vsel %vm575_vm0, %v626_v51, %v627_v43  ;;  %v631_v21 = vrot.slane %v6063_v59, 1  ;;  %v6079_v26 = vld [vmem:[%s5832_s7 + $0x128] sm:$0xff]  ;;  %s14351_s16 = smov (!%p328_p7, %s325_s16), 17 }
  0x2b   : > { %1275 = vrot.lane.b32.xlu0 %v5921_v36, %s5742_s8  ;;  %v6070_v61 = vsel %vm575_vm0, %v627_v43, %v629_v45  ;;  %12582 = vst [vmem:[#allocation16_spill] sm:$0xff] %v6075_v13  ;;  %v6082_v29 = vld [vmem:[%s5832_s7 + $0x130] sm:$0x3]  ;;  %v637_v43 = vrot.slane %v6079_v26, 1  ;;  %s5552_s17 = smul.u32 54, %s14351_s16  ;;  %s5751_s16 = smov 40  }
  0x2c   : > { %12581 = vst [vmem:[#allocation15_spill] sm:$0xff] %v6070_v61  ;;  %v6092_v45 = vsel %vm575_vm0, %v632_v6, %v634_v8  ;;  %v639_v51 = vrot.slane %v6082_v29, 1  ;;  %s5756_s29 = smov 60   ;;  %p359_p10 = scmp.lt.s32.totalorder %s5724_s18, 15 }
  0x2d   : > { %12583 = vst [vmem:[#allocation17_spill] sm:$0xff] %v6092_v45  ;;  %s332_s25 = sadd.s32 %s5552_s17, %s5826_s26  ;;  %s5752_s17 = smov 44  }
  0x2e   : > { %1281 = vrot.lane.b32.xlu1 %v5938_v41, %s5742_s8  ;;  %v6114_v8 = vsel %vm575_vm0, %v637_v43, %v639_v51  ;;  %s5342_s27 = sshll.u32 %s332_s25, 3  ;;  %s5753_s25 = smov 48  }
  0x2f   : > { %1279 = vrot.lane.b32.xlu0 %v5943_v44, %s5742_s8  ;;  %12585 = vst [vmem:[#allocation19_spill] sm:$0xff] %v6114_v8  ;;  %v6148_v44 = vld [vmem:[%s5832_s7 + $0x178] sm:$0x3]  ;;  %s7205_s30 = scalar_lea.vmem %s12341_s1, %s5342_s27  ;;  %s5754_s27 = smov 52  }
  0x32   : > { %1285 = vrot.lane.b32.xlu1 %v5960_v49, %s5742_s8  ;;  %v6145_v49 = vld [vmem:[%s5832_s7 + $0x170] sm:$0xff] }
  0x33   : > { %1283 = vrot.lane.b32.xlu0 %v5965_v52, %s5742_s8 }
  0x36   : > { %1289 = vrot.lane.b32.xlu1 %v5982_v57, %s5742_s8 }
  0x37   : > { %1287 = vrot.lane.b32.xlu0 %v5987_v60, %s5742_s8  ;;  %v6123_v60 = vld [vmem:[%s5832_s7 + $0x158] sm:$0xff] }
  0x3a   : > { %1293 = vrot.lane.b32.xlu1 %v6004_v4, %s5742_s8 }
  0x3b   : > { %1291 = vrot.lane.b32.xlu0 %v6009_v9, %s5742_s8 }
  0x3e   : > { %1297 = vrot.lane.b32.xlu1 %v6026_v20, %s5742_s8  ;;  %v6101_v20 = vld [vmem:[%s5832_s7 + $0x140] sm:$0xff] }
  0x3f   : > { %1295 = vrot.lane.b32.xlu0 %v6031_v27, %s5742_s8 }
  0x42   : > { %1301 = vrot.lane.b32.xlu1 %v6048_v42, %s5742_s8  ;;  %v6097_v42 = vsel %vm575_vm0, %v631_v21, %v632_v6  ;;  %v642_v6 = vrot.slane %v6101_v20, 1 }
  0x43   : > { %1299 = vrot.lane.b32.xlu0 %v6053_v50, %s5742_s8  ;;  %v6085_v50 = vld [vmem:[%s5832_s7 + $0x120] sm:$0xff]  ;;  %12584 = vst [vmem:[#allocation18_spill] sm:$0xff] %v6097_v42 }
  0x44   : > { %v636_v27 = vrot.slane %v6085_v50, 1 }
  0x46   : > { %1305 = vrot.lane.b32.xlu1 %v6070_v61, %s5742_s8  ;;  %v6104_v61 = vld [vmem:[%s5832_s7 + $0x148] sm:$0x3]  ;;  %v6119_v9 = vsel %vm575_vm0, %v636_v27, %v637_v43  ;;  %v647_v27 = vrot.slane %v6123_v60, 1 }
  0x47   : > { %1303 = vrot.lane.b32.xlu0 %v6075_v13, %s5742_s8  ;;  %v6107_v13 = vld [vmem:[%s5832_s7 + $0x138] sm:$0xff]  ;;  %v644_v21 = vrot.slane %v6104_v61, 1  ;;  %12586 = vst [vmem:[#allocation20_spill] sm:$0xff] %v6119_v9 }
  0x48   : > { %v641_v4 = vrot.slane %v6107_v13, 1 }
  0x49   : > { %v6136_v51 = vsel %vm575_vm0, %v642_v6, %v644_v21 }
  0x4a   : > { %1309 = vrot.lane.b32.xlu1 %v6092_v45, %s5742_s8  ;;  %v6126_v45 = vld [vmem:[%s5832_s7 + $0x160] sm:$0x3]  ;;  %12587 = vst [vmem:[#allocation21_spill] sm:$0xff] %v6136_v51  ;;  %v6141_v57 = vsel %vm575_vm0, %v641_v4, %v642_v6  ;;  %v652_v4 = vrot.slane %v6145_v49, 1  ;;  %v654_v6 = vrot.slane %v6148_v44, 1 }
  0x4b   : > { %1307 = vrot.lane.b32.xlu0 %v6097_v42, %s5742_s8  ;;  %v6129_v42 = vld [vmem:[%s5832_s7 + $0x150] sm:$0xff]  ;;  %v649_v43 = vrot.slane %v6126_v45, 1  ;;  %12588 = vst [vmem:[#allocation22_spill] sm:$0xff] %v6141_v57 }
  0x4c   : > { %v646_v52 = vrot.slane %v6129_v42, 1 }
  0x4d   : > { %v6158_v21 = vsel %vm575_vm0, %v647_v27, %v649_v43  ;;  %v658_v43 = vrot.slane %v5846_v5, 2  ;;  %v665_v5 = vrot.slane %v5850_v7, 2  ;;  %v667_v7 = vrot.slane %v5868_v15, 2 }
  0x4e   : > { %1313 = vrot.lane.b32.xlu1 %v6114_v8, %s5742_s8  ;;  %v6151_v8 = vld [vmem:[%s5832_s7 + $0x168] sm:$0xff]  ;;  %12589 = vst [vmem:[#allocation23_spill] sm:$0xff] %v6158_v21 }
  0x4f   : > { %1311 = vrot.lane.b32.xlu0 %v6119_v9, %s5742_s8  ;;  %v6163_v9 = vsel %vm575_vm0, %v646_v52, %v647_v27  ;;  %v651_v41 = vrot.slane %v6151_v8, 1  ;;  %v657_v52 = vrot.slane %v5841_v2, 2 }
  0x50   : > { %12590 = vst [vmem:[#allocation24_spill] sm:$0xff] %v6163_v9 }
  0x51   : > { %v6176_v36 = vsel %vm575_vm0, %v651_v41, %v652_v4  ;;  %v662_v41 = vrot.slane %v5835_v0, 2 }
  0x52   : > { %1317 = vrot.lane.b32.xlu1 %v6136_v51, %s5742_s8  ;;  %v660_v51 = vrot.slane %v5855_v10, 2  ;;  %12591 = vst [vmem:[#allocation25_spill] sm:$0xff] %v6176_v36  ;;  %v659_v10 = vsel %vm656_vm1, %v657_v52, %v658_v43  ;;  %v673_v52 = vrot.slane %v5882_v22, 2 }
  0x53   : > { %1315 = vrot.lane.b32.xlu0 %v6141_v57, %s5742_s8  ;;  %v6171_v57 = vsel %vm575_vm0, %v652_v4, %v654_v6  ;;  %v663_v6 = vrot.slane %v5838_v1, 2  ;;  %v668_v4 = vrot.slane %v5858_v11, 2 }
  0x54   : > { %v661_v27 = vsel %vm656_vm1, %v658_v43, %v660_v51  ;;  %v670_v51 = vrot.slane %v5865_v14, 2 }
  0x55   : > { %v6191_v2 = vsel %vm656_vm1, %v663_v6, %v665_v5  ;;  %v6209_v14 = vsel %vm656_vm1, %v667_v7, %v668_v4  ;;  %v683_v7 = vrot.slane %v5925_v38, 2 }
  0x56   : > { %1321 = vrot.lane.b32.xlu1 %v6158_v21, %s5742_s8  ;;  %v6204_v43 = vsel %vm656_vm1, %v668_v4, %v670_v51  ;;  %v677_v4 = vrot.slane %v5909_v32, 2 }
  0x57   : > { %1319 = vrot.lane.b32.xlu0 %v6163_v9, %s5742_s8 }
  0x5a   : > { %1325 = vrot.lane.b32.xlu1 %v6171_v57, %s5742_s8 }
  0x5b   : > { %1323 = vrot.lane.b32.xlu0 %v6176_v36, %s5742_s8  ;;  %v6196_v36 = vsel %vm656_vm1, %v662_v41, %v663_v6  ;;  %v672_v6 = vrot.slane %v5888_v24, 2  ;;  %v680_v41 = vrot.slane %v5906_v31, 2 }
  0x5e   : > { %1361 = vrot.lane.b32.xlu1 %v661_v27, %s5743_s9  ;;  %v675_v27 = vrot.slane %v5885_v23, 2  ;;  %v6222_v23 = vsel %vm656_vm1, %v672_v6, %v673_v52 }
  0x5f   : > { %1359 = vrot.lane.b32.xlu0 %v659_v10, %s5743_s9  ;;  %v678_v10 = vrot.slane %v5903_v30, 2  ;;  %12592 = vst [vmem:[#allocation26_spill] sm:$0xff] %v6222_v23 }
  0x60   : > { %v6217_v5 = vsel %vm656_vm1, %v673_v52, %v675_v27  ;;  %v685_v27 = vrot.slane %v5928_v39, 2  ;;  %v682_v52 = vrot.slane %v5931_v40, 2 }
  0x61   : > { %v6230_v51 = vsel %vm656_vm1, %v678_v10, %v680_v41  ;;  %v6235_v31 = vsel %vm656_vm1, %v677_v4, %v678_v10  ;;  %v688_v41 = vrot.slane %v5947_v46, 2  ;;  %v687_v10 = vrot.slane %v5953_v48, 2 }
  0x62   : > { %1365 = vrot.lane.b32.xlu1 %v6191_v2, %s5743_s9  ;;  %12593 = vst [vmem:[#allocation27_spill] sm:$0xff] %v6235_v31  ;;  %v6243_v6 = vsel %vm656_vm1, %v683_v7, %v685_v27  ;;  %v6248_v39 = vsel %vm656_vm1, %v682_v52, %v683_v7  ;;  %v693_v27 = vrot.slane %v5969_v54, 2  ;;  %v692_v7 = vrot.slane %v5975_v56, 2 }
  0x63   : > { %1363 = vrot.lane.b32.xlu0 %v6196_v36, %s5743_s9  ;;  %12594 = vst [vmem:[#allocation28_spill] sm:$0xff] %v6248_v39 }
  0x66   : > { %1369 = vrot.lane.b32.xlu1 %v6204_v43, %s5743_s9 }
  0x67   : > { %1367 = vrot.lane.b32.xlu0 %v6209_v14, %s5743_s9 }
  0x6a   : > { %1373 = vrot.lane.b32.xlu1 %v6217_v5, %s5743_s9 }
  0x6b   : > { %1371 = vrot.lane.b32.xlu0 %v6222_v23, %s5743_s9  ;;  %v690_v23 = vrot.slane %v5950_v47, 2  ;;  %v6261_v47 = vsel %vm656_vm1, %v687_v10, %v688_v41 }
  0x6c   : > { %12595 = vst [vmem:[#allocation29_spill] sm:$0xff] %v6261_v47 }
  0x6d   : > { %v6256_v4 = vsel %vm656_vm1, %v688_v41, %v690_v23  ;;  %v698_v23 = vrot.slane %v5991_v62, 2  ;;  %v697_v41 = vrot.slane %v5997_v3, 2 }
  0x6e   : > { %1377 = vrot.lane.b32.xlu1 %v6230_v51, %s5743_s9 }
  0x6f   : > { %1375 = vrot.lane.b32.xlu0 %v6235_v31, %s5743_s9  ;;  %v695_v31 = vrot.slane %v5972_v55, 2  ;;  %v6274_v55 = vsel %vm656_vm1, %v692_v7, %v693_v27 }
  0x70   : > { %12596 = vst [vmem:[#allocation30_spill] sm:$0xff] %v6274_v55 }
  0x71   : > { %v6269_v52 = vsel %vm656_vm1, %v693_v27, %v695_v31  ;;  %v703_v31 = vrot.slane %v6013_v16, 2  ;;  %v702_v27 = vrot.slane %v6019_v19, 2 }
  0x72   : > { %1381 = vrot.lane.b32.xlu1 %v6243_v6, %s5743_s9 }
  0x73   : > { %1379 = vrot.lane.b32.xlu0 %v6248_v39, %s5743_s9  ;;  %v700_v39 = vrot.slane %v5994_v63, 2  ;;  %v6287_v63 = vsel %vm656_vm1, %v697_v41, %v698_v23 }
  0x74   : > { %12597 = vst [vmem:[#allocation31_spill] sm:$0xff] %v6287_v63 }
  0x75   : > { %v6282_v10 = vsel %vm656_vm1, %v698_v23, %v700_v39  ;;  %v708_v39 = vrot.slane %v6035_v34, 2  ;;  %v707_v23 = vrot.slane %v6041_v37, 2 }
  0x76   : > { %1385 = vrot.lane.b32.xlu1 %v6256_v4, %s5743_s9 }
  0x77   : > { %1383 = vrot.lane.b32.xlu0 %v6261_v47, %s5743_s9  ;;  %v705_v47 = vrot.slane %v6016_v18, 2  ;;  %v6300_v18 = vsel %vm656_vm1, %v702_v27, %v703_v31 }
  0x78   : > { %12599 = vst [vmem:[#allocation33_spill] sm:$0xff] %v6300_v18 }
  0x79   : > { %v6295_v7 = vsel %vm656_vm1, %v703_v31, %v705_v47  ;;  %v713_v47 = vrot.slane %v6057_v53, 2  ;;  %v712_v31 = vrot.slane %v6063_v59, 2 }
  0x7a   : > { %1389 = vrot.lane.b32.xlu1 %v6269_v52, %s5743_s9  ;;  %12598 = vst [vmem:[#allocation32_spill] sm:$0xff] %v6295_v7 }
  0x7b   : > { %1387 = vrot.lane.b32.xlu0 %v6274_v55, %s5743_s9  ;;  %v710_v55 = vrot.slane %v6038_v35, 2  ;;  %v6313_v35 = vsel %vm656_vm1, %v707_v23, %v708_v39 }
  0x7c   : > { %12600 = vst [vmem:[#allocation34_spill] sm:$0xff] %v6313_v35 }
  0x7d   : > { %v6308_v41 = vsel %vm656_vm1, %v708_v39, %v710_v55  ;;  %v718_v55 = vrot.slane %v6079_v26, 2  ;;  %v717_v39 = vrot.slane %v6085_v50, 2 }
  0x7e   : > { %1393 = vrot.lane.b32.xlu1 %v6282_v10, %s5743_s9 }
  0x7f   : > { %1391 = vrot.lane.b32.xlu0 %v6287_v63, %s5743_s9  ;;  %v715_v63 = vrot.slane %v6060_v58, 2  ;;  %v6326_v58 = vsel %vm656_vm1, %v712_v31, %v713_v47 }
  0x80   : > { %12602 = vst [vmem:[#allocation36_spill] sm:$0xff] %v6326_v58 }
  0x81   : > { %v6321_v27 = vsel %vm656_vm1, %v713_v47, %v715_v63  ;;  %v723_v63 = vrot.slane %v6101_v20, 2  ;;  %v722_v47 = vrot.slane %v6107_v13, 2 }
  0x82   : > { %1397 = vrot.lane.b32.xlu1 %v6295_v7, %s5743_s9  ;;  %12601 = vst [vmem:[#allocation35_spill] sm:$0xff] %v6321_v27 }
  0x83   : > { %1395 = vrot.lane.b32.xlu0 %v6300_v18, %s5743_s9  ;;  %v720_v18 = vrot.slane %v6082_v29, 2  ;;  %v6339_v29 = vsel %vm656_vm1, %v717_v39, %v718_v55 }
  0x84   : > { %12603 = vst [vmem:[#allocation37_spill] sm:$0xff] %v6339_v29 }
  0x85   : > { %v6334_v23 = vsel %vm656_vm1, %v718_v55, %v720_v18  ;;  %v728_v18 = vrot.slane %v6123_v60, 2  ;;  %v727_v55 = vrot.slane %v6129_v42, 2 }
  0x86   : > { %1401 = vrot.lane.b32.xlu1 %v6308_v41, %s5743_s9 }
  0x87   : > { %1399 = vrot.lane.b32.xlu0 %v6313_v35, %s5743_s9  ;;  %v725_v35 = vrot.slane %v6104_v61, 2  ;;  %v6354_v61 = vsel %vm656_vm1, %v722_v47, %v723_v63  ;;  %v732_v47 = vrot.slane %v6151_v8, 2 }
  0x88   : > { %12606 = vst [vmem:[#allocation40_spill] sm:$0xff] %v6354_v61 }
  0x89   : > { %v6347_v31 = vsel %vm656_vm1, %v723_v63, %v725_v35  ;;  %v6371_v63 = vsel %vm656_vm1, %v727_v55, %v728_v18 }
  0x8a   : > { %1405 = vrot.lane.b32.xlu1 %v6321_v27, %s5743_s9  ;;  %12604 = vst [vmem:[#allocation38_spill] sm:$0xff] %v6347_v31  ;;  %12609 = vst [vmem:[#allocation43_spill] sm:$0xff] %v6371_v63 }
  0x8b   : > { %1403 = vrot.lane.b32.xlu0 %v6326_v58, %s5743_s9  ;;  %v730_v58 = vrot.slane %v6126_v45, 2  ;;  %v733_v45 = vrot.slane %v6145_v49, 2 }
  0x8d   : > { %v6364_v35 = vsel %vm656_vm1, %v728_v18, %v730_v58 }
  0x8e   : > { %1409 = vrot.lane.b32.xlu1 %v6334_v23, %s5743_s9 }
  0x8f   : > { %1407 = vrot.lane.b32.xlu0 %v6339_v29, %s5743_s9 }
  0x90   : > { %v6351_v27 = vpop.permute.xlu1 %1267 }
  0x91   : > { %12605 = vst [vmem:[#allocation39_spill] sm:$0xff] %v6351_v27  ;;  %v6357_v39 = vpop.permute.xlu0 %1263  ;;  %v735_v27 = vrot.slane %v6148_v44, 2  ;;  %v6386_v44 = vsel %vm656_vm1, %v732_v47, %v733_v45 }
  0x92   : > { %12607 = vst [vmem:[#allocation41_spill] sm:$0xff] %v6357_v39  ;;  %1413 = vrot.lane.b32.xlu1 %v6347_v31, %s5743_s9 }
  0x93   : > { %1411 = vrot.lane.b32.xlu0 %v6354_v61, %s5743_s9  ;;  %v6381_v58 = vsel %vm656_vm1, %v733_v45, %v735_v27 }
  0x94   : > { %v6368_v29 = vpop.permute.xlu1 %1269 }
  0x95   : > { %12608 = vst [vmem:[#allocation42_spill] sm:$0xff] %v6368_v29  ;;  %v6374_v39 = vpop.permute.xlu0 %1265 }
  0x96   : > { %12610 = vst [vmem:[#allocation44_spill] sm:$0xff] %v6374_v39  ;;  %1417 = vrot.lane.b32.xlu1 %v6364_v35, %s5743_s9 }
  0x97   : > { %1415 = vrot.lane.b32.xlu0 %v6371_v63, %s5743_s9 }
  0x98   : > { %v6383_v61 = vpop.permute.xlu1 %1273 }
  0x99   : > { %12611 = vst [vmem:[#allocation45_spill] sm:$0xff] %v6383_v61  ;;  %v6388_v18 = vpop.permute.xlu0 %1271 }
  0x9a   : > { %12612 = vst [vmem:[#allocation46_spill] sm:$0xff] %v6388_v18  ;;  %1421 = vrot.lane.b32.xlu1 %v6381_v58, %s5743_s9 }
  0x9b   : > { %1419 = vrot.lane.b32.xlu0 %v6386_v44, %s5743_s9 }
  0x9c   : > { %v6394_v55 = vpop.permute.xlu1 %1277 }
  0x9d   : > { %12613 = vst [vmem:[#allocation47_spill] sm:$0xff] %v6394_v55  ;;  %v6396_v39 = vpop.permute.xlu0 %1275 }
  0x9e   : > { %12614 = vst [vmem:[#allocation48_spill] sm:$0xff] %v6396_v39  ;;  %1457 = vrot.lane.b32.xlu1 %v5838_v1, %s5744_s10 }
  0x9f   : > { %1455 = vrot.lane.b32.xlu0 %v5835_v0, %s5744_s10 }
  0xa0   : > { %v6402_v27 = vpop.permute.xlu1 %1281 }
  0xa1   : > { %12615 = vst [vmem:[#allocation49_spill] sm:$0xff] %v6402_v27  ;;  %v6404_v45 = vpop.permute.xlu0 %1279 }
  0xa2   : > { %12616 = vst [vmem:[#allocation50_spill] sm:$0xff] %v6404_v45  ;;  %1461 = vrot.lane.b32.xlu1 %v5858_v11, %s5744_s10 }
  0xa3   : > { %1459 = vrot.lane.b32.xlu0 %v5868_v15, %s5744_s10 }
  0xa4   : > { %v6410_v47 = vpop.permute.xlu1 %1285 }
  0xa5   : > { %12617 = vst [vmem:[#allocation51_spill] sm:$0xff] %v6410_v47  ;;  %v6412_v39 = vpop.permute.xlu0 %1283 }
  0xa6   : > { %12618 = vst [vmem:[#allocation52_spill] sm:$0xff] %v6412_v39  ;;  %1465 = vrot.lane.b32.xlu1 %v5882_v22, %s5744_s10 }
  0xa7   : > { %1463 = vrot.lane.b32.xlu0 %v5888_v24, %s5744_s10 }
  0xa8   : > { %v6418_v0 = vpop.permute.xlu1 %1289 }
  0xa9   : > { %12619 = vst [vmem:[#allocation53_spill] sm:$0xff] %v6418_v0  ;;  %v6420_v1 = vpop.permute.xlu0 %1287 }
  0xaa   : > { %12620 = vst [vmem:[#allocation54_spill] sm:$0xff] %v6420_v1  ;;  %1469 = vrot.lane.b32.xlu1 %v5903_v30, %s5744_s10 }
  0xab   : > { %1467 = vrot.lane.b32.xlu0 %v5909_v32, %s5744_s10 }
  0xac   : > { %v6426_v45 = vpop.permute.xlu1 %1293 }
  0xad   : > { %12621 = vst [vmem:[#allocation55_spill] sm:$0xff] %v6426_v45  ;;  %v6428_v47 = vpop.permute.xlu0 %1291 }
  0xae   : > { %12622 = vst [vmem:[#allocation56_spill] sm:$0xff] %v6428_v47  ;;  %1473 = vrot.lane.b32.xlu1 %v5925_v38, %s5744_s10 }
  0xaf   : > { %1471 = vrot.lane.b32.xlu0 %v5931_v40, %s5744_s10 }
  0xb0   : > { %v6434_v39 = vpop.permute.xlu1 %1297 }
  0xb1   : > { %12623 = vst [vmem:[#allocation57_spill] sm:$0xff] %v6434_v39  ;;  %v6436_v0 = vpop.permute.xlu0 %1295 }
  0xb2   : > { %12624 = vst [vmem:[#allocation58_spill] sm:$0xff] %v6436_v0  ;;  %1477 = vrot.lane.b32.xlu1 %v5947_v46, %s5744_s10 }
  0xb3   : > { %1475 = vrot.lane.b32.xlu0 %v5953_v48, %s5744_s10 }
  0xb4   : > { %v6442_v1 = vpop.permute.xlu1 %1301 }
  0xb5   : > { %12625 = vst [vmem:[#allocation59_spill] sm:$0xff] %v6442_v1  ;;  %v6444_v45 = vpop.permute.xlu0 %1299 }
  0xb6   : > { %12626 = vst [vmem:[#allocation60_spill] sm:$0xff] %v6444_v45  ;;  %1481 = vrot.lane.b32.xlu1 %v5969_v54, %s5744_s10 }
  0xb7   : > { %1479 = vrot.lane.b32.xlu0 %v5975_v56, %s5744_s10 }
  0xb8   : > { %v6450_v47 = vpop.permute.xlu1 %1305 }
  0xb9   : > { %12627 = vst [vmem:[#allocation61_spill] sm:$0xff] %v6450_v47  ;;  %v6452_v39 = vpop.permute.xlu0 %1303 }
  0xba   : > { %12628 = vst [vmem:[#allocation62_spill] sm:$0xff] %v6452_v39  ;;  %1485 = vrot.lane.b32.xlu1 %v5991_v62, %s5744_s10 }
  0xbb   : > { %1483 = vrot.lane.b32.xlu0 %v5997_v3, %s5744_s10 }
  0xbc   : > { %v6458_v0 = vpop.permute.xlu1 %1309 }
  0xbd   : > { %12629 = vst [vmem:[#allocation63_spill] sm:$0xff] %v6458_v0  ;;  %v6460_v1 = vpop.permute.xlu0 %1307 }
  0xbe   : > { %12630 = vst [vmem:[#allocation64_spill] sm:$0xff] %v6460_v1  ;;  %1489 = vrot.lane.b32.xlu1 %v6013_v16, %s5744_s10 }
  0xbf   : > { %1487 = vrot.lane.b32.xlu0 %v6019_v19, %s5744_s10 }
  0xc0   : > { %v6466_v45 = vpop.permute.xlu1 %1313 }
  0xc1   : > { %12631 = vst [vmem:[#allocation65_spill] sm:$0xff] %v6466_v45  ;;  %v6468_v47 = vpop.permute.xlu0 %1311 }
  0xc2   : > { %12632 = vst [vmem:[#allocation66_spill] sm:$0xff] %v6468_v47  ;;  %1493 = vrot.lane.b32.xlu1 %v6035_v34, %s5744_s10 }
  0xc3   : > { %1491 = vrot.lane.b32.xlu0 %v6041_v37, %s5744_s10 }
  0xc4   : > { %v6474_v39 = vpop.permute.xlu1 %1317 }
  0xc5   : > { %12633 = vst [vmem:[#allocation67_spill] sm:$0xff] %v6474_v39  ;;  %v6476_v0 = vpop.permute.xlu0 %1315 }
  0xc6   : > { %12634 = vst [vmem:[#allocation68_spill] sm:$0xff] %v6476_v0  ;;  %1497 = vrot.lane.b32.xlu1 %v6057_v53, %s5744_s10  ;;  %v12659_v0 = vld [vmem:[#allocation6_spill] sm:$0xff] }
  0xc7   : > { %1495 = vrot.lane.b32.xlu0 %v6063_v59, %s5744_s10 }
  0xc8   : > { %v6482_v1 = vpop.permute.xlu1 %1321 }
  0xc9   : > { %12635 = vst [vmem:[#allocation69_spill] sm:$0xff] %v6482_v1  ;;  %v6484_v45 = vpop.permute.xlu0 %1319 }
  0xca   : > { %12636 = vst [vmem:[#allocation70_spill] sm:$0xff] %v6484_v45  ;;  %1501 = vrot.lane.b32.xlu1 %v6079_v26, %s5744_s10  ;;  %v12655_v45 = vld [vmem:[#allocation4_spill] sm:$0xff] }
  0xcb   : > { %1499 = vrot.lane.b32.xlu0 %v6085_v50, %s5744_s10 }
  0xcc   : > { %v6490_v47 = vpop.permute.xlu1 %1325 }
  0xcd   : > { %12637 = vst [vmem:[#allocation71_spill] sm:$0xff] %v6490_v47  ;;  %v6492_v27 = vpop.permute.xlu0 %1323 }
  0xce   : > { %12638 = vst [vmem:[#allocation72_spill] sm:$0xff] %v6492_v27  ;;  %1505 = vrot.lane.b32.xlu1 %v6101_v20, %s5744_s10  ;;  %v6515_v27 = vld [vmem:[%s5832_s7 + $0x188] sm:$0xff] }
  0xcf   : > { %1503 = vrot.lane.b32.xlu0 %v6107_v13, %s5744_s10 }
  0xd0   : > { %v6498_v55 = vpop.permute.xlu1 %1361 }
  0xd1   : > { %12639 = vst [vmem:[#allocation73_spill] sm:$0xff] %v6498_v55  ;;  %v6500_v18 = vpop.permute.xlu0 %1359 }
  0xd2   : > { %12640 = vst [vmem:[#allocation74_spill] sm:$0xff] %v6500_v18  ;;  %1509 = vrot.lane.b32.xlu1 %v6123_v60, %s5744_s10  ;;  %v6520_v18 = vld [vmem:[%s5832_s7 + $0x180] sm:$0xff] }
  0xd3   : > { %1507 = vrot.lane.b32.xlu0 %v6129_v42, %s5744_s10 }
  0xd4   : > { %v6506_v61 = vpop.permute.xlu1 %1365 }
  0xd5   : > { %12641 = vst [vmem:[#allocation75_spill] sm:$0xff] %v6506_v61  ;;  %v6508_v29 = vpop.permute.xlu0 %1363 }
  0xd6   : > { %12642 = vst [vmem:[#allocation76_spill] sm:$0xff] %v6508_v29  ;;  %1513 = vrot.lane.b32.xlu1 %v6145_v49, %s5744_s10 }
  0xd7   : > { %1511 = vrot.lane.b32.xlu0 %v6151_v8, %s5744_s10 }
  0xd8   : > { %v6517_v55 = vpop.permute.xlu1 %1369 }
  0xd9   : > { %12643 = vst [vmem:[#allocation77_spill] sm:$0xff] %v6517_v55  ;;  %v6522_v47 = vpop.permute.xlu0 %1367 }
  0xda   : > { %12644 = vst [vmem:[#allocation78_spill] sm:$0xff] %v6522_v47  ;;  %1517 = vrot.lane.b32.xlu1 %v6515_v27, %s5744_s10 }
  0xdb   : > { %1515 = vrot.lane.b32.xlu0 %v6520_v18, %s5744_s10 }
  0xdc   : > { %v6528_v29 = vpop.permute.xlu1 %1373 }
  0xdd   : > { %12645 = vst [vmem:[#allocation79_spill] sm:$0xff] %v6528_v29  ;;  %v6530_v61 = vpop.permute.xlu0 %1371 }
  0xde   : > { %12646 = vst [vmem:[#allocation80_spill] sm:$0xff] %v6530_v61  ;;  %1553 = vrot.lane.b32.xlu1 %v5875_v17, %s5745_s11  ;;  %v12651_v17 = vld [vmem:[#allocation2_spill] sm:$0xff] }
  0xdf   : > { %1551 = vrot.lane.b32.xlu0 %v5861_v12, %s5745_s11 }
  0xe0   : > { %v6536_v55 = vpop.permute.xlu1 %1377 }
  0xe1   : > { %12647 = vst [vmem:[#allocation81_spill] sm:$0xff] %v6536_v55  ;;  %v6538_v47 = vpop.permute.xlu0 %1375 }
  0xe2   : > { %12648 = vst [vmem:[#allocation82_spill] sm:$0xff] %v6538_v47  ;;  %1557 = vrot.lane.b32.xlu1 %v5894_v25, %s5745_s11  ;;  %v12654_v47 = vld [vmem:[#allocation3_spill] sm:$0xff] }
  0xe3   : > { %1555 = vrot.lane.b32.xlu0 %v5899_v28, %s5745_s11 }
  0xe4   : > { %v6544_v29 = vpop.permute.xlu1 %1381 }
  0xe5   : > { %12649 = vst [vmem:[#allocation83_spill] sm:$0xff] %v6544_v29  ;;  %v6546_v61 = vpop.permute.xlu0 %1379 }
  0xe6   : > { %12650 = vst [vmem:[#allocation84_spill] sm:$0xff] %v6546_v61  ;;  %1561 = vrot.lane.b32.xlu1 %v5916_v33, %s5745_s11  ;;  %v12658_v61 = vld [vmem:[#allocation5_spill] sm:$0xff] }
  0xe7   : > { %1559 = vrot.lane.b32.xlu0 %v12651_v17, %s5745_s11 }
  0xe8   : > { %v6552_v12 = vpop.permute.xlu1 %1385 }
  0xe9   : > { %12652 = vst [vmem:[#allocation2_spill] sm:$0xff] %v6552_v12  ;;  %v6554_v55 = vpop.permute.xlu0 %1383 }
  0xea   : > { %12653 = vst [vmem:[#allocation85_spill] sm:$0xff] %v6554_v55  ;;  %1565 = vrot.lane.b32.xlu1 %v12654_v47, %s5745_s11  ;;  %v12662_v55 = vld [vmem:[#allocation7_spill] sm:$0xff]  ;;  %v12663_v47 = vld [vmem:[#allocation8_spill] sm:$0xff] }
  0xeb   : > { %1563 = vrot.lane.b32.xlu0 %v12655_v45, %s5745_s11 }
  0xec   : > { %v6560_v1 = vpop.permute.xlu1 %1389 }
  0xed   : > { %12656 = vst [vmem:[#allocation86_spill] sm:$0xff] %v6560_v1  ;;  %v6562_v29 = vpop.permute.xlu0 %1387 }
  0xee   : > { %12657 = vst [vmem:[#allocation87_spill] sm:$0xff] %v6562_v29  ;;  %1569 = vrot.lane.b32.xlu1 %v12658_v61, %s5745_s11  ;;  %v12666_v29 = vld [vmem:[#allocation9_spill] sm:$0xff]  ;;  %v12667_v61 = vld [vmem:[#allocation10_spill] sm:$0xff] }
  0xef   : > { %1567 = vrot.lane.b32.xlu0 %v12659_v0, %s5745_s11 }
  0xf0   : > { %v6568_v39 = vpop.permute.xlu1 %1393 }
  0xf1   : > { %12660 = vst [vmem:[#allocation88_spill] sm:$0xff] %v6568_v39  ;;  %v6570_v12 = vpop.permute.xlu0 %1391 }
  0xf2   : > { %12661 = vst [vmem:[#allocation89_spill] sm:$0xff] %v6570_v12  ;;  %1573 = vrot.lane.b32.xlu1 %v12662_v55, %s5745_s11  ;;  %v12670_v12 = vld [vmem:[#allocation11_spill] sm:$0xff]  ;;  %v12671_v55 = vld [vmem:[#allocation12_spill] sm:$0xff] }
  0xf3   : > { %1571 = vrot.lane.b32.xlu0 %v12663_v47, %s5745_s11 }
  0xf4   : > { %v6576_v45 = vpop.permute.xlu1 %1397 }
  0xf5   : > { %12664 = vst [vmem:[#allocation90_spill] sm:$0xff] %v6576_v45  ;;  %v6578_v1 = vpop.permute.xlu0 %1395 }
  0xf6   : > { %12665 = vst [vmem:[#allocation91_spill] sm:$0xff] %v6578_v1  ;;  %1577 = vrot.lane.b32.xlu1 %v12666_v29, %s5745_s11  ;;  %v12674_v1 = vld [vmem:[#allocation13_spill] sm:$0xff]  ;;  %v12675_v29 = vld [vmem:[#allocation14_spill] sm:$0xff] }
  0xf7   : > { %1575 = vrot.lane.b32.xlu0 %v12667_v61, %s5745_s11 }
  0xf8   : > { %v6584_v0 = vpop.permute.xlu1 %1401 }
  0xf9   : > { %12668 = vst [vmem:[#allocation92_spill] sm:$0xff] %v6584_v0  ;;  %v6586_v39 = vpop.permute.xlu0 %1399 }
  0xfa   : > { %12669 = vst [vmem:[#allocation93_spill] sm:$0xff] %v6586_v39  ;;  %1581 = vrot.lane.b32.xlu1 %v12670_v12, %s5745_s11  ;;  %v12678_v39 = vld [vmem:[#allocation15_spill] sm:$0xff] }
  0xfb   : > { %1579 = vrot.lane.b32.xlu0 %v12671_v55, %s5745_s11  ;;  %v12679_v55 = vld [vmem:[#allocation16_spill] sm:$0xff]  ;;  %v12686_v12 = vld [vmem:[#allocation19_spill] sm:$0xff] }
  0xfc   : > { %v6592_v47 = vpop.permute.xlu1 %1405 }
  0xfd   : > { %12672 = vst [vmem:[#allocation94_spill] sm:$0xff] %v6592_v47  ;;  %v6594_v45 = vpop.permute.xlu0 %1403 }
  0xfe   : > { %12673 = vst [vmem:[#allocation95_spill] sm:$0xff] %v6594_v45  ;;  %1585 = vrot.lane.b32.xlu1 %v12674_v1, %s5745_s11  ;;  %v12682_v1 = vld [vmem:[#allocation17_spill] sm:$0xff] }
  0xff   : > { %1583 = vrot.lane.b32.xlu0 %v12675_v29, %s5745_s11  ;;  %v12683_v29 = vld [vmem:[#allocation18_spill] sm:$0xff] }
 0x100   : > { %v6600_v61 = vpop.permute.xlu1 %1409 }
 0x101   : > { %12676 = vst [vmem:[#allocation96_spill] sm:$0xff] %v6600_v61  ;;  %v6602_v0 = vpop.permute.xlu0 %1407 }
 0x102   : > { %12677 = vst [vmem:[#allocation97_spill] sm:$0xff] %v6602_v0  ;;  %1589 = vrot.lane.b32.xlu1 %v12678_v39, %s5745_s11  ;;  %v12687_v39 = vld [vmem:[#allocation20_spill] sm:$0xff] }
 0x103   : > { %1587 = vrot.lane.b32.xlu0 %v12679_v55, %s5745_s11 }
 0x104   : > { %v6608_v47 = vpop.permute.xlu1 %1413 }
 0x105   : > { %12680 = vst [vmem:[#allocation98_spill] sm:$0xff] %v6608_v47  ;;  %v6610_v45 = vpop.permute.xlu0 %1411 }
 0x106   : > { %12681 = vst [vmem:[#allocation99_spill] sm:$0xff] %v6610_v45  ;;  %1593 = vrot.lane.b32.xlu1 %v12682_v1, %s5745_s11  ;;  %v12690_v45 = vld [vmem:[#allocation21_spill] sm:$0xff]  ;;  %v12691_v1 = vld [vmem:[#allocation22_spill] sm:$0xff] }
 0x107   : > { %1591 = vrot.lane.b32.xlu0 %v12683_v29, %s5745_s11 }
 0x108   : > { %v6616_v61 = vpop.permute.xlu1 %1417 }
 0x109   : > { %12684 = vst [vmem:[#allocation100_spill] sm:$0xff] %v6616_v61  ;;  %v6618_v0 = vpop.permute.xlu0 %1415  ;;  %v6635_v61 = vld [vmem:[%s5832_s7 + $0x190] sm:$0x3] }
 0x10a   : > { %12685 = vst [vmem:[#allocation101_spill] sm:$0xff] %v6618_v0  ;;  %1597 = vrot.lane.b32.xlu1 %v12686_v12, %s5745_s11 }
 0x10b   : > { %1595 = vrot.lane.b32.xlu0 %v12687_v39, %s5745_s11  ;;  %v741_v39 = vrot.slane %v6515_v27, 1 }
 0x10c   : > { %v6624_v55 = vpop.permute.xlu1 %1421 }
 0x10d   : > { %12688 = vst [vmem:[#allocation102_spill] sm:$0xff] %v6624_v55  ;;  %v6626_v47 = vpop.permute.xlu0 %1419  ;;  %v740_v55 = vrot.slane %v6520_v18, 1 }
 0x10e   : > { %12689 = vst [vmem:[#allocation103_spill] sm:$0xff] %v6626_v47  ;;  %1601 = vrot.lane.b32.xlu1 %v12690_v45, %s5745_s11  ;;  %v743_v47 = vrot.slane %v6635_v61, 1 }
 0x10f   : > { %1599 = vrot.lane.b32.xlu0 %v12691_v1, %s5745_s11 }
 0x110   : > { %v6632_v29 = vpop.permute.xlu1 %1457 }
 0x111   : > { %12692 = vst [vmem:[#allocation104_spill] sm:$0xff] %v6632_v29  ;;  %v6637_v0 = vpop.permute.xlu0 %1455  ;;  %v6655_v29 = vsel %vm575_vm0, %v741_v39, %v743_v47 }
 0x112   : > { %12693 = vst [vmem:[#allocation105_spill] sm:$0xff] %v6637_v0  ;;  %1605 = vrot.lane.b32.xlu1 %v6158_v21, %s5745_s11  ;;  %v12696_v0 = vld [vmem:[#allocation25_spill] sm:$0xff] }
 0x113   : > { %1603 = vrot.lane.b32.xlu0 %v6163_v9, %s5745_s11  ;;  %v6660_v9 = vsel %vm575_vm0, %v740_v55, %v741_v39 }
 0x114   : > { %v6646_v45 = vpop.permute.xlu1 %1461 }
 0x115   : > { %12694 = vst [vmem:[#allocation106_spill] sm:$0xff] %v6646_v45  ;;  %v6648_v1 = vpop.permute.xlu0 %1459 }
 0x116   : > { %12695 = vst [vmem:[#allocation107_spill] sm:$0xff] %v6648_v1  ;;  %1609 = vrot.lane.b32.xlu1 %v6171_v57, %s5745_s11 }
 0x117   : > { %1607 = vrot.lane.b32.xlu0 %v12696_v0, %s5745_s11 }
 0x118   : > { %v6657_v21 = vpop.permute.xlu1 %1465 }
 0x119   : > { %12697 = vst [vmem:[#allocation25_spill] sm:$0xff] %v6657_v21  ;;  %v6662_v12 = vpop.permute.xlu0 %1463 }
 0x11a   : > { %12698 = vst [vmem:[#allocation108_spill] sm:$0xff] %v6662_v12  ;;  %1613 = vrot.lane.b32.xlu1 %v6655_v29, %s5745_s11 }
 0x11b   : > { %1611 = vrot.lane.b32.xlu0 %v6660_v9, %s5745_s11 }
 0x11c   : > { %v6668_v1 = vpop.permute.xlu1 %1469 }
 0x11d   : > { %12699 = vst [vmem:[#allocation109_spill] sm:$0xff] %v6668_v1  ;;  %v6670_v45 = vpop.permute.xlu0 %1467 }
 0x11e   : > { %12700 = vst [vmem:[#allocation110_spill] sm:$0xff] %v6670_v45  ;;  %1649 = vrot.lane.b32.xlu1 %v6191_v2, %s5746_s12  ;;  %v12705_v2 = vld [vmem:[#allocation26_spill] sm:$0xff] }
 0x11f   : > { %1647 = vrot.lane.b32.xlu0 %v6196_v36, %s5746_s12 }
 0x120   : > { %v6676_v39 = vpop.permute.xlu1 %1473 }
 0x121   : > { %12701 = vst [vmem:[#allocation111_spill] sm:$0xff] %v6676_v39  ;;  %v6678_v55 = vpop.permute.xlu0 %1471 }
 0x122   : > { %12702 = vst [vmem:[#allocation112_spill] sm:$0xff] %v6678_v55  ;;  %1653 = vrot.lane.b32.xlu1 %v6204_v43, %s5746_s12  ;;  %v12708_v55 = vld [vmem:[#allocation27_spill] sm:$0xff] }
 0x123   : > { %1651 = vrot.lane.b32.xlu0 %v6209_v14, %s5746_s12 }
 0x124   : > { %v6684_v47 = vpop.permute.xlu1 %1477 }
 0x125   : > { %12703 = vst [vmem:[#allocation113_spill] sm:$0xff] %v6684_v47  ;;  %v6686_v45 = vpop.permute.xlu0 %1475 }
 0x126   : > { %12704 = vst [vmem:[#allocation114_spill] sm:$0xff] %v6686_v45  ;;  %1657 = vrot.lane.b32.xlu1 %v6217_v5, %s5746_s12  ;;  %v12711_v45 = vld [vmem:[#allocation28_spill] sm:$0xff] }
 0x127   : > { %1655 = vrot.lane.b32.xlu0 %v12705_v2, %s5746_s12 }
 0x128   : > { %v6692_v36 = vpop.permute.xlu1 %1481 }
 0x129   : > { %12706 = vst [vmem:[#allocation26_spill] sm:$0xff] %v6692_v36  ;;  %v6694_v39 = vpop.permute.xlu0 %1479 }
 0x12a   : > { %12707 = vst [vmem:[#allocation115_spill] sm:$0xff] %v6694_v39  ;;  %1661 = vrot.lane.b32.xlu1 %v6230_v51, %s5746_s12  ;;  %v12714_v39 = vld [vmem:[#allocation29_spill] sm:$0xff] }
 0x12b   : > { %1659 = vrot.lane.b32.xlu0 %v12708_v55, %s5746_s12 }
 0x12c   : > { %v6700_v1 = vpop.permute.xlu1 %1485 }
 0x12d   : > { %12709 = vst [vmem:[#allocation27_spill] sm:$0xff] %v6700_v1  ;;  %v6702_v47 = vpop.permute.xlu0 %1483 }
 0x12e   : > { %12710 = vst [vmem:[#allocation116_spill] sm:$0xff] %v6702_v47  ;;  %1665 = vrot.lane.b32.xlu1 %v6243_v6, %s5746_s12  ;;  %v12717_v47 = vld [vmem:[#allocation30_spill] sm:$0xff] }
 0x12f   : > { %1663 = vrot.lane.b32.xlu0 %v12711_v45, %s5746_s12 }
 0x130   : > { %v6708_v12 = vpop.permute.xlu1 %1489 }
 0x131   : > { %12712 = vst [vmem:[#allocation117_spill] sm:$0xff] %v6708_v12  ;;  %v6710_v36 = vpop.permute.xlu0 %1487 }
 0x132   : > { %12713 = vst [vmem:[#allocation118_spill] sm:$0xff] %v6710_v36  ;;  %1669 = vrot.lane.b32.xlu1 %v6256_v4, %s5746_s12  ;;  %v12720_v36 = vld [vmem:[#allocation31_spill] sm:$0xff] }
 0x133   : > { %1667 = vrot.lane.b32.xlu0 %v12714_v39, %s5746_s12 }
 0x134   : > { %v6716_v21 = vpop.permute.xlu1 %1493 }
 0x135   : > { %12715 = vst [vmem:[#allocation119_spill] sm:$0xff] %v6716_v21  ;;  %v6718_v1 = vpop.permute.xlu0 %1491 }
 0x136   : > { %12716 = vst [vmem:[#allocation120_spill] sm:$0xff] %v6718_v1  ;;  %1673 = vrot.lane.b32.xlu1 %v6269_v52, %s5746_s12  ;;  %v12723_v1 = vld [vmem:[#allocation33_spill] sm:$0xff] }
 0x137   : > { %1671 = vrot.lane.b32.xlu0 %v12717_v47, %s5746_s12 }
 0x138   : > { %v6724_v45 = vpop.permute.xlu1 %1497 }
 0x139   : > { %12718 = vst [vmem:[#allocation121_spill] sm:$0xff] %v6724_v45  ;;  %v6726_v12 = vpop.permute.xlu0 %1495 }
 0x13a   : > { %12719 = vst [vmem:[#allocation122_spill] sm:$0xff] %v6726_v12  ;;  %1677 = vrot.lane.b32.xlu1 %v6282_v10, %s5746_s12  ;;  %v12726_v12 = vld [vmem:[#allocation34_spill] sm:$0xff] }
 0x13b   : > { %1675 = vrot.lane.b32.xlu0 %v12720_v36, %s5746_s12 }
 0x13c   : > { %v6732_v39 = vpop.permute.xlu1 %1501 }
 0x13d   : > { %12721 = vst [vmem:[#allocation123_spill] sm:$0xff] %v6732_v39  ;;  %v6734_v21 = vpop.permute.xlu0 %1499 }
 0x13e   : > { %12722 = vst [vmem:[#allocation124_spill] sm:$0xff] %v6734_v21  ;;  %1681 = vrot.lane.b32.xlu1 %v6295_v7, %s5746_s12  ;;  %v12729_v21 = vld [vmem:[#allocation35_spill] sm:$0xff]  ;;  %v12730_v7 = vld [vmem:[#allocation36_spill] sm:$0xff] }
 0x13f   : > { %1679 = vrot.lane.b32.xlu0 %v12723_v1, %s5746_s12 }
 0x140   : > { %v6740_v47 = vpop.permute.xlu1 %1505 }
 0x141   : > { %12724 = vst [vmem:[#allocation125_spill] sm:$0xff] %v6740_v47  ;;  %v6742_v45 = vpop.permute.xlu0 %1503 }
 0x142   : > { %12725 = vst [vmem:[#allocation126_spill] sm:$0xff] %v6742_v45  ;;  %1685 = vrot.lane.b32.xlu1 %v6308_v41, %s5746_s12  ;;  %v12733_v45 = vld [vmem:[#allocation37_spill] sm:$0xff] }
 0x143   : > { %1683 = vrot.lane.b32.xlu0 %v12726_v12, %s5746_s12 }
 0x144   : > { %v6748_v36 = vpop.permute.xlu1 %1509 }
 0x145   : > { %12727 = vst [vmem:[#allocation127_spill] sm:$0xff] %v6748_v36  ;;  %v6750_v39 = vpop.permute.xlu0 %1507 }
 0x146   : > { %12728 = vst [vmem:[#allocation128_spill] sm:$0xff] %v6750_v39  ;;  %1689 = vrot.lane.b32.xlu1 %v12729_v21, %s5746_s12  ;;  %v12736_v39 = vld [vmem:[#allocation40_spill] sm:$0xff] }
 0x147   : > { %1687 = vrot.lane.b32.xlu0 %v12730_v7, %s5746_s12 }
 0x148   : > { %v6756_v1 = vpop.permute.xlu1 %1513 }
 0x149   : > { %12731 = vst [vmem:[#allocation35_spill] sm:$0xff] %v6756_v1  ;;  %v6758_v47 = vpop.permute.xlu0 %1511 }
 0x14a   : > { %12732 = vst [vmem:[#allocation129_spill] sm:$0xff] %v6758_v47  ;;  %1693 = vrot.lane.b32.xlu1 %v6334_v23, %s5746_s12  ;;  %v746_v47 = vrot.slane %v6515_v27, 2 }
 0x14b   : > { %1691 = vrot.lane.b32.xlu0 %v12733_v45, %s5746_s12 }
 0x14c   : > { %v6764_v12 = vpop.permute.xlu1 %1517 }
 0x14d   : > { %12734 = vst [vmem:[#allocation130_spill] sm:$0xff] %v6764_v12  ;;  %v6766_v36 = vpop.permute.xlu0 %1515  ;;  %v745_v12 = vrot.slane %v6520_v18, 2 }
 0x14e   : > { %12735 = vst [vmem:[#allocation131_spill] sm:$0xff] %v6766_v36  ;;  %1697 = vrot.lane.b32.xlu1 %v6347_v31, %s5746_s12  ;;  %v748_v36 = vrot.slane %v6635_v61, 2 }
 0x14f   : > { %1695 = vrot.lane.b32.xlu0 %v12736_v39, %s5746_s12 }
 0x150   : > { %v6772_v7 = vpop.permute.xlu1 %1553 }
 0x151   : > { %12737 = vst [vmem:[#allocation40_spill] sm:$0xff] %v6772_v7  ;;  %v6774_v1 = vpop.permute.xlu0 %1551 }
 0x152   : > { %12738 = vst [vmem:[#allocation132_spill] sm:$0xff] %v6774_v1  ;;  %1701 = vrot.lane.b32.xlu1 %v6364_v35, %s5746_s12  ;;  %v6792_v1 = vsel %vm656_vm1, %v746_v47, %v748_v36 }
 0x153   : > { %1699 = vrot.lane.b32.xlu0 %v6371_v63, %s5746_s12  ;;  %v6797_v63 = vsel %vm656_vm1, %v745_v12, %v746_v47 }
 0x154   : > { %v6783_v31 = vpop.permute.xlu1 %1557 }
 0x155   : > { %12739 = vst [vmem:[#allocation133_spill] sm:$0xff] %v6783_v31  ;;  %v6785_v45 = vpop.permute.xlu0 %1555 }
 0x156   : > { %12740 = vst [vmem:[#allocation134_spill] sm:$0xff] %v6785_v45  ;;  %1705 = vrot.lane.b32.xlu1 %v6381_v58, %s5746_s12 }
 0x157   : > { %1703 = vrot.lane.b32.xlu0 %v6386_v44, %s5746_s12 }
 0x158   : > { %v6794_v7 = vpop.permute.xlu1 %1561 }
 0x159   : > { %12741 = vst [vmem:[#allocation135_spill] sm:$0xff] %v6794_v7  ;;  %v6799_v61 = vpop.permute.xlu0 %1559 }
 0x15a   : > { %12742 = vst [vmem:[#allocation136_spill] sm:$0xff] %v6799_v61  ;;  %1709 = vrot.lane.b32.xlu1 %v6792_v1, %s5746_s12 }
 0x15b   : > { %1707 = vrot.lane.b32.xlu0 %v6797_v63, %s5746_s12 }
 0x15c   : > { %v6805_v45 = vpop.permute.xlu1 %1565 }
 0x15d   : > { %12743 = vst [vmem:[#allocation137_spill] sm:$0xff] %v6805_v45  ;;  %v6807_v31 = vpop.permute.xlu0 %1563  ;;  %v7433_v45 = vld [vmem:[%s7205_s30 + $0x168] sm:$0xff] }
 0x15e   : > { %12744 = vst [vmem:[#allocation138_spill] sm:$0xff] %v6807_v31  ;;  %1745 = vrot.lane.b32.xlu1 %v5858_v11, %s5747_s13 }
 0x15f   : > { %1743 = vrot.lane.b32.xlu0 %v5868_v15, %s5747_s13 }
 0x160   : > { %v6813_v12 = vpop.permute.xlu1 %1569 }
 0x161   : > { %12745 = vst [vmem:[#allocation139_spill] sm:$0xff] %v6813_v12  ;;  %v6815_v47 = vpop.permute.xlu0 %1567 }
 0x162   : > { %12746 = vst [vmem:[#allocation140_spill] sm:$0xff] %v6815_v47  ;;  %1749 = vrot.lane.b32.xlu1 %v5882_v22, %s5747_s13 }
 0x163   : > { %1747 = vrot.lane.b32.xlu0 %v5888_v24, %s5747_s13 }
 0x164   : > { %v6821_v36 = vpop.permute.xlu1 %1573 }
 0x165   : > { %12747 = vst [vmem:[#allocation141_spill] sm:$0xff] %v6821_v36  ;;  %v6823_v31 = vpop.permute.xlu0 %1571  ;;  %v7426_v36 = vld [vmem:[%s7205_s30 + $0x170] sm:$0xff] }
 0x166   : > { %12748 = vst [vmem:[#allocation142_spill] sm:$0xff] %v6823_v31  ;;  %1753 = vrot.lane.b32.xlu1 %v5903_v30, %s5747_s13  ;;  %v7416_v31 = vld [vmem:[%s7205_s30 + $0x10] sm:$0x3] }
 0x167   : > { %1751 = vrot.lane.b32.xlu0 %v5909_v32, %s5747_s13  ;;  %v814_v47 = vrot.slane %v7416_v31, 1 }
 0x168   : > { %v6829_v11 = vpop.permute.xlu1 %1577 }
 0x169   : > { %12749 = vst [vmem:[#allocation143_spill] sm:$0xff] %v6829_v11  ;;  %v6831_v15 = vpop.permute.xlu0 %1575  ;;  %v7413_v11 = vld [vmem:[%s7205_s30 + $0x150] sm:$0xff] }
 0x16a   : > { %12750 = vst [vmem:[#allocation144_spill] sm:$0xff] %v6831_v15  ;;  %1757 = vrot.lane.b32.xlu1 %v5925_v38, %s5747_s13 }
 0x16b   : > { %1755 = vrot.lane.b32.xlu0 %v5931_v40, %s5747_s13 }
 0x16c   : > { %v6837_v22 = vpop.permute.xlu1 %1581 }
 0x16d   : > { %12751 = vst [vmem:[#allocation145_spill] sm:$0xff] %v6837_v22  ;;  %v6839_v24 = vpop.permute.xlu0 %1579  ;;  %v7408_v22 = vld [vmem:[%s7205_s30 + $0x158] sm:$0xff] }
 0x16e   : > { %12752 = vst [vmem:[#allocation146_spill] sm:$0xff] %v6839_v24  ;;  %1761 = vrot.lane.b32.xlu1 %v5947_v46, %s5747_s13 }
 0x16f   : > { %1759 = vrot.lane.b32.xlu0 %v5953_v48, %s5747_s13 }
 0x170   : > { %v6845_v30 = vpop.permute.xlu1 %1585 }
 0x171   : > { %12753 = vst [vmem:[#allocation147_spill] sm:$0xff] %v6845_v30  ;;  %v6847_v32 = vpop.permute.xlu0 %1583  ;;  %v7399_v30 = vld [vmem:[%s7205_s30 + $0x138] sm:$0xff] }
 0x172   : > { %12754 = vst [vmem:[#allocation148_spill] sm:$0xff] %v6847_v32  ;;  %1765 = vrot.lane.b32.xlu1 %v5969_v54, %s5747_s13 }
 0x173   : > { %1763 = vrot.lane.b32.xlu0 %v5975_v56, %s5747_s13 }
 0x174   : > { %v6853_v38 = vpop.permute.xlu1 %1589 }
 0x175   : > { %12755 = vst [vmem:[#allocation149_spill] sm:$0xff] %v6853_v38  ;;  %v6855_v40 = vpop.permute.xlu0 %1587  ;;  %v7394_v38 = vld [vmem:[%s7205_s30 + $0x140] sm:$0xff] }
 0x176   : > { %12756 = vst [vmem:[#allocation150_spill] sm:$0xff] %v6855_v40  ;;  %1769 = vrot.lane.b32.xlu1 %v5991_v62, %s5747_s13 }
 0x177   : > { %1767 = vrot.lane.b32.xlu0 %v5997_v3, %s5747_s13 }
 0x178   : > { %v6861_v46 = vpop.permute.xlu1 %1593 }
 0x179   : > { %12757 = vst [vmem:[#allocation151_spill] sm:$0xff] %v6861_v46  ;;  %v6863_v48 = vpop.permute.xlu0 %1591  ;;  %v7385_v46 = vld [vmem:[%s7205_s30 + $0x120] sm:$0xff] }
 0x17a   : > { %12758 = vst [vmem:[#allocation152_spill] sm:$0xff] %v6863_v48  ;;  %1773 = vrot.lane.b32.xlu1 %v6013_v16, %s5747_s13 }
 0x17b   : > { %1771 = vrot.lane.b32.xlu0 %v6019_v19, %s5747_s13 }
 0x17c   : > { %v6869_v54 = vpop.permute.xlu1 %1597 }
 0x17d   : > { %12759 = vst [vmem:[#allocation153_spill] sm:$0xff] %v6869_v54  ;;  %v6871_v56 = vpop.permute.xlu0 %1595  ;;  %v7380_v54 = vld [vmem:[%s7205_s30 + $0x128] sm:$0xff] }
 0x17e   : > { %12760 = vst [vmem:[#allocation154_spill] sm:$0xff] %v6871_v56  ;;  %1777 = vrot.lane.b32.xlu1 %v6035_v34, %s5747_s13 }
 0x17f   : > { %1775 = vrot.lane.b32.xlu0 %v6041_v37, %s5747_s13 }
 0x180   : > { %v6877_v62 = vpop.permute.xlu1 %1601 }
 0x181   : > { %12761 = vst [vmem:[#allocation155_spill] sm:$0xff] %v6877_v62  ;;  %v6879_v3 = vpop.permute.xlu0 %1599  ;;  %v6931_v62 = vld [vmem:[%s5832_s7 + $0x198] sm:$0xff] }
 0x182   : > { %12762 = vst [vmem:[#allocation156_spill] sm:$0xff] %v6879_v3  ;;  %1781 = vrot.lane.b32.xlu1 %v6057_v53, %s5747_s13 }
 0x183   : > { %1779 = vrot.lane.b32.xlu0 %v6063_v59, %s5747_s13 }
 0x184   : > { %v6885_v16 = vpop.permute.xlu1 %1605 }
 0x185   : > { %12763 = vst [vmem:[#allocation157_spill] sm:$0xff] %v6885_v16  ;;  %v6887_v19 = vpop.permute.xlu0 %1603 }
 0x186   : > { %12764 = vst [vmem:[#allocation158_spill] sm:$0xff] %v6887_v19  ;;  %1785 = vrot.lane.b32.xlu1 %v6079_v26, %s5747_s13  ;;  %v7590_v19 = vld [vmem:[%s7205_s30 + $0xe8] sm:$0x3] }
 0x187   : > { %1783 = vrot.lane.b32.xlu0 %v6085_v50, %s5747_s13 }
 0x188   : > { %v6893_v34 = vpop.permute.xlu1 %1609 }
 0x189   : > { %12765 = vst [vmem:[#allocation159_spill] sm:$0xff] %v6893_v34  ;;  %v6895_v37 = vpop.permute.xlu0 %1607 }
 0x18a   : > { %12766 = vst [vmem:[#allocation160_spill] sm:$0xff] %v6895_v37  ;;  %1789 = vrot.lane.b32.xlu1 %v6101_v20, %s5747_s13 }
 0x18b   : > { %1787 = vrot.lane.b32.xlu0 %v6107_v13, %s5747_s13 }
 0x18c   : > { %v6901_v53 = vpop.permute.xlu1 %1613 }
 0x18d   : > { %12767 = vst [vmem:[#allocation161_spill] sm:$0xff] %v6901_v53  ;;  %v6903_v59 = vpop.permute.xlu0 %1611  ;;  %v7570_v53 = vld [vmem:[%s7205_s30 + $0xd0] sm:$0x3] }
 0x18e   : > { %12768 = vst [vmem:[#allocation162_spill] sm:$0xff] %v6903_v59  ;;  %1793 = vrot.lane.b32.xlu1 %v6123_v60, %s5747_s13  ;;  %v6926_v60 = vld [vmem:[%s5832_s7 + $0x1a0] sm:$0xff] }
 0x18f   : > { %1791 = vrot.lane.b32.xlu0 %v6129_v42, %s5747_s13 }
 0x190   : > { %v6909_v50 = vpop.permute.xlu1 %1649 }
 0x191   : > { %12769 = vst [vmem:[#allocation163_spill] sm:$0xff] %v6909_v50  ;;  %v6911_v26 = vpop.permute.xlu0 %1647 }
 0x192   : > { %12770 = vst [vmem:[#allocation164_spill] sm:$0xff] %v6911_v26  ;;  %1797 = vrot.lane.b32.xlu1 %v6145_v49, %s5747_s13  ;;  %v7046_v26 = vld [vmem:[%s5832_s7 + $0x1a8] sm:$0x3] }
 0x193   : > { %1795 = vrot.lane.b32.xlu0 %v6151_v8, %s5747_s13 }
 0x194   : > { %v6917_v20 = vpop.permute.xlu1 %1653 }
 0x195   : > { %12771 = vst [vmem:[#allocation165_spill] sm:$0xff] %v6917_v20  ;;  %v6919_v13 = vpop.permute.xlu0 %1651  ;;  %v12821_v20 = vld [vmem:[#allocation23_spill] sm:$0xff] }
 0x196   : > { %12772 = vst [vmem:[#allocation166_spill] sm:$0xff] %v6919_v13  ;;  %1801 = vrot.lane.b32.xlu1 %v6515_v27, %s5747_s13 }
 0x197   : > { %1799 = vrot.lane.b32.xlu0 %v6520_v18, %s5747_s13 }
 0x198   : > { %v6928_v42 = vpop.permute.xlu1 %1657 }
 0x199   : > { %12773 = vst [vmem:[#allocation167_spill] sm:$0xff] %v6928_v42  ;;  %v6933_v49 = vpop.permute.xlu0 %1655  ;;  %v12781_v42 = vld [vmem:[#allocation3_spill] sm:$0xff] }
 0x19a   : > { %12774 = vst [vmem:[#allocation168_spill] sm:$0xff] %v6933_v49  ;;  %1805 = vrot.lane.b32.xlu1 %v6926_v60, %s5747_s13 }
 0x19b   : > { %1803 = vrot.lane.b32.xlu0 %v6931_v62, %s5747_s13 }
 0x19c   : > { %v6939_v8 = vpop.permute.xlu1 %1661 }
 0x19d   : > { %12775 = vst [vmem:[#allocation169_spill] sm:$0xff] %v6939_v8  ;;  %v6941_v27 = vpop.permute.xlu0 %1659 }
 0x19e   : > { %12776 = vst [vmem:[#allocation170_spill] sm:$0xff] %v6941_v27  ;;  %1841 = vrot.lane.b32.xlu1 %v5894_v25, %s5748_s14  ;;  %v12782_v25 = vld [vmem:[#allocation4_spill] sm:$0xff] }
 0x19f   : > { %1839 = vrot.lane.b32.xlu0 %v5899_v28, %s5748_s14 }
 0x1a0   : > { %v6947_v18 = vpop.permute.xlu1 %1665 }
 0x1a1   : > { %12777 = vst [vmem:[#allocation171_spill] sm:$0xff] %v6947_v18  ;;  %v6949_v49 = vpop.permute.xlu0 %1663 }
 0x1a2   : > { %12778 = vst [vmem:[#allocation172_spill] sm:$0xff] %v6949_v49  ;;  %1845 = vrot.lane.b32.xlu1 %v5916_v33, %s5748_s14  ;;  %v12785_v49 = vld [vmem:[#allocation5_spill] sm:$0xff]  ;;  %v12786_v33 = vld [vmem:[#allocation6_spill] sm:$0xff] }
 0x1a3   : > { %1843 = vrot.lane.b32.xlu0 %v12651_v17, %s5748_s14 }
 0x1a4   : > { %v6955_v8 = vpop.permute.xlu1 %1669 }
 0x1a5   : > { %12779 = vst [vmem:[#allocation173_spill] sm:$0xff] %v6955_v8  ;;  %v6957_v27 = vpop.permute.xlu0 %1667 }
 0x1a6   : > { %12780 = vst [vmem:[#allocation174_spill] sm:$0xff] %v6957_v27  ;;  %1849 = vrot.lane.b32.xlu1 %v12781_v42, %s5748_s14  ;;  %v12789_v27 = vld [vmem:[#allocation7_spill] sm:$0xff]  ;;  %v12790_v42 = vld [vmem:[#allocation8_spill] sm:$0xff] }
 0x1a7   : > { %1847 = vrot.lane.b32.xlu0 %v12782_v25, %s5748_s14 }
 0x1a8   : > { %v6963_v28 = vpop.permute.xlu1 %1673 }
 0x1a9   : > { %12783 = vst [vmem:[#allocation3_spill] sm:$0xff] %v6963_v28  ;;  %v6965_v18 = vpop.permute.xlu0 %1671 }
 0x1aa   : > { %12784 = vst [vmem:[#allocation4_spill] sm:$0xff] %v6965_v18  ;;  %1853 = vrot.lane.b32.xlu1 %v12785_v49, %s5748_s14  ;;  %v12793_v18 = vld [vmem:[#allocation9_spill] sm:$0xff]  ;;  %v12794_v49 = vld [vmem:[#allocation10_spill] sm:$0xff] }
 0x1ab   : > { %1851 = vrot.lane.b32.xlu0 %v12786_v33, %s5748_s14 }
 0x1ac   : > { %v6971_v17 = vpop.permute.xlu1 %1677 }
 0x1ad   : > { %12787 = vst [vmem:[#allocation5_spill] sm:$0xff] %v6971_v17  ;;  %v6973_v8 = vpop.permute.xlu0 %1675 }
 0x1ae   : > { %12788 = vst [vmem:[#allocation6_spill] sm:$0xff] %v6973_v8  ;;  %1857 = vrot.lane.b32.xlu1 %v12789_v27, %s5748_s14  ;;  %v12797_v8 = vld [vmem:[#allocation11_spill] sm:$0xff]  ;;  %v12798_v27 = vld [vmem:[#allocation12_spill] sm:$0xff] }
 0x1af   : > { %1855 = vrot.lane.b32.xlu0 %v12790_v42, %s5748_s14 }
 0x1b0   : > { %v6979_v25 = vpop.permute.xlu1 %1681 }
 0x1b1   : > { %12791 = vst [vmem:[#allocation7_spill] sm:$0xff] %v6979_v25  ;;  %v6981_v28 = vpop.permute.xlu0 %1679 }
 0x1b2   : > { %12792 = vst [vmem:[#allocation8_spill] sm:$0xff] %v6981_v28  ;;  %1861 = vrot.lane.b32.xlu1 %v12793_v18, %s5748_s14  ;;  %v12801_v28 = vld [vmem:[#allocation13_spill] sm:$0xff]  ;;  %v12802_v18 = vld [vmem:[#allocation14_spill] sm:$0xff] }
 0x1b3   : > { %1859 = vrot.lane.b32.xlu0 %v12794_v49, %s5748_s14 }
 0x1b4   : > { %v6987_v33 = vpop.permute.xlu1 %1685 }
 0x1b5   : > { %12795 = vst [vmem:[#allocation9_spill] sm:$0xff] %v6987_v33  ;;  %v6989_v17 = vpop.permute.xlu0 %1683 }
 0x1b6   : > { %12796 = vst [vmem:[#allocation10_spill] sm:$0xff] %v6989_v17  ;;  %1865 = vrot.lane.b32.xlu1 %v12797_v8, %s5748_s14  ;;  %v12805_v17 = vld [vmem:[#allocation15_spill] sm:$0xff]  ;;  %v12806_v8 = vld [vmem:[#allocation16_spill] sm:$0xff] }
 0x1b7   : > { %1863 = vrot.lane.b32.xlu0 %v12798_v27, %s5748_s14 }
 0x1b8   : > { %v6995_v42 = vpop.permute.xlu1 %1689 }
 0x1b9   : > { %12799 = vst [vmem:[#allocation11_spill] sm:$0xff] %v6995_v42  ;;  %v6997_v25 = vpop.permute.xlu0 %1687 }
 0x1ba   : > { %12800 = vst [vmem:[#allocation12_spill] sm:$0xff] %v6997_v25  ;;  %1869 = vrot.lane.b32.xlu1 %v12801_v28, %s5748_s14  ;;  %v12809_v25 = vld [vmem:[#allocation17_spill] sm:$0xff]  ;;  %v12810_v28 = vld [vmem:[#allocation18_spill] sm:$0xff] }
 0x1bb   : > { %1867 = vrot.lane.b32.xlu0 %v12802_v18, %s5748_s14 }
 0x1bc   : > { %v7003_v49 = vpop.permute.xlu1 %1693 }
 0x1bd   : > { %12803 = vst [vmem:[#allocation13_spill] sm:$0xff] %v7003_v49  ;;  %v7005_v33 = vpop.permute.xlu0 %1691  ;;  %v12817_v49 = vld [vmem:[#allocation21_spill] sm:$0xff] }
 0x1be   : > { %12804 = vst [vmem:[#allocation14_spill] sm:$0xff] %v7005_v33  ;;  %1873 = vrot.lane.b32.xlu1 %v12805_v17, %s5748_s14  ;;  %v12813_v17 = vld [vmem:[#allocation19_spill] sm:$0xff] }
 0x1bf   : > { %1871 = vrot.lane.b32.xlu0 %v12806_v8, %s5748_s14  ;;  %v12814_v8 = vld [vmem:[#allocation20_spill] sm:$0xff] }
 0x1c0   : > { %v7011_v27 = vpop.permute.xlu1 %1697 }
 0x1c1   : > { %12807 = vst [vmem:[#allocation15_spill] sm:$0xff] %v7011_v27  ;;  %v7013_v42 = vpop.permute.xlu0 %1695 }
 0x1c2   : > { %12808 = vst [vmem:[#allocation16_spill] sm:$0xff] %v7013_v42  ;;  %1877 = vrot.lane.b32.xlu1 %v12809_v25, %s5748_s14  ;;  %v12818_v25 = vld [vmem:[#allocation22_spill] sm:$0xff] }
 0x1c3   : > { %1875 = vrot.lane.b32.xlu0 %v12810_v28, %s5748_s14 }
 0x1c4   : > { %v7019_v18 = vpop.permute.xlu1 %1701 }
 0x1c5   : > { %12811 = vst [vmem:[#allocation17_spill] sm:$0xff] %v7019_v18  ;;  %v7021_v33 = vpop.permute.xlu0 %1699 }
 0x1c6   : > { %12812 = vst [vmem:[#allocation18_spill] sm:$0xff] %v7021_v33  ;;  %1881 = vrot.lane.b32.xlu1 %v12813_v17, %s5748_s14  ;;  %v12822_v17 = vld [vmem:[#allocation24_spill] sm:$0xff]  ;;  %v7550_v33 = vld [vmem:[%s7205_s30 + $0xb8] sm:$0x3] }
 0x1c7   : > { %1879 = vrot.lane.b32.xlu0 %v12814_v8, %s5748_s14 }
 0x1c8   : > { %v7027_v27 = vpop.permute.xlu1 %1705 }
 0x1c9   : > { %12815 = vst [vmem:[#allocation19_spill] sm:$0xff] %v7027_v27  ;;  %v7029_v42 = vpop.permute.xlu0 %1703 }
 0x1ca   : > { %12816 = vst [vmem:[#allocation20_spill] sm:$0xff] %v7029_v42  ;;  %1885 = vrot.lane.b32.xlu1 %v12817_v49, %s5748_s14  ;;  %v754_v49 = vrot.slane %v6926_v60, 1 }
 0x1cb   : > { %1883 = vrot.lane.b32.xlu0 %v12818_v25, %s5748_s14  ;;  %v756_v25 = vrot.slane %v7046_v26, 1 }
 0x1cc   : > { %v7035_v28 = vpop.permute.xlu1 %1709 }
 0x1cd   : > { %12819 = vst [vmem:[#allocation21_spill] sm:$0xff] %v7035_v28  ;;  %v7037_v13 = vpop.permute.xlu0 %1707 }
 0x1ce   : > { %12820 = vst [vmem:[#allocation22_spill] sm:$0xff] %v7037_v13  ;;  %1889 = vrot.lane.b32.xlu1 %v12821_v20, %s5748_s14  ;;  %v753_v20 = vrot.slane %v6931_v62, 1 }
 0x1cf   : > { %1887 = vrot.lane.b32.xlu0 %v12822_v17, %s5748_s14 }
 0x1d0   : > { %v7043_v8 = vpop.permute.xlu1 %1745 }
 0x1d1   : > { %12823 = vst [vmem:[#allocation23_spill] sm:$0xff] %v7043_v8  ;;  %v7048_v50 = vpop.permute.xlu0 %1743 }
 0x1d2   : > { %12824 = vst [vmem:[#allocation24_spill] sm:$0xff] %v7048_v50  ;;  %1893 = vrot.lane.b32.xlu1 %v6171_v57, %s5748_s14  ;;  %v757_v57 = vsel %vm575_vm0, %v754_v49, %v756_v25 }
 0x1d3   : > { %1891 = vrot.lane.b32.xlu0 %v12696_v0, %s5748_s14  ;;  %v755_v0 = vsel %vm575_vm0, %v753_v20, %v754_v49 }
 0x1d4   : > { %v7057_v3 = vpop.permute.xlu1 %1749 }
 0x1d5   : > { %12825 = vst [vmem:[#allocation175_spill] sm:$0xff] %v7057_v3  ;;  %v7059_v17 = vpop.permute.xlu0 %1747 }
 0x1d6   : > { %12826 = vst [vmem:[#allocation176_spill] sm:$0xff] %v7059_v17  ;;  %1897 = vrot.lane.b32.xlu1 %v6655_v29, %s5748_s14 }
 0x1d7   : > { %1895 = vrot.lane.b32.xlu0 %v6660_v9, %s5748_s14 }
 0x1d8   : > { %v7066_v50 = vpop.permute.xlu1 %1753 }
 0x1d9   : > { %12827 = vst [vmem:[#allocation177_spill] sm:$0xff] %v7066_v50  ;;  %v7069_v8 = vpop.permute.xlu0 %1751  ;;  %v7371_v50 = vld [vmem:[%s7205_s30 + $0x108] sm:$0xff] }
 0x1da   : > { %12828 = vst [vmem:[#allocation178_spill] sm:$0xff] %v7069_v8  ;;  %1901 = vrot.lane.b32.xlu1 %v757_v57, %s5748_s14 }
 0x1db   : > { %1899 = vrot.lane.b32.xlu0 %v755_v0, %s5748_s14 }
 0x1dc   : > { %v7073_v3 = vpop.permute.xlu1 %1757 }
 0x1dd   : > { %12829 = vst [vmem:[#allocation179_spill] sm:$0xff] %v7073_v3  ;;  %v7075_v17 = vpop.permute.xlu0 %1755  ;;  %v7357_v3 = vld [vmem:[%s7205_s30 + $0xf0] sm:$0xff] }
 0x1de   : > { %12830 = vst [vmem:[#allocation180_spill] sm:$0xff] %v7075_v17  ;;  %1937 = vrot.lane.b32.xlu1 %v6204_v43, %s5749_s15 }
 0x1df   : > { %1935 = vrot.lane.b32.xlu0 %v6209_v14, %s5749_s15 }
 0x1e0   : > { %v7081_v9 = vpop.permute.xlu1 %1761 }
 0x1e1   : > { %12831 = vst [vmem:[#allocation181_spill] sm:$0xff] %v7081_v9  ;;  %v7083_v29 = vpop.permute.xlu0 %1759  ;;  %v7343_v9 = vld [vmem:[%s7205_s30 + $0xd8] sm:$0xff] }
 0x1e2   : > { %12832 = vst [vmem:[#allocation182_spill] sm:$0xff] %v7083_v29  ;;  %1941 = vrot.lane.b32.xlu1 %v6217_v5, %s5749_s15  ;;  %v12837_v5 = vld [vmem:[#allocation28_spill] sm:$0xff] }
 0x1e3   : > { %1939 = vrot.lane.b32.xlu0 %v12705_v2, %s5749_s15 }
 0x1e4   : > { %v7089_v49 = vpop.permute.xlu1 %1765 }
 0x1e5   : > { %12833 = vst [vmem:[#allocation183_spill] sm:$0xff] %v7089_v49  ;;  %v7091_v25 = vpop.permute.xlu0 %1763  ;;  %v7329_v49 = vld [vmem:[%s7205_s30 + $0xc0] sm:$0xff] }
 0x1e6   : > { %12834 = vst [vmem:[#allocation184_spill] sm:$0xff] %v7091_v25  ;;  %1945 = vrot.lane.b32.xlu1 %v6230_v51, %s5749_s15  ;;  %v12840_v51 = vld [vmem:[#allocation29_spill] sm:$0xff] }
 0x1e7   : > { %1943 = vrot.lane.b32.xlu0 %v12708_v55, %s5749_s15 }
 0x1e8   : > { %v7097_v43 = vpop.permute.xlu1 %1769 }
 0x1e9   : > { %12835 = vst [vmem:[#allocation185_spill] sm:$0xff] %v7097_v43  ;;  %v7099_v14 = vpop.permute.xlu0 %1767  ;;  %v7315_v43 = vld [vmem:[%s7205_s30 + $0xa8] sm:$0xff] }
 0x1ea   : > { %12836 = vst [vmem:[#allocation186_spill] sm:$0xff] %v7099_v14  ;;  %1949 = vrot.lane.b32.xlu1 %v6243_v6, %s5749_s15  ;;  %v12843_v6 = vld [vmem:[#allocation30_spill] sm:$0xff] }
 0x1eb   : > { %1947 = vrot.lane.b32.xlu0 %v12837_v5, %s5749_s15 }
 0x1ec   : > { %v7105_v2 = vpop.permute.xlu1 %1773 }
 0x1ed   : > { %12838 = vst [vmem:[#allocation28_spill] sm:$0xff] %v7105_v2  ;;  %v7107_v20 = vpop.permute.xlu0 %1771 }
 0x1ee   : > { %12839 = vst [vmem:[#allocation187_spill] sm:$0xff] %v7107_v20  ;;  %1953 = vrot.lane.b32.xlu1 %v6256_v4, %s5749_s15  ;;  %v12846_v4 = vld [vmem:[#allocation31_spill] sm:$0xff]  ;;  %v7301_v20 = vld [vmem:[%s7205_s30 + $0x90] sm:$0xff] }
 0x1ef   : > { %1951 = vrot.lane.b32.xlu0 %v12840_v51, %s5749_s15 }
 0x1f0   : > { %v7113_v55 = vpop.permute.xlu1 %1777 }
 0x1f1   : > { %12841 = vst [vmem:[#allocation29_spill] sm:$0xff] %v7113_v55  ;;  %v7115_v57 = vpop.permute.xlu0 %1775 }
 0x1f2   : > { %12842 = vst [vmem:[#allocation188_spill] sm:$0xff] %v7115_v57  ;;  %1957 = vrot.lane.b32.xlu1 %v6269_v52, %s5749_s15  ;;  %v12849_v52 = vld [vmem:[#allocation32_spill] sm:$0xff] }
 0x1f3   : > { %1955 = vrot.lane.b32.xlu0 %v12843_v6, %s5749_s15  ;;  %v12850_v6 = vld [vmem:[#allocation33_spill] sm:$0xff] }
 0x1f4   : > { %v7121_v0 = vpop.permute.xlu1 %1781 }
 0x1f5   : > { %12844 = vst [vmem:[#allocation30_spill] sm:$0xff] %v7121_v0  ;;  %v7123_v5 = vpop.permute.xlu0 %1779 }
 0x1f6   : > { %12845 = vst [vmem:[#allocation189_spill] sm:$0xff] %v7123_v5  ;;  %1961 = vrot.lane.b32.xlu1 %v6282_v10, %s5749_s15  ;;  %v12853_v10 = vld [vmem:[#allocation34_spill] sm:$0xff]  ;;  %v7287_v5 = vld [vmem:[%s7205_s30 + $0x78] sm:$0xff] }
 0x1f7   : > { %1959 = vrot.lane.b32.xlu0 %v12846_v4, %s5749_s15 }
 0x1f8   : > { %v7129_v51 = vpop.permute.xlu1 %1785 }
 0x1f9   : > { %12847 = vst [vmem:[#allocation31_spill] sm:$0xff] %v7129_v51  ;;  %v7131_v2 = vpop.permute.xlu0 %1783 }
 0x1fa   : > { %12848 = vst [vmem:[#allocation190_spill] sm:$0xff] %v7131_v2  ;;  %1965 = vrot.lane.b32.xlu1 %v12849_v52, %s5749_s15  ;;  %v12856_v52 = vld [vmem:[#allocation36_spill] sm:$0xff] }
 0x1fb   : > { %1963 = vrot.lane.b32.xlu0 %v12850_v6, %s5749_s15 }
 0x1fc   : > { %v7137_v0 = vpop.permute.xlu1 %1789 }
 0x1fd   : > { %12851 = vst [vmem:[#allocation32_spill] sm:$0xff] %v7137_v0  ;;  %v7139_v57 = vpop.permute.xlu0 %1787 }
 0x1fe   : > { %12852 = vst [vmem:[#allocation33_spill] sm:$0xff] %v7139_v57  ;;  %1969 = vrot.lane.b32.xlu1 %v6308_v41, %s5749_s15  ;;  %v12859_v41 = vld [vmem:[#allocation37_spill] sm:$0xff] }
 0x1ff   : > { %1967 = vrot.lane.b32.xlu0 %v12853_v10, %s5749_s15 }
 0x200   : > { %v7145_v4 = vpop.permute.xlu1 %1793 }
 0x201   : > { %12854 = vst [vmem:[#allocation34_spill] sm:$0xff] %v7145_v4  ;;  %v7147_v51 = vpop.permute.xlu0 %1791 }
 0x202   : > { %12855 = vst [vmem:[#allocation191_spill] sm:$0xff] %v7147_v51  ;;  %1973 = vrot.lane.b32.xlu1 %v12729_v21, %s5749_s15  ;;  %v12862_v21 = vld [vmem:[#allocation38_spill] sm:$0xff] }
 0x203   : > { %1971 = vrot.lane.b32.xlu0 %v12856_v52, %s5749_s15 }
 0x204   : > { %v7154_v6 = vpop.permute.xlu1 %1797 }
 0x205   : > { %12857 = vst [vmem:[#allocation36_spill] sm:$0xff] %v7154_v6  ;;  %v7156_v57 = vpop.permute.xlu0 %1795 }
 0x206   : > { %12858 = vst [vmem:[#allocation192_spill] sm:$0xff] %v7156_v57  ;;  %1977 = vrot.lane.b32.xlu1 %v6334_v23, %s5749_s15  ;;  %v12865_v23 = vld [vmem:[#allocation43_spill] sm:$0xff]  ;;  %v7530_v57 = vld [vmem:[%s7205_s30 + $0xa0] sm:$0x3] }
 0x207   : > { %1975 = vrot.lane.b32.xlu0 %v12859_v41, %s5749_s15 }
 0x208   : > { %v7162_v10 = vpop.permute.xlu1 %1801 }
 0x209   : > { %12860 = vst [vmem:[#allocation37_spill] sm:$0xff] %v7162_v10  ;;  %v7164_v4 = vpop.permute.xlu0 %1799 }
 0x20a   : > { %12861 = vst [vmem:[#allocation193_spill] sm:$0xff] %v7164_v4  ;;  %1981 = vrot.lane.b32.xlu1 %v12862_v21, %s5749_s15  ;;  %v761_v21 = vrot.slane %v7046_v26, 2  ;;  %v7217_v26 = vld [vmem:[%s7205_s30] sm:$0xff] }
 0x20b   : > { %1979 = vrot.lane.b32.xlu0 %v12736_v39, %s5749_s15  ;;  %v759_v39 = vrot.slane %v6926_v60, 2 }
 0x20c   : > { %v7170_v52 = vpop.permute.xlu1 %1805 }
 0x20d   : > { %12863 = vst [vmem:[#allocation38_spill] sm:$0xff] %v7170_v52  ;;  %v7172_v51 = vpop.permute.xlu0 %1803 }
 0x20e   : > { %12864 = vst [vmem:[#allocation194_spill] sm:$0xff] %v7172_v51  ;;  %1985 = vrot.lane.b32.xlu1 %v6364_v35, %s5749_s15  ;;  %v758_v35 = vrot.slane %v6931_v62, 2 }
 0x20f   : > { %1983 = vrot.lane.b32.xlu0 %v12865_v23, %s5749_s15 }
 0x210   : > { %v7178_v41 = vpop.permute.xlu1 %1841 }
 0x211   : > { %12866 = vst [vmem:[#allocation43_spill] sm:$0xff] %v7178_v41  ;;  %v7180_v0 = vpop.permute.xlu0 %1839 }
 0x212   : > { %12867 = vst [vmem:[#allocation195_spill] sm:$0xff] %v7180_v0  ;;  %1989 = vrot.lane.b32.xlu1 %v6381_v58, %s5749_s15  ;;  %v762_v58 = vsel %vm656_vm1, %v759_v39, %v761_v21  ;;  %v7226_v21 = vld [vmem:[%s7205_s30 + $0x20] sm:$0xff] }
 0x213   : > { %1987 = vrot.lane.b32.xlu0 %v6386_v44, %s5749_s15  ;;  %v760_v44 = vsel %vm656_vm1, %v758_v35, %v759_v39  ;;  %v7273_v0 = vld [vmem:[%s7205_s30 + $0x60] sm:$0xff]  ;;  %v817_v7 = vrot.slane %v7226_v21, 1 }
 0x214   : > { %v7190_v2 = vpop.permute.xlu1 %1845 }
 0x215   : > { %12868 = vst [vmem:[#allocation196_spill] sm:$0xff] %v7190_v2  ;;  %v7192_v23 = vpop.permute.xlu0 %1843 }
 0x216   : > { %12869 = vst [vmem:[#allocation197_spill] sm:$0xff] %v7192_v23  ;;  %1993 = vrot.lane.b32.xlu1 %v6792_v1, %s5749_s15  ;;  %v7259_v23 = vld [vmem:[%s7205_s30 + $0x48] sm:$0xff] }
 0x217   : > { %1991 = vrot.lane.b32.xlu0 %v6797_v63, %s5749_s15  ;;  %v7212_v63 = vld [vmem:[%s7205_s30 + $0x8] sm:$0xff] }
 0x218   : > { %v7199_v60 = vpop.permute.xlu1 %1849 }
 0x219   : > { %12870 = vst [vmem:[#allocation198_spill] sm:$0xff] %v7199_v60  ;;  %v7207_v62 = vpop.permute.xlu0 %1847 }
 0x21a   : > { %12871 = vst [vmem:[#allocation199_spill] sm:$0xff] %v7207_v62  ;;  %1997 = vrot.lane.b32.xlu1 %v762_v58, %s5749_s15  ;;  %v7231_v58 = vld [vmem:[%s7205_s30 + $0x18] sm:$0xff]  ;;  %v7245_v62 = vld [vmem:[%s7205_s30 + $0x30] sm:$0xff] }
 0x21b   : > { %1995 = vrot.lane.b32.xlu0 %v760_v44, %s5749_s15 }
 0x21c   : > { %v7214_v1 = vpop.permute.xlu1 %1853 }
 0x21d   : > { %12872 = vst [vmem:[#allocation200_spill] sm:$0xff] %v7214_v1  ;;  %v7219_v39 = vpop.permute.xlu0 %1851 }
 0x21e   : > { %12873 = vst [vmem:[#allocation201_spill] sm:$0xff] %v7219_v39  ;;  %2033 = vrot.lane.b32.xlu1 %v7212_v63, %s5750_s6  ;;  %v7240_v39 = vld [vmem:[%s7205_s30 + $0x38] sm:$0xff] }
 0x21f   : > { %2031 = vrot.lane.b32.xlu0 %v7217_v26, %s5750_s6  ;;  %v822_v28 = vrot.slane %v7240_v39, 1 }
 0x220   : > { %v7228_v35 = vpop.permute.xlu1 %1857 }
 0x221   : > { %12874 = vst [vmem:[#allocation202_spill] sm:$0xff] %v7228_v35  ;;  %v7233_v44 = vpop.permute.xlu0 %1855 }
 0x222   : > { %12875 = vst [vmem:[#allocation203_spill] sm:$0xff] %v7233_v44  ;;  %2037 = vrot.lane.b32.xlu1 %v7226_v21, %s5750_s6  ;;  %v7254_v44 = vld [vmem:[%s7205_s30 + $0x50] sm:$0xff] }
 0x223   : > { %2035 = vrot.lane.b32.xlu0 %v7231_v58, %s5750_s6 }
 0x224   : > { %v7242_v1 = vpop.permute.xlu1 %1861 }
 0x225   : > { %12876 = vst [vmem:[#allocation204_spill] sm:$0xff] %v7242_v1  ;;  %v7247_v35 = vpop.permute.xlu0 %1859 }
 0x226   : > { %12877 = vst [vmem:[#allocation205_spill] sm:$0xff] %v7247_v35  ;;  %2041 = vrot.lane.b32.xlu1 %v7240_v39, %s5750_s6  ;;  %v7268_v35 = vld [vmem:[%s7205_s30 + $0x68] sm:$0xff] }
 0x227   : > { %2039 = vrot.lane.b32.xlu0 %v7245_v62, %s5750_s6 }
 0x228   : > { %v7256_v60 = vpop.permute.xlu1 %1865 }
 0x229   : > { %12878 = vst [vmem:[#allocation206_spill] sm:$0xff] %v7256_v60  ;;  %v7261_v1 = vpop.permute.xlu0 %1863 }
 0x22a   : > { %12879 = vst [vmem:[#allocation207_spill] sm:$0xff] %v7261_v1  ;;  %2045 = vrot.lane.b32.xlu1 %v7254_v44, %s5750_s6  ;;  %v7282_v1 = vld [vmem:[%s7205_s30 + $0x80] sm:$0xff] }
 0x22b   : > { %2043 = vrot.lane.b32.xlu0 %v7259_v23, %s5750_s6 }
 0x22c   : > { %v7270_v2 = vpop.permute.xlu1 %1869 }
 0x22d   : > { %12880 = vst [vmem:[#allocation208_spill] sm:$0xff] %v7270_v2  ;;  %v7275_v60 = vpop.permute.xlu0 %1867 }
 0x22e   : > { %12881 = vst [vmem:[#allocation209_spill] sm:$0xff] %v7275_v60  ;;  %2049 = vrot.lane.b32.xlu1 %v7268_v35, %s5750_s6  ;;  %v7296_v60 = vld [vmem:[%s7205_s30 + $0x98] sm:$0xff] }
 0x22f   : > { %2047 = vrot.lane.b32.xlu0 %v7273_v0, %s5750_s6 }
 0x230   : > { %v7284_v41 = vpop.permute.xlu1 %1873 }
 0x231   : > { %12882 = vst [vmem:[#allocation210_spill] sm:$0xff] %v7284_v41  ;;  %v7289_v2 = vpop.permute.xlu0 %1871 }
 0x232   : > { %12883 = vst [vmem:[#allocation211_spill] sm:$0xff] %v7289_v2  ;;  %2053 = vrot.lane.b32.xlu1 %v7282_v1, %s5750_s6  ;;  %v7310_v2 = vld [vmem:[%s7205_s30 + $0xb0] sm:$0xff] }
 0x233   : > { %2051 = vrot.lane.b32.xlu0 %v7287_v5, %s5750_s6 }
 0x234   : > { %v7298_v55 = vpop.permute.xlu1 %1877 }
 0x235   : > { %12884 = vst [vmem:[#allocation212_spill] sm:$0xff] %v7298_v55  ;;  %v7303_v41 = vpop.permute.xlu0 %1875 }
 0x236   : > { %12885 = vst [vmem:[#allocation213_spill] sm:$0xff] %v7303_v41  ;;  %2057 = vrot.lane.b32.xlu1 %v7296_v60, %s5750_s6  ;;  %v7324_v41 = vld [vmem:[%s7205_s30 + $0xc8] sm:$0xff] }
 0x237   : > { %2055 = vrot.lane.b32.xlu0 %v7301_v20, %s5750_s6 }
 0x238   : > { %v7312_v14 = vpop.permute.xlu1 %1881 }
 0x239   : > { %12886 = vst [vmem:[#allocation214_spill] sm:$0xff] %v7312_v14  ;;  %v7317_v55 = vpop.permute.xlu0 %1879 }
 0x23a   : > { %12887 = vst [vmem:[#allocation215_spill] sm:$0xff] %v7317_v55  ;;  %2061 = vrot.lane.b32.xlu1 %v7310_v2, %s5750_s6  ;;  %v7338_v55 = vld [vmem:[%s7205_s30 + $0xe0] sm:$0xff] }
 0x23b   : > { %2059 = vrot.lane.b32.xlu0 %v7315_v43, %s5750_s6 }
 0x23c   : > { %v7326_v25 = vpop.permute.xlu1 %1885 }
 0x23d   : > { %12888 = vst [vmem:[#allocation216_spill] sm:$0xff] %v7326_v25  ;;  %v7331_v14 = vpop.permute.xlu0 %1883 }
 0x23e   : > { %12889 = vst [vmem:[#allocation217_spill] sm:$0xff] %v7331_v14  ;;  %2065 = vrot.lane.b32.xlu1 %v7324_v41, %s5750_s6  ;;  %v7352_v14 = vld [vmem:[%s7205_s30 + $0xf8] sm:$0xff] }
 0x23f   : > { %2063 = vrot.lane.b32.xlu0 %v7329_v49, %s5750_s6 }
 0x240   : > { %v7340_v29 = vpop.permute.xlu1 %1889 }
 0x241   : > { %12890 = vst [vmem:[#allocation218_spill] sm:$0xff] %v7340_v29  ;;  %v7345_v25 = vpop.permute.xlu0 %1887 }
 0x242   : > { %12891 = vst [vmem:[#allocation219_spill] sm:$0xff] %v7345_v25  ;;  %2069 = vrot.lane.b32.xlu1 %v7338_v55, %s5750_s6  ;;  %v7366_v25 = vld [vmem:[%s7205_s30 + $0x110] sm:$0xff] }
 0x243   : > { %2067 = vrot.lane.b32.xlu0 %v7343_v9, %s5750_s6 }
 0x244   : > { %v7354_v17 = vpop.permute.xlu1 %1893 }
 0x245   : > { %12892 = vst [vmem:[#allocation220_spill] sm:$0xff] %v7354_v17  ;;  %v7359_v29 = vpop.permute.xlu0 %1891 }
 0x246   : > { %12893 = vst [vmem:[#allocation221_spill] sm:$0xff] %v7359_v29  ;;  %2073 = vrot.lane.b32.xlu1 %v7352_v14, %s5750_s6  ;;  %v7510_v29 = vld [vmem:[%s7205_s30 + $0x88] sm:$0x3] }
 0x247   : > { %2071 = vrot.lane.b32.xlu0 %v7357_v3, %s5750_s6 }
 0x248   : > { %v7368_v8 = vpop.permute.xlu1 %1897 }
 0x249   : > { %12894 = vst [vmem:[#allocation222_spill] sm:$0xff] %v7368_v8  ;;  %v7373_v56 = vpop.permute.xlu0 %1895  ;;  %v7490_v8 = vld [vmem:[%s7205_s30 + $0x70] sm:$0x3] }
 0x24a   : > { %12895 = vst [vmem:[#allocation223_spill] sm:$0xff] %v7373_v56  ;;  %2077 = vrot.lane.b32.xlu1 %v7366_v25, %s5750_s6 }
 0x24b   : > { %2075 = vrot.lane.b32.xlu0 %v7371_v50, %s5750_s6 }
 0x24c   : > { %v7382_v48 = vpop.permute.xlu1 %1901 }
 0x24d   : > { %12896 = vst [vmem:[#allocation224_spill] sm:$0xff] %v7382_v48  ;;  %v7387_v40 = vpop.permute.xlu0 %1899 }
 0x24e   : > { %12897 = vst [vmem:[#allocation225_spill] sm:$0xff] %v7387_v40  ;;  %2081 = vrot.lane.b32.xlu1 %v7380_v54, %s5750_s6 }
 0x24f   : > { %2079 = vrot.lane.b32.xlu0 %v7385_v46, %s5750_s6 }
 0x250   : > { %v7396_v32 = vpop.permute.xlu1 %1937 }
 0x251   : > { %12898 = vst [vmem:[#allocation226_spill] sm:$0xff] %v7396_v32  ;;  %v7401_v24 = vpop.permute.xlu0 %1935 }
 0x252   : > { %12899 = vst [vmem:[#allocation227_spill] sm:$0xff] %v7401_v24  ;;  %2085 = vrot.lane.b32.xlu1 %v7394_v38, %s5750_s6  ;;  %v812_v24 = vrot.slane %v7212_v63, 1 }
 0x253   : > { %2083 = vrot.lane.b32.xlu0 %v7399_v30, %s5750_s6 }
 0x254   : > { %v7410_v15 = vpop.permute.xlu1 %1941  ;;  %v815_v40 = vsel %vm575_vm0, %v812_v24, %v814_v47 }
 0x255   : > { %12900 = vst [vmem:[#allocation228_spill] sm:$0xff] %v7410_v15  ;;  %v7418_v32 = vpop.permute.xlu0 %1939  ;;  %v811_v15 = vrot.slane %v7217_v26, 1 }
 0x256   : > { %12901 = vst [vmem:[#allocation229_spill] sm:$0xff] %v7418_v32  ;;  %2089 = vrot.lane.b32.xlu1 %v7408_v22, %s5750_s6  ;;  %v7436_v32 = vld [vmem:[%s7205_s30 + $0x28] sm:$0x3] }
 0x257   : > { %2087 = vrot.lane.b32.xlu0 %v7413_v11, %s5750_s6  ;;  %v819_v48 = vrot.slane %v7436_v32, 1  ;;  %v813_v52 = vsel %vm575_vm0, %v811_v15, %v812_v24  ;;  %v821_v24 = vrot.slane %v7245_v62, 1 }
 0x258   : > { %v7430_v12 = vpop.permute.xlu1 %1945 }
 0x259   : > { %12902 = vst [vmem:[#allocation230_spill] sm:$0xff] %v7430_v12  ;;  %v7438_v61 = vpop.permute.xlu0 %1943  ;;  %v816_v12 = vrot.slane %v7231_v58, 1  ;;  %v7459_v47 = vsel %vm575_vm0, %v817_v7, %v819_v48 }
 0x25a   : > { %12903 = vst [vmem:[#allocation231_spill] sm:$0xff] %v7438_v61  ;;  %2093 = vrot.lane.b32.xlu1 %v7426_v36, %s5750_s6  ;;  %v7452_v61 = vld [vmem:[%s7205_s30 + $0x40] sm:$0x3] }
 0x25b   : > { %2091 = vrot.lane.b32.xlu0 %v7433_v45, %s5750_s6  ;;  %v824_v56 = vrot.slane %v7452_v61, 1  ;;  %v7466_v15 = vsel %vm575_vm0, %v816_v12, %v817_v7 }
 0x25c   : > { %v7448_v51 = vpop.permute.xlu1 %1949 }
 0x25d   : > { %12904 = vst [vmem:[#allocation232_spill] sm:$0xff] %v7448_v51  ;;  %v7454_v13 = vpop.permute.xlu0 %1947  ;;  %v7479_v48 = vsel %vm575_vm0, %v822_v28, %v824_v56 }
 0x25e   : > { %12905 = vst [vmem:[#allocation233_spill] sm:$0xff] %v7454_v13  ;;  %2129 = vrot.lane.b32.xlu1 %v815_v40, %s5751_s16  ;;  %v7470_v13 = vld [vmem:[%s7205_s30 + $0x58] sm:$0x3]  ;;  %12908 = vst [vmem:[#allocation236_spill] sm:$0xff] %v7479_v48 }
 0x25f   : > { %2127 = vrot.lane.b32.xlu0 %v813_v52, %s5751_s16  ;;  %v827_v52 = vrot.slane %v7254_v44, 1  ;;  %v829_v7 = vrot.slane %v7470_v13, 1 }
 0x260   : > { %v7463_v51 = vpop.permute.xlu1 %1953 }
 0x261   : > { %12906 = vst [vmem:[#allocation234_spill] sm:$0xff] %v7463_v51  ;;  %v7472_v40 = vpop.permute.xlu0 %1951  ;;  %v7486_v51 = vsel %vm575_vm0, %v821_v24, %v822_v28  ;;  %v7499_v56 = vsel %vm575_vm0, %v827_v52, %v829_v7  ;;  %v834_v28 = vrot.slane %v7490_v8, 1 }
 0x262   : > { %12907 = vst [vmem:[#allocation235_spill] sm:$0xff] %v7472_v40  ;;  %2133 = vrot.lane.b32.xlu1 %v7459_v47, %s5751_s16  ;;  %12910 = vst [vmem:[#allocation238_spill] sm:$0xff] %v7486_v51  ;;  %v826_v40 = vrot.slane %v7259_v23, 1 }
 0x263   : > { %2131 = vrot.lane.b32.xlu0 %v7466_v15, %s5751_s16  ;;  %12912 = vst [vmem:[#allocation240_spill] sm:$0xff] %v7499_v56 }
 0x264   : > { %v7483_v12 = vpop.permute.xlu1 %1957  ;;  %v7506_v10 = vsel %vm575_vm0, %v826_v40, %v827_v52  ;;  %v839_v40 = vrot.slane %v7510_v29, 1 }
 0x265   : > { %12909 = vst [vmem:[#allocation237_spill] sm:$0xff] %v7483_v12  ;;  %v7492_v4 = vpop.permute.xlu0 %1955  ;;  %v832_v12 = vrot.slane %v7268_v35, 1  ;;  %12914 = vst [vmem:[#allocation242_spill] sm:$0xff] %v7506_v10 }
 0x266   : > { %12911 = vst [vmem:[#allocation239_spill] sm:$0xff] %v7492_v4  ;;  %2137 = vrot.lane.b32.xlu1 %v7479_v48, %s5751_s16  ;;  %v831_v4 = vrot.slane %v7273_v0, 1 }
 0x267   : > { %2135 = vrot.lane.b32.xlu0 %v7486_v51, %s5751_s16  ;;  %v7519_v7 = vsel %vm575_vm0, %v832_v12, %v834_v28 }
 0x268   : > { %v7503_v24 = vpop.permute.xlu1 %1961  ;;  %12916 = vst [vmem:[#allocation244_spill] sm:$0xff] %v7519_v7  ;;  %v7526_v17 = vsel %vm575_vm0, %v831_v4, %v832_v12  ;;  %v844_v4 = vrot.slane %v7530_v57, 1 }
 0x269   : > { %12913 = vst [vmem:[#allocation241_spill] sm:$0xff] %v7503_v24  ;;  %v7512_v42 = vpop.permute.xlu0 %1959  ;;  %v837_v24 = vrot.slane %v7282_v1, 1  ;;  %12918 = vst [vmem:[#allocation246_spill] sm:$0xff] %v7526_v17 }
 0x26a   : > { %12915 = vst [vmem:[#allocation243_spill] sm:$0xff] %v7512_v42  ;;  %2141 = vrot.lane.b32.xlu1 %v7499_v56, %s5751_s16  ;;  %v836_v42 = vrot.slane %v7287_v5, 1 }
 0x26b   : > { %2139 = vrot.lane.b32.xlu0 %v7506_v10, %s5751_s16  ;;  %v7539_v28 = vsel %vm575_vm0, %v837_v24, %v839_v40  ;;  %v7710_v10 = vld [vmem:[%s7205_s30 + $0x178] sm:$0x3] }
 0x26c   : > { %v7523_v52 = vpop.permute.xlu1 %1965  ;;  %12920 = vst [vmem:[#allocation248_spill] sm:$0xff] %v7539_v28  ;;  %v7546_v6 = vsel %vm575_vm0, %v836_v42, %v837_v24  ;;  %v849_v42 = vrot.slane %v7550_v33, 1 }
 0x26d   : > { %12917 = vst [vmem:[#allocation245_spill] sm:$0xff] %v7523_v52  ;;  %v7532_v27 = vpop.permute.xlu0 %1963  ;;  %v842_v52 = vrot.slane %v7296_v60, 1  ;;  %12922 = vst [vmem:[#allocation250_spill] sm:$0xff] %v7546_v6 }
 0x26e   : > { %12919 = vst [vmem:[#allocation247_spill] sm:$0xff] %v7532_v27  ;;  %2145 = vrot.lane.b32.xlu1 %v7519_v7, %s5751_s16  ;;  %v841_v27 = vrot.slane %v7301_v20, 1  ;;  %v7690_v7 = vld [vmem:[%s7205_s30 + $0x160] sm:$0x3] }
 0x26f   : > { %2143 = vrot.lane.b32.xlu0 %v7526_v17, %s5751_s16  ;;  %v7559_v40 = vsel %vm575_vm0, %v842_v52, %v844_v4  ;;  %v7670_v17 = vld [vmem:[%s7205_s30 + $0x148] sm:$0x3] }
 0x270   : > { %v7543_v12 = vpop.permute.xlu1 %1969  ;;  %12924 = vst [vmem:[#allocation252_spill] sm:$0xff] %v7559_v40  ;;  %v7566_v18 = vsel %vm575_vm0, %v841_v27, %v842_v52  ;;  %v854_v27 = vrot.slane %v7570_v53, 1 }
 0x271   : > { %12921 = vst [vmem:[#allocation249_spill] sm:$0xff] %v7543_v12  ;;  %v7552_v59 = vpop.permute.xlu0 %1967  ;;  %v847_v12 = vrot.slane %v7310_v2, 1  ;;  %12926 = vst [vmem:[#allocation254_spill] sm:$0xff] %v7566_v18 }
 0x272   : > { %12923 = vst [vmem:[#allocation251_spill] sm:$0xff] %v7552_v59  ;;  %2149 = vrot.lane.b32.xlu1 %v7539_v28, %s5751_s16  ;;  %v846_v59 = vrot.slane %v7315_v43, 1  ;;  %v7650_v28 = vld [vmem:[%s7205_s30 + $0x130] sm:$0x3] }
 0x273   : > { %2147 = vrot.lane.b32.xlu0 %v7546_v6, %s5751_s16  ;;  %v7579_v4 = vsel %vm575_vm0, %v847_v12, %v849_v42  ;;  %v7630_v6 = vld [vmem:[%s7205_s30 + $0x118] sm:$0x3] }
 0x274   : > { %v7563_v24 = vpop.permute.xlu1 %1973  ;;  %12928 = vst [vmem:[#allocation256_spill] sm:$0xff] %v7579_v4  ;;  %v7586_v34 = vsel %vm575_vm0, %v846_v59, %v847_v12  ;;  %v859_v59 = vrot.slane %v7590_v19, 1 }
 0x275   : > { %12925 = vst [vmem:[#allocation253_spill] sm:$0xff] %v7563_v24  ;;  %v7572_v37 = vpop.permute.xlu0 %1971  ;;  %v852_v24 = vrot.slane %v7324_v41, 1  ;;  %12930 = vst [vmem:[#allocation258_spill] sm:$0xff] %v7586_v34 }
 0x276   : > { %12927 = vst [vmem:[#allocation255_spill] sm:$0xff] %v7572_v37  ;;  %2153 = vrot.lane.b32.xlu1 %v7559_v40, %s5751_s16  ;;  %v851_v37 = vrot.slane %v7329_v49, 1  ;;  %v7610_v40 = vld [vmem:[%s7205_s30 + $0x100] sm:$0x3] }
 0x277   : > { %2151 = vrot.lane.b32.xlu0 %v7566_v18, %s5751_s16  ;;  %v7599_v42 = vsel %vm575_vm0, %v852_v24, %v854_v27 }
 0x278   : > { %v7583_v52 = vpop.permute.xlu1 %1977  ;;  %12932 = vst [vmem:[#allocation260_spill] sm:$0xff] %v7599_v42  ;;  %v7606_v18 = vsel %vm575_vm0, %v851_v37, %v852_v24  ;;  %v864_v37 = vrot.slane %v7610_v40, 1 }
 0x279   : > { %12929 = vst [vmem:[#allocation257_spill] sm:$0xff] %v7583_v52  ;;  %v7592_v16 = vpop.permute.xlu0 %1975  ;;  %v857_v52 = vrot.slane %v7338_v55, 1  ;;  %12934 = vst [vmem:[#allocation262_spill] sm:$0xff] %v7606_v18 }
 0x27a   : > { %12931 = vst [vmem:[#allocation259_spill] sm:$0xff] %v7592_v16  ;;  %2157 = vrot.lane.b32.xlu1 %v7579_v4, %s5751_s16  ;;  %v856_v16 = vrot.slane %v7343_v9, 1 }
 0x27b   : > { %2155 = vrot.lane.b32.xlu0 %v7586_v34, %s5751_s16  ;;  %v7619_v27 = vsel %vm575_vm0, %v857_v52, %v859_v59 }
 0x27c   : > { %v7603_v12 = vpop.permute.xlu1 %1981  ;;  %12936 = vst [vmem:[#allocation264_spill] sm:$0xff] %v7619_v27  ;;  %v7626_v34 = vsel %vm575_vm0, %v856_v16, %v857_v52  ;;  %v869_v16 = vrot.slane %v7630_v6, 1 }
 0x27d   : > { %12933 = vst [vmem:[#allocation261_spill] sm:$0xff] %v7603_v12  ;;  %v7612_v4 = vpop.permute.xlu0 %1979  ;;  %v862_v12 = vrot.slane %v7352_v14, 1  ;;  %12938 = vst [vmem:[#allocation266_spill] sm:$0xff] %v7626_v34 }
 0x27e   : > { %12935 = vst [vmem:[#allocation263_spill] sm:$0xff] %v7612_v4  ;;  %2161 = vrot.lane.b32.xlu1 %v7599_v42, %s5751_s16  ;;  %v861_v4 = vrot.slane %v7357_v3, 1 }
 0x27f   : > { %2159 = vrot.lane.b32.xlu0 %v7606_v18, %s5751_s16  ;;  %v7639_v59 = vsel %vm575_vm0, %v862_v12, %v864_v37 }
 0x280   : > { %v7623_v24 = vpop.permute.xlu1 %1985  ;;  %12940 = vst [vmem:[#allocation268_spill] sm:$0xff] %v7639_v59  ;;  %v7646_v18 = vsel %vm575_vm0, %v861_v4, %v862_v12  ;;  %v874_v4 = vrot.slane %v7650_v28, 1 }
 0x281   : > { %12937 = vst [vmem:[#allocation265_spill] sm:$0xff] %v7623_v24  ;;  %v7632_v42 = vpop.permute.xlu0 %1983  ;;  %v867_v24 = vrot.slane %v7366_v25, 1  ;;  %12942 = vst [vmem:[#allocation270_spill] sm:$0xff] %v7646_v18 }
 0x282   : > { %12939 = vst [vmem:[#allocation267_spill] sm:$0xff] %v7632_v42  ;;  %2165 = vrot.lane.b32.xlu1 %v7619_v27, %s5751_s16  ;;  %v866_v42 = vrot.slane %v7371_v50, 1 }
 0x283   : > { %2163 = vrot.lane.b32.xlu0 %v7626_v34, %s5751_s16  ;;  %v7659_v37 = vsel %vm575_vm0, %v867_v24, %v869_v16 }
 0x284   : > { %v7643_v52 = vpop.permute.xlu1 %1989  ;;  %12944 = vst [vmem:[#allocation272_spill] sm:$0xff] %v7659_v37  ;;  %v7666_v34 = vsel %vm575_vm0, %v866_v42, %v867_v24  ;;  %v879_v42 = vrot.slane %v7670_v17, 1 }
 0x285   : > { %12941 = vst [vmem:[#allocation269_spill] sm:$0xff] %v7643_v52  ;;  %v7652_v27 = vpop.permute.xlu0 %1987  ;;  %v872_v52 = vrot.slane %v7380_v54, 1  ;;  %12946 = vst [vmem:[#allocation274_spill] sm:$0xff] %v7666_v34 }
 0x286   : > { %12943 = vst [vmem:[#allocation271_spill] sm:$0xff] %v7652_v27  ;;  %2169 = vrot.lane.b32.xlu1 %v7639_v59, %s5751_s16  ;;  %v871_v27 = vrot.slane %v7385_v46, 1 }
 0x287   : > { %2167 = vrot.lane.b32.xlu0 %v7646_v18, %s5751_s16  ;;  %v7679_v16 = vsel %vm575_vm0, %v872_v52, %v874_v4 }
 0x288   : > { %v7663_v12 = vpop.permute.xlu1 %1993  ;;  %12948 = vst [vmem:[#allocation276_spill] sm:$0xff] %v7679_v16  ;;  %v7686_v18 = vsel %vm575_vm0, %v871_v27, %v872_v52  ;;  %v884_v27 = vrot.slane %v7690_v7, 1 }
 0x289   : > { %12945 = vst [vmem:[#allocation273_spill] sm:$0xff] %v7663_v12  ;;  %v7672_v59 = vpop.permute.xlu0 %1991  ;;  %v877_v12 = vrot.slane %v7394_v38, 1  ;;  %12950 = vst [vmem:[#allocation278_spill] sm:$0xff] %v7686_v18 }
 0x28a   : > { %12947 = vst [vmem:[#allocation275_spill] sm:$0xff] %v7672_v59  ;;  %2173 = vrot.lane.b32.xlu1 %v7659_v37, %s5751_s16  ;;  %v876_v59 = vrot.slane %v7399_v30, 1 }
 0x28b   : > { %2171 = vrot.lane.b32.xlu0 %v7666_v34, %s5751_s16  ;;  %v7699_v4 = vsel %vm575_vm0, %v877_v12, %v879_v42 }
 0x28c   : > { %v7683_v24 = vpop.permute.xlu1 %1997  ;;  %12952 = vst [vmem:[#allocation280_spill] sm:$0xff] %v7699_v4  ;;  %v7706_v34 = vsel %vm575_vm0, %v876_v59, %v877_v12  ;;  %v889_v59 = vrot.slane %v7710_v10, 1 }
 0x28d   : > { %12949 = vst [vmem:[#allocation277_spill] sm:$0xff] %v7683_v24  ;;  %v7692_v37 = vpop.permute.xlu0 %1995  ;;  %v882_v24 = vrot.slane %v7408_v22, 1  ;;  %12954 = vst [vmem:[#allocation282_spill] sm:$0xff] %v7706_v34 }
 0x28e   : > { %12951 = vst [vmem:[#allocation279_spill] sm:$0xff] %v7692_v37  ;;  %2177 = vrot.lane.b32.xlu1 %v7679_v16, %s5751_s16  ;;  %v881_v37 = vrot.slane %v7413_v11, 1 }
 0x28f   : > { %2175 = vrot.lane.b32.xlu0 %v7686_v18, %s5751_s16  ;;  %v7719_v42 = vsel %vm575_vm0, %v882_v24, %v884_v27 }
 0x290   : > { %v7703_v52 = vpop.permute.xlu1 %2033  ;;  %12956 = vst [vmem:[#allocation284_spill] sm:$0xff] %v7719_v42  ;;  %v7726_v18 = vsel %vm575_vm0, %v881_v37, %v882_v24  ;;  %v891_v37 = vrot.slane %v7217_v26, 2  ;;  %v896_v26 = vrot.slane %v7231_v58, 2 }
 0x291   : > { %12953 = vst [vmem:[#allocation281_spill] sm:$0xff] %v7703_v52  ;;  %v7712_v16 = vpop.permute.xlu0 %2031  ;;  %v887_v52 = vrot.slane %v7426_v36, 1  ;;  %12958 = vst [vmem:[#allocation286_spill] sm:$0xff] %v7726_v18 }
 0x292   : > { %12955 = vst [vmem:[#allocation283_spill] sm:$0xff] %v7712_v16  ;;  %2181 = vrot.lane.b32.xlu1 %v7699_v4, %s5751_s16  ;;  %v886_v16 = vrot.slane %v7433_v45, 1 }
 0x293   : > { %2179 = vrot.lane.b32.xlu0 %v7706_v34, %s5751_s16  ;;  %v892_v34 = vrot.slane %v7212_v63, 2  ;;  %v7737_v27 = vsel %vm575_vm0, %v887_v52, %v889_v59  ;;  %v897_v63 = vrot.slane %v7226_v21, 2 }
 0x294   : > { %v7723_v12 = vpop.permute.xlu1 %2037  ;;  %12960 = vst [vmem:[#allocation288_spill] sm:$0xff] %v7737_v27  ;;  %v7744_v4 = vsel %vm575_vm0, %v886_v16, %v887_v52 }
 0x295   : > { %12957 = vst [vmem:[#allocation285_spill] sm:$0xff] %v7723_v12  ;;  %v7729_v56 = vpop.permute.xlu0 %2035  ;;  %v894_v12 = vrot.slane %v7416_v31, 2  ;;  %12962 = vst [vmem:[#allocation290_spill] sm:$0xff] %v7744_v4  ;;  %v899_v31 = vrot.slane %v7436_v32, 2  ;;  %v893_v16 = vsel %vm656_vm1, %v891_v37, %v892_v34  ;;  %v904_v32 = vrot.slane %v7452_v61, 2 }
 0x296   : > { %12959 = vst [vmem:[#allocation287_spill] sm:$0xff] %v7729_v56  ;;  %2185 = vrot.lane.b32.xlu1 %v7719_v42, %s5751_s16  ;;  %v907_v61 = vrot.slane %v7254_v44, 2 }
 0x297   : > { %2183 = vrot.lane.b32.xlu0 %v7726_v18, %s5751_s16  ;;  %v895_v59 = vsel %vm656_vm1, %v892_v34, %v894_v12  ;;  %v902_v12 = vrot.slane %v7240_v39, 2  ;;  %v901_v34 = vrot.slane %v7245_v62, 2 }
 0x298   : > { %v7741_v24 = vpop.permute.xlu1 %2041 }
 0x299   : > { %12961 = vst [vmem:[#allocation289_spill] sm:$0xff] %v7741_v24  ;;  %v7746_v56 = vpop.permute.xlu0 %2039 }
 0x29a   : > { %12963 = vst [vmem:[#allocation291_spill] sm:$0xff] %v7746_v56  ;;  %2189 = vrot.lane.b32.xlu1 %v7737_v27, %s5751_s16  ;;  %v7764_v56 = vsel %vm656_vm1, %v897_v63, %v899_v31  ;;  %v909_v31 = vrot.slane %v7470_v13, 2  ;;  %v912_v13 = vrot.slane %v7268_v35, 2 }
 0x29b   : > { %2187 = vrot.lane.b32.xlu0 %v7744_v4, %s5751_s16 }
 0x29c   : > { %v7756_v24 = vpop.permute.xlu1 %2045 }
 0x29d   : > { %12964 = vst [vmem:[#allocation292_spill] sm:$0xff] %v7756_v24  ;;  %v7759_v52 = vpop.permute.xlu0 %2043  ;;  %v7771_v24 = vsel %vm656_vm1, %v896_v26, %v897_v63  ;;  %v7788_v63 = vsel %vm656_vm1, %v901_v34, %v902_v12  ;;  %v906_v26 = vrot.slane %v7259_v23, 2  ;;  %v911_v34 = vrot.slane %v7273_v0, 2 }
 0x29e   : > { %12965 = vst [vmem:[#allocation293_spill] sm:$0xff] %v7759_v52  ;;  %2225 = vrot.lane.b32.xlu1 %v895_v59, %s5752_s17  ;;  %v7781_v59 = vsel %vm656_vm1, %v902_v12, %v904_v32  ;;  %v7798_v32 = vsel %vm656_vm1, %v907_v61, %v909_v31 }
 0x29f   : > { %2223 = vrot.lane.b32.xlu0 %v893_v16, %s5752_s17  ;;  %v7805_v12 = vsel %vm656_vm1, %v906_v26, %v907_v61  ;;  %v7822_v61 = vsel %vm656_vm1, %v911_v34, %v912_v13  ;;  %v916_v26 = vrot.slane %v7287_v5, 2  ;;  %v921_v34 = vrot.slane %v7301_v20, 2 }
 0x2a0   : > { %v7768_v4 = vpop.permute.xlu1 %2049  ;;  %12971 = vst [vmem:[#allocation299_spill] sm:$0xff] %v7805_v12  ;;  %12974 = vst [vmem:[#allocation302_spill] sm:$0xff] %v7822_v61 }
 0x2a1   : > { %12966 = vst [vmem:[#allocation294_spill] sm:$0xff] %v7768_v4  ;;  %v7774_v37 = vpop.permute.xlu0 %2047 }
 0x2a2   : > { %12967 = vst [vmem:[#allocation295_spill] sm:$0xff] %v7774_v37  ;;  %2229 = vrot.lane.b32.xlu1 %v7764_v56, %s5752_s17 }
 0x2a3   : > { %2227 = vrot.lane.b32.xlu0 %v7771_v24, %s5752_s17 }
 0x2a4   : > { %v7785_v16 = vpop.permute.xlu1 %2053 }
 0x2a5   : > { %12968 = vst [vmem:[#allocation296_spill] sm:$0xff] %v7785_v16  ;;  %v7791_v37 = vpop.permute.xlu0 %2051  ;;  %v914_v16 = vrot.slane %v7490_v8, 2  ;;  %v917_v8 = vrot.slane %v7282_v1, 2 }
 0x2a6   : > { %12969 = vst [vmem:[#allocation297_spill] sm:$0xff] %v7791_v37  ;;  %2233 = vrot.lane.b32.xlu1 %v7781_v59, %s5752_s17 }
 0x2a7   : > { %2231 = vrot.lane.b32.xlu0 %v7788_v63, %s5752_s17  ;;  %v7815_v31 = vsel %vm656_vm1, %v912_v13, %v914_v16  ;;  %v7839_v13 = vsel %vm656_vm1, %v916_v26, %v917_v8  ;;  %v926_v26 = vrot.slane %v7315_v43, 2 }
 0x2a8   : > { %v7802_v4 = vpop.permute.xlu1 %2057  ;;  %12977 = vst [vmem:[#allocation305_spill] sm:$0xff] %v7839_v13 }
 0x2a9   : > { %12970 = vst [vmem:[#allocation298_spill] sm:$0xff] %v7802_v4  ;;  %v7808_v37 = vpop.permute.xlu0 %2055  ;;  %v919_v4 = vrot.slane %v7510_v29, 2  ;;  %v922_v29 = vrot.slane %v7296_v60, 2 }
 0x2aa   : > { %12972 = vst [vmem:[#allocation300_spill] sm:$0xff] %v7808_v37  ;;  %2237 = vrot.lane.b32.xlu1 %v7798_v32, %s5752_s17 }
 0x2ab   : > { %2235 = vrot.lane.b32.xlu0 %v7805_v12, %s5752_s17  ;;  %v7832_v16 = vsel %vm656_vm1, %v917_v8, %v919_v4  ;;  %v7856_v8 = vsel %vm656_vm1, %v921_v34, %v922_v29  ;;  %v931_v34 = vrot.slane %v7329_v49, 2 }
 0x2ac   : > { %v7819_v52 = vpop.permute.xlu1 %2061  ;;  %12980 = vst [vmem:[#allocation308_spill] sm:$0xff] %v7856_v8 }
 0x2ad   : > { %12973 = vst [vmem:[#allocation301_spill] sm:$0xff] %v7819_v52  ;;  %v7825_v37 = vpop.permute.xlu0 %2059  ;;  %v924_v52 = vrot.slane %v7530_v57, 2  ;;  %v927_v57 = vrot.slane %v7310_v2, 2 }
 0x2ae   : > { %12975 = vst [vmem:[#allocation303_spill] sm:$0xff] %v7825_v37  ;;  %2241 = vrot.lane.b32.xlu1 %v7815_v31, %s5752_s17 }
 0x2af   : > { %2239 = vrot.lane.b32.xlu0 %v7822_v61, %s5752_s17  ;;  %v7849_v4 = vsel %vm656_vm1, %v922_v29, %v924_v52  ;;  %v7873_v29 = vsel %vm656_vm1, %v926_v26, %v927_v57  ;;  %v936_v26 = vrot.slane %v7343_v9, 2 }
 0x2b0   : > { %v7836_v12 = vpop.permute.xlu1 %2065  ;;  %12983 = vst [vmem:[#allocation311_spill] sm:$0xff] %v7873_v29 }
 0x2b1   : > { %12976 = vst [vmem:[#allocation304_spill] sm:$0xff] %v7836_v12  ;;  %v7842_v37 = vpop.permute.xlu0 %2063  ;;  %v929_v12 = vrot.slane %v7550_v33, 2  ;;  %v932_v33 = vrot.slane %v7324_v41, 2 }
 0x2b2   : > { %12978 = vst [vmem:[#allocation306_spill] sm:$0xff] %v7842_v37  ;;  %2245 = vrot.lane.b32.xlu1 %v7832_v16, %s5752_s17 }
 0x2b3   : > { %2243 = vrot.lane.b32.xlu0 %v7839_v13, %s5752_s17  ;;  %v7866_v52 = vsel %vm656_vm1, %v927_v57, %v929_v12  ;;  %v7890_v57 = vsel %vm656_vm1, %v931_v34, %v932_v33  ;;  %v941_v34 = vrot.slane %v7357_v3, 2 }
 0x2b4   : > { %v7853_v61 = vpop.permute.xlu1 %2069  ;;  %12986 = vst [vmem:[#allocation314_spill] sm:$0xff] %v7890_v57 }
 0x2b5   : > { %12979 = vst [vmem:[#allocation307_spill] sm:$0xff] %v7853_v61  ;;  %v7859_v37 = vpop.permute.xlu0 %2067  ;;  %v934_v61 = vrot.slane %v7570_v53, 2  ;;  %v937_v53 = vrot.slane %v7338_v55, 2 }
 0x2b6   : > { %12981 = vst [vmem:[#allocation309_spill] sm:$0xff] %v7859_v37  ;;  %2249 = vrot.lane.b32.xlu1 %v7849_v4, %s5752_s17 }
 0x2b7   : > { %2247 = vrot.lane.b32.xlu0 %v7856_v8, %s5752_s17  ;;  %v7883_v12 = vsel %vm656_vm1, %v932_v33, %v934_v61  ;;  %v7907_v33 = vsel %vm656_vm1, %v936_v26, %v937_v53  ;;  %v946_v26 = vrot.slane %v7371_v50, 2 }
 0x2b8   : > { %v7870_v13 = vpop.permute.xlu1 %2073  ;;  %12989 = vst [vmem:[#allocation317_spill] sm:$0xff] %v7907_v33 }
 0x2b9   : > { %12982 = vst [vmem:[#allocation310_spill] sm:$0xff] %v7870_v13  ;;  %v7876_v37 = vpop.permute.xlu0 %2071  ;;  %v939_v13 = vrot.slane %v7590_v19, 2  ;;  %v942_v19 = vrot.slane %v7352_v14, 2 }
 0x2ba   : > { %12984 = vst [vmem:[#allocation312_spill] sm:$0xff] %v7876_v37  ;;  %2253 = vrot.lane.b32.xlu1 %v7866_v52, %s5752_s17 }
 0x2bb   : > { %2251 = vrot.lane.b32.xlu0 %v7873_v29, %s5752_s17  ;;  %v7900_v61 = vsel %vm656_vm1, %v937_v53, %v939_v13  ;;  %v7924_v53 = vsel %vm656_vm1, %v941_v34, %v942_v19  ;;  %v951_v34 = vrot.slane %v7385_v46, 2 }
 0x2bc   : > { %v7887_v8 = vpop.permute.xlu1 %2077  ;;  %12992 = vst [vmem:[#allocation320_spill] sm:$0xff] %v7924_v53 }
 0x2bd   : > { %12985 = vst [vmem:[#allocation313_spill] sm:$0xff] %v7887_v8  ;;  %v7893_v37 = vpop.permute.xlu0 %2075  ;;  %v944_v8 = vrot.slane %v7610_v40, 2  ;;  %v947_v40 = vrot.slane %v7366_v25, 2 }
 0x2be   : > { %12987 = vst [vmem:[#allocation315_spill] sm:$0xff] %v7893_v37  ;;  %2257 = vrot.lane.b32.xlu1 %v7883_v12, %s5752_s17 }
 0x2bf   : > { %2255 = vrot.lane.b32.xlu0 %v7890_v57, %s5752_s17  ;;  %v7917_v13 = vsel %vm656_vm1, %v942_v19, %v944_v8  ;;  %v7941_v19 = vsel %vm656_vm1, %v946_v26, %v947_v40  ;;  %v956_v26 = vrot.slane %v7399_v30, 2 }
 0x2c0   : > { %v7904_v29 = vpop.permute.xlu1 %2081  ;;  %12995 = vst [vmem:[#allocation323_spill] sm:$0xff] %v7941_v19 }
 0x2c1   : > { %12988 = vst [vmem:[#allocation316_spill] sm:$0xff] %v7904_v29  ;;  %v7910_v37 = vpop.permute.xlu0 %2079  ;;  %v949_v29 = vrot.slane %v7630_v6, 2  ;;  %v952_v6 = vrot.slane %v7380_v54, 2 }
 0x2c2   : > { %12990 = vst [vmem:[#allocation318_spill] sm:$0xff] %v7910_v37  ;;  %2261 = vrot.lane.b32.xlu1 %v7900_v61, %s5752_s17 }
 0x2c3   : > { %2259 = vrot.lane.b32.xlu0 %v7907_v33, %s5752_s17  ;;  %v7934_v8 = vsel %vm656_vm1, %v947_v40, %v949_v29  ;;  %v7958_v40 = vsel %vm656_vm1, %v951_v34, %v952_v6  ;;  %v961_v34 = vrot.slane %v7413_v11, 2 }
 0x2c4   : > { %v7921_v57 = vpop.permute.xlu1 %2085  ;;  %12998 = vst [vmem:[#allocation326_spill] sm:$0xff] %v7958_v40 }
 0x2c5   : > { %12991 = vst [vmem:[#allocation319_spill] sm:$0xff] %v7921_v57  ;;  %v7927_v37 = vpop.permute.xlu0 %2083  ;;  %v954_v57 = vrot.slane %v7650_v28, 2  ;;  %v957_v28 = vrot.slane %v7394_v38, 2 }
 0x2c6   : > { %12993 = vst [vmem:[#allocation321_spill] sm:$0xff] %v7927_v37  ;;  %2265 = vrot.lane.b32.xlu1 %v7917_v13, %s5752_s17 }
 0x2c7   : > { %2263 = vrot.lane.b32.xlu0 %v7924_v53, %s5752_s17  ;;  %v7951_v29 = vsel %vm656_vm1, %v952_v6, %v954_v57  ;;  %v7975_v6 = vsel %vm656_vm1, %v956_v26, %v957_v28  ;;  %v966_v26 = vrot.slane %v7433_v45, 2 }
 0x2c8   : > { %v7938_v33 = vpop.permute.xlu1 %2089  ;;  %13001 = vst [vmem:[#allocation329_spill] sm:$0xff] %v7975_v6 }
 0x2c9   : > { %12994 = vst [vmem:[#allocation322_spill] sm:$0xff] %v7938_v33  ;;  %v7944_v37 = vpop.permute.xlu0 %2087  ;;  %v959_v33 = vrot.slane %v7670_v17, 2  ;;  %v962_v17 = vrot.slane %v7408_v22, 2 }
 0x2ca   : > { %12996 = vst [vmem:[#allocation324_spill] sm:$0xff] %v7944_v37  ;;  %2269 = vrot.lane.b32.xlu1 %v7934_v8, %s5752_s17 }
 0x2cb   : > { %2267 = vrot.lane.b32.xlu0 %v7941_v19, %s5752_s17  ;;  %v7968_v57 = vsel %vm656_vm1, %v957_v28, %v959_v33  ;;  %v7992_v28 = vsel %vm656_vm1, %v961_v34, %v962_v17 }
 0x2cc   : > { %v7955_v53 = vpop.permute.xlu1 %2093 }
 0x2cd   : > { %12997 = vst [vmem:[#allocation325_spill] sm:$0xff] %v7955_v53  ;;  %v7961_v37 = vpop.permute.xlu0 %2091  ;;  %v964_v53 = vrot.slane %v7690_v7, 2  ;;  %v967_v7 = vrot.slane %v7426_v36, 2 }
 0x2ce   : > { %12999 = vst [vmem:[#allocation327_spill] sm:$0xff] %v7961_v37  ;;  %2273 = vrot.lane.b32.xlu1 %v7951_v29, %s5752_s17 }
 0x2cf   : > { %2271 = vrot.lane.b32.xlu0 %v7958_v40, %s5752_s17  ;;  %v7985_v33 = vsel %vm656_vm1, %v962_v17, %v964_v53 }
 0x2d0   : > { %v7972_v19 = vpop.permute.xlu1 %2129 }
 0x2d1   : > { %13000 = vst [vmem:[#allocation328_spill] sm:$0xff] %v7972_v19  ;;  %v7978_v37 = vpop.permute.xlu0 %2127  ;;  %v969_v19 = vrot.slane %v7710_v10, 2  ;;  %v8007_v10 = vsel %vm656_vm1, %v966_v26, %v967_v7 }
 0x2d2   : > { %13002 = vst [vmem:[#allocation330_spill] sm:$0xff] %v7978_v37  ;;  %2277 = vrot.lane.b32.xlu1 %v7968_v57, %s5752_s17 }
 0x2d3   : > { %2275 = vrot.lane.b32.xlu0 %v7975_v6, %s5752_s17  ;;  %v8002_v53 = vsel %vm656_vm1, %v967_v7, %v969_v19 }
 0x2d4   : > { %v7989_v40 = vpop.permute.xlu1 %2133 }
 0x2d5   : > { %13003 = vst [vmem:[#allocation331_spill] sm:$0xff] %v7989_v40  ;;  %v7995_v37 = vpop.permute.xlu0 %2131  ;;  %v8256_v40 = vld [vmem:[%s7205_s30 + $0x190] sm:$0x3] }
 0x2d6   : > { %13004 = vst [vmem:[#allocation332_spill] sm:$0xff] %v7995_v37  ;;  %2281 = vrot.lane.b32.xlu1 %v7985_v33, %s5752_s17 }
 0x2d7   : > { %2279 = vrot.lane.b32.xlu0 %v7992_v28, %s5752_s17 }
 0x2d8   : > { %v8004_v6 = vpop.permute.xlu1 %2137 }
 0x2d9   : > { %13005 = vst [vmem:[#allocation333_spill] sm:$0xff] %v8004_v6  ;;  %v8009_v17 = vpop.permute.xlu0 %2135  ;;  %v13073_v6 = vld [vmem:[#allocation280_spill] sm:$0xff] }
 0x2da   : > { %13006 = vst [vmem:[#allocation334_spill] sm:$0xff] %v8009_v17  ;;  %2285 = vrot.lane.b32.xlu1 %v8002_v53, %s5752_s17 }
 0x2db   : > { %2283 = vrot.lane.b32.xlu0 %v8007_v10, %s5752_s17  ;;  %s336_s17 = sadd.s32 2, %s5724_s18 }
 0x2dc   : > { %v8015_v34 = vpop.permute.xlu1 %2141  ;;  %p339_p8 = scmp.lt.s32.totalorder %s336_s17, 17 }
 0x2dd   : > { %13007 = vst [vmem:[#allocation335_spill] sm:$0xff] %v8015_v34  ;;  %v8017_v37 = vpop.permute.xlu0 %2139  ;;  %v13071_v34 = vld [vmem:[#allocation276_spill] sm:$0xff] }
 0x2de   : > { %13008 = vst [vmem:[#allocation336_spill] sm:$0xff] %v8017_v37  ;;  %2321 = vrot.lane.b32.xlu1 %v7226_v21, %s5753_s25  ;;  %s14353_s17 = smov (!%p339_p8, %s336_s17), 17 }
 0x2df   : > { %2319 = vrot.lane.b32.xlu0 %v7231_v58, %s5753_s25 }
 0x2e0   : > { %v8023_v19 = vpop.permute.xlu1 %2145 }
 0x2e1   : > { %13009 = vst [vmem:[#allocation337_spill] sm:$0xff] %v8023_v19  ;;  %v8025_v7 = vpop.permute.xlu0 %2143  ;;  %v13060_v19 = vld [vmem:[#allocation262_spill] sm:$0xff] }
 0x2e2   : > { %13010 = vst [vmem:[#allocation338_spill] sm:$0xff] %v8025_v7  ;;  %2325 = vrot.lane.b32.xlu1 %v7240_v39, %s5753_s25  ;;  %v13059_v7 = vld [vmem:[#allocation260_spill] sm:$0xff] }
 0x2e3   : > { %2323 = vrot.lane.b32.xlu0 %v7245_v62, %s5753_s25 }
 0x2e4   : > { %v8031_v26 = vpop.permute.xlu1 %2149 }
 0x2e5   : > { %13011 = vst [vmem:[#allocation339_spill] sm:$0xff] %v8031_v26  ;;  %v8033_v37 = vpop.permute.xlu0 %2147  ;;  %v13052_v26 = vld [vmem:[#allocation254_spill] sm:$0xff] }
 0x2e6   : > { %13012 = vst [vmem:[#allocation340_spill] sm:$0xff] %v8033_v37  ;;  %2329 = vrot.lane.b32.xlu1 %v7254_v44, %s5753_s25 }
 0x2e7   : > { %2327 = vrot.lane.b32.xlu0 %v7259_v23, %s5753_s25 }
 0x2e8   : > { %v8039_v21 = vpop.permute.xlu1 %2153 }
 0x2e9   : > { %13013 = vst [vmem:[#allocation341_spill] sm:$0xff] %v8039_v21  ;;  %v8041_v58 = vpop.permute.xlu0 %2151  ;;  %v13044_v21 = vld [vmem:[#allocation246_spill] sm:$0xff] }
 0x2ea   : > { %13014 = vst [vmem:[#allocation342_spill] sm:$0xff] %v8041_v58  ;;  %2333 = vrot.lane.b32.xlu1 %v7268_v35, %s5753_s25  ;;  %v13043_v58 = vld [vmem:[#allocation244_spill] sm:$0xff] }
 0x2eb   : > { %2331 = vrot.lane.b32.xlu0 %v7273_v0, %s5753_s25 }
 0x2ec   : > { %v8047_v62 = vpop.permute.xlu1 %2157 }
 0x2ed   : > { %13015 = vst [vmem:[#allocation343_spill] sm:$0xff] %v8047_v62  ;;  %v8049_v39 = vpop.permute.xlu0 %2155 }
 0x2ee   : > { %13016 = vst [vmem:[#allocation344_spill] sm:$0xff] %v8049_v39  ;;  %2337 = vrot.lane.b32.xlu1 %v7282_v1, %s5753_s25 }
 0x2ef   : > { %2335 = vrot.lane.b32.xlu0 %v7287_v5, %s5753_s25 }
 0x2f0   : > { %v8055_v23 = vpop.permute.xlu1 %2161 }
 0x2f1   : > { %13017 = vst [vmem:[#allocation345_spill] sm:$0xff] %v8055_v23  ;;  %v8057_v44 = vpop.permute.xlu0 %2159  ;;  %v13068_v23 = vld [vmem:[#allocation270_spill] sm:$0xff] }
 0x2f2   : > { %13018 = vst [vmem:[#allocation346_spill] sm:$0xff] %v8057_v44  ;;  %2341 = vrot.lane.b32.xlu1 %v7296_v60, %s5753_s25 }
 0x2f3   : > { %2339 = vrot.lane.b32.xlu0 %v7301_v20, %s5753_s25 }
 0x2f4   : > { %v8063_v0 = vpop.permute.xlu1 %2165 }
 0x2f5   : > { %13019 = vst [vmem:[#allocation347_spill] sm:$0xff] %v8063_v0  ;;  %v8065_v35 = vpop.permute.xlu0 %2163  ;;  %v13056_v0 = vld [vmem:[#allocation258_spill] sm:$0xff] }
 0x2f6   : > { %13020 = vst [vmem:[#allocation348_spill] sm:$0xff] %v8065_v35  ;;  %2345 = vrot.lane.b32.xlu1 %v7310_v2, %s5753_s25 }
 0x2f7   : > { %2343 = vrot.lane.b32.xlu0 %v7315_v43, %s5753_s25 }
 0x2f8   : > { %v8071_v5 = vpop.permute.xlu1 %2169 }
 0x2f9   : > { %13021 = vst [vmem:[#allocation349_spill] sm:$0xff] %v8071_v5  ;;  %v8073_v1 = vpop.permute.xlu0 %2167 }
 0x2fa   : > { %13022 = vst [vmem:[#allocation350_spill] sm:$0xff] %v8073_v1  ;;  %2349 = vrot.lane.b32.xlu1 %v7324_v41, %s5753_s25 }
 0x2fb   : > { %2347 = vrot.lane.b32.xlu0 %v7329_v49, %s5753_s25 }
 0x2fc   : > { %v8079_v20 = vpop.permute.xlu1 %2173 }
 0x2fd   : > { %13023 = vst [vmem:[#allocation351_spill] sm:$0xff] %v8079_v20  ;;  %v8081_v60 = vpop.permute.xlu0 %2171 }
 0x2fe   : > { %13024 = vst [vmem:[#allocation352_spill] sm:$0xff] %v8081_v60  ;;  %2353 = vrot.lane.b32.xlu1 %v7338_v55, %s5753_s25  ;;  %v13039_v60 = vld [vmem:[#allocation240_spill] sm:$0xff] }
 0x2ff   : > { %2351 = vrot.lane.b32.xlu0 %v7343_v9, %s5753_s25 }
 0x300   : > { %v8087_v43 = vpop.permute.xlu1 %2177 }
 0x301   : > { %13025 = vst [vmem:[#allocation353_spill] sm:$0xff] %v8087_v43  ;;  %v8089_v2 = vpop.permute.xlu0 %2175  ;;  %v8141_v43 = vld [vmem:[%s7205_s30 + $0x180] sm:$0xff] }
 0x302   : > { %13026 = vst [vmem:[#allocation354_spill] sm:$0xff] %v8089_v2  ;;  %2357 = vrot.lane.b32.xlu1 %v7352_v14, %s5753_s25 }
 0x303   : > { %2355 = vrot.lane.b32.xlu0 %v7357_v3, %s5753_s25 }
 0x304   : > { %v8095_v49 = vpop.permute.xlu1 %2181 }
 0x305   : > { %v8097_v41 = vpop.permute.xlu0 %2179 }
 0x306   : > { %2361 = vrot.lane.b32.xlu1 %v7366_v25, %s5753_s25 }
 0x307   : > { %2359 = vrot.lane.b32.xlu0 %v7371_v50, %s5753_s25 }
 0x308   : > { %v8103_v9 = vpop.permute.xlu1 %2185 }
 0x309   : > { %v8105_v55 = vpop.permute.xlu0 %2183 }
 0x30a   : > { %2365 = vrot.lane.b32.xlu1 %v7380_v54, %s5753_s25 }
 0x30b   : > { %2363 = vrot.lane.b32.xlu0 %v7385_v46, %s5753_s25 }
 0x30c   : > { %v8111_v3 = vpop.permute.xlu1 %2189 }
 0x30d   : > { %v8113_v14 = vpop.permute.xlu0 %2187 }
 0x30e   : > { %2369 = vrot.lane.b32.xlu1 %v7394_v38, %s5753_s25 }
 0x30f   : > { %2367 = vrot.lane.b32.xlu0 %v7399_v30, %s5753_s25  ;;  %v8136_v30 = vld [vmem:[%s7205_s30 + $0x188] sm:$0xff] }
 0x310   : > { %v8119_v50 = vpop.permute.xlu1 %2225 }
 0x311   : > { %13027 = vst [vmem:[#allocation355_spill] sm:$0xff] %v8119_v50  ;;  %v8121_v25 = vpop.permute.xlu0 %2223  ;;  %v975_v50 = vrot.slane %v8136_v30, 1 }
 0x312   : > { %13028 = vst [vmem:[#allocation356_spill] sm:$0xff] %v8121_v25  ;;  %2373 = vrot.lane.b32.xlu1 %v7408_v22, %s5753_s25 }
 0x313   : > { %2371 = vrot.lane.b32.xlu0 %v7413_v11, %s5753_s25 }
 0x314   : > { %v8127_v46 = vpop.permute.xlu1 %2229 }
 0x315   : > { %13029 = vst [vmem:[#allocation357_spill] sm:$0xff] %v8127_v46  ;;  %v8129_v54 = vpop.permute.xlu0 %2227 }
 0x316   : > { %13030 = vst [vmem:[#allocation358_spill] sm:$0xff] %v8129_v54  ;;  %2377 = vrot.lane.b32.xlu1 %v7426_v36, %s5753_s25  ;;  %v13074_v54 = vld [vmem:[#allocation282_spill] sm:$0xff] }
 0x317   : > { %2375 = vrot.lane.b32.xlu0 %v7433_v45, %s5753_s25 }
 0x318   : > { %v8138_v38 = vpop.permute.xlu1 %2233 }
 0x319   : > { %13031 = vst [vmem:[#allocation359_spill] sm:$0xff] %v8138_v38  ;;  %v8143_v22 = vpop.permute.xlu0 %2231 }
 0x31a   : > { %13032 = vst [vmem:[#allocation360_spill] sm:$0xff] %v8143_v22  ;;  %2381 = vrot.lane.b32.xlu1 %v8136_v30, %s5753_s25  ;;  %v13072_v22 = vld [vmem:[#allocation278_spill] sm:$0xff] }
 0x31b   : > { %2379 = vrot.lane.b32.xlu0 %v8141_v43, %s5753_s25  ;;  %s5553_s25 = smul.u32 54, %s14353_s17 }
 0x31c   : > { %v8149_v11 = vpop.permute.xlu1 %2237 }
 0x31d   : > { %13033 = vst [vmem:[#allocation361_spill] sm:$0xff] %v8149_v11  ;;  %v8151_v36 = vpop.permute.xlu0 %2235  ;;  %v13070_v11 = vld [vmem:[#allocation274_spill] sm:$0xff] }
 0x31e   : > { %13034 = vst [vmem:[#allocation362_spill] sm:$0xff] %v8151_v36  ;;  %2417 = vrot.lane.b32.xlu1 %v7459_v47, %s5754_s27  ;;  %v13040_v47 = vld [vmem:[#allocation242_spill] sm:$0xff]  ;;  %v13069_v36 = vld [vmem:[#allocation272_spill] sm:$0xff] }
 0x31f   : > { %2415 = vrot.lane.b32.xlu0 %v7466_v15, %s5754_s27 }
 0x320   : > { %v8157_v45 = vpop.permute.xlu1 %2241 }
 0x321   : > { %13035 = vst [vmem:[#allocation363_spill] sm:$0xff] %v8157_v45  ;;  %v8159_v2 = vpop.permute.xlu0 %2239 }
 0x322   : > { %13036 = vst [vmem:[#allocation364_spill] sm:$0xff] %v8159_v2  ;;  %2421 = vrot.lane.b32.xlu1 %v7479_v48, %s5754_s27 }
 0x323   : > { %2419 = vrot.lane.b32.xlu0 %v7486_v51, %s5754_s27 }
 0x324   : > { %v8165_v62 = vpop.permute.xlu1 %2245 }
 0x325   : > { %13037 = vst [vmem:[#allocation365_spill] sm:$0xff] %v8165_v62  ;;  %v8167_v39 = vpop.permute.xlu0 %2243  ;;  %v13048_v62 = vld [vmem:[#allocation250_spill] sm:$0xff] }
 0x326   : > { %13038 = vst [vmem:[#allocation366_spill] sm:$0xff] %v8167_v39  ;;  %2425 = vrot.lane.b32.xlu1 %v13039_v60, %s5754_s27  ;;  %v13047_v39 = vld [vmem:[#allocation248_spill] sm:$0xff] }
 0x327   : > { %2423 = vrot.lane.b32.xlu0 %v13040_v47, %s5754_s27 }
 0x328   : > { %v8173_v15 = vpop.permute.xlu1 %2249 }
 0x329   : > { %13041 = vst [vmem:[#allocation367_spill] sm:$0xff] %v8173_v15  ;;  %v8175_v20 = vpop.permute.xlu0 %2247 }
 0x32a   : > { %13042 = vst [vmem:[#allocation368_spill] sm:$0xff] %v8175_v20  ;;  %2429 = vrot.lane.b32.xlu1 %v13043_v58, %s5754_s27  ;;  %v13051_v20 = vld [vmem:[#allocation252_spill] sm:$0xff] }
 0x32b   : > { %2427 = vrot.lane.b32.xlu0 %v13044_v21, %s5754_s27 }
 0x32c   : > { %v8181_v1 = vpop.permute.xlu1 %2253 }
 0x32d   : > { %13045 = vst [vmem:[#allocation369_spill] sm:$0xff] %v8181_v1  ;;  %v8183_v5 = vpop.permute.xlu0 %2251 }
 0x32e   : > { %13046 = vst [vmem:[#allocation370_spill] sm:$0xff] %v8183_v5  ;;  %2433 = vrot.lane.b32.xlu1 %v13047_v39, %s5754_s27  ;;  %v13055_v5 = vld [vmem:[#allocation256_spill] sm:$0xff]  ;;  %v13126_v39 = vld [vmem:[#allocation158_spill] sm:$0xff] }
 0x32f   : > { %2431 = vrot.lane.b32.xlu0 %v13048_v62, %s5754_s27 }
 0x330   : > { %v8189_v37 = vpop.permute.xlu1 %2257 }
 0x331   : > { %13049 = vst [vmem:[#allocation371_spill] sm:$0xff] %v8189_v37  ;;  %v8191_v15 = vpop.permute.xlu0 %2255  ;;  %v13064_v37 = vld [vmem:[#allocation266_spill] sm:$0xff] }
 0x332   : > { %13050 = vst [vmem:[#allocation372_spill] sm:$0xff] %v8191_v15  ;;  %2437 = vrot.lane.b32.xlu1 %v13051_v20, %s5754_s27 }
 0x333   : > { %2435 = vrot.lane.b32.xlu0 %v13052_v26, %s5754_s27  ;;  %v13113_v26 = vld [vmem:[#allocation100_spill] sm:$0xff] }
 0x334   : > { %v8197_v35 = vpop.permute.xlu1 %2261 }
 0x335   : > { %13053 = vst [vmem:[#allocation373_spill] sm:$0xff] %v8197_v35  ;;  %v8199_v1 = vpop.permute.xlu0 %2259 }
 0x336   : > { %13054 = vst [vmem:[#allocation374_spill] sm:$0xff] %v8199_v1  ;;  %2441 = vrot.lane.b32.xlu1 %v13055_v5, %s5754_s27  ;;  %v13063_v1 = vld [vmem:[#allocation264_spill] sm:$0xff] }
 0x337   : > { %2439 = vrot.lane.b32.xlu0 %v13056_v0, %s5754_s27 }
 0x338   : > { %v8205_v2 = vpop.permute.xlu1 %2265 }
 0x339   : > { %13057 = vst [vmem:[#allocation375_spill] sm:$0xff] %v8205_v2  ;;  %v8207_v45 = vpop.permute.xlu0 %2263 }
 0x33a   : > { %13058 = vst [vmem:[#allocation376_spill] sm:$0xff] %v8207_v45  ;;  %2445 = vrot.lane.b32.xlu1 %v13059_v7, %s5754_s27  ;;  %v13067_v45 = vld [vmem:[#allocation268_spill] sm:$0xff]  ;;  %v13108_v7 = vld [vmem:[#allocation71_spill] sm:$0xff] }
 0x33b   : > { %2443 = vrot.lane.b32.xlu0 %v13060_v19, %s5754_s27  ;;  %v5615_v19 = vld [vmem:[%s5832_s7 + $0x170] sm:$0xff] }
 0x33c   : > { %v8213_v15 = vpop.permute.xlu1 %2269  ;;  %v2735_v0 = vsel %vm2703_vm2, %v5615_v19, %v13108_v7  ;;  %v13115_v19 = vld [vmem:[#allocation102_spill] sm:$0xff] }
 0x33d   : > { %13061 = vst [vmem:[#allocation377_spill] sm:$0xff] %v8213_v15  ;;  %v8215_v35 = vpop.permute.xlu0 %2267  ;;  %v2768_v7 = vsel %vm2736_vm3, %v2735_v0, %v13115_v19  ;;  %v13122_v0 = vld [vmem:[#allocation130_spill] sm:$0xff] }
 0x33e   : > { %13062 = vst [vmem:[#allocation378_spill] sm:$0xff] %v8215_v35  ;;  %2449 = vrot.lane.b32.xlu1 %v13063_v1, %s5754_s27  ;;  %v977_v1 = vrot.slane %v8256_v40, 1  ;;  %v2801_v19 = vsel %vm2769_vm4, %v2768_v7, %v13122_v0 }
 0x33f   : > { %2447 = vrot.lane.b32.xlu0 %v13064_v37, %s5754_s27 }
 0x340   : > { %v8221_v44 = vpop.permute.xlu1 %2273 }
 0x341   : > { %13065 = vst [vmem:[#allocation379_spill] sm:$0xff] %v8221_v44  ;;  %v8223_v2 = vpop.permute.xlu0 %2271 }
 0x342   : > { %13066 = vst [vmem:[#allocation380_spill] sm:$0xff] %v8223_v2  ;;  %2453 = vrot.lane.b32.xlu1 %v13067_v45, %s5754_s27  ;;  %v13107_v45 = vld [vmem:[#allocation70_spill] sm:$0xff] }
 0x343   : > { %2451 = vrot.lane.b32.xlu0 %v13068_v23, %s5754_s27  ;;  %v5614_v23 = vld [vmem:[%s5832_s7 + $0x150] sm:$0xff] }
 0x344   : > { %v8229_v15 = vpop.permute.xlu1 %2277  ;;  %v2732_v37 = vsel %vm2703_vm2, %v5614_v23, %v13107_v45  ;;  %v13114_v45 = vld [vmem:[#allocation101_spill] sm:$0xff] }
 0x345   : > { %v8231_v35 = vpop.permute.xlu0 %2275  ;;  %v2765_v20 = vsel %vm2736_vm3, %v2732_v37, %v13114_v45  ;;  %v13120_v37 = vld [vmem:[#allocation35_spill] sm:$0xff] }
 0x346   : > { %2457 = vrot.lane.b32.xlu1 %v13069_v36, %s5754_s27 }
 0x347   : > { %2455 = vrot.lane.b32.xlu0 %v13070_v11, %s5754_s27  ;;  %v13105_v11 = vld [vmem:[#allocation69_spill] sm:$0xff] }
 0x348   : > { %v8237_v44 = vpop.permute.xlu1 %2281 }
 0x349   : > { %v8239_v2 = vpop.permute.xlu0 %2279 }
 0x34a   : > { %2461 = vrot.lane.b32.xlu1 %v13071_v34, %s5754_s27 }
 0x34b   : > { %2459 = vrot.lane.b32.xlu0 %v13072_v22, %s5754_s27 }
 0x34c   : > { %v8245_v38 = vpop.permute.xlu1 %2285 }
 0x34d   : > { %v8247_v17 = vpop.permute.xlu0 %2283 }
 0x34e   : > { %2465 = vrot.lane.b32.xlu1 %v13073_v6, %s5754_s27  ;;  %v974_v6 = vrot.slane %v8141_v43, 1 }
 0x34f   : > { %2463 = vrot.lane.b32.xlu0 %v13074_v54, %s5754_s27 }
 0x350   : > { %v8253_v46 = vpop.permute.xlu1 %2321 }
 0x351   : > { %13075 = vst [vmem:[#allocation381_spill] sm:$0xff] %v8253_v46  ;;  %v8258_v25 = vpop.permute.xlu0 %2319  ;;  %v8276_v46 = vsel %vm575_vm0, %v975_v50, %v977_v1 }
 0x352   : > { %13076 = vst [vmem:[#allocation382_spill] sm:$0xff] %v8258_v25  ;;  %2469 = vrot.lane.b32.xlu1 %v7719_v42, %s5754_s27  ;;  %v13079_v25 = vld [vmem:[#allocation290_spill] sm:$0xff]  ;;  %13080 = vst [vmem:[#allocation385_spill] sm:$0xff] %v8276_v46 }
 0x353   : > { %2467 = vrot.lane.b32.xlu0 %v7726_v18, %s5754_s27  ;;  %v8281_v18 = vsel %vm575_vm0, %v974_v6, %v975_v50 }
 0x354   : > { %v8267_v22 = vpop.permute.xlu1 %2325  ;;  %13082 = vst [vmem:[#allocation387_spill] sm:$0xff] %v8281_v18 }
 0x355   : > { %13077 = vst [vmem:[#allocation383_spill] sm:$0xff] %v8267_v22  ;;  %v8269_v54 = vpop.permute.xlu0 %2323 }
 0x356   : > { %13078 = vst [vmem:[#allocation384_spill] sm:$0xff] %v8269_v54  ;;  %2473 = vrot.lane.b32.xlu1 %v7737_v27, %s5754_s27  ;;  %v13104_v27 = vld [vmem:[#allocation68_spill] sm:$0xff] }
 0x357   : > { %2471 = vrot.lane.b32.xlu0 %v13079_v25, %s5754_s27  ;;  %v5613_v25 = vld [vmem:[%s5832_s7 + $0x158] sm:$0xff] }
 0x358   : > { %v8278_v42 = vpop.permute.xlu1 %2329 }
 0x359   : > { %13081 = vst [vmem:[#allocation386_spill] sm:$0xff] %v8278_v42  ;;  %v8283_v34 = vpop.permute.xlu0 %2327  ;;  %v13103_v42 = vld [vmem:[#allocation67_spill] sm:$0xff] }
 0x35a   : > { %13083 = vst [vmem:[#allocation388_spill] sm:$0xff] %v8283_v34  ;;  %2477 = vrot.lane.b32.xlu1 %v8276_v46, %s5754_s27  ;;  %v13099_v34 = vld [vmem:[#allocation308_spill] sm:$0xff] }
 0x35b   : > { %2475 = vrot.lane.b32.xlu0 %v8281_v18, %s5754_s27  ;;  %v5612_v18 = vld [vmem:[%s5832_s7 + $0x138] sm:$0xff]  ;;  %s343_s27 = sadd.s32 %s5553_s25, %s5826_s26 }
 0x35c   : > { %v8289_v54 = vpop.permute.xlu1 %2333 }
 0x35d   : > { %13084 = vst [vmem:[#allocation389_spill] sm:$0xff] %v8289_v54  ;;  %v8291_v22 = vpop.permute.xlu0 %2331  ;;  %v13096_v54 = vld [vmem:[#allocation305_spill] sm:$0xff] }
 0x35e   : > { %13085 = vst [vmem:[#allocation390_spill] sm:$0xff] %v8291_v22  ;;  %2513 = vrot.lane.b32.xlu1 %v7764_v56, %s5755_s28  ;;  %v13090_v56 = vld [vmem:[#allocation299_spill] sm:$0xff] }
 0x35f   : > { %2511 = vrot.lane.b32.xlu0 %v7771_v24, %s5755_s28 }
 0x360   : > { %v8297_v6 = vpop.permute.xlu1 %2337 }
 0x361   : > { %13086 = vst [vmem:[#allocation391_spill] sm:$0xff] %v8297_v6  ;;  %v8299_v1 = vpop.permute.xlu0 %2335 }
 0x362   : > { %13087 = vst [vmem:[#allocation392_spill] sm:$0xff] %v8299_v1  ;;  %2517 = vrot.lane.b32.xlu1 %v7781_v59, %s5755_s28  ;;  %v13093_v1 = vld [vmem:[#allocation302_spill] sm:$0xff] }
 0x363   : > { %2515 = vrot.lane.b32.xlu0 %v7788_v63, %s5755_s28 }
 0x364   : > { %v8305_v50 = vpop.permute.xlu1 %2341 }
 0x365   : > { %13088 = vst [vmem:[#allocation393_spill] sm:$0xff] %v8305_v50  ;;  %v8307_v22 = vpop.permute.xlu0 %2339 }
 0x366   : > { %13089 = vst [vmem:[#allocation394_spill] sm:$0xff] %v8307_v22  ;;  %2521 = vrot.lane.b32.xlu1 %v7798_v32, %s5755_s28 }
 0x367   : > { %2519 = vrot.lane.b32.xlu0 %v13090_v56, %s5755_s28 }
 0x368   : > { %v8313_v24 = vpop.permute.xlu1 %2345 }
 0x369   : > { %13091 = vst [vmem:[#allocation299_spill] sm:$0xff] %v8313_v24  ;;  %v8315_v6 = vpop.permute.xlu0 %2343 }
 0x36a   : > { %13092 = vst [vmem:[#allocation395_spill] sm:$0xff] %v8315_v6  ;;  %2525 = vrot.lane.b32.xlu1 %v7815_v31, %s5755_s28 }
 0x36b   : > { %2523 = vrot.lane.b32.xlu0 %v13093_v1, %s5755_s28 }
 0x36c   : > { %v8321_v50 = vpop.permute.xlu1 %2349 }
 0x36d   : > { %13094 = vst [vmem:[#allocation302_spill] sm:$0xff] %v8321_v50  ;;  %v8323_v22 = vpop.permute.xlu0 %2347 }
 0x36e   : > { %13095 = vst [vmem:[#allocation396_spill] sm:$0xff] %v8323_v22  ;;  %2529 = vrot.lane.b32.xlu1 %v7832_v16, %s5755_s28 }
 0x36f   : > { %2527 = vrot.lane.b32.xlu0 %v13096_v54, %s5755_s28 }
 0x370   : > { %v8329_v6 = vpop.permute.xlu1 %2353 }
 0x371   : > { %13097 = vst [vmem:[#allocation305_spill] sm:$0xff] %v8329_v6  ;;  %v8331_v24 = vpop.permute.xlu0 %2351  ;;  %v5611_v6 = vld [vmem:[%s5832_s7 + $0x140] sm:$0xff] }
 0x372   : > { %13098 = vst [vmem:[#allocation397_spill] sm:$0xff] %v8331_v24  ;;  %2533 = vrot.lane.b32.xlu1 %v7849_v4, %s5755_s28  ;;  %v13102_v24 = vld [vmem:[#allocation311_spill] sm:$0xff]  ;;  %v2731_v46 = vsel %vm2703_vm2, %v5611_v6, %v13103_v42  ;;  %v13109_v6 = vld [vmem:[#allocation72_spill] sm:$0xff] }
 0x373   : > { %2531 = vrot.lane.b32.xlu0 %v13099_v34, %s5755_s28  ;;  %v5616_v42 = vld [vmem:[%s5832_s7 + $0x168] sm:$0xff] }
 0x374   : > { %v8337_v50 = vpop.permute.xlu1 %2357  ;;  %v2734_v5 = vsel %vm2703_vm2, %v5616_v42, %v13109_v6  ;;  %v13116_v42 = vld [vmem:[#allocation103_spill] sm:$0xff] }
 0x375   : > { %13100 = vst [vmem:[#allocation308_spill] sm:$0xff] %v8337_v50  ;;  %v8339_v22 = vpop.permute.xlu0 %2355  ;;  %v2730_v50 = vsel %vm2703_vm2, %v5612_v18, %v13104_v27  ;;  %v13111_v27 = vld [vmem:[#allocation98_spill] sm:$0xff]  ;;  %v2767_v6 = vsel %vm2736_vm3, %v2734_v5, %v13116_v42  ;;  %v13124_v42 = vld [vmem:[#allocation131_spill] sm:$0xff] }
 0x376   : > { %13101 = vst [vmem:[#allocation398_spill] sm:$0xff] %v8339_v22  ;;  %2537 = vrot.lane.b32.xlu1 %v7866_v52, %s5755_s28  ;;  %v2733_v22 = vsel %vm2703_vm2, %v5613_v25, %v13105_v11  ;;  %v2764_v25 = vsel %vm2736_vm3, %v2731_v46, %v13111_v27  ;;  %v13112_v11 = vld [vmem:[#allocation99_spill] sm:$0xff] }
 0x377   : > { %2535 = vrot.lane.b32.xlu0 %v13102_v24, %s5755_s28  ;;  %v2766_v23 = vsel %vm2736_vm3, %v2733_v22, %v13113_v26  ;;  %v13119_v26 = vld [vmem:[#allocation128_spill] sm:$0xff] }
 0x378   : > { %v8354_v36 = vpop.permute.xlu1 %2361  ;;  %v2799_v27 = vsel %vm2769_vm4, %v2766_v23, %v13120_v37  ;;  %v13128_v23 = vld [vmem:[#allocation159_spill] sm:$0xff]  ;;  %v13129_v37 = vld [vmem:[#allocation160_spill] sm:$0xff] }
 0x379   : > { %13106 = vst [vmem:[#allocation311_spill] sm:$0xff] %v8354_v36  ;;  %v8365_v18 = vpop.permute.xlu0 %2359  ;;  %v2763_v36 = vsel %vm2736_vm3, %v2730_v50, %v13112_v11  ;;  %v13118_v50 = vld [vmem:[#allocation314_spill] sm:$0xff]  ;;  %v13121_v11 = vld [vmem:[#allocation129_spill] sm:$0xff] }
 0x37a   : > { %13110 = vst [vmem:[#allocation67_spill] sm:$0xff] %v8365_v18  ;;  %2541 = vrot.lane.b32.xlu1 %v7883_v12, %s5755_s28  ;;  %v13117_v18 = vld [vmem:[#allocation127_spill] sm:$0xff]  ;;  %v2796_v22 = vsel %vm2769_vm4, %v2763_v36, %v13119_v26  ;;  %v2798_v45 = vsel %vm2769_vm4, %v2765_v20, %v13121_v11  ;;  %v2832_v20 = vsel %vm12567_vm5, %v2799_v27, %v13128_v23  ;;  %v13130_v11 = vld [vmem:[#allocation161_spill] sm:$0xff] }
 0x37b   : > { %v2797_v46 = vsel %vm2769_vm4, %v2764_v25, %v13117_v18  ;;  %2539 = vrot.lane.b32.xlu0 %v13118_v50, %s5755_s28  ;;  %v2800_v18 = vsel %vm2769_vm4, %v2767_v6, %v13124_v42  ;;  %v13125_v25 = vld [vmem:[#allocation157_spill] sm:$0xff]  ;;  %v2829_v36 = vsel %vm12567_vm5, %v2796_v22, %v13126_v39  ;;  %v2831_v7 = vsel %vm12567_vm5, %v2798_v45, %v13129_v37  ;;  %v13133_v22 = vld [vmem:[#allocation18_spill] sm:$0xff]  ;;  %v13138_v37 = vld [vmem:[#allocation220_spill] sm:$0xff] }
 0x37c   : > { %v8393_v5 = vpop.permute.xlu1 %2365  ;;  %v2830_v62 = vsel %vm12567_vm5, %v2797_v46, %v13125_v25  ;;  %v2834_v0 = vsel %vm12567_vm5, %v2801_v19, %v13130_v11  ;;  %v13132_v46 = vld [vmem:[#allocation162_spill] sm:$0xff]  ;;  %v2862_v42 = vsel %vm2835_vm6, %v2829_v36, %v13133_v22  ;;  %v13134_v25 = vld [vmem:[#allocation36_spill] sm:$0xff]  ;;  %v13135_v45 = vld [vmem:[#allocation317_spill] sm:$0xff] }
 0x37d   : > { %13123 = vst [vmem:[#allocation68_spill] sm:$0xff] %v8393_v5  ;;  %v8401_v26 = vpop.permute.xlu0 %2363  ;;  %v13131_v5 = vld [vmem:[#allocation17_spill] sm:$0xff]  ;;  %v2833_v39 = vsel %vm12567_vm5, %v2800_v18, %v13132_v46  ;;  %v13136_v19 = vld [vmem:[#allocation19_spill] sm:$0xff]  ;;  %v13140_v36 = vld [vmem:[#allocation20_spill] sm:$0xff] }
 0x37e   : > { %13127 = vst [vmem:[#allocation69_spill] sm:$0xff] %v8401_v26  ;;  %v2863_v6 = vsel %vm2835_vm6, %v2830_v62, %v13131_v5  ;;  %2545 = vrot.lane.b32.xlu1 %v7900_v61, %s5755_s28  ;;  %v2865_v23 = vsel %vm2835_vm6, %v2832_v20, %v13136_v19  ;;  %v13137_v62 = vld [vmem:[#allocation192_spill] sm:$0xff]  ;;  %v2864_v46 = vsel %vm2835_vm6, %v2831_v7, %v13140_v36  ;;  %v13144_v19 = vld [vmem:[#allocation37_spill] sm:$0xff] }
 0x37f   : > { %v2896_v27 = vsel %vm2868_vm7, %v2863_v6, %v13134_v25  ;;  %2543 = vrot.lane.b32.xlu0 %v13135_v45, %s5755_s28  ;;  %v2895_v5 = vsel %vm2868_vm7, %v2862_v42, %v13137_v62  ;;  %v13141_v6 = vld [vmem:[#allocation221_spill] sm:$0xff]  ;;  %v2898_v42 = vsel %vm2868_vm7, %v2865_v23, %v13144_v19  ;;  %v13145_v62 = vld [vmem:[#allocation271_spill] sm:$0xff]  ;;  %v13149_v23 = vld [vmem:[#allocation320_spill] sm:$0xff] }
 0x380   : > { %v2929_v11 = vsel %vm2901_vm8, %v2896_v27, %v13138_v37  ;;  %v8427_v18 = vpop.permute.xlu1 %2369  ;;  %v2928_v22 = vsel %vm2901_vm8, %v2895_v5, %v13141_v6  ;;  %v13142_v25 = vld [vmem:[#allocation269_spill] sm:$0xff]  ;;  %v13146_v37 = vld [vmem:[#allocation319_spill] sm:$0xff] }
 0x381   : > { %13139 = vst [vmem:[#allocation70_spill] sm:$0xff] %v8427_v18  ;;  %v2962_v26 = vsel %vm2934_vm9, %v2929_v11, %v13142_v25  ;;  %v8435_v20 = vpop.permute.xlu0 %2367  ;;  %v2961_v27 = vsel %vm2934_vm9, %v2928_v22, %v13145_v62  ;;  %v13147_v7 = vld [vmem:[#allocation193_spill] sm:$0xff]  ;;  %v13150_v22 = vld [vmem:[#allocation222_spill] sm:$0xff]  ;;  %v13151_v62 = vld [vmem:[#allocation223_spill] sm:$0xff] }
 0x382   : > { %13143 = vst [vmem:[#allocation71_spill] sm:$0xff] %v8435_v20  ;;  %v2995_v18 = vsel %vm2967_vm10, %v2962_v26, %v13146_v37  ;;  %2549 = vrot.lane.b32.xlu1 %v7917_v13, %s5755_s28  ;;  %v2897_v5 = vsel %vm2868_vm7, %v2864_v46, %v13147_v7  ;;  %v13148_v11 = vld [vmem:[#allocation321_spill] sm:$0xff]  ;;  %v2931_v26 = vsel %vm2901_vm8, %v2898_v42, %v13150_v22 }
 0x383   : > { %v2994_v36 = vsel %vm2967_vm10, %v2961_v27, %v13148_v11  ;;  %v3028_v6 = vsel %vm3000_vm11, %v2995_v18, %v8095_v49  ;;  %2547 = vrot.lane.b32.xlu0 %v13149_v23, %s5755_s28  ;;  %v2930_v27 = vsel %vm2901_vm8, %v2897_v5, %v13151_v62  ;;  %v13152_v37 = vld [vmem:[#allocation273_spill] sm:$0xff] }
 0x384   : > { %v3027_v25 = vsel %vm3000_vm11, %v2994_v36, %v8097_v41  ;;  %v3061_v19 = vsel %vm3033_vm12, %v3028_v6, %v8229_v15  ;;  %v2374_v46 = vpop.permute.xlu1 %2373  ;;  %v2964_v49 = vsel %vm2934_vm9, %v2931_v26, %v13152_v37  ;;  %v13153_v11 = vld [vmem:[#allocation21_spill] sm:$0xff]  ;;  %v13154_v36 = vld [vmem:[#allocation275_spill] sm:$0xff]  ;;  %v13155_v6 = vld [vmem:[#allocation322_spill] sm:$0xff] }
 0x385   : > { %v3060_v18 = vsel %vm3033_vm12, %v3027_v25, %v8231_v35  ;;  %v8466_v7 = vsel %vm12566_vm13, %v3061_v19, %v2374_v46  ;;  %v2372_v42 = vpop.permute.xlu0 %2371  ;;  %v2867_v41 = vsel %vm2835_vm6, %v2834_v0, %v13153_v11  ;;  %v2963_v15 = vsel %vm2934_vm9, %v2930_v27, %v13154_v36  ;;  %v13156_v35 = vld [vmem:[#allocation22_spill] sm:$0xff]  ;;  %v13158_v46 = vld [vmem:[#allocation324_spill] sm:$0xff]  ;;  %v13159_v27 = vld [vmem:[#allocation323_spill] sm:$0xff] }
 0x386   : > { %v2997_v22 = vsel %vm2967_vm10, %v2964_v49, %v13155_v6  ;;  %v8475_v5 = vsel %vm12566_vm13, %v3060_v18, %v2372_v42  ;;  %2553 = vrot.lane.b32.xlu1 %v7934_v8, %s5755_s28  ;;  %v2866_v26 = vsel %vm2835_vm6, %v2833_v39, %v13156_v35  ;;  %v13157_v25 = vld [vmem:[#allocation38_spill] sm:$0xff]  ;;  %v2996_v0 = vsel %vm2967_vm10, %v2963_v15, %v13158_v46  ;;  %v13161_v18 = vld [vmem:[#allocation224_spill] sm:$0xff]  ;;  %v13162_v36 = vld [vmem:[#allocation225_spill] sm:$0xff] }
 0x387   : > { %v2900_v19 = vsel %vm2868_vm7, %v2867_v41, %v13157_v25  ;;  %v3030_v62 = vsel %vm3000_vm11, %v2997_v22, %v8103_v9  ;;  %2551 = vrot.lane.b32.xlu0 %v13159_v27, %s5755_s28  ;;  %v13160_v37 = vld [vmem:[#allocation194_spill] sm:$0xff]  ;;  %v3029_v39 = vsel %vm3000_vm11, %v2996_v0, %v8105_v55  ;;  %v13163_v9 = vld [vmem:[#allocation277_spill] sm:$0xff]  ;;  %v13164_v25 = vld [vmem:[#allocation279_spill] sm:$0xff] }
 0x388   : > { %v2899_v49 = vsel %vm2868_vm7, %v2866_v26, %v13160_v37  ;;  %v2933_v42 = vsel %vm2901_vm8, %v2900_v19, %v13161_v18  ;;  %v3063_v11 = vsel %vm3033_vm12, %v3030_v62, %v8237_v44  ;;  %v2378_v41 = vpop.permute.xlu1 %2377  ;;  %v3062_v22 = vsel %vm3033_vm12, %v3029_v39, %v8239_v2  ;;  %v13165_v19 = vld [vmem:[#allocation325_spill] sm:$0xff]  ;;  %v13166_v0 = vld [vmem:[#allocation327_spill] sm:$0xff]  ;;  %v13167_v37 = vld [vmem:[#allocation326_spill] sm:$0xff] }
 0x389   : > { %v2932_v15 = vsel %vm2901_vm8, %v2899_v49, %v13162_v36  ;;  %v2966_v6 = vsel %vm2934_vm9, %v2933_v42, %v13163_v9  ;;  %v8504_v35 = vsel %vm12566_vm13, %v3063_v11, %v2378_v41  ;;  %v2376_v26 = vpop.permute.xlu0 %2375  ;;  %v979_v9 = vrot.slane %v8141_v43, 2  ;;  %v5625_v20 = vld [vmem:[%s7205_s30 + $0x98] sm:$0xff] }
 0x38a   : > { %v2965_v55 = vsel %vm2934_vm9, %v2932_v15, %v13164_v25  ;;  %v2999_v44 = vsel %vm2967_vm10, %v2966_v6, %v13165_v19  ;;  %v8511_v46 = vsel %vm12566_vm13, %v3062_v22, %v2376_v26  ;;  %2557 = vrot.lane.b32.xlu1 %v7951_v29, %s5755_s28  ;;  %v982_v15 = vrot.slane %v8256_v40, 2 }
 0x38b   : > { %v2998_v62 = vsel %vm2967_vm10, %v2965_v55, %v13166_v0  ;;  %v3032_v2 = vsel %vm3000_vm11, %v2999_v44, %v8111_v3  ;;  %2555 = vrot.lane.b32.xlu0 %v13167_v37, %s5755_s28  ;;  %v13168_v3 = vld [vmem:[#allocation329_spill] sm:$0xff] }
 0x38c   : > { %v3031_v49 = vsel %vm3000_vm11, %v2998_v62, %v8113_v14  ;;  %v3065_v18 = vsel %vm3033_vm12, %v3032_v2, %v8245_v38  ;;  %v2382_v42 = vpop.permute.xlu1 %2381  ;;  %v5617_v0 = vld [vmem:[%s7205_s30 + $0x38] sm:$0xff]  ;;  %v5618_v62 = vld [vmem:[%s7205_s30 + $0x30] sm:$0xff] }
 0x38d   : > { %v3064_v39 = vsel %vm3033_vm12, %v3031_v49, %v8247_v17  ;;  %v8528_v11 = vsel %vm12566_vm13, %v3065_v18, %v2382_v42  ;;  %v2380_v41 = vpop.permute.xlu0 %2379  ;;  %v980_v17 = vrot.slane %v8136_v30, 2  ;;  %v5619_v18 = vld [vmem:[%s7205_s30 + $0x50] sm:$0xff]  ;;  %v5620_v42 = vld [vmem:[%s7205_s30 + $0x48] sm:$0xff] }
 0x38e   : > { %v8531_v36 = vsel %vm12566_vm13, %v3064_v39, %v2380_v41  ;;  %2561 = vrot.lane.b32.xlu1 %v7968_v57, %s5755_s28 }
 0x38f   : > { %2559 = vrot.lane.b32.xlu0 %v13168_v3, %s5755_s28  ;;  %v8557_v26 = vsel %vm656_vm1, %v980_v17, %v982_v15  ;;  %v8562_v40 = vsel %vm656_vm1, %v979_v9, %v980_v17  ;;  %v5621_v17 = vld [vmem:[%s7205_s30 + $0x68] sm:$0xff]  ;;  %v5622_v15 = vld [vmem:[%s7205_s30 + $0x60] sm:$0xff] }
 0x390   : > { %v8537_v14 = vpop.permute.xlu1 %2417 }
 0x391   : > { %13169 = vst [vmem:[#allocation72_spill] sm:$0xff] %v8537_v14  ;;  %v8539_v38 = vpop.permute.xlu0 %2415 }
 0x392   : > { %13170 = vst [vmem:[#allocation98_spill] sm:$0xff] %v8539_v38  ;;  %2565 = vrot.lane.b32.xlu1 %v7985_v33, %s5755_s28 }
 0x393   : > { %2563 = vrot.lane.b32.xlu0 %v7992_v28, %s5755_s28 }
 0x394   : > { %v8548_v6 = vpop.permute.xlu1 %2421 }
 0x395   : > { %13171 = vst [vmem:[#allocation99_spill] sm:$0xff] %v8548_v6  ;;  %v8550_v22 = vpop.permute.xlu0 %2419 }
 0x396   : > { %13172 = vst [vmem:[#allocation100_spill] sm:$0xff] %v8550_v22  ;;  %2569 = vrot.lane.b32.xlu1 %v8002_v53, %s5755_s28 }
 0x397   : > { %2567 = vrot.lane.b32.xlu0 %v8007_v10, %s5755_s28 }
 0x398   : > { %v8559_v25 = vpop.permute.xlu1 %2425 }
 0x399   : > { %13173 = vst [vmem:[#allocation101_spill] sm:$0xff] %v8559_v25  ;;  %v8564_v55 = vpop.permute.xlu0 %2423 }
 0x39a   : > { %13174 = vst [vmem:[#allocation102_spill] sm:$0xff] %v8564_v55  ;;  %2573 = vrot.lane.b32.xlu1 %v8557_v26, %s5755_s28 }
 0x39b   : > { %2571 = vrot.lane.b32.xlu0 %v8562_v40, %s5755_s28  ;;  %s5343_s28 = sshll.u32 %s343_s27, 3 }
 0x39c   : > { %v8570_v19 = vpop.permute.xlu1 %2429  ;;  %s8860_s17 = scalar_lea.vmem %s12342_s2, %s5343_s28 }
 0x39d   : > { %13175 = vst [vmem:[#allocation103_spill] sm:$0xff] %v8570_v19  ;;  %v8572_v44 = vpop.permute.xlu0 %2427  ;;  %v9157_v14 = vld [vmem:[%s8860_s17 + $0x70] sm:$0x3]  ;;  %v9217_v47 = vld [vmem:[%s8860_s17 + $0xb8] sm:$0x3] }
 0x39e   : > { %13176 = vst [vmem:[#allocation127_spill] sm:$0xff] %v8572_v44  ;;  %2609 = vrot.lane.b32.xlu1 %v5617_v0, %s5756_s29  ;;  %v9257_v48 = vld [vmem:[%s8860_s17 + $0xe8] sm:$0x3] }
 0x39f   : > { %2607 = vrot.lane.b32.xlu0 %v5618_v62, %s5756_s29  ;;  %v5623_v62 = vld [vmem:[%s7205_s30 + $0x80] sm:$0xff] }
 0x3a0   : > { %v8578_v2 = vpop.permute.xlu1 %2433 }
 0x3a1   : > { %13177 = vst [vmem:[#allocation314_spill] sm:$0xff] %v8578_v2  ;;  %v8580_v49 = vpop.permute.xlu0 %2431 }
 0x3a2   : > { %13178 = vst [vmem:[#allocation128_spill] sm:$0xff] %v8580_v49  ;;  %2613 = vrot.lane.b32.xlu1 %v5619_v18, %s5756_s29  ;;  %v5624_v18 = vld [vmem:[%s7205_s30 + $0x78] sm:$0xff]  ;;  %v5643_v49 = vld [vmem:[%s7205_s30 + $0x170] sm:$0xff] }
 0x3a3   : > { %2611 = vrot.lane.b32.xlu0 %v5620_v42, %s5756_s29 }
 0x3a4   : > { %v8586_v39 = vpop.permute.xlu1 %2437 }
 0x3a5   : > { %13179 = vst [vmem:[#allocation35_spill] sm:$0xff] %v8586_v39  ;;  %v8588_v41 = vpop.permute.xlu0 %2435  ;;  %v5631_v39 = vld [vmem:[%s7205_s30 + $0xe0] sm:$0xff] }
 0x3a6   : > { %13180 = vst [vmem:[#allocation129_spill] sm:$0xff] %v8588_v41  ;;  %2617 = vrot.lane.b32.xlu1 %v5621_v17, %s5756_s29 }
 0x3a7   : > { %2615 = vrot.lane.b32.xlu0 %v5622_v15, %s5756_s29  ;;  %v5626_v15 = vld [vmem:[%s7205_s30 + $0x90] sm:$0xff] }
 0x3a8   : > { %v8594_v9 = vpop.permute.xlu1 %2441 }
 0x3a9   : > { %13181 = vst [vmem:[#allocation130_spill] sm:$0xff] %v8594_v9  ;;  %v8596_v0 = vpop.permute.xlu0 %2439  ;;  %v5627_v9 = vld [vmem:[%s7205_s30 + $0xb0] sm:$0xff] }
 0x3aa   : > { %13182 = vst [vmem:[#allocation131_spill] sm:$0xff] %v8596_v0  ;;  %2621 = vrot.lane.b32.xlu1 %v5623_v62, %s5756_s29 }
 0x3ab   : > { %2619 = vrot.lane.b32.xlu0 %v5624_v18, %s5756_s29  ;;  %v5628_v18 = vld [vmem:[%s7205_s30 + $0xa8] sm:$0xff] }
 0x3ac   : > { %v8602_v42 = vpop.permute.xlu1 %2445 }
 0x3ad   : > { %13183 = vst [vmem:[#allocation157_spill] sm:$0xff] %v8602_v42  ;;  %v8604_v17 = vpop.permute.xlu0 %2443 }
 0x3ae   : > { %13184 = vst [vmem:[#allocation158_spill] sm:$0xff] %v8604_v17  ;;  %2625 = vrot.lane.b32.xlu1 %v5625_v20, %s5756_s29  ;;  %v5629_v17 = vld [vmem:[%s7205_s30 + $0xc8] sm:$0xff] }
 0x3af   : > { %2623 = vrot.lane.b32.xlu0 %v5626_v15, %s5756_s29  ;;  %v5630_v15 = vld [vmem:[%s7205_s30 + $0xc0] sm:$0xff] }
 0x3b0   : > { %v8610_v0 = vpop.permute.xlu1 %2449 }
 0x3b1   : > { %13185 = vst [vmem:[#allocation159_spill] sm:$0xff] %v8610_v0  ;;  %v8612_v62 = vpop.permute.xlu0 %2447 }
 0x3b2   : > { %13186 = vst [vmem:[#allocation160_spill] sm:$0xff] %v8612_v62  ;;  %2629 = vrot.lane.b32.xlu1 %v5627_v9, %s5756_s29 }
 0x3b3   : > { %2627 = vrot.lane.b32.xlu0 %v5628_v18, %s5756_s29  ;;  %v5632_v18 = vld [vmem:[%s7205_s30 + $0xd8] sm:$0xff] }
 0x3b4   : > { %v8618_v42 = vpop.permute.xlu1 %2453 }
 0x3b5   : > { %13187 = vst [vmem:[#allocation161_spill] sm:$0xff] %v8618_v42  ;;  %v8620_v20 = vpop.permute.xlu0 %2451 }
 0x3b6   : > { %13188 = vst [vmem:[#allocation17_spill] sm:$0xff] %v8620_v20  ;;  %2633 = vrot.lane.b32.xlu1 %v5629_v17, %s5756_s29  ;;  %v5633_v17 = vld [vmem:[%s7205_s30 + $0xf8] sm:$0xff] }
 0x3b7   : > { %2631 = vrot.lane.b32.xlu0 %v5630_v15, %s5756_s29  ;;  %v5634_v15 = vld [vmem:[%s7205_s30 + $0xf0] sm:$0xff] }
 0x3b8   : > { %v8626_v41 = vpop.permute.xlu1 %2457 }
 0x3b9   : > { %13189 = vst [vmem:[#allocation162_spill] sm:$0xff] %v8626_v41  ;;  %v8628_v9 = vpop.permute.xlu0 %2455 }
 0x3ba   : > { %13190 = vst [vmem:[#allocation18_spill] sm:$0xff] %v8628_v9  ;;  %2637 = vrot.lane.b32.xlu1 %v5631_v39, %s5756_s29  ;;  %v5635_v39 = vld [vmem:[%s7205_s30 + $0x110] sm:$0xff] }
 0x3bb   : > { %2635 = vrot.lane.b32.xlu0 %v5632_v18, %s5756_s29  ;;  %v5636_v18 = vld [vmem:[%s7205_s30 + $0x108] sm:$0xff] }
 0x3bc   : > { %v8634_v42 = vpop.permute.xlu1 %2461 }
 0x3bd   : > { %13191 = vst [vmem:[#allocation36_spill] sm:$0xff] %v8634_v42  ;;  %v8636_v20 = vpop.permute.xlu0 %2459 }
 0x3be   : > { %13192 = vst [vmem:[#allocation317_spill] sm:$0xff] %v8636_v20  ;;  %2641 = vrot.lane.b32.xlu1 %v5633_v17, %s5756_s29 }
 0x3bf   : > { %2639 = vrot.lane.b32.xlu0 %v5634_v15, %s5756_s29 }
 0x3c0   : > { %v8642_v41 = vpop.permute.xlu1 %2465 }
 0x3c1   : > { %13193 = vst [vmem:[#allocation19_spill] sm:$0xff] %v8642_v41  ;;  %v8644_v9 = vpop.permute.xlu0 %2463  ;;  %v5637_v41 = vld [vmem:[%s7205_s30 + $0x128] sm:$0xff] }
 0x3c2   : > { %13194 = vst [vmem:[#allocation192_spill] sm:$0xff] %v8644_v9  ;;  %2645 = vrot.lane.b32.xlu1 %v5635_v39, %s5756_s29  ;;  %v5638_v39 = vld [vmem:[%s7205_s30 + $0x120] sm:$0xff] }
 0x3c3   : > { %2643 = vrot.lane.b32.xlu0 %v5636_v18, %s5756_s29 }
 0x3c4   : > { %v2470_v20 = vpop.permute.xlu1 %2469 }
 0x3c5   : > { %v8652_v17 = vsel %vm12565_vm14, %v8466_v7, %v2470_v20  ;;  %v2468_v42 = vpop.permute.xlu0 %2467 }
 0x3c6   : > { %v8656_v15 = vsel %vm12565_vm14, %v8475_v5, %v2468_v42  ;;  %2649 = vrot.lane.b32.xlu1 %v5637_v41, %s5756_s29  ;;  %v5639_v5 = vld [vmem:[%s7205_s30 + $0x140] sm:$0xff]  ;;  %v5640_v41 = vld [vmem:[%s7205_s30 + $0x138] sm:$0xff] }
 0x3c7   : > { %2647 = vrot.lane.b32.xlu0 %v5638_v39, %s5756_s29 }
 0x3c8   : > { %v2474_v18 = vpop.permute.xlu1 %2473 }
 0x3c9   : > { %v8664_v9 = vsel %vm12565_vm14, %v8504_v35, %v2474_v18  ;;  %v2472_v7 = vpop.permute.xlu0 %2471 }
 0x3ca   : > { %v8668_v20 = vsel %vm12565_vm14, %v8511_v46, %v2472_v7  ;;  %2653 = vrot.lane.b32.xlu1 %v5639_v5, %s5756_s29  ;;  %v5641_v46 = vld [vmem:[%s7205_s30 + $0x158] sm:$0xff]  ;;  %v5642_v7 = vld [vmem:[%s7205_s30 + $0x150] sm:$0xff] }
 0x3cb   : > { %2651 = vrot.lane.b32.xlu0 %v5640_v41, %s5756_s29 }
 0x3cc   : > { %v2478_v42 = vpop.permute.xlu1 %2477 }
 0x3cd   : > { %v8676_v39 = vsel %vm12565_vm14, %v8528_v11, %v2478_v42  ;;  %v2476_v35 = vpop.permute.xlu0 %2475  ;;  %v5644_v11 = vld [vmem:[%s7205_s30 + $0x168] sm:$0xff] }
 0x3ce   : > { %v8680_v18 = vsel %vm12565_vm14, %v8531_v36, %v2476_v35  ;;  %2657 = vrot.lane.b32.xlu1 %v5641_v46, %s5756_s29  ;;  %v8703_v35 = vld [vmem:[%s7205_s30 + $0x1a0] sm:$0xff]  ;;  %vm5757_vm14 = vmmov 1  }
 0x3cf   : > { %2655 = vrot.lane.b32.xlu0 %v5642_v7, %s5756_s29  ;;  %v8708_v7 = vld [vmem:[%s7205_s30 + $0x198] sm:$0xff] }
 0x3d0   : > { %v8686_v5 = vpop.permute.xlu1 %2513 }
 0x3d1   : > { %13195 = vst [vmem:[#allocation220_spill] sm:$0xff] %v8686_v5  ;;  %v8688_v41 = vpop.permute.xlu0 %2511 }
 0x3d2   : > { %13196 = vst [vmem:[#allocation20_spill] sm:$0xff] %v8688_v41  ;;  %2661 = vrot.lane.b32.xlu1 %v5643_v49, %s5756_s29  ;;  %v9137_v41 = vld [vmem:[%s8860_s17 + $0x58] sm:$0x3] }
 0x3d3   : > { %2659 = vrot.lane.b32.xlu0 %v5644_v11, %s5756_s29 }
 0x3d4   : > { %v8694_v42 = vpop.permute.xlu1 %2517 }
 0x3d5   : > { %13197 = vst [vmem:[#allocation221_spill] sm:$0xff] %v8694_v42  ;;  %v8696_v36 = vpop.permute.xlu0 %2515  ;;  %v9119_v42 = vld [vmem:[%s8860_s17 + $0x40] sm:$0x3] }
 0x3d6   : > { %13198 = vst [vmem:[#allocation269_spill] sm:$0xff] %v8696_v36  ;;  %2665 = vrot.lane.b32.xlu1 %v8136_v30, %s5756_s29 }
 0x3d7   : > { %2663 = vrot.lane.b32.xlu0 %v8141_v43, %s5756_s29 }
 0x3d8   : > { %v8705_v46 = vpop.permute.xlu1 %2521 }
 0x3d9   : > { %13199 = vst [vmem:[#allocation37_spill] sm:$0xff] %v8705_v46  ;;  %v8710_v49 = vpop.permute.xlu0 %2519 }
 0x3da   : > { %13200 = vst [vmem:[#allocation271_spill] sm:$0xff] %v8710_v49  ;;  %2669 = vrot.lane.b32.xlu1 %v8703_v35, %s5756_s29 }
 0x3db   : > { %2667 = vrot.lane.b32.xlu0 %v8708_v7, %s5756_s29 }
 0x3dc   : > { %v8716_v11 = vpop.permute.xlu1 %2525 }
 0x3dd   : > { %13201 = vst [vmem:[#allocation319_spill] sm:$0xff] %v8716_v11  ;;  %v8718_v30 = vpop.permute.xlu0 %2523 }
 0x3de   : > { %13202 = vst [vmem:[#allocation193_spill] sm:$0xff] %v8718_v30  ;;  %3200 = vrot.lane.b32.xlu1 %v7781_v59, %s5742_s8  ;;  %v9093_v30 = vld [vmem:[%s8860_s17 + $0x170] sm:$0xff] }
 0x3df   : > { %3198 = vrot.lane.b32.xlu0 %v7788_v63, %s5742_s8 }
 0x3e0   : > { %v8724_v43 = vpop.permute.xlu1 %2529 }
 0x3e1   : > { %13203 = vst [vmem:[#allocation321_spill] sm:$0xff] %v8724_v43  ;;  %v8726_v2 = vpop.permute.xlu0 %2527 }
 0x3e2   : > { %13204 = vst [vmem:[#allocation320_spill] sm:$0xff] %v8726_v2  ;;  %3204 = vrot.lane.b32.xlu1 %v7798_v32, %s5742_s8  ;;  %v8998_v2 = vld [vmem:[%s8860_s17 + $0xd8] sm:$0xff] }
 0x3e3   : > { %3202 = vrot.lane.b32.xlu0 %v13090_v56, %s5742_s8 }
 0x3e4   : > { %v8732_v62 = vpop.permute.xlu1 %2533 }
 0x3e5   : > { %13205 = vst [vmem:[#allocation222_spill] sm:$0xff] %v8732_v62  ;;  %v8734_v0 = vpop.permute.xlu0 %2531 }
 0x3e6   : > { %13206 = vst [vmem:[#allocation223_spill] sm:$0xff] %v8734_v0  ;;  %3208 = vrot.lane.b32.xlu1 %v7815_v31, %s5742_s8  ;;  %v8965_v0 = vld [vmem:[%s8860_s17 + $0xb0] sm:$0xff] }
 0x3e7   : > { %3206 = vrot.lane.b32.xlu0 %v13093_v1, %s5742_s8 }
 0x3e8   : > { %v8740_v59 = vpop.permute.xlu1 %2537 }
 0x3e9   : > { %13207 = vst [vmem:[#allocation273_spill] sm:$0xff] %v8740_v59  ;;  %v8742_v63 = vpop.permute.xlu0 %2535 }
 0x3ea   : > { %13208 = vst [vmem:[#allocation21_spill] sm:$0xff] %v8742_v63  ;;  %3212 = vrot.lane.b32.xlu1 %v7832_v16, %s5742_s8  ;;  %v8928_v63 = vld [vmem:[%s8860_s17 + $0x60] sm:$0xff] }
 0x3eb   : > { %3210 = vrot.lane.b32.xlu0 %v13096_v54, %s5742_s8 }
 0x3ec   : > { %v8748_v32 = vpop.permute.xlu1 %2541 }
 0x3ed   : > { %13209 = vst [vmem:[#allocation275_spill] sm:$0xff] %v8748_v32  ;;  %v8750_v56 = vpop.permute.xlu0 %2539  ;;  %v8914_v32 = vld [vmem:[%s8860_s17 + $0x48] sm:$0xff] }
 0x3ee   : > { %13210 = vst [vmem:[#allocation322_spill] sm:$0xff] %v8750_v56  ;;  %3216 = vrot.lane.b32.xlu1 %v7849_v4, %s5742_s8  ;;  %v1092_v38 = vrot.slane %v8914_v32, 1 }
 0x3ef   : > { %3214 = vrot.lane.b32.xlu0 %v13099_v34, %s5742_s8 }
 0x3f0   : > { %v8756_v31 = vpop.permute.xlu1 %2545 }
 0x3f1   : > { %13211 = vst [vmem:[#allocation22_spill] sm:$0xff] %v8756_v31  ;;  %v8758_v1 = vpop.permute.xlu0 %2543 }
 0x3f2   : > { %13212 = vst [vmem:[#allocation38_spill] sm:$0xff] %v8758_v1  ;;  %3220 = vrot.lane.b32.xlu1 %v7866_v52, %s5742_s8  ;;  %v9025_v1 = vld [vmem:[%s8860_s17 + $0x110] sm:$0xff] }
 0x3f3   : > { %3218 = vrot.lane.b32.xlu0 %v13102_v24, %s5742_s8 }
 0x3f4   : > { %v8764_v16 = vpop.permute.xlu1 %2549 }
 0x3f5   : > { %13213 = vst [vmem:[#allocation324_spill] sm:$0xff] %v8764_v16  ;;  %v8766_v54 = vpop.permute.xlu0 %2547 }
 0x3f6   : > { %13214 = vst [vmem:[#allocation323_spill] sm:$0xff] %v8766_v54  ;;  %3224 = vrot.lane.b32.xlu1 %v7883_v12, %s5742_s8  ;;  %v8970_v54 = vld [vmem:[%s8860_s17 + $0xa8] sm:$0xff] }
 0x3f7   : > { %3222 = vrot.lane.b32.xlu0 %v13118_v50, %s5742_s8 }
 0x3f8   : > { %v8772_v4 = vpop.permute.xlu1 %2553 }
 0x3f9   : > { %13215 = vst [vmem:[#allocation194_spill] sm:$0xff] %v8772_v4  ;;  %v8774_v34 = vpop.permute.xlu0 %2551 }
 0x3fa   : > { %13216 = vst [vmem:[#allocation224_spill] sm:$0xff] %v8774_v34  ;;  %3228 = vrot.lane.b32.xlu1 %v7900_v61, %s5742_s8  ;;  %v8942_v34 = vld [vmem:[%s8860_s17 + $0x78] sm:$0xff] }
 0x3fb   : > { %3226 = vrot.lane.b32.xlu0 %v13135_v45, %s5742_s8 }
 0x3fc   : > { %v8780_v52 = vpop.permute.xlu1 %2557 }
 0x3fd   : > { %13217 = vst [vmem:[#allocation225_spill] sm:$0xff] %v8780_v52  ;;  %v8782_v24 = vpop.permute.xlu0 %2555 }
 0x3fe   : > { %13218 = vst [vmem:[#allocation277_spill] sm:$0xff] %v8782_v24  ;;  %3232 = vrot.lane.b32.xlu1 %v7917_v13, %s5742_s8  ;;  %v8923_v24 = vld [vmem:[%s8860_s17 + $0x68] sm:$0xff] }
 0x3ff   : > { %3230 = vrot.lane.b32.xlu0 %v13149_v23, %s5742_s8 }
 0x400   : > { %v8788_v12 = vpop.permute.xlu1 %2561 }
 0x401   : > { %13219 = vst [vmem:[#allocation279_spill] sm:$0xff] %v8788_v12  ;;  %v8790_v50 = vpop.permute.xlu0 %2559  ;;  %v8909_v12 = vld [vmem:[%s8860_s17 + $0x50] sm:$0xff] }
 0x402   : > { %13220 = vst [vmem:[#allocation325_spill] sm:$0xff] %v8790_v50  ;;  %3236 = vrot.lane.b32.xlu1 %v7934_v8, %s5742_s8 }
 0x403   : > { %3234 = vrot.lane.b32.xlu0 %v13159_v27, %s5742_s8 }
 0x404   : > { %v2566_v61 = vpop.permute.xlu1 %2565 }
 0x405   : > { %v8799_v45 = vsel %vm12492_vm15, %v8652_v17, %v2566_v61  ;;  %v2564_v13 = vpop.permute.xlu0 %2563 }
 0x406   : > { %v8803_v23 = vsel %vm12492_vm15, %v8656_v15, %v2564_v13  ;;  %3240 = vrot.lane.b32.xlu1 %v7951_v29, %s5742_s8 }
 0x407   : > { %3238 = vrot.lane.b32.xlu0 %v13167_v37, %s5742_s8 }
 0x408   : > { %v2570_v8 = vpop.permute.xlu1 %2569 }
 0x409   : > { %v8811_v27 = vsel %vm12492_vm15, %v8664_v9, %v2570_v8  ;;  %v2568_v17 = vpop.permute.xlu0 %2567  ;;  %v8872_v8 = vld [vmem:[%s8860_s17] sm:$0xff] }
 0x40a   : > { %v8815_v61 = vsel %vm12492_vm15, %v8668_v20, %v2568_v17  ;;  %3244 = vrot.lane.b32.xlu1 %v7968_v57, %s5742_s8  ;;  %v1077_v44 = vrot.slane %v8872_v8, 1 }
 0x40b   : > { %3242 = vrot.lane.b32.xlu0 %v13168_v3, %s5742_s8  ;;  %v472_v3 = vld [vmem:[%s7205_s30 + $0x1a8] sm:$0x3] }
 0x40c   : > { %v2574_v29 = vpop.permute.xlu1 %2573 }
 0x40d   : > { %v8823_v37 = vsel %vm12492_vm15, %v8676_v39, %v2574_v29  ;;  %v2572_v9 = vpop.permute.xlu0 %2571  ;;  %v1025_v39 = vrot.slane %v8703_v35, 2  ;;  %v8881_v29 = vld [vmem:[%s8860_s17 + $0x20] sm:$0xff] }
 0x40e   : > { %v8827_v15 = vsel %vm12492_vm15, %v8680_v18, %v2572_v9  ;;  %3248 = vrot.lane.b32.xlu1 %v7985_v33, %s5742_s8  ;;  %v1027_v18 = vrot.slane %v472_v3, 2  ;;  %v1024_v33 = vrot.slane %v8708_v7, 2  ;;  %v8886_v3 = vld [vmem:[%s8860_s17 + $0x18] sm:$0xff]  ;;  %vm12564_vm15 = vcmask 490496  }
 0x40f   : > { %3246 = vrot.lane.b32.xlu0 %v7992_v28, %s5742_s8  ;;  %v1083_v46 = vrot.slane %v8881_v29, 1 }
 0x410   : > { %v8833_v57 = vpop.permute.xlu1 %2609 }
 0x411   : > { %13221 = vst [vmem:[#allocation327_spill] sm:$0xff] %v8833_v57  ;;  %v8836_v20 = vpop.permute.xlu0 %2607 }
 0x412   : > { %13222 = vst [vmem:[#allocation326_spill] sm:$0xff] %v8836_v20  ;;  %3252 = vrot.lane.b32.xlu1 %v8002_v53, %s5742_s8  ;;  %v1028_v53 = vsel %vm656_vm1, %v1025_v39, %v1027_v18  ;;  %v8895_v18 = vld [vmem:[%s8860_s17 + $0x38] sm:$0xff]  ;;  %v1090_v20 = vrot.slane %v9119_v42, 1 }
 0x413   : > { %3250 = vrot.lane.b32.xlu0 %v8007_v10, %s5742_s8  ;;  %v1026_v10 = vsel %vm656_vm1, %v1024_v33, %v1025_v39 }
 0x414   : > { %v8845_v13 = vpop.permute.xlu1 %2613 }
 0x415   : > { %13223 = vst [vmem:[#allocation329_spill] sm:$0xff] %v8845_v13  ;;  %v8847_v28 = vpop.permute.xlu0 %2611 }
 0x416   : > { %13224 = vst [vmem:[#allocation399_spill] sm:$0xff] %v8847_v28  ;;  %3256 = vrot.lane.b32.xlu1 %v8557_v26, %s5742_s8  ;;  %v1082_v28 = vrot.slane %v8886_v3, 1 }
 0x417   : > { %3254 = vrot.lane.b32.xlu0 %v8562_v40, %s5742_s8  ;;  %v8867_v40 = vld [vmem:[%s8860_s17 + $0x8] sm:$0xff] }
 0x418   : > { %v8854_v35 = vpop.permute.xlu1 %2617 }
 0x419   : > { %13225 = vst [vmem:[#allocation400_spill] sm:$0xff] %v8854_v35  ;;  %v8862_v26 = vpop.permute.xlu0 %2615  ;;  %v9103_v35 = vld [vmem:[%s8860_s17 + $0x28] sm:$0x3] }
 0x41a   : > { %13226 = vst [vmem:[#allocation401_spill] sm:$0xff] %v8862_v26  ;;  %3260 = vrot.lane.b32.xlu1 %v1028_v53, %s5742_s8  ;;  %v8900_v53 = vld [vmem:[%s8860_s17 + $0x30] sm:$0xff]  ;;  %v9100_v26 = vld [vmem:[%s8860_s17 + $0x168] sm:$0xff]  ;;  %v1085_v25 = vrot.slane %v9103_v35, 1 }
 0x41b   : > { %3258 = vrot.lane.b32.xlu0 %v1026_v10, %s5742_s8 }
 0x41c   : > { %v8869_v7 = vpop.permute.xlu1 %2621  ;;  %v9126_v6 = vsel %vm575_vm0, %v1083_v46, %v1085_v25 }
 0x41d   : > { %13227 = vst [vmem:[#allocation402_spill] sm:$0xff] %v8869_v7  ;;  %v8874_v17 = vpop.permute.xlu0 %2619  ;;  %v1078_v7 = vrot.slane %v8867_v40, 1 }
 0x41e   : > { %13228 = vst [vmem:[#allocation403_spill] sm:$0xff] %v8874_v17  ;;  %3296 = vrot.lane.b32.xlu1 %v8867_v40, %s5743_s9  ;;  %v9028_v17 = vld [vmem:[%s8860_s17 + $0x108] sm:$0xff] }
 0x41f   : > { %3294 = vrot.lane.b32.xlu0 %v8872_v8, %s5743_s9  ;;  %v1079_v36 = vsel %vm575_vm0, %v1077_v44, %v1078_v7  ;;  %v9133_v44 = vsel %vm575_vm0, %v1082_v28, %v1083_v46  ;;  %v1095_v46 = vrot.slane %v9137_v41, 1 }
 0x420   : > { %v8883_v9 = vpop.permute.xlu1 %2625 }
 0x421   : > { %13229 = vst [vmem:[#allocation404_spill] sm:$0xff] %v8883_v9  ;;  %v8888_v39 = vpop.permute.xlu0 %2623 }
 0x422   : > { %13230 = vst [vmem:[#allocation405_spill] sm:$0xff] %v8888_v39  ;;  %3300 = vrot.lane.b32.xlu1 %v8881_v29, %s5743_s9  ;;  %v8984_v39 = vld [vmem:[%s8860_s17 + $0xc0] sm:$0xff] }
 0x423   : > { %3298 = vrot.lane.b32.xlu0 %v8886_v3, %s5743_s9 }
 0x424   : > { %v8897_v33 = vpop.permute.xlu1 %2629 }
 0x425   : > { %13231 = vst [vmem:[#allocation406_spill] sm:$0xff] %v8897_v33  ;;  %v8902_v10 = vpop.permute.xlu0 %2627 }
 0x426   : > { %13232 = vst [vmem:[#allocation407_spill] sm:$0xff] %v8902_v10  ;;  %3304 = vrot.lane.b32.xlu1 %v8895_v18, %s5743_s9  ;;  %v8956_v10 = vld [vmem:[%s8860_s17 + $0x90] sm:$0xff] }
 0x427   : > { %3302 = vrot.lane.b32.xlu0 %v8900_v53, %s5743_s9 }
 0x428   : > { %v8911_v50 = vpop.permute.xlu1 %2633 }
 0x429   : > { %13233 = vst [vmem:[#allocation408_spill] sm:$0xff] %v8911_v50  ;;  %v8916_v56 = vpop.permute.xlu0 %2631 }
 0x42a   : > { %13234 = vst [vmem:[#allocation409_spill] sm:$0xff] %v8916_v56  ;;  %3308 = vrot.lane.b32.xlu1 %v8909_v12, %s5743_s9  ;;  %v8937_v56 = vld [vmem:[%s8860_s17 + $0x80] sm:$0xff] }
 0x42b   : > { %3306 = vrot.lane.b32.xlu0 %v8914_v32, %s5743_s9 }
 0x42c   : > { %v8925_v52 = vpop.permute.xlu1 %2637 }
 0x42d   : > { %13235 = vst [vmem:[#allocation410_spill] sm:$0xff] %v8925_v52  ;;  %v8930_v50 = vpop.permute.xlu0 %2635 }
 0x42e   : > { %13236 = vst [vmem:[#allocation411_spill] sm:$0xff] %v8930_v50  ;;  %3312 = vrot.lane.b32.xlu1 %v8923_v24, %s5743_s9  ;;  %v8951_v50 = vld [vmem:[%s8860_s17 + $0x98] sm:$0xff] }
 0x42f   : > { %3310 = vrot.lane.b32.xlu0 %v8928_v63, %s5743_s9 }
 0x430   : > { %v8939_v59 = vpop.permute.xlu1 %2641 }
 0x431   : > { %13237 = vst [vmem:[#allocation412_spill] sm:$0xff] %v8939_v59  ;;  %v8944_v52 = vpop.permute.xlu0 %2639 }
 0x432   : > { %13238 = vst [vmem:[#allocation413_spill] sm:$0xff] %v8944_v52  ;;  %3316 = vrot.lane.b32.xlu1 %v8937_v56, %s5743_s9  ;;  %v9010_v52 = vld [vmem:[%s8860_s17 + $0xf0] sm:$0xff] }
 0x433   : > { %3314 = vrot.lane.b32.xlu0 %v8942_v34, %s5743_s9 }
 0x434   : > { %v8953_v4 = vpop.permute.xlu1 %2645 }
 0x435   : > { %13239 = vst [vmem:[#allocation414_spill] sm:$0xff] %v8953_v4  ;;  %v8958_v33 = vpop.permute.xlu0 %2643 }
 0x436   : > { %13240 = vst [vmem:[#allocation415_spill] sm:$0xff] %v8958_v33  ;;  %3320 = vrot.lane.b32.xlu1 %v8951_v50, %s5743_s9  ;;  %v8979_v33 = vld [vmem:[%s8860_s17 + $0xc8] sm:$0xff] }
 0x437   : > { %3318 = vrot.lane.b32.xlu0 %v8956_v10, %s5743_s9 }
 0x438   : > { %v8967_v62 = vpop.permute.xlu1 %2649 }
 0x439   : > { %13241 = vst [vmem:[#allocation416_spill] sm:$0xff] %v8967_v62  ;;  %v8972_v4 = vpop.permute.xlu0 %2647 }
 0x43a   : > { %13242 = vst [vmem:[#allocation417_spill] sm:$0xff] %v8972_v4  ;;  %3324 = vrot.lane.b32.xlu1 %v8965_v0, %s5743_s9  ;;  %v8993_v4 = vld [vmem:[%s8860_s17 + $0xe0] sm:$0xff] }
 0x43b   : > { %3322 = vrot.lane.b32.xlu0 %v8970_v54, %s5743_s9 }
 0x43c   : > { %v8981_v16 = vpop.permute.xlu1 %2653 }
 0x43d   : > { %13243 = vst [vmem:[#allocation418_spill] sm:$0xff] %v8981_v16  ;;  %v8986_v9 = vpop.permute.xlu0 %2651 }
 0x43e   : > { %13244 = vst [vmem:[#allocation419_spill] sm:$0xff] %v8986_v9  ;;  %3328 = vrot.lane.b32.xlu1 %v8979_v33, %s5743_s9  ;;  %v9007_v9 = vld [vmem:[%s8860_s17 + $0xf8] sm:$0xff] }
 0x43f   : > { %3326 = vrot.lane.b32.xlu0 %v8984_v39, %s5743_s9 }
 0x440   : > { %v8995_v62 = vpop.permute.xlu1 %2657 }
 0x441   : > { %13245 = vst [vmem:[#allocation420_spill] sm:$0xff] %v8995_v62  ;;  %v9000_v43 = vpop.permute.xlu0 %2655 }
 0x442   : > { %13246 = vst [vmem:[#allocation421_spill] sm:$0xff] %v9000_v43  ;;  %3332 = vrot.lane.b32.xlu1 %v8993_v4, %s5743_s9 }
 0x443   : > { %3330 = vrot.lane.b32.xlu0 %v8998_v2, %s5743_s9 }
 0x444   : > { %v2662_v16 = vpop.permute.xlu1 %2661 }
 0x445   : > { %v9014_v62 = vsel %vm12564_vm15, %v8799_v45, %v2662_v16  ;;  %v2660_v59 = vpop.permute.xlu0 %2659 }
 0x446   : > { %13247 = vst [vmem:[#allocation422_spill] sm:$0xff] %v9014_v62  ;;  %v9018_v43 = vsel %vm12564_vm15, %v8803_v23, %v2660_v59  ;;  %3336 = vrot.lane.b32.xlu1 %v9007_v9, %s5743_s9  ;;  %v9043_v23 = vld [vmem:[%s8860_s17 + $0x128] sm:$0xff] }
 0x447   : > { %13248 = vst [vmem:[#allocation423_spill] sm:$0xff] %v9018_v43  ;;  %3334 = vrot.lane.b32.xlu0 %v9010_v52, %s5743_s9  ;;  %v9046_v43 = vld [vmem:[%s8860_s17 + $0x120] sm:$0xff] }
 0x448   : > { %v2666_v31 = vpop.permute.xlu1 %2665 }
 0x449   : > { %v9032_v16 = vsel %vm12564_vm15, %v8811_v27, %v2666_v31  ;;  %v2664_v45 = vpop.permute.xlu0 %2663 }
 0x44a   : > { %13249 = vst [vmem:[#allocation424_spill] sm:$0xff] %v9032_v16  ;;  %v9036_v59 = vsel %vm12564_vm15, %v8815_v61, %v2664_v45  ;;  %3340 = vrot.lane.b32.xlu1 %v9025_v1, %s5743_s9  ;;  %v9061_v45 = vld [vmem:[%s8860_s17 + $0x140] sm:$0xff] }
 0x44b   : > { %13250 = vst [vmem:[#allocation425_spill] sm:$0xff] %v9036_v59  ;;  %3338 = vrot.lane.b32.xlu0 %v9028_v17, %s5743_s9  ;;  %v9066_v59 = vld [vmem:[%s8860_s17 + $0x138] sm:$0xff] }
 0x44c   : > { %v2670_v62 = vpop.permute.xlu1 %2669 }
 0x44d   : > { %v9050_v31 = vsel %vm12564_vm15, %v8823_v37, %v2670_v62  ;;  %v2668_v27 = vpop.permute.xlu0 %2667  ;;  %v9075_v37 = vld [vmem:[%s8860_s17 + $0x158] sm:$0xff] }
 0x44e   : > { %13251 = vst [vmem:[#allocation426_spill] sm:$0xff] %v9050_v31  ;;  %v9054_v61 = vsel %vm12564_vm15, %v8827_v15, %v2668_v27  ;;  %3344 = vrot.lane.b32.xlu1 %v9043_v23, %s5743_s9  ;;  %v9080_v27 = vld [vmem:[%s8860_s17 + $0x150] sm:$0xff]  ;;  %vm4750_vm15 = vcmask 1043456  }
 0x44f   : > { %13252 = vst [vmem:[#allocation427_spill] sm:$0xff] %v9054_v61  ;;  %3342 = vrot.lane.b32.xlu0 %v9046_v43, %s5743_s9  ;;  %v9083_v61 = vld [vmem:[%s8860_s17 + $0x10] sm:$0x3]  ;;  %vm5531_vm13 = vmpackc.low %vm4750_vm15, %vm5757_vm14  ;;  %vm4606_vm14 = vcmask 523264  }
 0x450   : > { %v9063_v16 = vpop.permute.xlu1 %3200  ;;  %v1080_v11 = vrot.slane %v9083_v61, 1 }
 0x451   : > { %13253 = vst [vmem:[#allocation428_spill] sm:$0xff] %v9063_v16  ;;  %v9068_v62 = vpop.permute.xlu0 %3198 }
 0x452   : > { %13254 = vst [vmem:[#allocation429_spill] sm:$0xff] %v9068_v62  ;;  %3348 = vrot.lane.b32.xlu1 %v9061_v45, %s5743_s9  ;;  %v1081_v55 = vsel %vm575_vm0, %v1078_v7, %v1080_v11  ;;  %v1088_v11 = vrot.slane %v8895_v18, 1  ;;  %v1087_v7 = vrot.slane %v8900_v53, 1 }
 0x453   : > { %3346 = vrot.lane.b32.xlu0 %v9066_v59, %s5743_s9 }
 0x454   : > { %v9077_v15 = vpop.permute.xlu1 %3204  ;;  %v9146_v25 = vsel %vm575_vm0, %v1088_v11, %v1090_v20  ;;  %v9153_v5 = vsel %vm575_vm0, %v1087_v7, %v1088_v11  ;;  %v1100_v11 = vrot.slane %v9157_v14, 1 }
 0x455   : > { %13255 = vst [vmem:[#allocation430_spill] sm:$0xff] %v9077_v15  ;;  %v9085_v31 = vpop.permute.xlu0 %3202  ;;  %v9237_v15 = vld [vmem:[%s8860_s17 + $0xd0] sm:$0x3] }
 0x456   : > { %13256 = vst [vmem:[#allocation431_spill] sm:$0xff] %v9085_v31  ;;  %3352 = vrot.lane.b32.xlu1 %v9075_v37, %s5743_s9 }
 0x457   : > { %3350 = vrot.lane.b32.xlu0 %v9080_v27, %s5743_s9 }
 0x458   : > { %v9097_v19 = vpop.permute.xlu1 %3208 }
 0x459   : > { %13257 = vst [vmem:[#allocation432_spill] sm:$0xff] %v9097_v19  ;;  %v9105_v49 = vpop.permute.xlu0 %3206 }
 0x45a   : > { %13258 = vst [vmem:[#allocation433_spill] sm:$0xff] %v9105_v49  ;;  %3356 = vrot.lane.b32.xlu1 %v9093_v30, %s5743_s9  ;;  %v9197_v49 = vld [vmem:[%s8860_s17 + $0xa0] sm:$0x3] }
 0x45b   : > { %3354 = vrot.lane.b32.xlu0 %v9100_v26, %s5743_s9 }
 0x45c   : > { %v9115_v13 = vpop.permute.xlu1 %3212 }
 0x45d   : > { %13259 = vst [vmem:[#allocation434_spill] sm:$0xff] %v9115_v13  ;;  %v9121_v22 = vpop.permute.xlu0 %3210 }
 0x45e   : > { %13260 = vst [vmem:[#allocation435_spill] sm:$0xff] %v9121_v22  ;;  %3392 = vrot.lane.b32.xlu1 %v1081_v55, %s5744_s10  ;;  %v9177_v22 = vld [vmem:[%s8860_s17 + $0x88] sm:$0x3] }
 0x45f   : > { %3390 = vrot.lane.b32.xlu0 %v1079_v36, %s5744_s10  ;;  %v1093_v36 = vrot.slane %v8909_v12, 1 }
 0x460   : > { %v9130_v57 = vpop.permute.xlu1 %3216 }
 0x461   : > { %13261 = vst [vmem:[#allocation436_spill] sm:$0xff] %v9130_v57  ;;  %v9139_v55 = vpop.permute.xlu0 %3214  ;;  %v9166_v20 = vsel %vm575_vm0, %v1093_v36, %v1095_v46  ;;  %v9173_v57 = vsel %vm575_vm0, %v1092_v38, %v1093_v36  ;;  %v1105_v38 = vrot.slane %v9177_v22, 1 }
 0x462   : > { %13262 = vst [vmem:[#allocation437_spill] sm:$0xff] %v9139_v55  ;;  %3396 = vrot.lane.b32.xlu1 %v9126_v6, %s5744_s10  ;;  %13265 = vst [vmem:[#allocation440_spill] sm:$0xff] %v9166_v20 }
 0x463   : > { %3394 = vrot.lane.b32.xlu0 %v9133_v44, %s5744_s10  ;;  %13267 = vst [vmem:[#allocation442_spill] sm:$0xff] %v9173_v57 }
 0x464   : > { %v9150_v28 = vpop.permute.xlu1 %3220 }
 0x465   : > { %13263 = vst [vmem:[#allocation438_spill] sm:$0xff] %v9150_v28  ;;  %v9159_v55 = vpop.permute.xlu0 %3218  ;;  %v1098_v28 = vrot.slane %v8923_v24, 1 }
 0x466   : > { %13264 = vst [vmem:[#allocation439_spill] sm:$0xff] %v9159_v55  ;;  %3400 = vrot.lane.b32.xlu1 %v9146_v25, %s5744_s10  ;;  %v1097_v55 = vrot.slane %v8928_v63, 1 }
 0x467   : > { %3398 = vrot.lane.b32.xlu0 %v9153_v5, %s5744_s10  ;;  %v9186_v46 = vsel %vm575_vm0, %v1098_v28, %v1100_v11 }
 0x468   : > { %v9170_v7 = vpop.permute.xlu1 %3224  ;;  %13269 = vst [vmem:[#allocation444_spill] sm:$0xff] %v9186_v46  ;;  %v9193_v21 = vsel %vm575_vm0, %v1097_v55, %v1098_v28  ;;  %v1110_v55 = vrot.slane %v9197_v49, 1 }
 0x469   : > { %13266 = vst [vmem:[#allocation441_spill] sm:$0xff] %v9170_v7  ;;  %v9179_v13 = vpop.permute.xlu0 %3222  ;;  %v1103_v7 = vrot.slane %v8937_v56, 1  ;;  %13271 = vst [vmem:[#allocation446_spill] sm:$0xff] %v9193_v21 }
 0x46a   : > { %13268 = vst [vmem:[#allocation443_spill] sm:$0xff] %v9179_v13  ;;  %3404 = vrot.lane.b32.xlu1 %v9166_v20, %s5744_s10  ;;  %v1102_v13 = vrot.slane %v8942_v34, 1 }
 0x46b   : > { %3402 = vrot.lane.b32.xlu0 %v9173_v57, %s5744_s10  ;;  %v9206_v11 = vsel %vm575_vm0, %v1103_v7, %v1105_v38  ;;  %v9377_v57 = vld [vmem:[%s8860_s17 + $0x178] sm:$0x3] }
 0x46c   : > { %v9190_v36 = vpop.permute.xlu1 %3228  ;;  %13273 = vst [vmem:[#allocation448_spill] sm:$0xff] %v9206_v11  ;;  %v9213_v19 = vsel %vm575_vm0, %v1102_v13, %v1103_v7  ;;  %v1115_v13 = vrot.slane %v9217_v47, 1 }
 0x46d   : > { %13270 = vst [vmem:[#allocation445_spill] sm:$0xff] %v9190_v36  ;;  %v9199_v58 = vpop.permute.xlu0 %3226  ;;  %v1108_v36 = vrot.slane %v8951_v50, 1  ;;  %13275 = vst [vmem:[#allocation450_spill] sm:$0xff] %v9213_v19 }
 0x46e   : > { %13272 = vst [vmem:[#allocation447_spill] sm:$0xff] %v9199_v58  ;;  %3408 = vrot.lane.b32.xlu1 %v9186_v46, %s5744_s10  ;;  %v1107_v58 = vrot.slane %v8956_v10, 1  ;;  %v9357_v46 = vld [vmem:[%s8860_s17 + $0x160] sm:$0x3] }
 0x46f   : > { %3406 = vrot.lane.b32.xlu0 %v9193_v21, %s5744_s10  ;;  %v9226_v38 = vsel %vm575_vm0, %v1108_v36, %v1110_v55  ;;  %v9337_v21 = vld [vmem:[%s8860_s17 + $0x148] sm:$0x3] }
 0x470   : > { %v9210_v28 = vpop.permute.xlu1 %3232  ;;  %13277 = vst [vmem:[#allocation452_spill] sm:$0xff] %v9226_v38  ;;  %v9233_v60 = vsel %vm575_vm0, %v1107_v58, %v1108_v36  ;;  %v1120_v58 = vrot.slane %v9237_v15, 1 }
 0x471   : > { %13274 = vst [vmem:[#allocation449_spill] sm:$0xff] %v9210_v28  ;;  %v9219_v31 = vpop.permute.xlu0 %3230  ;;  %v1113_v28 = vrot.slane %v8965_v0, 1  ;;  %13279 = vst [vmem:[#allocation454_spill] sm:$0xff] %v9233_v60 }
 0x472   : > { %13276 = vst [vmem:[#allocation451_spill] sm:$0xff] %v9219_v31  ;;  %3412 = vrot.lane.b32.xlu1 %v9206_v11, %s5744_s10  ;;  %v1112_v31 = vrot.slane %v8970_v54, 1  ;;  %v9317_v11 = vld [vmem:[%s8860_s17 + $0x130] sm:$0x3] }
 0x473   : > { %3410 = vrot.lane.b32.xlu0 %v9213_v19, %s5744_s10  ;;  %v9246_v55 = vsel %vm575_vm0, %v1113_v28, %v1115_v13  ;;  %v9297_v19 = vld [vmem:[%s8860_s17 + $0x118] sm:$0x3] }
 0x474   : > { %v9230_v7 = vpop.permute.xlu1 %3236  ;;  %13281 = vst [vmem:[#allocation456_spill] sm:$0xff] %v9246_v55  ;;  %v9253_v62 = vsel %vm575_vm0, %v1112_v31, %v1113_v28  ;;  %v1125_v31 = vrot.slane %v9257_v48, 1 }
 0x475   : > { %13278 = vst [vmem:[#allocation453_spill] sm:$0xff] %v9230_v7  ;;  %v9239_v51 = vpop.permute.xlu0 %3234  ;;  %v1118_v7 = vrot.slane %v8979_v33, 1  ;;  %13283 = vst [vmem:[#allocation458_spill] sm:$0xff] %v9253_v62 }
 0x476   : > { %13280 = vst [vmem:[#allocation455_spill] sm:$0xff] %v9239_v51  ;;  %3416 = vrot.lane.b32.xlu1 %v9226_v38, %s5744_s10  ;;  %v1117_v51 = vrot.slane %v8984_v39, 1  ;;  %v9277_v38 = vld [vmem:[%s8860_s17 + $0x100] sm:$0x3] }
 0x477   : > { %3414 = vrot.lane.b32.xlu0 %v9233_v60, %s5744_s10  ;;  %v9266_v13 = vsel %vm575_vm0, %v1118_v7, %v1120_v58 }
 0x478   : > { %v9250_v36 = vpop.permute.xlu1 %3240  ;;  %13285 = vst [vmem:[#allocation460_spill] sm:$0xff] %v9266_v13  ;;  %v9273_v60 = vsel %vm575_vm0, %v1117_v51, %v1118_v7  ;;  %v1130_v51 = vrot.slane %v9277_v38, 1 }
 0x479   : > { %13282 = vst [vmem:[#allocation457_spill] sm:$0xff] %v9250_v36  ;;  %v9259_v16 = vpop.permute.xlu0 %3238  ;;  %v1123_v36 = vrot.slane %v8993_v4, 1  ;;  %13287 = vst [vmem:[#allocation462_spill] sm:$0xff] %v9273_v60 }
 0x47a   : > { %13284 = vst [vmem:[#allocation459_spill] sm:$0xff] %v9259_v16  ;;  %3420 = vrot.lane.b32.xlu1 %v9246_v55, %s5744_s10  ;;  %v1122_v16 = vrot.slane %v8998_v2, 1 }
 0x47b   : > { %3418 = vrot.lane.b32.xlu0 %v9253_v62, %s5744_s10  ;;  %v9286_v58 = vsel %vm575_vm0, %v1123_v36, %v1125_v31 }
 0x47c   : > { %v9270_v28 = vpop.permute.xlu1 %3244  ;;  %13289 = vst [vmem:[#allocation464_spill] sm:$0xff] %v9286_v58  ;;  %v9293_v62 = vsel %vm575_vm0, %v1122_v16, %v1123_v36  ;;  %v1135_v16 = vrot.slane %v9297_v19, 1 }
 0x47d   : > { %13286 = vst [vmem:[#allocation461_spill] sm:$0xff] %v9270_v28  ;;  %v9279_v55 = vpop.permute.xlu0 %3242  ;;  %v1128_v28 = vrot.slane %v9007_v9, 1  ;;  %13291 = vst [vmem:[#allocation466_spill] sm:$0xff] %v9293_v62 }
 0x47e   : > { %13288 = vst [vmem:[#allocation463_spill] sm:$0xff] %v9279_v55  ;;  %3424 = vrot.lane.b32.xlu1 %v9266_v13, %s5744_s10  ;;  %v1127_v55 = vrot.slane %v9010_v52, 1 }
 0x47f   : > { %3422 = vrot.lane.b32.xlu0 %v9273_v60, %s5744_s10  ;;  %v9306_v31 = vsel %vm575_vm0, %v1128_v28, %v1130_v51 }
 0x480   : > { %v9290_v7 = vpop.permute.xlu1 %3248  ;;  %13293 = vst [vmem:[#allocation468_spill] sm:$0xff] %v9306_v31  ;;  %v9313_v60 = vsel %vm575_vm0, %v1127_v55, %v1128_v28  ;;  %v1140_v55 = vrot.slane %v9317_v11, 1 }
 0x481   : > { %13290 = vst [vmem:[#allocation465_spill] sm:$0xff] %v9290_v7  ;;  %v9299_v13 = vpop.permute.xlu0 %3246  ;;  %v1133_v7 = vrot.slane %v9025_v1, 1  ;;  %13295 = vst [vmem:[#allocation470_spill] sm:$0xff] %v9313_v60 }
 0x482   : > { %13292 = vst [vmem:[#allocation467_spill] sm:$0xff] %v9299_v13  ;;  %3428 = vrot.lane.b32.xlu1 %v9286_v58, %s5744_s10  ;;  %v1132_v13 = vrot.slane %v9028_v17, 1 }
 0x483   : > { %3426 = vrot.lane.b32.xlu0 %v9293_v62, %s5744_s10  ;;  %v9326_v51 = vsel %vm575_vm0, %v1133_v7, %v1135_v16 }
 0x484   : > { %v9310_v36 = vpop.permute.xlu1 %3252  ;;  %13297 = vst [vmem:[#allocation472_spill] sm:$0xff] %v9326_v51  ;;  %v9333_v62 = vsel %vm575_vm0, %v1132_v13, %v1133_v7  ;;  %v1145_v13 = vrot.slane %v9337_v21, 1 }
 0x485   : > { %13294 = vst [vmem:[#allocation469_spill] sm:$0xff] %v9310_v36  ;;  %v9319_v58 = vpop.permute.xlu0 %3250  ;;  %v1138_v36 = vrot.slane %v9043_v23, 1  ;;  %13299 = vst [vmem:[#allocation474_spill] sm:$0xff] %v9333_v62 }
 0x486   : > { %13296 = vst [vmem:[#allocation471_spill] sm:$0xff] %v9319_v58  ;;  %3432 = vrot.lane.b32.xlu1 %v9306_v31, %s5744_s10  ;;  %v1137_v58 = vrot.slane %v9046_v43, 1 }
 0x487   : > { %3430 = vrot.lane.b32.xlu0 %v9313_v60, %s5744_s10  ;;  %v9346_v16 = vsel %vm575_vm0, %v1138_v36, %v1140_v55 }
 0x488   : > { %v9330_v28 = vpop.permute.xlu1 %3256  ;;  %13301 = vst [vmem:[#allocation476_spill] sm:$0xff] %v9346_v16  ;;  %v9353_v60 = vsel %vm575_vm0, %v1137_v58, %v1138_v36  ;;  %v1150_v58 = vrot.slane %v9357_v46, 1 }
 0x489   : > { %13298 = vst [vmem:[#allocation473_spill] sm:$0xff] %v9330_v28  ;;  %v9339_v31 = vpop.permute.xlu0 %3254  ;;  %v1143_v28 = vrot.slane %v9061_v45, 1  ;;  %13303 = vst [vmem:[#allocation478_spill] sm:$0xff] %v9353_v60 }
 0x48a   : > { %13300 = vst [vmem:[#allocation475_spill] sm:$0xff] %v9339_v31  ;;  %3436 = vrot.lane.b32.xlu1 %v9326_v51, %s5744_s10  ;;  %v1142_v31 = vrot.slane %v9066_v59, 1 }
 0x48b   : > { %3434 = vrot.lane.b32.xlu0 %v9333_v62, %s5744_s10  ;;  %v9366_v55 = vsel %vm575_vm0, %v1143_v28, %v1145_v13 }
 0x48c   : > { %v9350_v7 = vpop.permute.xlu1 %3260  ;;  %13305 = vst [vmem:[#allocation480_spill] sm:$0xff] %v9366_v55  ;;  %v9373_v62 = vsel %vm575_vm0, %v1142_v31, %v1143_v28  ;;  %v1155_v31 = vrot.slane %v9377_v57, 1 }
 0x48d   : > { %13302 = vst [vmem:[#allocation477_spill] sm:$0xff] %v9350_v7  ;;  %v9359_v51 = vpop.permute.xlu0 %3258  ;;  %v1148_v7 = vrot.slane %v9075_v37, 1  ;;  %13307 = vst [vmem:[#allocation482_spill] sm:$0xff] %v9373_v62 }
 0x48e   : > { %13304 = vst [vmem:[#allocation479_spill] sm:$0xff] %v9359_v51  ;;  %3440 = vrot.lane.b32.xlu1 %v9346_v16, %s5744_s10  ;;  %v1147_v51 = vrot.slane %v9080_v27, 1 }
 0x48f   : > { %3438 = vrot.lane.b32.xlu0 %v9353_v60, %s5744_s10  ;;  %v9386_v13 = vsel %vm575_vm0, %v1148_v7, %v1150_v58 }
 0x490   : > { %v9370_v36 = vpop.permute.xlu1 %3296  ;;  %13309 = vst [vmem:[#allocation484_spill] sm:$0xff] %v9386_v13  ;;  %v9393_v60 = vsel %vm575_vm0, %v1147_v51, %v1148_v7  ;;  %v1157_v51 = vrot.slane %v8872_v8, 2  ;;  %v1162_v8 = vrot.slane %v8886_v3, 2 }
 0x491   : > { %13306 = vst [vmem:[#allocation481_spill] sm:$0xff] %v9370_v36  ;;  %v9379_v16 = vpop.permute.xlu0 %3294  ;;  %v1153_v36 = vrot.slane %v9093_v30, 1  ;;  %13311 = vst [vmem:[#allocation486_spill] sm:$0xff] %v9393_v60 }
 0x492   : > { %13308 = vst [vmem:[#allocation483_spill] sm:$0xff] %v9379_v16  ;;  %3444 = vrot.lane.b32.xlu1 %v9366_v55, %s5744_s10  ;;  %v1152_v16 = vrot.slane %v9100_v26, 1  ;;  %v1158_v55 = vrot.slane %v8867_v40, 2  ;;  %v1163_v40 = vrot.slane %v8881_v29, 2 }
 0x493   : > { %3442 = vrot.lane.b32.xlu0 %v9373_v62, %s5744_s10  ;;  %v9404_v58 = vsel %vm575_vm0, %v1153_v36, %v1155_v31 }
 0x494   : > { %v9390_v28 = vpop.permute.xlu1 %3300  ;;  %13313 = vst [vmem:[#allocation488_spill] sm:$0xff] %v9404_v58  ;;  %v9411_v62 = vsel %vm575_vm0, %v1152_v16, %v1153_v36  ;;  %v1159_v16 = vsel %vm656_vm1, %v1157_v51, %v1158_v55 }
 0x495   : > { %13310 = vst [vmem:[#allocation485_spill] sm:$0xff] %v9390_v28  ;;  %v9396_v20 = vpop.permute.xlu0 %3298  ;;  %v1160_v28 = vrot.slane %v9083_v61, 2  ;;  %13315 = vst [vmem:[#allocation490_spill] sm:$0xff] %v9411_v62  ;;  %v1165_v61 = vrot.slane %v9103_v35, 2 }
 0x496   : > { %13312 = vst [vmem:[#allocation487_spill] sm:$0xff] %v9396_v20  ;;  %3448 = vrot.lane.b32.xlu1 %v9386_v13, %s5744_s10 }
 0x497   : > { %3446 = vrot.lane.b32.xlu0 %v9393_v60, %s5744_s10  ;;  %v1161_v31 = vsel %vm656_vm1, %v1158_v55, %v1160_v28  ;;  %v1170_v28 = vrot.slane %v9119_v42, 2  ;;  %v1167_v55 = vrot.slane %v8900_v53, 2  ;;  %v1173_v42 = vrot.slane %v8909_v12, 2 }
 0x498   : > { %v9408_v7 = vpop.permute.xlu1 %3304 }
 0x499   : > { %13314 = vst [vmem:[#allocation489_spill] sm:$0xff] %v9408_v7  ;;  %v9413_v20 = vpop.permute.xlu0 %3302 }
 0x49a   : > { %13316 = vst [vmem:[#allocation491_spill] sm:$0xff] %v9413_v20  ;;  %3452 = vrot.lane.b32.xlu1 %v9404_v58, %s5744_s10  ;;  %v9431_v20 = vsel %vm656_vm1, %v1163_v40, %v1165_v61  ;;  %v1168_v58 = vrot.slane %v8895_v18, 2  ;;  %v1175_v61 = vrot.slane %v9137_v41, 2  ;;  %v1178_v41 = vrot.slane %v8923_v24, 2 }
 0x49b   : > { %3450 = vrot.lane.b32.xlu0 %v9411_v62, %s5744_s10  ;;  %v9438_v62 = vsel %vm656_vm1, %v1162_v8, %v1163_v40  ;;  %v1172_v8 = vrot.slane %v8914_v32, 2 }
 0x49c   : > { %v9423_v7 = vpop.permute.xlu1 %3308  ;;  %v9455_v40 = vsel %vm656_vm1, %v1167_v55, %v1168_v58  ;;  %v1177_v55 = vrot.slane %v8928_v63, 2 }
 0x49d   : > { %13317 = vst [vmem:[#allocation492_spill] sm:$0xff] %v9423_v7  ;;  %v9426_v36 = vpop.permute.xlu0 %3306 }
 0x49e   : > { %13318 = vst [vmem:[#allocation493_spill] sm:$0xff] %v9426_v36  ;;  %3488 = vrot.lane.b32.xlu1 %v1161_v31, %s5745_s11  ;;  %v9448_v31 = vsel %vm656_vm1, %v1168_v58, %v1170_v28  ;;  %v9465_v28 = vsel %vm656_vm1, %v1173_v42, %v1175_v61  ;;  %v9472_v58 = vsel %vm656_vm1, %v1172_v8, %v1173_v42  ;;  %v1182_v8 = vrot.slane %v8942_v34, 2 }
 0x49f   : > { %3486 = vrot.lane.b32.xlu0 %v1159_v16, %s5745_s11  ;;  %v9489_v42 = vsel %vm656_vm1, %v1177_v55, %v1178_v41  ;;  %v1187_v55 = vrot.slane %v8956_v10, 2 }
 0x4a0   : > { %v9435_v35 = vpop.permute.xlu1 %3312 }
 0x4a1   : > { %13319 = vst [vmem:[#allocation494_spill] sm:$0xff] %v9435_v35  ;;  %v9441_v51 = vpop.permute.xlu0 %3310 }
 0x4a2   : > { %13320 = vst [vmem:[#allocation495_spill] sm:$0xff] %v9441_v51  ;;  %3492 = vrot.lane.b32.xlu1 %v9431_v20, %s5745_s11 }
 0x4a3   : > { %3490 = vrot.lane.b32.xlu0 %v9438_v62, %s5745_s11 }
 0x4a4   : > { %v9452_v16 = vpop.permute.xlu1 %3316 }
 0x4a5   : > { %13321 = vst [vmem:[#allocation496_spill] sm:$0xff] %v9452_v16  ;;  %v9458_v51 = vpop.permute.xlu0 %3314  ;;  %v1180_v16 = vrot.slane %v9157_v14, 2  ;;  %v1183_v14 = vrot.slane %v8937_v56, 2 }
 0x4a6   : > { %13322 = vst [vmem:[#allocation497_spill] sm:$0xff] %v9458_v51  ;;  %3496 = vrot.lane.b32.xlu1 %v9448_v31, %s5745_s11 }
 0x4a7   : > { %3494 = vrot.lane.b32.xlu0 %v9455_v40, %s5745_s11  ;;  %v9482_v61 = vsel %vm656_vm1, %v1178_v41, %v1180_v16  ;;  %v9506_v41 = vsel %vm656_vm1, %v1182_v8, %v1183_v14  ;;  %v1192_v8 = vrot.slane %v8970_v54, 2 }
 0x4a8   : > { %v9469_v35 = vpop.permute.xlu1 %3320 }
 0x4a9   : > { %13323 = vst [vmem:[#allocation498_spill] sm:$0xff] %v9469_v35  ;;  %v9475_v51 = vpop.permute.xlu0 %3318  ;;  %v1185_v35 = vrot.slane %v9177_v22, 2  ;;  %v1188_v22 = vrot.slane %v8951_v50, 2 }
 0x4aa   : > { %13324 = vst [vmem:[#allocation499_spill] sm:$0xff] %v9475_v51  ;;  %3500 = vrot.lane.b32.xlu1 %v9465_v28, %s5745_s11 }
 0x4ab   : > { %3498 = vrot.lane.b32.xlu0 %v9472_v58, %s5745_s11  ;;  %v9499_v16 = vsel %vm656_vm1, %v1183_v14, %v1185_v35  ;;  %v9523_v14 = vsel %vm656_vm1, %v1187_v55, %v1188_v22  ;;  %v1197_v55 = vrot.slane %v8984_v39, 2 }
 0x4ac   : > { %v9486_v36 = vpop.permute.xlu1 %3324 }
 0x4ad   : > { %13325 = vst [vmem:[#allocation500_spill] sm:$0xff] %v9486_v36  ;;  %v9492_v51 = vpop.permute.xlu0 %3322  ;;  %v1190_v36 = vrot.slane %v9197_v49, 2  ;;  %v1193_v49 = vrot.slane %v8965_v0, 2 }
 0x4ae   : > { %13326 = vst [vmem:[#allocation501_spill] sm:$0xff] %v9492_v51  ;;  %3504 = vrot.lane.b32.xlu1 %v9482_v61, %s5745_s11 }
 0x4af   : > { %3502 = vrot.lane.b32.xlu0 %v9489_v42, %s5745_s11  ;;  %v9516_v35 = vsel %vm656_vm1, %v1188_v22, %v1190_v36  ;;  %v9540_v22 = vsel %vm656_vm1, %v1192_v8, %v1193_v49  ;;  %v1202_v8 = vrot.slane %v8998_v2, 2 }
 0x4b0   : > { %v9503_v7 = vpop.permute.xlu1 %3328  ;;  %13329 = vst [vmem:[#allocation504_spill] sm:$0xff] %v9516_v35  ;;  %13334 = vst [vmem:[#allocation509_spill] sm:$0xff] %v9540_v22 }
 0x4b1   : > { %13327 = vst [vmem:[#allocation502_spill] sm:$0xff] %v9503_v7  ;;  %v9509_v51 = vpop.permute.xlu0 %3326  ;;  %v1195_v7 = vrot.slane %v9217_v47, 2  ;;  %v1198_v47 = vrot.slane %v8979_v33, 2 }
 0x4b2   : > { %13328 = vst [vmem:[#allocation503_spill] sm:$0xff] %v9509_v51  ;;  %3508 = vrot.lane.b32.xlu1 %v9499_v16, %s5745_s11 }
 0x4b3   : > { %3506 = vrot.lane.b32.xlu0 %v9506_v41, %s5745_s11  ;;  %v9533_v36 = vsel %vm656_vm1, %v1193_v49, %v1195_v7  ;;  %v9557_v49 = vsel %vm656_vm1, %v1197_v55, %v1198_v47  ;;  %v1207_v55 = vrot.slane %v9010_v52, 2 }
 0x4b4   : > { %v9520_v13 = vpop.permute.xlu1 %3332  ;;  %13332 = vst [vmem:[#allocation507_spill] sm:$0xff] %v9533_v36  ;;  %13338 = vst [vmem:[#allocation513_spill] sm:$0xff] %v9557_v49 }
 0x4b5   : > { %13330 = vst [vmem:[#allocation505_spill] sm:$0xff] %v9520_v13  ;;  %v9526_v51 = vpop.permute.xlu0 %3330  ;;  %v1200_v13 = vrot.slane %v9237_v15, 2  ;;  %v1203_v15 = vrot.slane %v8993_v4, 2 }
 0x4b6   : > { %13331 = vst [vmem:[#allocation506_spill] sm:$0xff] %v9526_v51  ;;  %3512 = vrot.lane.b32.xlu1 %v9516_v35, %s5745_s11 }
 0x4b7   : > { %3510 = vrot.lane.b32.xlu0 %v9523_v14, %s5745_s11  ;;  %v9550_v7 = vsel %vm656_vm1, %v1198_v47, %v1200_v13  ;;  %v9574_v47 = vsel %vm656_vm1, %v1202_v8, %v1203_v15  ;;  %v1212_v8 = vrot.slane %v9028_v17, 2 }
 0x4b8   : > { %v9537_v60 = vpop.permute.xlu1 %3336  ;;  %13336 = vst [vmem:[#allocation511_spill] sm:$0xff] %v9550_v7 }
 0x4b9   : > { %13333 = vst [vmem:[#allocation508_spill] sm:$0xff] %v9537_v60  ;;  %v9543_v51 = vpop.permute.xlu0 %3334  ;;  %v1205_v60 = vrot.slane %v9257_v48, 2  ;;  %v1208_v48 = vrot.slane %v9007_v9, 2 }
 0x4ba   : > { %13335 = vst [vmem:[#allocation510_spill] sm:$0xff] %v9543_v51  ;;  %3516 = vrot.lane.b32.xlu1 %v9533_v36, %s5745_s11 }
 0x4bb   : > { %3514 = vrot.lane.b32.xlu0 %v9540_v22, %s5745_s11  ;;  %v9567_v13 = vsel %vm656_vm1, %v1203_v15, %v1205_v60  ;;  %v9591_v15 = vsel %vm656_vm1, %v1207_v55, %v1208_v48  ;;  %v1217_v55 = vrot.slane %v9046_v43, 2 }
 0x4bc   : > { %v9554_v35 = vpop.permute.xlu1 %3340 }
 0x4bd   : > { %13337 = vst [vmem:[#allocation512_spill] sm:$0xff] %v9554_v35  ;;  %v9560_v51 = vpop.permute.xlu0 %3338  ;;  %v1210_v35 = vrot.slane %v9277_v38, 2  ;;  %v1213_v38 = vrot.slane %v9025_v1, 2 }
 0x4be   : > { %13339 = vst [vmem:[#allocation514_spill] sm:$0xff] %v9560_v51  ;;  %3520 = vrot.lane.b32.xlu1 %v9550_v7, %s5745_s11 }
 0x4bf   : > { %3518 = vrot.lane.b32.xlu0 %v9557_v49, %s5745_s11  ;;  %v9584_v60 = vsel %vm656_vm1, %v1208_v48, %v1210_v35  ;;  %v9608_v48 = vsel %vm656_vm1, %v1212_v8, %v1213_v38  ;;  %v1222_v8 = vrot.slane %v9066_v59, 2 }
 0x4c0   : > { %v9571_v36 = vpop.permute.xlu1 %3344 }
 0x4c1   : > { %13340 = vst [vmem:[#allocation515_spill] sm:$0xff] %v9571_v36  ;;  %v9577_v51 = vpop.permute.xlu0 %3342  ;;  %v1215_v36 = vrot.slane %v9297_v19, 2  ;;  %v1218_v19 = vrot.slane %v9043_v23, 2 }
 0x4c2   : > { %13341 = vst [vmem:[#allocation516_spill] sm:$0xff] %v9577_v51  ;;  %3524 = vrot.lane.b32.xlu1 %v9567_v13, %s5745_s11 }
 0x4c3   : > { %3522 = vrot.lane.b32.xlu0 %v9574_v47, %s5745_s11  ;;  %v9601_v35 = vsel %vm656_vm1, %v1213_v38, %v1215_v36  ;;  %v9625_v38 = vsel %vm656_vm1, %v1217_v55, %v1218_v19  ;;  %v1227_v55 = vrot.slane %v9080_v27, 2 }
 0x4c4   : > { %v9588_v7 = vpop.permute.xlu1 %3348  ;;  %13344 = vst [vmem:[#allocation519_spill] sm:$0xff] %v9601_v35 }
 0x4c5   : > { %13342 = vst [vmem:[#allocation517_spill] sm:$0xff] %v9588_v7  ;;  %v9594_v51 = vpop.permute.xlu0 %3346  ;;  %v1220_v7 = vrot.slane %v9317_v11, 2  ;;  %v1223_v11 = vrot.slane %v9061_v45, 2 }
 0x4c6   : > { %13343 = vst [vmem:[#allocation518_spill] sm:$0xff] %v9594_v51  ;;  %3528 = vrot.lane.b32.xlu1 %v9584_v60, %s5745_s11 }
 0x4c7   : > { %3526 = vrot.lane.b32.xlu0 %v9591_v15, %s5745_s11  ;;  %v9618_v36 = vsel %vm656_vm1, %v1218_v19, %v1220_v7  ;;  %v9642_v19 = vsel %vm656_vm1, %v1222_v8, %v1223_v11  ;;  %v1232_v8 = vrot.slane %v9100_v26, 2 }
 0x4c8   : > { %v9605_v49 = vpop.permute.xlu1 %3352  ;;  %13347 = vst [vmem:[#allocation522_spill] sm:$0xff] %v9618_v36 }
 0x4c9   : > { %13345 = vst [vmem:[#allocation520_spill] sm:$0xff] %v9605_v49  ;;  %v9611_v51 = vpop.permute.xlu0 %3350  ;;  %v1225_v49 = vrot.slane %v9337_v21, 2  ;;  %v1228_v21 = vrot.slane %v9075_v37, 2 }
 0x4ca   : > { %13346 = vst [vmem:[#allocation521_spill] sm:$0xff] %v9611_v51  ;;  %3532 = vrot.lane.b32.xlu1 %v9601_v35, %s5745_s11 }
 0x4cb   : > { %3530 = vrot.lane.b32.xlu0 %v9608_v48, %s5745_s11  ;;  %v9635_v7 = vsel %vm656_vm1, %v1223_v11, %v1225_v49  ;;  %v9659_v11 = vsel %vm656_vm1, %v1227_v55, %v1228_v21 }
 0x4cc   : > { %v9622_v22 = vpop.permute.xlu1 %3356  ;;  %13350 = vst [vmem:[#allocation525_spill] sm:$0xff] %v9635_v7 }
 0x4cd   : > { %13348 = vst [vmem:[#allocation523_spill] sm:$0xff] %v9622_v22  ;;  %v9628_v51 = vpop.permute.xlu0 %3354  ;;  %v1230_v22 = vrot.slane %v9357_v46, 2  ;;  %v1233_v46 = vrot.slane %v9093_v30, 2 }
 0x4ce   : > { %13349 = vst [vmem:[#allocation524_spill] sm:$0xff] %v9628_v51  ;;  %3536 = vrot.lane.b32.xlu1 %v9618_v36, %s5745_s11 }
 0x4cf   : > { %3534 = vrot.lane.b32.xlu0 %v9625_v38, %s5745_s11  ;;  %v9652_v49 = vsel %vm656_vm1, %v1228_v21, %v1230_v22 }
 0x4d0   : > { %v9639_v35 = vpop.permute.xlu1 %3392 }
 0x4d1   : > { %13351 = vst [vmem:[#allocation526_spill] sm:$0xff] %v9639_v35  ;;  %v9645_v51 = vpop.permute.xlu0 %3390  ;;  %v1235_v35 = vrot.slane %v9377_v57, 2  ;;  %v9674_v57 = vsel %vm656_vm1, %v1232_v8, %v1233_v46 }
 0x4d2   : > { %13352 = vst [vmem:[#allocation527_spill] sm:$0xff] %v9645_v51  ;;  %3540 = vrot.lane.b32.xlu1 %v9635_v7, %s5745_s11 }
 0x4d3   : > { %3538 = vrot.lane.b32.xlu0 %v9642_v19, %s5745_s11  ;;  %v9669_v22 = vsel %vm656_vm1, %v1233_v46, %v1235_v35 }
 0x4d4   : > { %v9656_v36 = vpop.permute.xlu1 %3396 }
 0x4d5   : > { %v9662_v51 = vpop.permute.xlu0 %3394 }
 0x4d6   : > { %13353 = vst [vmem:[#allocation528_spill] sm:$0xff] %v9662_v51  ;;  %3544 = vrot.lane.b32.xlu1 %v9652_v49, %s5745_s11 }
 0x4d7   : > { %3542 = vrot.lane.b32.xlu0 %v9659_v11, %s5745_s11 }
 0x4d8   : > { %v9671_v7 = vpop.permute.xlu1 %3400 }
 0x4d9   : > { %v9676_v21 = vpop.permute.xlu0 %3398 }
 0x4da   : > { %13354 = vst [vmem:[#allocation529_spill] sm:$0xff] %v9676_v21  ;;  %3548 = vrot.lane.b32.xlu1 %v9669_v22, %s5745_s11  ;;  %v13627_v21 = vld [vmem:[#allocation491_spill] sm:$0xff] }
 0x4db   : > { %3546 = vrot.lane.b32.xlu0 %v9674_v57, %s5745_s11 }
 0x4dc   : > { %v9682_v55 = vpop.permute.xlu1 %3404 }
 0x4dd   : > { %13355 = vst [vmem:[#allocation530_spill] sm:$0xff] %v9682_v55  ;;  %v9684_v51 = vpop.permute.xlu0 %3402 }
 0x4de   : > { %13356 = vst [vmem:[#allocation531_spill] sm:$0xff] %v9684_v51  ;;  %3584 = vrot.lane.b32.xlu1 %v8881_v29, %s5746_s12  ;;  %v13590_v51 = vld [vmem:[#allocation254_spill] sm:$0xff] }
 0x4df   : > { %3582 = vrot.lane.b32.xlu0 %v8886_v3, %s5746_s12 }
 0x4e0   : > { %v9690_v35 = vpop.permute.xlu1 %3408 }
 0x4e1   : > { %13357 = vst [vmem:[#allocation532_spill] sm:$0xff] %v9690_v35  ;;  %v9692_v46 = vpop.permute.xlu0 %3406  ;;  %v13422_v35 = vld [vmem:[#allocation474_spill] sm:$0xff] }
 0x4e2   : > { %13358 = vst [vmem:[#allocation533_spill] sm:$0xff] %v9692_v46  ;;  %3588 = vrot.lane.b32.xlu1 %v8895_v18, %s5746_s12  ;;  %v13421_v46 = vld [vmem:[#allocation472_spill] sm:$0xff] }
 0x4e3   : > { %3586 = vrot.lane.b32.xlu0 %v8900_v53, %s5746_s12 }
 0x4e4   : > { %v9698_v8 = vpop.permute.xlu1 %3412 }
 0x4e5   : > { %13359 = vst [vmem:[#allocation534_spill] sm:$0xff] %v9698_v8  ;;  %v9700_v55 = vpop.permute.xlu0 %3410  ;;  %v13410_v8 = vld [vmem:[#allocation462_spill] sm:$0xff] }
 0x4e6   : > { %13360 = vst [vmem:[#allocation535_spill] sm:$0xff] %v9700_v55  ;;  %3592 = vrot.lane.b32.xlu1 %v8909_v12, %s5746_s12  ;;  %v13409_v55 = vld [vmem:[#allocation460_spill] sm:$0xff] }
 0x4e7   : > { %3590 = vrot.lane.b32.xlu0 %v8914_v32, %s5746_s12 }
 0x4e8   : > { %v9706_v29 = vpop.permute.xlu1 %3416 }
 0x4e9   : > { %13361 = vst [vmem:[#allocation536_spill] sm:$0xff] %v9706_v29  ;;  %v9708_v3 = vpop.permute.xlu0 %3414  ;;  %v13402_v29 = vld [vmem:[#allocation454_spill] sm:$0xff] }
 0x4ea   : > { %13362 = vst [vmem:[#allocation537_spill] sm:$0xff] %v9708_v3  ;;  %3596 = vrot.lane.b32.xlu1 %v8923_v24, %s5746_s12 }
 0x4eb   : > { %3594 = vrot.lane.b32.xlu0 %v8928_v63, %s5746_s12 }
 0x4ec   : > { %v9714_v18 = vpop.permute.xlu1 %3420 }
 0x4ed   : > { %13363 = vst [vmem:[#allocation538_spill] sm:$0xff] %v9714_v18  ;;  %v9716_v53 = vpop.permute.xlu0 %3418 }
 0x4ee   : > { %13364 = vst [vmem:[#allocation539_spill] sm:$0xff] %v9716_v53  ;;  %3600 = vrot.lane.b32.xlu1 %v8937_v56, %s5746_s12 }
 0x4ef   : > { %3598 = vrot.lane.b32.xlu0 %v8942_v34, %s5746_s12 }
 0x4f0   : > { %v9722_v32 = vpop.permute.xlu1 %3424 }
 0x4f1   : > { %13365 = vst [vmem:[#allocation540_spill] sm:$0xff] %v9722_v32  ;;  %v9724_v12 = vpop.permute.xlu0 %3422  ;;  %v5646_v32 = vld [vmem:[%s8860_s17 + $0x30] sm:$0xff] }
 0x4f2   : > { %13366 = vst [vmem:[#allocation541_spill] sm:$0xff] %v9724_v12  ;;  %3604 = vrot.lane.b32.xlu1 %v8951_v50, %s5746_s12 }
 0x4f3   : > { %3602 = vrot.lane.b32.xlu0 %v8956_v10, %s5746_s12 }
 0x4f4   : > { %v9730_v63 = vpop.permute.xlu1 %3428 }
 0x4f5   : > { %13367 = vst [vmem:[#allocation542_spill] sm:$0xff] %v9730_v63  ;;  %v9732_v24 = vpop.permute.xlu0 %3426  ;;  %v13414_v63 = vld [vmem:[#allocation466_spill] sm:$0xff] }
 0x4f6   : > { %13368 = vst [vmem:[#allocation543_spill] sm:$0xff] %v9732_v24  ;;  %3608 = vrot.lane.b32.xlu1 %v8965_v0, %s5746_s12 }
 0x4f7   : > { %3606 = vrot.lane.b32.xlu0 %v8970_v54, %s5746_s12 }
 0x4f8   : > { %v9738_v56 = vpop.permute.xlu1 %3432 }
 0x4f9   : > { %13369 = vst [vmem:[#allocation544_spill] sm:$0xff] %v9738_v56  ;;  %v9740_v34 = vpop.permute.xlu0 %3430  ;;  %v13406_v56 = vld [vmem:[#allocation458_spill] sm:$0xff] }
 0x4fa   : > { %13370 = vst [vmem:[#allocation545_spill] sm:$0xff] %v9740_v34  ;;  %3612 = vrot.lane.b32.xlu1 %v8979_v33, %s5746_s12 }
 0x4fb   : > { %3610 = vrot.lane.b32.xlu0 %v8984_v39, %s5746_s12 }
 0x4fc   : > { %v9746_v50 = vpop.permute.xlu1 %3436 }
 0x4fd   : > { %13371 = vst [vmem:[#allocation546_spill] sm:$0xff] %v9746_v50  ;;  %v9748_v10 = vpop.permute.xlu0 %3434  ;;  %v13398_v50 = vld [vmem:[#allocation450_spill] sm:$0xff] }
 0x4fe   : > { %13372 = vst [vmem:[#allocation547_spill] sm:$0xff] %v9748_v10  ;;  %3616 = vrot.lane.b32.xlu1 %v8993_v4, %s5746_s12  ;;  %v13397_v10 = vld [vmem:[#allocation448_spill] sm:$0xff] }
 0x4ff   : > { %3614 = vrot.lane.b32.xlu0 %v8998_v2, %s5746_s12 }
 0x500   : > { %v9754_v0 = vpop.permute.xlu1 %3440 }
 0x501   : > { %13373 = vst [vmem:[#allocation548_spill] sm:$0xff] %v9754_v0  ;;  %v9756_v54 = vpop.permute.xlu0 %3438  ;;  %v13393_v0 = vld [vmem:[#allocation444_spill] sm:$0xff] }
 0x502   : > { %13374 = vst [vmem:[#allocation549_spill] sm:$0xff] %v9756_v54  ;;  %3620 = vrot.lane.b32.xlu1 %v9007_v9, %s5746_s12  ;;  %v13394_v54 = vld [vmem:[#allocation446_spill] sm:$0xff] }
 0x503   : > { %3618 = vrot.lane.b32.xlu0 %v9010_v52, %s5746_s12 }
 0x504   : > { %v9762_v39 = vpop.permute.xlu1 %3444 }
 0x505   : > { %13375 = vst [vmem:[#allocation550_spill] sm:$0xff] %v9762_v39  ;;  %v9764_v33 = vpop.permute.xlu0 %3442  ;;  %v13389_v39 = vld [vmem:[#allocation440_spill] sm:$0xff] }
 0x506   : > { %13376 = vst [vmem:[#allocation551_spill] sm:$0xff] %v9764_v33  ;;  %3624 = vrot.lane.b32.xlu1 %v9025_v1, %s5746_s12 }
 0x507   : > { %3622 = vrot.lane.b32.xlu0 %v9028_v17, %s5746_s12 }
 0x508   : > { %v9770_v2 = vpop.permute.xlu1 %3448 }
 0x509   : > { %13377 = vst [vmem:[#allocation552_spill] sm:$0xff] %v9770_v2  ;;  %v9772_v4 = vpop.permute.xlu0 %3446 }
 0x50a   : > { %13378 = vst [vmem:[#allocation553_spill] sm:$0xff] %v9772_v4  ;;  %3628 = vrot.lane.b32.xlu1 %v9043_v23, %s5746_s12 }
 0x50b   : > { %3626 = vrot.lane.b32.xlu0 %v9046_v43, %s5746_s12 }
 0x50c   : > { %v9778_v52 = vpop.permute.xlu1 %3452 }
 0x50d   : > { %13379 = vst [vmem:[#allocation554_spill] sm:$0xff] %v9778_v52  ;;  %v9780_v9 = vpop.permute.xlu0 %3450 }
 0x50e   : > { %13380 = vst [vmem:[#allocation555_spill] sm:$0xff] %v9780_v9  ;;  %3632 = vrot.lane.b32.xlu1 %v9061_v45, %s5746_s12  ;;  %v9808_v9 = vld [vmem:[%s8860_s17 + $0x180] sm:$0xff] }
 0x50f   : > { %3630 = vrot.lane.b32.xlu0 %v9066_v59, %s5746_s12  ;;  %v9803_v59 = vld [vmem:[%s8860_s17 + $0x188] sm:$0xff] }
 0x510   : > { %v9786_v1 = vpop.permute.xlu1 %3488 }
 0x511   : > { %v9788_v17 = vpop.permute.xlu0 %3486 }
 0x512   : > { %3636 = vrot.lane.b32.xlu1 %v9075_v37, %s5746_s12 }
 0x513   : > { %3634 = vrot.lane.b32.xlu0 %v9080_v27, %s5746_s12 }
 0x514   : > { %v9794_v43 = vpop.permute.xlu1 %3492 }
 0x515   : > { %v9796_v23 = vpop.permute.xlu0 %3490 }
 0x516   : > { %3640 = vrot.lane.b32.xlu1 %v9093_v30, %s5746_s12 }
 0x517   : > { %3638 = vrot.lane.b32.xlu0 %v9100_v26, %s5746_s12 }
 0x518   : > { %v9805_v45 = vpop.permute.xlu1 %3496 }
 0x519   : > { %13381 = vst [vmem:[#allocation556_spill] sm:$0xff] %v9805_v45  ;;  %v9810_v37 = vpop.permute.xlu0 %3494 }
 0x51a   : > { %13382 = vst [vmem:[#allocation557_spill] sm:$0xff] %v9810_v37  ;;  %3644 = vrot.lane.b32.xlu1 %v9803_v59, %s5746_s12  ;;  %v13622_v37 = vld [vmem:[#allocation481_spill] sm:$0xff] }
 0x51b   : > { %3642 = vrot.lane.b32.xlu0 %v9808_v9, %s5746_s12 }
 0x51c   : > { %v9816_v27 = vpop.permute.xlu1 %3500 }
 0x51d   : > { %13383 = vst [vmem:[#allocation558_spill] sm:$0xff] %v9816_v27  ;;  %v9818_v30 = vpop.permute.xlu0 %3498  ;;  %v5648_v27 = vld [vmem:[%s8860_s17 + $0x48] sm:$0xff] }
 0x51e   : > { %13384 = vst [vmem:[#allocation559_spill] sm:$0xff] %v9818_v30  ;;  %3680 = vrot.lane.b32.xlu1 %v9126_v6, %s5747_s13  ;;  %v13390_v6 = vld [vmem:[#allocation442_spill] sm:$0xff]  ;;  %v5647_v30 = vld [vmem:[%s8860_s17 + $0x50] sm:$0xff] }
 0x51f   : > { %3678 = vrot.lane.b32.xlu0 %v9133_v44, %s5747_s13 }
 0x520   : > { %v9824_v26 = vpop.permute.xlu1 %3504 }
 0x521   : > { %13385 = vst [vmem:[#allocation560_spill] sm:$0xff] %v9824_v26  ;;  %v9826_v52 = vpop.permute.xlu0 %3502  ;;  %v13418_v26 = vld [vmem:[#allocation470_spill] sm:$0xff] }
 0x522   : > { %13386 = vst [vmem:[#allocation561_spill] sm:$0xff] %v9826_v52  ;;  %3684 = vrot.lane.b32.xlu1 %v9146_v25, %s5747_s13 }
 0x523   : > { %3682 = vrot.lane.b32.xlu0 %v9153_v5, %s5747_s13 }
 0x524   : > { %v9832_v2 = vpop.permute.xlu1 %3508 }
 0x525   : > { %13387 = vst [vmem:[#allocation562_spill] sm:$0xff] %v9832_v2  ;;  %v9834_v4 = vpop.permute.xlu0 %3506 }
 0x526   : > { %13388 = vst [vmem:[#allocation563_spill] sm:$0xff] %v9834_v4  ;;  %3688 = vrot.lane.b32.xlu1 %v13389_v39, %s5747_s13 }
 0x527   : > { %3686 = vrot.lane.b32.xlu0 %v13390_v6, %s5747_s13 }
 0x528   : > { %v9840_v44 = vpop.permute.xlu1 %3512 }
 0x529   : > { %13391 = vst [vmem:[#allocation440_spill] sm:$0xff] %v9840_v44  ;;  %v9842_v33 = vpop.permute.xlu0 %3510 }
 0x52a   : > { %13392 = vst [vmem:[#allocation442_spill] sm:$0xff] %v9842_v33  ;;  %3692 = vrot.lane.b32.xlu1 %v13393_v0, %s5747_s13  ;;  %v13401_v33 = vld [vmem:[#allocation452_spill] sm:$0xff] }
 0x52b   : > { %3690 = vrot.lane.b32.xlu0 %v13394_v54, %s5747_s13 }
 0x52c   : > { %v9848_v18 = vpop.permute.xlu1 %3516 }
 0x52d   : > { %13395 = vst [vmem:[#allocation444_spill] sm:$0xff] %v9848_v18  ;;  %v9850_v53 = vpop.permute.xlu0 %3514 }
 0x52e   : > { %13396 = vst [vmem:[#allocation446_spill] sm:$0xff] %v9850_v53  ;;  %3696 = vrot.lane.b32.xlu1 %v13397_v10, %s5747_s13  ;;  %v13405_v53 = vld [vmem:[#allocation456_spill] sm:$0xff] }
 0x52f   : > { %3694 = vrot.lane.b32.xlu0 %v13398_v50, %s5747_s13 }
 0x530   : > { %v9856_v3 = vpop.permute.xlu1 %3520 }
 0x531   : > { %13399 = vst [vmem:[#allocation448_spill] sm:$0xff] %v9856_v3  ;;  %v9858_v44 = vpop.permute.xlu0 %3518  ;;  %v13426_v3 = vld [vmem:[#allocation478_spill] sm:$0xff] }
 0x532   : > { %13400 = vst [vmem:[#allocation450_spill] sm:$0xff] %v9858_v44  ;;  %3700 = vrot.lane.b32.xlu1 %v13401_v33, %s5747_s13  ;;  %v13425_v44 = vld [vmem:[#allocation476_spill] sm:$0xff] }
 0x533   : > { %3698 = vrot.lane.b32.xlu0 %v13402_v29, %s5747_s13 }
 0x534   : > { %v9864_v34 = vpop.permute.xlu1 %3524 }
 0x535   : > { %13403 = vst [vmem:[#allocation452_spill] sm:$0xff] %v9864_v34  ;;  %v9866_v18 = vpop.permute.xlu0 %3522 }
 0x536   : > { %13404 = vst [vmem:[#allocation454_spill] sm:$0xff] %v9866_v18  ;;  %3704 = vrot.lane.b32.xlu1 %v13405_v53, %s5747_s13  ;;  %v13413_v18 = vld [vmem:[#allocation464_spill] sm:$0xff] }
 0x537   : > { %3702 = vrot.lane.b32.xlu0 %v13406_v56, %s5747_s13 }
 0x538   : > { %v9872_v4 = vpop.permute.xlu1 %3528 }
 0x539   : > { %13407 = vst [vmem:[#allocation456_spill] sm:$0xff] %v9872_v4  ;;  %v9874_v2 = vpop.permute.xlu0 %3526 }
 0x53a   : > { %13408 = vst [vmem:[#allocation458_spill] sm:$0xff] %v9874_v2  ;;  %3708 = vrot.lane.b32.xlu1 %v13409_v55, %s5747_s13  ;;  %v13417_v2 = vld [vmem:[#allocation468_spill] sm:$0xff] }
 0x53b   : > { %3706 = vrot.lane.b32.xlu0 %v13410_v8, %s5747_s13 }
 0x53c   : > { %v9880_v24 = vpop.permute.xlu1 %3532 }
 0x53d   : > { %13411 = vst [vmem:[#allocation460_spill] sm:$0xff] %v9880_v24  ;;  %v9882_v34 = vpop.permute.xlu0 %3530 }
 0x53e   : > { %13412 = vst [vmem:[#allocation462_spill] sm:$0xff] %v9882_v34  ;;  %3712 = vrot.lane.b32.xlu1 %v13413_v18, %s5747_s13 }
 0x53f   : > { %3710 = vrot.lane.b32.xlu0 %v13414_v63, %s5747_s13 }
 0x540   : > { %v9888_v52 = vpop.permute.xlu1 %3536 }
 0x541   : > { %13415 = vst [vmem:[#allocation464_spill] sm:$0xff] %v9888_v52  ;;  %v9890_v4 = vpop.permute.xlu0 %3534 }
 0x542   : > { %13416 = vst [vmem:[#allocation466_spill] sm:$0xff] %v9890_v4  ;;  %3716 = vrot.lane.b32.xlu1 %v13417_v2, %s5747_s13 }
 0x543   : > { %3714 = vrot.lane.b32.xlu0 %v13418_v26, %s5747_s13 }
 0x544   : > { %v9896_v24 = vpop.permute.xlu1 %3540 }
 0x545   : > { %13419 = vst [vmem:[#allocation468_spill] sm:$0xff] %v9896_v24  ;;  %v9898_v34 = vpop.permute.xlu0 %3538 }
 0x546   : > { %13420 = vst [vmem:[#allocation470_spill] sm:$0xff] %v9898_v34  ;;  %3720 = vrot.lane.b32.xlu1 %v13421_v46, %s5747_s13 }
 0x547   : > { %3718 = vrot.lane.b32.xlu0 %v13422_v35, %s5747_s13 }
 0x548   : > { %v9904_v52 = vpop.permute.xlu1 %3544 }
 0x549   : > { %13423 = vst [vmem:[#allocation472_spill] sm:$0xff] %v9904_v52  ;;  %v9906_v4 = vpop.permute.xlu0 %3542 }
 0x54a   : > { %13424 = vst [vmem:[#allocation474_spill] sm:$0xff] %v9906_v4  ;;  %3724 = vrot.lane.b32.xlu1 %v13425_v44, %s5747_s13  ;;  %v5645_v4 = vld [vmem:[%s8860_s17 + $0x38] sm:$0xff] }
 0x54b   : > { %3722 = vrot.lane.b32.xlu0 %v13426_v3, %s5747_s13 }
 0x54c   : > { %v9912_v24 = vpop.permute.xlu1 %3548 }
 0x54d   : > { %13427 = vst [vmem:[#allocation476_spill] sm:$0xff] %v9912_v24  ;;  %v9914_v12 = vpop.permute.xlu0 %3546 }
 0x54e   : > { %13428 = vst [vmem:[#allocation478_spill] sm:$0xff] %v9914_v12  ;;  %3776 = vrot.lane.b32.xlu1 %v9431_v20, %s5748_s14 }
 0x54f   : > { %3774 = vrot.lane.b32.xlu0 %v9438_v62, %s5748_s14 }
 0x550   : > { %v9920_v34 = vpop.permute.xlu1 %3584 }
 0x551   : > { %v9922_v52 = vpop.permute.xlu0 %3582 }
 0x552   : > { %3872 = vrot.lane.b32.xlu1 %v5645_v4, %s5749_s15 }
 0x553   : > { %3870 = vrot.lane.b32.xlu0 %v5646_v32, %s5749_s15 }
 0x554   : > { %v9928_v24 = vpop.permute.xlu1 %3588 }
 0x555   : > { %v9930_v12 = vpop.permute.xlu0 %3586 }
 0x556   : > { %3968 = vrot.lane.b32.xlu1 %v9146_v25, %s5750_s6 }
 0x557   : > { %3966 = vrot.lane.b32.xlu0 %v9153_v5, %s5750_s6 }
 0x558   : > { %v9936_v62 = vpop.permute.xlu1 %3592 }
 0x559   : > { %13429 = vst [vmem:[#allocation564_spill] sm:$0xff] %v9936_v62  ;;  %v9938_v20 = vpop.permute.xlu0 %3590  ;;  %v13620_v62 = vld [vmem:[#allocation282_spill] sm:$0xff] }
 0x55a   : > { %13430 = vst [vmem:[#allocation565_spill] sm:$0xff] %v9938_v20  ;;  %3778 = vrot.lane.b32.xlu1 %v9455_v40, %s5748_s14 }
 0x55b   : > { %4062 = vrot.lane.b32.xlu0 %v9455_v40, %s5751_s16 }
 0x55c   : > { %v9944_v32 = vpop.permute.xlu1 %3596 }
 0x55d   : > { %13431 = vst [vmem:[#allocation566_spill] sm:$0xff] %v9944_v32  ;;  %v9946_v4 = vpop.permute.xlu0 %3594  ;;  %v13587_v32 = vld [vmem:[#allocation436_spill] sm:$0xff] }
 0x55e   : > { %13432 = vst [vmem:[#allocation567_spill] sm:$0xff] %v9946_v4  ;;  %3780 = vrot.lane.b32.xlu1 %v9448_v31, %s5748_s14 }
 0x55f   : > { %4064 = vrot.lane.b32.xlu0 %v9448_v31, %s5751_s16 }
 0x560   : > { %v9952_v5 = vpop.permute.xlu1 %3600 }
 0x561   : > { %13433 = vst [vmem:[#allocation568_spill] sm:$0xff] %v9952_v5  ;;  %v9954_v25 = vpop.permute.xlu0 %3598 }
 0x562   : > { %13434 = vst [vmem:[#allocation569_spill] sm:$0xff] %v9954_v25  ;;  %3876 = vrot.lane.b32.xlu1 %v5647_v30, %s5749_s15 }
 0x563   : > { %3874 = vrot.lane.b32.xlu0 %v5648_v27, %s5749_s15 }
 0x564   : > { %v9960_v40 = vpop.permute.xlu1 %3604 }
 0x565   : > { %13435 = vst [vmem:[#allocation570_spill] sm:$0xff] %v9960_v40  ;;  %v9962_v4 = vpop.permute.xlu0 %3602  ;;  %v5657_v40 = vld [vmem:[%s8860_s17 + $0x108] sm:$0xff] }
 0x566   : > { %13436 = vst [vmem:[#allocation571_spill] sm:$0xff] %v9962_v4  ;;  %3972 = vrot.lane.b32.xlu1 %v13389_v39, %s5750_s6 }
 0x567   : > { %3970 = vrot.lane.b32.xlu0 %v13390_v6, %s5750_s6 }
 0x568   : > { %v9968_v31 = vpop.permute.xlu1 %3608 }
 0x569   : > { %13437 = vst [vmem:[#allocation572_spill] sm:$0xff] %v9968_v31  ;;  %v9970_v25 = vpop.permute.xlu0 %3606  ;;  %v5650_v31 = vld [vmem:[%s8860_s17 + $0x60] sm:$0xff] }
 0x56a   : > { %13438 = vst [vmem:[#allocation573_spill] sm:$0xff] %v9970_v25  ;;  %3782 = vrot.lane.b32.xlu1 %v9472_v58, %s5748_s14  ;;  %v5649_v25 = vld [vmem:[%s8860_s17 + $0x68] sm:$0xff] }
 0x56b   : > { %4066 = vrot.lane.b32.xlu0 %v9472_v58, %s5751_s16 }
 0x56c   : > { %v9976_v27 = vpop.permute.xlu1 %3612 }
 0x56d   : > { %13439 = vst [vmem:[#allocation574_spill] sm:$0xff] %v9976_v27  ;;  %v9978_v30 = vpop.permute.xlu0 %3610 }
 0x56e   : > { %13440 = vst [vmem:[#allocation575_spill] sm:$0xff] %v9978_v30  ;;  %3784 = vrot.lane.b32.xlu1 %v9465_v28, %s5748_s14 }
 0x56f   : > { %4068 = vrot.lane.b32.xlu0 %v9465_v28, %s5751_s16 }
 0x570   : > { %v9984_v39 = vpop.permute.xlu1 %3616 }
 0x571   : > { %13441 = vst [vmem:[#allocation576_spill] sm:$0xff] %v9984_v39  ;;  %v9986_v6 = vpop.permute.xlu0 %3614  ;;  %v5665_v39 = vld [vmem:[%s8860_s17 + $0x138] sm:$0xff] }
 0x572   : > { %13442 = vst [vmem:[#allocation577_spill] sm:$0xff] %v9986_v6  ;;  %3880 = vrot.lane.b32.xlu1 %v5649_v25, %s5749_s15 }
 0x573   : > { %3878 = vrot.lane.b32.xlu0 %v5650_v31, %s5749_s15 }
 0x574   : > { %v9992_v58 = vpop.permute.xlu1 %3620 }
 0x575   : > { %13443 = vst [vmem:[#allocation578_spill] sm:$0xff] %v9992_v58  ;;  %v9994_v27 = vpop.permute.xlu0 %3618  ;;  %v13484_v58 = vld [vmem:[#allocation507_spill] sm:$0xff] }
 0x576   : > { %13444 = vst [vmem:[#allocation579_spill] sm:$0xff] %v9994_v27  ;;  %3976 = vrot.lane.b32.xlu1 %v13393_v0, %s5750_s6  ;;  %v5662_v27 = vld [vmem:[%s8860_s17 + $0x128] sm:$0xff] }
 0x577   : > { %3974 = vrot.lane.b32.xlu0 %v13394_v54, %s5750_s6 }
 0x578   : > { %v10000_v28 = vpop.permute.xlu1 %3624 }
 0x579   : > { %13445 = vst [vmem:[#allocation580_spill] sm:$0xff] %v10000_v28  ;;  %v10002_v30 = vpop.permute.xlu0 %3622  ;;  %v5656_v28 = vld [vmem:[%s8860_s17 + $0x98] sm:$0xff] }
 0x57a   : > { %13446 = vst [vmem:[#allocation581_spill] sm:$0xff] %v10002_v30  ;;  %3786 = vrot.lane.b32.xlu1 %v9489_v42, %s5748_s14  ;;  %v5651_v30 = vld [vmem:[%s8860_s17 + $0x78] sm:$0xff] }
 0x57b   : > { %4070 = vrot.lane.b32.xlu0 %v9489_v42, %s5751_s16 }
 0x57c   : > { %v10008_v25 = vpop.permute.xlu1 %3628 }
 0x57d   : > { %13447 = vst [vmem:[#allocation582_spill] sm:$0xff] %v10008_v25  ;;  %v10010_v31 = vpop.permute.xlu0 %3626  ;;  %v5652_v25 = vld [vmem:[%s8860_s17 + $0x80] sm:$0xff] }
 0x57e   : > { %13448 = vst [vmem:[#allocation583_spill] sm:$0xff] %v10010_v31  ;;  %3788 = vrot.lane.b32.xlu1 %v9482_v61, %s5748_s14 }
 0x57f   : > { %4072 = vrot.lane.b32.xlu0 %v9482_v61, %s5751_s16 }
 0x580   : > { %v10016_v0 = vpop.permute.xlu1 %3632 }
 0x581   : > { %13449 = vst [vmem:[#allocation584_spill] sm:$0xff] %v10016_v0  ;;  %v10018_v54 = vpop.permute.xlu0 %3630 }
 0x582   : > { %13450 = vst [vmem:[#allocation585_spill] sm:$0xff] %v10018_v54  ;;  %3806 = vrot.lane.b32.xlu1 %v9574_v47, %s5748_s14  ;;  %v5653_v54 = vld [vmem:[%s8860_s17 + $0xf0] sm:$0xff] }
 0x583   : > { %3882 = vrot.lane.b32.xlu0 %v5651_v30, %s5749_s15 }
 0x584   : > { %v10024_v42 = vpop.permute.xlu1 %3636 }
 0x585   : > { %13451 = vst [vmem:[#allocation586_spill] sm:$0xff] %v10024_v42  ;;  %v10026_v31 = vpop.permute.xlu0 %3634 }
 0x586   : > { %13452 = vst [vmem:[#allocation587_spill] sm:$0xff] %v10026_v31  ;;  %3978 = vrot.lane.b32.xlu1 %v13398_v50, %s5750_s6 }
 0x587   : > { %3884 = vrot.lane.b32.xlu0 %v5652_v25, %s5749_s15 }
 0x588   : > { %v10032_v61 = vpop.permute.xlu1 %3640 }
 0x589   : > { %13453 = vst [vmem:[#allocation588_spill] sm:$0xff] %v10032_v61  ;;  %v10034_v0 = vpop.permute.xlu0 %3638  ;;  %v5654_v61 = vld [vmem:[%s8860_s17 + $0xf8] sm:$0xff] }
 0x58a   : > { %13454 = vst [vmem:[#allocation589_spill] sm:$0xff] %v10034_v0  ;;  %3902 = vrot.lane.b32.xlu1 %v5653_v54, %s5749_s15  ;;  %v5655_v0 = vld [vmem:[%s8860_s17 + $0x90] sm:$0xff] }
 0x58b   : > { %3808 = vrot.lane.b32.xlu0 %v9567_v13, %s5748_s14 }
 0x58c   : > { %v10040_v30 = vpop.permute.xlu1 %3644 }
 0x58d   : > { %13455 = vst [vmem:[#allocation590_spill] sm:$0xff] %v10040_v30  ;;  %v10042_v42 = vpop.permute.xlu0 %3642 }
 0x58e   : > { %13456 = vst [vmem:[#allocation591_spill] sm:$0xff] %v10042_v42  ;;  %4074 = vrot.lane.b32.xlu1 %v9506_v41, %s5751_s16 }
 0x58f   : > { %3980 = vrot.lane.b32.xlu0 %v13397_v10, %s5750_s6 }
 0x590   : > { %v10048_v50 = vpop.permute.xlu1 %3680 }
 0x591   : > { %v10050_v25 = vpop.permute.xlu0 %3678 }
 0x592   : > { %3904 = vrot.lane.b32.xlu1 %v5654_v61, %s5749_s15 }
 0x593   : > { %3790 = vrot.lane.b32.xlu0 %v9506_v41, %s5748_s14 }
 0x594   : > { %v10056_v54 = vpop.permute.xlu1 %3684 }
 0x595   : > { %v10058_v42 = vpop.permute.xlu0 %3682 }
 0x596   : > { %4076 = vrot.lane.b32.xlu1 %v9499_v16, %s5751_s16 }
 0x597   : > { %3998 = vrot.lane.b32.xlu0 %v13418_v26, %s5750_s6 }
 0x598   : > { %v10064_v10 = vpop.permute.xlu1 %3688 }
 0x599   : > { %13457 = vst [vmem:[#allocation592_spill] sm:$0xff] %v10064_v10  ;;  %v10066_v30 = vpop.permute.xlu0 %3686  ;;  %v13614_v10 = vld [vmem:[#allocation276_spill] sm:$0xff] }
 0x59a   : > { %13458 = vst [vmem:[#allocation593_spill] sm:$0xff] %v10066_v30  ;;  %3886 = vrot.lane.b32.xlu1 %v5655_v0, %s5749_s15 }
 0x59b   : > { %3792 = vrot.lane.b32.xlu0 %v9499_v16, %s5748_s14 }
 0x59c   : > { %v10072_v41 = vpop.permute.xlu1 %3692 }
 0x59d   : > { %13459 = vst [vmem:[#allocation594_spill] sm:$0xff] %v10072_v41  ;;  %v10074_v61 = vpop.permute.xlu0 %3690  ;;  %v5666_v41 = vld [vmem:[%s8860_s17 + $0x140] sm:$0xff] }
 0x59e   : > { %13460 = vst [vmem:[#allocation595_spill] sm:$0xff] %v10074_v61  ;;  %4094 = vrot.lane.b32.xlu1 %v9591_v15, %s5751_s16  ;;  %v13498_v61 = vld [vmem:[#allocation513_spill] sm:$0xff] }
 0x59f   : > { %4000 = vrot.lane.b32.xlu0 %v13417_v2, %s5750_s6 }
 0x5a0   : > { %v10080_v26 = vpop.permute.xlu1 %3696 }
 0x5a1   : > { %13461 = vst [vmem:[#allocation596_spill] sm:$0xff] %v10080_v26  ;;  %v10082_v31 = vpop.permute.xlu0 %3694  ;;  %v5663_v26 = vld [vmem:[%s8860_s17 + $0xc0] sm:$0xff] }
 0x5a2   : > { %13462 = vst [vmem:[#allocation597_spill] sm:$0xff] %v10082_v31  ;;  %3888 = vrot.lane.b32.xlu1 %v5656_v28, %s5749_s15 }
 0x5a3   : > { %3810 = vrot.lane.b32.xlu0 %v9591_v15, %s5748_s14 }
 0x5a4   : > { %v10088_v16 = vpop.permute.xlu1 %3700 }
 0x5a5   : > { %13463 = vst [vmem:[#allocation598_spill] sm:$0xff] %v10088_v16  ;;  %v10090_v0 = vpop.permute.xlu0 %3698  ;;  %v5661_v16 = vld [vmem:[%s8860_s17 + $0x120] sm:$0xff] }
 0x5a6   : > { %13464 = vst [vmem:[#allocation599_spill] sm:$0xff] %v10090_v0  ;;  %4096 = vrot.lane.b32.xlu1 %v9584_v60, %s5751_s16  ;;  %v5659_v0 = vld [vmem:[%s8860_s17 + $0xa8] sm:$0xff] }
 0x5a7   : > { %3982 = vrot.lane.b32.xlu0 %v13402_v29, %s5750_s6 }
 0x5a8   : > { %v10096_v2 = vpop.permute.xlu1 %3704 }
 0x5a9   : > { %13465 = vst [vmem:[#allocation600_spill] sm:$0xff] %v10096_v2  ;;  %v10098_v4 = vpop.permute.xlu0 %3702  ;;  %v5658_v2 = vld [vmem:[%s8860_s17 + $0x110] sm:$0xff] }
 0x5aa   : > { %13466 = vst [vmem:[#allocation601_spill] sm:$0xff] %v10098_v4  ;;  %3906 = vrot.lane.b32.xlu1 %v5657_v40, %s5749_s15 }
 0x5ab   : > { %3812 = vrot.lane.b32.xlu0 %v9584_v60, %s5748_s14 }
 0x5ac   : > { %v10104_v15 = vpop.permute.xlu1 %3708 }
 0x5ad   : > { %13467 = vst [vmem:[#allocation602_spill] sm:$0xff] %v10104_v15  ;;  %v10106_v28 = vpop.permute.xlu0 %3706  ;;  %v13473_v15 = vld [vmem:[#allocation504_spill] sm:$0xff] }
 0x5ae   : > { %13468 = vst [vmem:[#allocation603_spill] sm:$0xff] %v10106_v28  ;;  %4078 = vrot.lane.b32.xlu1 %v9523_v14, %s5751_s16 }
 0x5af   : > { %3984 = vrot.lane.b32.xlu0 %v13401_v33, %s5750_s6 }
 0x5b0   : > { %v10112_v29 = vpop.permute.xlu1 %3712 }
 0x5b1   : > { %13469 = vst [vmem:[#allocation604_spill] sm:$0xff] %v10112_v29  ;;  %v10114_v4 = vpop.permute.xlu0 %3710  ;;  %v13493_v29 = vld [vmem:[#allocation522_spill] sm:$0xff] }
 0x5b2   : > { %13470 = vst [vmem:[#allocation605_spill] sm:$0xff] %v10114_v4  ;;  %3908 = vrot.lane.b32.xlu1 %v5658_v2, %s5749_s15  ;;  %v5664_v4 = vld [vmem:[%s8860_s17 + $0xc8] sm:$0xff] }
 0x5b3   : > { %3794 = vrot.lane.b32.xlu0 %v9523_v14, %s5748_s14 }
 0x5b4   : > { %v10120_v60 = vpop.permute.xlu1 %3716 }
 0x5b5   : > { %13471 = vst [vmem:[#allocation606_spill] sm:$0xff] %v10120_v60  ;;  %v10122_v40 = vpop.permute.xlu0 %3714 }
 0x5b6   : > { %13472 = vst [vmem:[#allocation607_spill] sm:$0xff] %v10122_v40  ;;  %4080 = vrot.lane.b32.xlu1 %v13473_v15, %s5751_s16  ;;  %v13480_v40 = vld [vmem:[#allocation509_spill] sm:$0xff] }
 0x5b7   : > { %4002 = vrot.lane.b32.xlu0 %v13422_v35, %s5750_s6 }
 0x5b8   : > { %v10128_v33 = vpop.permute.xlu1 %3720 }
 0x5b9   : > { %13474 = vst [vmem:[#allocation504_spill] sm:$0xff] %v10128_v33  ;;  %v10130_v28 = vpop.permute.xlu0 %3718  ;;  %v5660_v33 = vld [vmem:[%s8860_s17 + $0xb0] sm:$0xff] }
 0x5ba   : > { %13475 = vst [vmem:[#allocation608_spill] sm:$0xff] %v10130_v28  ;;  %3890 = vrot.lane.b32.xlu1 %v5659_v0, %s5749_s15 }
 0x5bb   : > { %3796 = vrot.lane.b32.xlu0 %v13473_v15, %s5748_s14 }
 0x5bc   : > { %v10136_v14 = vpop.permute.xlu1 %3724 }
 0x5bd   : > { %13476 = vst [vmem:[#allocation609_spill] sm:$0xff] %v10136_v14  ;;  %v10138_v2 = vpop.permute.xlu0 %3722 }
 0x5be   : > { %13477 = vst [vmem:[#allocation610_spill] sm:$0xff] %v10138_v2  ;;  %4098 = vrot.lane.b32.xlu1 %v9608_v48, %s5751_s16  ;;  %v13478_v2 = vld [vmem:[#allocation519_spill] sm:$0xff] }
 0x5bf   : > { %4004 = vrot.lane.b32.xlu0 %v13421_v46, %s5750_s6 }
 0x5c0   : > { %v10144_v35 = vpop.permute.xlu1 %3776 }
 0x5c1   : > { %v10146_v28 = vpop.permute.xlu0 %3774 }
 0x5c2   : > { %3892 = vrot.lane.b32.xlu1 %v5660_v33, %s5749_s15 }
 0x5c3   : > { %3814 = vrot.lane.b32.xlu0 %v9608_v48, %s5748_s14 }
 0x5c4   : > { %v10152_v0 = vpop.permute.xlu1 %3872 }
 0x5c5   : > { %v10154_v15 = vpop.permute.xlu0 %3870 }
 0x5c6   : > { %4100 = vrot.lane.b32.xlu1 %v13478_v2, %s5751_s16 }
 0x5c7   : > { %3986 = vrot.lane.b32.xlu0 %v13406_v56, %s5750_s6 }
 0x5c8   : > { %v10160_v46 = vpop.permute.xlu1 %3968 }
 0x5c9   : > { %v10162_v14 = vpop.permute.xlu0 %3966 }
 0x5ca   : > { %3910 = vrot.lane.b32.xlu1 %v5661_v16, %s5749_s15 }
 0x5cb   : > { %3816 = vrot.lane.b32.xlu0 %v13478_v2, %s5748_s14 }
 0x5cc   : > { %v10168_v48 = vpop.permute.xlu1 %3778 }
 0x5cd   : > { %13479 = vst [vmem:[#allocation519_spill] sm:$0xff] %v10168_v48  ;;  %v10170_v33 = vpop.permute.xlu0 %4062  ;;  %v13623_v48 = vld [vmem:[#allocation483_spill] sm:$0xff] }
 0x5ce   : > { %4082 = vrot.lane.b32.xlu1 %v13480_v40, %s5751_s16 }
 0x5cf   : > { %3988 = vrot.lane.b32.xlu0 %v13405_v53, %s5750_s6 }
 0x5d0   : > { %v10176_v56 = vpop.permute.xlu1 %3780 }
 0x5d1   : > { %13481 = vst [vmem:[#allocation509_spill] sm:$0xff] %v10176_v56  ;;  %v10178_v60 = vpop.permute.xlu0 %4064 }
 0x5d2   : > { %3912 = vrot.lane.b32.xlu1 %v5662_v27, %s5749_s15 }
 0x5d3   : > { %3798 = vrot.lane.b32.xlu0 %v13480_v40, %s5748_s14 }
 0x5d4   : > { %v10184_v16 = vpop.permute.xlu1 %3876 }
 0x5d5   : > { %13482 = vst [vmem:[#allocation611_spill] sm:$0xff] %v10184_v16  ;;  %v10186_v2 = vpop.permute.xlu0 %3874 }
 0x5d6   : > { %13483 = vst [vmem:[#allocation612_spill] sm:$0xff] %v10186_v2  ;;  %4084 = vrot.lane.b32.xlu1 %v13484_v58, %s5751_s16  ;;  %v13618_v2 = vld [vmem:[#allocation280_spill] sm:$0xff] }
 0x5d7   : > { %4006 = vrot.lane.b32.xlu0 %v13426_v3, %s5750_s6 }
 0x5d8   : > { %v10192_v53 = vpop.permute.xlu1 %3972 }
 0x5d9   : > { %13485 = vst [vmem:[#allocation507_spill] sm:$0xff] %v10192_v53  ;;  %v10194_v31 = vpop.permute.xlu0 %3970 }
 0x5da   : > { %13486 = vst [vmem:[#allocation613_spill] sm:$0xff] %v10194_v31  ;;  %3894 = vrot.lane.b32.xlu1 %v5663_v26, %s5749_s15  ;;  %v13613_v31 = vld [vmem:[#allocation457_spill] sm:$0xff] }
 0x5db   : > { %3800 = vrot.lane.b32.xlu0 %v13484_v58, %s5748_s14  ;;  %v4179_v20 = vsel %vm2703_vm2, %v13614_v10, %v13613_v31 }
 0x5dc   : > { %v10200_v27 = vpop.permute.xlu1 %3782 }
 0x5dd   : > { %13487 = vst [vmem:[#allocation614_spill] sm:$0xff] %v10200_v27  ;;  %v10202_v40 = vpop.permute.xlu0 %4066  ;;  %v13589_v27 = vld [vmem:[#allocation437_spill] sm:$0xff] }
 0x5de   : > { %13488 = vst [vmem:[#allocation615_spill] sm:$0xff] %v10202_v40  ;;  %4102 = vrot.lane.b32.xlu1 %v9625_v38, %s5751_s16 }
 0x5df   : > { %4008 = vrot.lane.b32.xlu0 %v13425_v44, %s5750_s6 }
 0x5e0   : > { %v10208_v3 = vpop.permute.xlu1 %3784 }
 0x5e1   : > { %13489 = vst [vmem:[#allocation616_spill] sm:$0xff] %v10208_v3  ;;  %v10210_v5 = vpop.permute.xlu0 %4068  ;;  %v4166_v3 = vsel %vm2703_vm2, %v13590_v51, %v13589_v27  ;;  %v13598_v51 = vld [vmem:[#allocation443_spill] sm:$0xff]  ;;  %v13599_v27 = vld [vmem:[#allocation262_spill] sm:$0xff] }
 0x5e2   : > { %13490 = vst [vmem:[#allocation617_spill] sm:$0xff] %v10210_v5  ;;  %3896 = vrot.lane.b32.xlu1 %v5664_v4, %s5749_s15  ;;  %v4170_v40 = vsel %vm2703_vm2, %v13599_v27, %v13598_v51  ;;  %v4651_v5 = vld [vmem:[%s12343_s3 + $0x60] sm:$0xff] }
 0x5e3   : > { %3818 = vrot.lane.b32.xlu0 %v9625_v38, %s5748_s14 }
 0x5e4   : > { %v10216_v58 = vpop.permute.xlu1 %3880 }
 0x5e5   : > { %13491 = vst [vmem:[#allocation618_spill] sm:$0xff] %v10216_v58  ;;  %v10218_v26 = vpop.permute.xlu0 %3878  ;;  %v13588_v58 = vld [vmem:[#allocation252_spill] sm:$0xff] }
 0x5e6   : > { %13492 = vst [vmem:[#allocation619_spill] sm:$0xff] %v10218_v26  ;;  %4104 = vrot.lane.b32.xlu1 %v13493_v29, %s5751_s16 }
 0x5e7   : > { %3990 = vrot.lane.b32.xlu0 %v13410_v8, %s5750_s6 }
 0x5e8   : > { %v10224_v44 = vpop.permute.xlu1 %3976 }
 0x5e9   : > { %13494 = vst [vmem:[#allocation522_spill] sm:$0xff] %v10224_v44  ;;  %v10226_v6 = vpop.permute.xlu0 %3974 }
 0x5ea   : > { %13495 = vst [vmem:[#allocation620_spill] sm:$0xff] %v10226_v6  ;;  %3914 = vrot.lane.b32.xlu1 %v5665_v39, %s5749_s15 }
 0x5eb   : > { %3820 = vrot.lane.b32.xlu0 %v13493_v29, %s5748_s14 }
 0x5ec   : > { %v10232_v38 = vpop.permute.xlu1 %3786 }
 0x5ed   : > { %13496 = vst [vmem:[#allocation621_spill] sm:$0xff] %v10232_v38  ;;  %v10234_v4 = vpop.permute.xlu0 %4070  ;;  %v13503_v38 = vld [vmem:[#allocation511_spill] sm:$0xff] }
 0x5ee   : > { %13497 = vst [vmem:[#allocation622_spill] sm:$0xff] %v10234_v4  ;;  %4086 = vrot.lane.b32.xlu1 %v13498_v61, %s5751_s16 }
 0x5ef   : > { %3992 = vrot.lane.b32.xlu0 %v13409_v55, %s5750_s6  ;;  %v13504_v55 = vld [vmem:[#allocation482_spill] sm:$0xff] }
 0x5f0   : > { %v10240_v8 = vpop.permute.xlu1 %3788 }
 0x5f1   : > { %13499 = vst [vmem:[#allocation513_spill] sm:$0xff] %v10240_v8  ;;  %v10242_v6 = vpop.permute.xlu0 %4072 }
 0x5f2   : > { %13500 = vst [vmem:[#allocation623_spill] sm:$0xff] %v10242_v6  ;;  %3916 = vrot.lane.b32.xlu1 %v5666_v41, %s5749_s15  ;;  %v13577_v6 = vld [vmem:[#allocation242_spill] sm:$0xff] }
 0x5f3   : > { %3802 = vrot.lane.b32.xlu0 %v13498_v61, %s5748_s14 }
 0x5f4   : > { %v10248_v39 = vpop.permute.xlu1 %3806 }
 0x5f5   : > { %13501 = vst [vmem:[#allocation624_spill] sm:$0xff] %v10248_v39  ;;  %v10250_v29 = vpop.permute.xlu0 %3882  ;;  %v13509_v39 = vld [vmem:[#allocation480_spill] sm:$0xff] }
 0x5f6   : > { %13502 = vst [vmem:[#allocation625_spill] sm:$0xff] %v10250_v29  ;;  %4088 = vrot.lane.b32.xlu1 %v13503_v38, %s5751_s16  ;;  %v5667_v29 = vld [vmem:[%s8860_s17 + $0xd8] sm:$0xff] }
 0x5f7   : > { %4010 = vrot.lane.b32.xlu0 %v13504_v55, %s5750_s6 }
 0x5f8   : > { %v10256_v8 = vpop.permute.xlu1 %3978 }
 0x5f9   : > { %13505 = vst [vmem:[#allocation511_spill] sm:$0xff] %v10256_v8  ;;  %v10258_v4 = vpop.permute.xlu0 %3884 }
 0x5fa   : > { %13506 = vst [vmem:[#allocation482_spill] sm:$0xff] %v10258_v4  ;;  %3804 = vrot.lane.b32.xlu1 %v13503_v38, %s5748_s14 }
 0x5fb   : > { %3726 = vrot.lane.b32.xlu0 %v13504_v55, %s5747_s13 }
 0x5fc   : > { %v10264_v41 = vpop.permute.xlu1 %3902 }
 0x5fd   : > { %13507 = vst [vmem:[#allocation626_spill] sm:$0xff] %v10264_v41  ;;  %v10266_v61 = vpop.permute.xlu0 %3808  ;;  %v5668_v41 = vld [vmem:[%s8860_s17 + $0xe0] sm:$0xff] }
 0x5fe   : > { %13508 = vst [vmem:[#allocation627_spill] sm:$0xff] %v10266_v61  ;;  %4012 = vrot.lane.b32.xlu1 %v13509_v39, %s5750_s6  ;;  %v5669_v61 = vld [vmem:[%s8860_s17 + $0x150] sm:$0xff] }
 0x5ff   : > { %3898 = vrot.lane.b32.xlu0 %v5667_v29, %s5749_s15 }
 0x600   : > { %v10272_v8 = vpop.permute.xlu1 %4074 }
 0x601   : > { %13510 = vst [vmem:[#allocation480_spill] sm:$0xff] %v10272_v8  ;;  %v10274_v4 = vpop.permute.xlu0 %3980 }
 0x602   : > { %13511 = vst [vmem:[#allocation628_spill] sm:$0xff] %v10274_v4  ;;  %3728 = vrot.lane.b32.xlu1 %v13509_v39, %s5747_s13  ;;  %v13516_v39 = vld [vmem:[#allocation525_spill] sm:$0xff] }
 0x603   : > { %4106 = vrot.lane.b32.xlu0 %v9642_v19, %s5751_s16 }
 0x604   : > { %v10280_v38 = vpop.permute.xlu1 %3904 }
 0x605   : > { %13512 = vst [vmem:[#allocation629_spill] sm:$0xff] %v10280_v38  ;;  %v10282_v55 = vpop.permute.xlu0 %3790 }
 0x606   : > { %13513 = vst [vmem:[#allocation630_spill] sm:$0xff] %v10282_v55  ;;  %3900 = vrot.lane.b32.xlu1 %v5668_v41, %s5749_s15 }
 0x607   : > { %3822 = vrot.lane.b32.xlu0 %v9642_v19, %s5748_s14 }
 0x608   : > { %v10288_v29 = vpop.permute.xlu1 %4076 }
 0x609   : > { %13514 = vst [vmem:[#allocation631_spill] sm:$0xff] %v10288_v29  ;;  %v10290_v8 = vpop.permute.xlu0 %3998  ;;  %v13561_v29 = vld [vmem:[#allocation46_spill] sm:$0xff] }
 0x60a   : > { %13515 = vst [vmem:[#allocation632_spill] sm:$0xff] %v10290_v8  ;;  %4108 = vrot.lane.b32.xlu1 %v13516_v39, %s5751_s16 }
 0x60b   : > { %3994 = vrot.lane.b32.xlu0 %v13414_v63, %s5750_s6 }
 0x60c   : > { %v10296_v38 = vpop.permute.xlu1 %3886 }
 0x60d   : > { %13517 = vst [vmem:[#allocation525_spill] sm:$0xff] %v10296_v38  ;;  %v10298_v55 = vpop.permute.xlu0 %3792 }
 0x60e   : > { %13518 = vst [vmem:[#allocation633_spill] sm:$0xff] %v10298_v55  ;;  %3918 = vrot.lane.b32.xlu1 %v5669_v61, %s5749_s15  ;;  %v13523_v55 = vld [vmem:[#allocation486_spill] sm:$0xff]  ;;  %v5670_v61 = vld [vmem:[%s8860_s17 + $0x158] sm:$0xff] }
 0x60f   : > { %3824 = vrot.lane.b32.xlu0 %v13516_v39, %s5748_s14 }
 0x610   : > { %v10304_v19 = vpop.permute.xlu1 %4094 }
 0x611   : > { %13519 = vst [vmem:[#allocation634_spill] sm:$0xff] %v10304_v19  ;;  %v10306_v41 = vpop.permute.xlu0 %4000 }
 0x612   : > { %13520 = vst [vmem:[#allocation635_spill] sm:$0xff] %v10306_v41  ;;  %4090 = vrot.lane.b32.xlu1 %v9574_v47, %s5751_s16 }
 0x613   : > { %3996 = vrot.lane.b32.xlu0 %v13413_v18, %s5750_s6 }
 0x614   : > { %v10312_v63 = vpop.permute.xlu1 %3888 }
 0x615   : > { %13521 = vst [vmem:[#allocation636_spill] sm:$0xff] %v10312_v63  ;;  %v10314_v38 = vpop.permute.xlu0 %3810 }
 0x616   : > { %13522 = vst [vmem:[#allocation637_spill] sm:$0xff] %v10314_v38  ;;  %4014 = vrot.lane.b32.xlu1 %v13523_v55, %s5750_s6 }
 0x617   : > { %3920 = vrot.lane.b32.xlu0 %v5670_v61, %s5749_s15  ;;  %v13528_v61 = vld [vmem:[#allocation484_spill] sm:$0xff] }
 0x618   : > { %v10320_v39 = vpop.permute.xlu1 %4096 }
 0x619   : > { %13524 = vst [vmem:[#allocation486_spill] sm:$0xff] %v10320_v39  ;;  %v10322_v19 = vpop.permute.xlu0 %3982  ;;  %v5673_v39 = vld [vmem:[%s5832_s7 + $0x18] sm:$0xff] }
 0x61a   : > { %13525 = vst [vmem:[#allocation638_spill] sm:$0xff] %v10322_v19  ;;  %3730 = vrot.lane.b32.xlu1 %v13523_v55, %s5747_s13 }
 0x61b   : > { %4092 = vrot.lane.b32.xlu0 %v9567_v13, %s5751_s16 }
 0x61c   : > { %v10328_v47 = vpop.permute.xlu1 %3906 }
 0x61d   : > { %13526 = vst [vmem:[#allocation639_spill] sm:$0xff] %v10328_v47  ;;  %v10330_v18 = vpop.permute.xlu0 %3812 }
 0x61e   : > { %13527 = vst [vmem:[#allocation640_spill] sm:$0xff] %v10330_v18  ;;  %4110 = vrot.lane.b32.xlu1 %v9659_v11, %s5751_s16  ;;  %v5671_v18 = vld [vmem:[%s8860_s17 + $0x170] sm:$0xff] }
 0x61f   : > { %4016 = vrot.lane.b32.xlu0 %v13528_v61, %s5750_s6 }
 0x620   : > { %v10336_v38 = vpop.permute.xlu1 %4078 }
 0x621   : > { %13529 = vst [vmem:[#allocation484_spill] sm:$0xff] %v10336_v38  ;;  %v10338_v19 = vpop.permute.xlu0 %3984 }
 0x622   : > { %13530 = vst [vmem:[#allocation641_spill] sm:$0xff] %v10338_v19  ;;  %3826 = vrot.lane.b32.xlu1 %v9659_v11, %s5748_s14  ;;  %v5672_v11 = vld [vmem:[%s8860_s17 + $0x168] sm:$0xff] }
 0x623   : > { %3732 = vrot.lane.b32.xlu0 %v13528_v61, %s5747_s13 }
 0x624   : > { %v10344_v13 = vpop.permute.xlu1 %3908 }
 0x625   : > { %13531 = vst [vmem:[#allocation642_spill] sm:$0xff] %v10344_v13  ;;  %v10346_v55 = vpop.permute.xlu0 %3794 }
 0x626   : > { %13532 = vst [vmem:[#allocation643_spill] sm:$0xff] %v10346_v55  ;;  %3828 = vrot.lane.b32.xlu1 %v9652_v49, %s5748_s14  ;;  %v13537_v55 = vld [vmem:[#allocation490_spill] sm:$0xff] }
 0x627   : > { %4112 = vrot.lane.b32.xlu0 %v9652_v49, %s5751_s16 }
 0x628   : > { %v10352_v47 = vpop.permute.xlu1 %4080 }
 0x629   : > { %13533 = vst [vmem:[#allocation644_spill] sm:$0xff] %v10352_v47  ;;  %v10354_v38 = vpop.permute.xlu0 %4002 }
 0x62a   : > { %13534 = vst [vmem:[#allocation645_spill] sm:$0xff] %v10354_v38  ;;  %3924 = vrot.lane.b32.xlu1 %v5671_v18, %s5749_s15  ;;  %v13540_v18 = vld [vmem:[#allocation488_spill] sm:$0xff] }
 0x62b   : > { %3922 = vrot.lane.b32.xlu0 %v5672_v11, %s5749_s15 }
 0x62c   : > { %v10360_v61 = vpop.permute.xlu1 %3890 }
 0x62d   : > { %13535 = vst [vmem:[#allocation646_spill] sm:$0xff] %v10360_v61  ;;  %v10362_v13 = vpop.permute.xlu0 %3796 }
 0x62e   : > { %13536 = vst [vmem:[#allocation647_spill] sm:$0xff] %v10362_v13  ;;  %3734 = vrot.lane.b32.xlu1 %v13537_v55, %s5747_s13  ;;  %v4639_v13 = vld [vmem:[%s12343_s3] sm:$0xff] }
 0x62f   : > { %4018 = vrot.lane.b32.xlu0 %v13537_v55, %s5750_s6  ;;  %v4640_v55 = vld [vmem:[%s12343_s3 + $0x8] sm:$0xff] }
 0x630   : > { %v10368_v49 = vpop.permute.xlu1 %4098 }
 0x631   : > { %13538 = vst [vmem:[#allocation490_spill] sm:$0xff] %v10368_v49  ;;  %v10370_v47 = vpop.permute.xlu0 %4004  ;;  %v5506_v49 = vpack.c.bf16 %v4640_v55, %v4639_v13  ;;  %v1240_v55 = vrot.slane %v9808_v9, 1 }
 0x632   : > { %13539 = vst [vmem:[#allocation648_spill] sm:$0xff] %v10370_v47  ;;  %4114 = vrot.lane.b32.xlu1 %v9674_v57, %s5751_s16  ;;  %v10411_v47 = vld [vmem:[%s8860_s17 + $0x190] sm:$0x3] }
 0x633   : > { %4020 = vrot.lane.b32.xlu0 %v13540_v18, %s5750_s6  ;;  %5507 = vmatprep.subr.bf16.mxu0 %v5506_v49  ;;  %v1243_v63 = vrot.slane %v10411_v47, 1 }
 0x634   : > { %v10376_v11 = vpop.permute.xlu1 %3892  ;;  %5536 = vmatprep.subr.bf16.mxu1 %v5506_v49  ;;  %5509 = vmatpush3.bf16.msra.mxu0 %v5506_v49 }
 0x635   : > { %13541 = vst [vmem:[#allocation488_spill] sm:$0xff] %v10376_v11  ;;  %v10378_v61 = vpop.permute.xlu0 %3814  ;;  %v4641_v11 = vld [vmem:[%s12343_s3 + $0x10] sm:$0xff]  ;;  %5543 = vmatpush3.bf16.msra.mxu1 %v5506_v49  ;;  %v4643_v49 = vld [vmem:[%s12343_s3 + $0x20] sm:$0xff] }
 0x636   : > { %13542 = vst [vmem:[#allocation649_spill] sm:$0xff] %v10378_v61  ;;  %3830 = vrot.lane.b32.xlu1 %v9674_v57, %s5748_s14  ;;  %v4642_v57 = vld [vmem:[%s12343_s3 + $0x18] sm:$0xff] }
 0x637   : > { %3736 = vrot.lane.b32.xlu0 %v13540_v18, %s5747_s13  ;;  %v5510_v13 = vpack.c.bf16 %v4642_v57, %v4641_v11  ;;  %v1241_v18 = vrot.slane %v9803_v59, 1  ;;  %v4644_v11 = vld [vmem:[%s12343_s3 + $0x28] sm:$0xff]  ;;  %v12563_v57 = vrot.slane %v9803_v59, 2 }
 0x638   : > { %v10390_v38 = vpop.permute.xlu1 %4100 }
 0x639   : > { %13543 = vst [vmem:[#allocation650_spill] sm:$0xff] %v10390_v38  ;;  %v10392_v61 = vpop.permute.xlu0 %3986  ;;  %5511 = vmatprep.subr.bf16.mxu0 %v5510_v13  ;;  %5537 = vmatprep.subr.bf16.mxu1 %v5510_v13 }
 0x63a   : > { %13544 = vst [vmem:[#allocation651_spill] sm:$0xff] %v10392_v61  ;;  %3832 = vrot.lane.b32.xlu1 %v9669_v22, %s5748_s14  ;;  %5513 = vmatpush3.bf16.msra.mxu0 %v5510_v13 }
 0x63b   : > { %4116 = vrot.lane.b32.xlu0 %v9669_v22, %s5751_s16  ;;  %5544 = vmatpush3.bf16.msra.mxu1 %v5510_v13  ;;  %v5514_v22 = vpack.c.bf16 %v4644_v11, %v4643_v49  ;;  %v4645_v49 = vld [vmem:[%s12343_s3 + $0x30] sm:$0xff] }
 0x63c   : > { %v10406_v61 = vpop.permute.xlu1 %3910 }
 0x63d   : > { %13545 = vst [vmem:[#allocation652_spill] sm:$0xff] %v10406_v61  ;;  %v10408_v38 = vpop.permute.xlu0 %3816  ;;  %v1245_v61 = vrot.slane %v9808_v9, 2  ;;  %5515 = vmatprep.subr.bf16.mxu0 %v5514_v22  ;;  %5538 = vmatprep.subr.bf16.mxu1 %v5514_v22 }
 0x63e   : > { %13546 = vst [vmem:[#allocation653_spill] sm:$0xff] %v10408_v38  ;;  %3928 = vrot.lane.b32.xlu1 %v9803_v59, %s5749_s15  ;;  %v1242_v38 = vsel %vm575_vm0, %v1240_v55, %v1241_v18  ;;  %5517 = vmatpush3.bf16.msra.mxu0 %v5514_v22 }
 0x63f   : > { %3926 = vrot.lane.b32.xlu0 %v9808_v9, %s5749_s15  ;;  %v4646_v9 = vld [vmem:[%s12343_s3 + $0x38] sm:$0xff]  ;;  %5545 = vmatpush3.bf16.msra.mxu1 %v5514_v22  ;;  %v1247_v11 = vsel %vm656_vm1, %v1245_v61, %v12563_v57  ;;  %v13550_v22 = vld [vmem:[#allocation39_spill] sm:$0xff]  ;;  %v13557_v57 = vld [vmem:[#allocation44_spill] sm:$0xff] }
 0x640   : > { %v10426_v19 = vpop.permute.xlu1 %4082  ;;  %v5518_v55 = vpack.c.bf16 %v4646_v9, %v4645_v49  ;;  %v10448_v8 = vsel %vm2703_vm2, %v5673_v39, %v13550_v22  ;;  %v5674_v49 = vld [vmem:[%s5832_s7] sm:$0xff]  ;;  %v4648_v39 = vld [vmem:[%s12343_s3 + $0x48] sm:$0xff] }
 0x641   : > { %13547 = vst [vmem:[#allocation654_spill] sm:$0xff] %v10426_v19  ;;  %v10429_v13 = vpop.permute.xlu0 %3988  ;;  %13551 = vst [vmem:[#allocation39_spill] sm:$0xff] %v10448_v8  ;;  %v13555_v22 = vld [vmem:[#allocation42_spill] sm:$0xff] }
 0x642   : > { %13548 = vst [vmem:[#allocation655_spill] sm:$0xff] %v10429_v13  ;;  %3738 = vrot.lane.b32.xlu1 %v1242_v38, %s5747_s13  ;;  %v1244_v13 = vsel %vm575_vm0, %v1241_v18, %v1243_v63  ;;  %5519 = vmatprep.subr.bf16.mxu0 %v5518_v55  ;;  %v4647_v63 = vld [vmem:[%s12343_s3 + $0x40] sm:$0xff] }
 0x643   : > { %4022 = vrot.lane.b32.xlu0 %v1242_v38, %s5750_s6  ;;  %5539 = vmatprep.subr.bf16.mxu1 %v5518_v55  ;;  %v13552_v38 = vld [vmem:[#allocation41_spill] sm:$0xff]  ;;  %v5675_v18 = vld [vmem:[%s5832_s7 + $0x20] sm:$0xff]  ;;  %v5522_v41 = vpack.c.bf16 %v4648_v39, %v4647_v63 }
 0x644   : > { %v10442_v19 = vpop.permute.xlu1 %3912  ;;  %v10453_v9 = vsel %vm2703_vm2, %v5674_v49, %v13552_v38  ;;  %5521 = vmatpush3.bf16.msra.mxu0 %v5518_v55  ;;  %5546 = vmatpush3.bf16.msra.mxu1 %v5518_v55  ;;  %v10466_v49 = vsel %vm2703_vm2, %v5675_v18, %v13555_v22  ;;  %v5676_v38 = vld [vmem:[%s5832_s7 + $0x8] sm:$0xff]  ;;  %v5678_v55 = vld [vmem:[%s5832_s7 + $0x30] sm:$0xff]  ;;  %v13567_v63 = vld [vmem:[#allocation49_spill] sm:$0xff] }
 0x645   : > { %13549 = vst [vmem:[#allocation656_spill] sm:$0xff] %v10442_v19  ;;  %13553 = vst [vmem:[#allocation41_spill] sm:$0xff] %v10453_v9  ;;  %v10455_v61 = vpop.permute.xlu0 %3798  ;;  %v10471_v8 = vsel %vm2703_vm2, %v5676_v38, %v13557_v57  ;;  %v5677_v9 = vld [vmem:[%s5832_s7 + $0x38] sm:$0xff]  ;;  %v10482_v4 = vsel %vm2703_vm2, %v5678_v55, %v13561_v29  ;;  %v5679_v18 = vld [vmem:[%s5832_s7 + $0x50] sm:$0xff]  ;;  %5523 = vmatprep.subr.bf16.mxu0 %v5522_v41  ;;  %5540 = vmatprep.subr.bf16.mxu1 %v5522_v41 }
 0x646   : > { %13554 = vst [vmem:[#allocation657_spill] sm:$0xff] %v10455_v61  ;;  %13556 = vst [vmem:[#allocation42_spill] sm:$0xff] %v10466_v49  ;;  %v13559_v61 = vld [vmem:[#allocation45_spill] sm:$0xff]  ;;  %4118 = vrot.lane.b32.xlu1 %v1247_v11, %s5751_s16  ;;  %v13563_v22 = vld [vmem:[#allocation47_spill] sm:$0xff] }
 0x647   : > { %13558 = vst [vmem:[#allocation44_spill] sm:$0xff] %v10471_v8  ;;  %v10476_v19 = vsel %vm2703_vm2, %v5677_v9, %v13559_v61  ;;  %13562 = vst [vmem:[#allocation46_spill] sm:$0xff] %v10482_v4  ;;  %v10487_v49 = vsel %vm2703_vm2, %v5679_v18, %v13563_v22  ;;  %v5680_v57 = vld [vmem:[%s5832_s7 + $0x48] sm:$0xff]  ;;  %v13565_v38 = vld [vmem:[#allocation48_spill] sm:$0xff]  ;;  %4024 = vrot.lane.b32.xlu0 %v1244_v13, %s5750_s6  ;;  %v1248_v9 = vrot.slane %v10411_v47, 2 }
 0x648   : > { %13560 = vst [vmem:[#allocation45_spill] sm:$0xff] %v10476_v19  ;;  %13564 = vst [vmem:[#allocation47_spill] sm:$0xff] %v10487_v49  ;;  %v10492_v8 = vsel %vm2703_vm2, %v5680_v57, %v13565_v38  ;;  %v5681_v61 = vld [vmem:[%s5832_s7 + $0x68] sm:$0xff]  ;;  %v13569_v29 = vld [vmem:[#allocation428_spill] sm:$0xff]  ;;  %v10507_v19 = vpop.permute.xlu1 %4084  ;;  %5525 = vmatpush3.bf16.msra.mxu0 %v5522_v41  ;;  %5547 = vmatpush3.bf16.msra.mxu1 %v5522_v41  ;;  %v4167_v41 = vsel %vm2703_vm2, %v13588_v58, %v13587_v32 }
 0x649   : > { %13566 = vst [vmem:[#allocation48_spill] sm:$0xff] %v10492_v8  ;;  %v10499_v39 = vsel %vm2703_vm2, %v5681_v61, %v13567_v63  ;;  %v13570_v55 = vld [vmem:[#allocation236_spill] sm:$0xff]  ;;  %v13571_v18 = vld [vmem:[#allocation429_spill] sm:$0xff]  ;;  %v13572_v22 = vld [vmem:[#allocation238_spill] sm:$0xff] }
 0x64a   : > { %13568 = vst [vmem:[#allocation49_spill] sm:$0xff] %v10499_v39  ;;  %v4159_v4 = vsel %vm2703_vm2, %v13570_v55, %v13569_v29  ;;  %v4158_v49 = vsel %vm2703_vm2, %v13572_v22, %v13571_v18  ;;  %13573 = vst [vmem:[#allocation428_spill] sm:$0xff] %v10507_v19  ;;  %v13574_v57 = vld [vmem:[#allocation430_spill] sm:$0xff]  ;;  %v13575_v38 = vld [vmem:[#allocation240_spill] sm:$0xff]  ;;  %v10518_v55 = vpop.permute.xlu0 %4006  ;;  %3834 = vrot.lane.b32.xlu1 %v1247_v11, %s5748_s14 }
 0x64b   : > { %v4161_v47 = vsel %vm2703_vm2, %v13575_v38, %v13574_v57  ;;  %v13576_v8 = vld [vmem:[#allocation431_spill] sm:$0xff]  ;;  %v13578_v63 = vld [vmem:[#allocation432_spill] sm:$0xff]  ;;  %13580 = vst [vmem:[#allocation236_spill] sm:$0xff] %v10518_v55  ;;  %v4650_v22 = vld [vmem:[%s12343_s3 + $0x58] sm:$0xff]  ;;  %3740 = vrot.lane.b32.xlu0 %v1244_v13, %s5747_s13  ;;  %v4191_v16 = vsel %vm2736_vm3, %v4159_v4, %v13622_v37 }
 0x64c   : > { %v4160_v61 = vsel %vm2703_vm2, %v13577_v6, %v13576_v8  ;;  %v13579_v39 = vld [vmem:[#allocation244_spill] sm:$0xff]  ;;  %v13581_v57 = vld [vmem:[#allocation433_spill] sm:$0xff]  ;;  %v13582_v38 = vld [vmem:[#allocation246_spill] sm:$0xff]  ;;  %v10558_v30 = vpop.permute.xlu1 %3894 }
 0x64d   : > { %v4163_v29 = vsel %vm2703_vm2, %v13579_v39, %v13578_v63  ;;  %v4649_v18 = vld [vmem:[%s12343_s3 + $0x50] sm:$0xff]  ;;  %v4162_v6 = vsel %vm2703_vm2, %v13582_v38, %v13581_v57  ;;  %v13583_v8 = vld [vmem:[#allocation434_spill] sm:$0xff]  ;;  %v13585_v55 = vld [vmem:[#allocation435_spill] sm:$0xff]  ;;  %13600 = vst [vmem:[#allocation429_spill] sm:$0xff] %v10558_v30 }
 0x64e   : > { %v13584_v39 = vld [vmem:[#allocation248_spill] sm:$0xff]  ;;  %v13586_v19 = vld [vmem:[#allocation250_spill] sm:$0xff]  ;;  %v5526_v26 = vpack.c.bf16 %v4650_v22, %v4649_v18  ;;  %v13596_v32 = vld [vmem:[#allocation441_spill] sm:$0xff]  ;;  %v10577_v27 = vpop.permute.xlu0 %3800  ;;  %v10627_v56 = vsel %vm2736_vm3, %v4162_v6, %v13627_v21 }
 0x64f   : > { %v4165_v63 = vsel %vm2703_vm2, %v13584_v39, %v13583_v8  ;;  %v4164_v44 = vsel %vm2703_vm2, %v13586_v19, %v13585_v55  ;;  %v13591_v57 = vld [vmem:[#allocation438_spill] sm:$0xff]  ;;  %v13592_v38 = vld [vmem:[#allocation256_spill] sm:$0xff]  ;;  %v13593_v19 = vrot.slane %v9803_v59, 2  ;;  %v13594_v55 = vld [vmem:[#allocation439_spill] sm:$0xff]  ;;  %13608 = vst [vmem:[#allocation430_spill] sm:$0xff] %v10577_v27 }
 0x650   : > { %v4169_v8 = vsel %vm2703_vm2, %v13592_v38, %v13591_v57  ;;  %v13595_v18 = vld [vmem:[#allocation258_spill] sm:$0xff]  ;;  %v13597_v58 = vld [vmem:[#allocation260_spill] sm:$0xff]  ;;  %v10564_v13 = vld [vmem:[%s8860_s17 + $0x1a8] sm:$0x3]  ;;  %5527 = vmatprep.subr.bf16.mxu0 %v5526_v26  ;;  %5541 = vmatprep.subr.bf16.mxu1 %v5526_v26  ;;  %v10610_v10 = vpop.permute.xlu1 %4102 }
 0x651   : > { %v1249_v11 = vsel %vm656_vm1, %v13593_v19, %v1248_v9  ;;  %v4168_v22 = vsel %vm2703_vm2, %v13595_v18, %v13594_v55  ;;  %v4171_v39 = vsel %vm2703_vm2, %v13597_v58, %v13596_v32  ;;  %v10561_v57 = vld [vmem:[%s8860_s17 + $0x1a0] sm:$0xff]  ;;  %v13601_v59 = vld [vmem:[#allocation447_spill] sm:$0xff]  ;;  %v13604_v19 = vld [vmem:[#allocation449_spill] sm:$0xff]  ;;  %5529 = vmatpush3.bf16.msra.mxu0 %v5526_v26  ;;  %5548 = vmatpush3.bf16.msra.mxu1 %v5526_v26  ;;  %v1256_v53 = vrot.slane %v10564_v13, 1 }
 0x652   : > { %v13602_v9 = vld [vmem:[#allocation266_spill] sm:$0xff]  ;;  %v13605_v55 = vld [vmem:[#allocation268_spill] sm:$0xff]  ;;  %v13606_v32 = vld [vmem:[#allocation451_spill] sm:$0xff]  ;;  %3836 = vrot.lane.b32.xlu1 %v1249_v11, %s5748_s14  ;;  %4120 = vrot.lane.b32.xlu0 %v1249_v11, %s5751_s16  ;;  %v1254_v26 = vrot.slane %v10561_v57, 1  ;;  %13621 = vst [vmem:[#allocation240_spill] sm:$0xff] %v10610_v10  ;;  %v1261_v21 = vrot.slane %v10564_v13, 2 }
 0x653   : > { %v10569_v38 = vsel %vm2703_vm2, %v13602_v9, %v13601_v59  ;;  %v4175_v18 = vsel %vm2703_vm2, %v13605_v55, %v13604_v19  ;;  %v13607_v58 = vld [vmem:[#allocation270_spill] sm:$0xff]  ;;  %v10580_v30 = vld [vmem:[%s8860_s17 + $0x198] sm:$0xff]  ;;  %v4652_v59 = vld [vmem:[%s12343_s3 + $0x68] sm:$0xf]  ;;  %s5758_s14 = smov 64  }
 0x654   : > { %13603 = vst [vmem:[#allocation238_spill] sm:$0xff] %v10569_v38  ;;  %v4174_v51 = vsel %vm2703_vm2, %v13607_v58, %v13606_v32  ;;  %v13609_v9 = vld [vmem:[#allocation453_spill] sm:$0xff]  ;;  %v13610_v19 = vld [vmem:[#allocation272_spill] sm:$0xff]  ;;  %v5530_v32 = vpack.c.bf16 %v4652_v59, %v4651_v5  ;;  %v13611_v58 = vld [vmem:[#allocation455_spill] sm:$0xff]  ;;  %v1253_v11 = vrot.slane %v10580_v30, 1 }
 0x655   : > { %v4177_v55 = vsel %vm2703_vm2, %v13610_v19, %v13609_v9  ;;  %v13612_v38 = vld [vmem:[#allocation274_spill] sm:$0xff]  ;;  %v13615_v9 = vld [vmem:[#allocation459_spill] sm:$0xff]  ;;  %v13617_v59 = vld [vmem:[#allocation461_spill] sm:$0xff] }
 0x656   : > { %v4176_v27 = vsel %vm2703_vm2, %v13612_v38, %v13611_v58  ;;  %v13616_v19 = vld [vmem:[#allocation278_spill] sm:$0xff]  ;;  %v4181_v38 = vsel %vm2703_vm2, %v13618_v2, %v13617_v59  ;;  %v13619_v58 = vld [vmem:[#allocation463_spill] sm:$0xff]  ;;  %5532 = vmatprep.subr.msk.bf16.mxu0 %vm5531_vm13, %v5530_v32  ;;  %5542 = vmatprep.subr.msk.bf16.mxu1 %vm5531_vm13, %v5530_v32  ;;  %v10619_v2 = vpop.permute.xlu0 %4008  ;;  %v13628_v37 = vld [vmem:[#allocation492_spill] sm:$0xff] }
 0x657   : > { %v4178_v5 = vsel %vm2703_vm2, %v13616_v19, %v13615_v9  ;;  %v4180_v31 = vsel %vm2703_vm2, %v13620_v62, %v13619_v58  ;;  %v4190_v9 = vsel %vm2736_vm3, %v4158_v49, %v13623_v48  ;;  %v13624_v19 = vld [vmem:[#allocation485_spill] sm:$0xff]  ;;  %5535 = vmatpush3.bf16.msk.msra.mxu0 %vm5531_vm13, %v5530_v32  ;;  %5549 = vmatpush3.bf16.msk.msra.mxu1 %vm5531_vm13, %v5530_v32  ;;  %v13625_v62 = vld [vmem:[#allocation487_spill] sm:$0xff]  ;;  %vm14046_vm13 = vcmask 424960  }
 0x658   : > { %v4193_v45 = vsel %vm2736_vm3, %v4161_v47, %v13624_v19  ;;  %v4192_v59 = vsel %vm2736_vm3, %v4160_v61, %v13625_v62  ;;  %v13626_v58 = vld [vmem:[#allocation489_spill] sm:$0xff]  ;;  %v10631_v48 = vsel %vm2736_vm3, %v4165_v63, %v13628_v37  ;;  %3932 = vrot.lane.b32.xlu1 %v10561_v57, %s5749_s15  ;;  %v1259_v47 = vrot.slane %v10561_v57, 2  ;;  %3930 = vrot.lane.b32.xlu0 %v10580_v30, %s5749_s15  ;;  %v13631_v63 = vld [vmem:[#allocation495_spill] sm:$0xff]  ;;  %v10653_v19 = vpop.permute.xlu1 %3896  ;;  %v13632_v62 = vld [vmem:[#allocation496_spill] sm:$0xff]  ;;  %s5345_s15 = sshll.u32 %s14349_s19, 5 }
 0x659   : > { %v4195_v10 = vsel %vm2736_vm3, %v4163_v29, %v13626_v58  ;;  %v13629_v4 = vld [vmem:[#allocation493_spill] sm:$0xff]  ;;  %v1257_v61 = vsel %vm575_vm0, %v1254_v26, %v1256_v53  ;;  %v13630_v29 = vld [vmem:[#allocation494_spill] sm:$0xff]  ;;  %v10650_v32 = vsel %vm2736_vm3, %v4166_v3, %v13631_v63  ;;  %v1255_v57 = vsel %vm575_vm0, %v1253_v11, %v1254_v26  ;;  %v13635_v3 = vld [vmem:[#allocation499_spill] sm:$0xff] }
 0x65a   : > { %v10637_v49 = vsel %vm2736_vm3, %v4164_v44, %v13629_v4  ;;  %v10646_v6 = vsel %vm2736_vm3, %v4167_v41, %v13630_v29  ;;  %v1258_v44 = vrot.slane %v10580_v30, 2  ;;  %v10658_v58 = vsel %vm2736_vm3, %v4169_v8, %v13632_v62  ;;  %v13633_v53 = vld [vmem:[#allocation497_spill] sm:$0xff]  ;;  %v13634_v41 = vld [vmem:[#allocation498_spill] sm:$0xff]  ;;  %v10672_v30 = vpop.permute.xlu0 %3818  ;;  %v13637_v8 = vld [vmem:[#allocation503_spill] sm:$0xff] }
 0x65b   : > { %v10662_v13 = vsel %vm2736_vm3, %v4168_v22, %v13633_v53  ;;  %v10666_v37 = vsel %vm2736_vm3, %v4171_v39, %v13634_v41  ;;  %v10670_v4 = vsel %vm2736_vm3, %v4170_v40, %v13635_v3  ;;  %v13636_v29 = vld [vmem:[#allocation502_spill] sm:$0xff]  ;;  %v10680_v11 = vsel %vm2736_vm3, %v4174_v51, %v13637_v8  ;;  %v13638_v22 = vld [vmem:[#allocation505_spill] sm:$0xff]  ;;  %v13641_v41 = vld [vmem:[#allocation527_spill] sm:$0xff] }
 0x65c   : > { %v10676_v26 = vsel %vm2736_vm3, %v4175_v18, %v13636_v29  ;;  %v10684_v63 = vsel %vm2736_vm3, %v4177_v55, %v13638_v22  ;;  %v13639_v39 = vld [vmem:[#allocation526_spill] sm:$0xff]  ;;  %4028 = vrot.lane.b32.xlu1 %v1257_v61, %s5750_s6  ;;  %v4222_v18 = vsel %vm2769_vm4, %v4190_v9, %v13641_v41  ;;  %4026 = vrot.lane.b32.xlu0 %v1255_v57, %s5750_s6  ;;  %v13642_v3 = vld [vmem:[#allocation508_spill] sm:$0xff]  ;;  %v10707_v61 = vpop.permute.xlu1 %4104  ;;  %vm14050_vm15 = vmmov %vm14046_vm13 }
 0x65d   : > { %v4223_v62 = vsel %vm2769_vm4, %v4191_v16, %v13639_v39  ;;  %v13640_v40 = vld [vmem:[#allocation506_spill] sm:$0xff]  ;;  %v1262_v55 = vsel %vm656_vm1, %v1259_v47, %v1261_v21  ;;  %v10701_v29 = vsel %vm2736_vm3, %v4179_v20, %v13642_v3  ;;  %v4254_v16 = vsel %vm12567_vm5, %v4222_v18, %v9788_v17  ;;  %v13644_v57 = vld [vmem:[#allocation512_spill] sm:$0xff] }
 0x65e   : > { %v10691_v53 = vsel %vm2736_vm3, %v4176_v27, %v13640_v40  ;;  %v4255_v51 = vsel %vm12567_vm5, %v4223_v62, %v9786_v1  ;;  %v1260_v9 = vsel %vm656_vm1, %v1258_v44, %v1259_v47  ;;  %v13643_v8 = vld [vmem:[#allocation510_spill] sm:$0xff]  ;;  %v10716_v21 = vsel %vm2736_vm3, %v4181_v38, %v13644_v57  ;;  %v10722_v22 = vpop.permute.xlu0 %3990  ;;  %v13647_v40 = vld [vmem:[#allocation509_spill] sm:$0xff]  ;;  %v13649_v41 = vld [vmem:[#allocation556_spill] sm:$0xff] }
 0x65f   : > { %v4287_v27 = vsel %vm2835_vm6, %v4255_v51, %v9920_v34  ;;  %v10712_v1 = vsel %vm2736_vm3, %v4178_v5, %v13643_v8  ;;  %v4286_v20 = vsel %vm2835_vm6, %v4254_v16, %v9922_v52  ;;  %v13645_v34 = vld [vmem:[#allocation514_spill] sm:$0xff]  ;;  %v4225_v5 = vsel %vm2769_vm4, %v4193_v45, %v9656_v36  ;;  %v13646_v52 = vld [vmem:[#allocation528_spill] sm:$0xff] }
 0x660   : > { %v4319_v17 = vsel %vm2868_vm7, %v4287_v27, %v10048_v50  ;;  %v10726_v39 = vsel %vm2736_vm3, %v4180_v31, %v13645_v34  ;;  %v4318_v47 = vsel %vm2868_vm7, %v4286_v20, %v10050_v25  ;;  %4124 = vrot.lane.b32.xlu1 %v1262_v55, %s5751_s16  ;;  %v4224_v50 = vsel %vm2769_vm4, %v4192_v59, %v13646_v52  ;;  %v10752_v59 = vpop.permute.xlu1 %3914  ;;  %v13653_v3 = vld [vmem:[#allocation564_spill] sm:$0xff]  ;;  %v13656_v20 = vld [vmem:[#allocation565_spill] sm:$0xff] }
 0x661   : > { %v4351_v38 = vsel %vm2901_vm8, %v4319_v17, %v10144_v35  ;;  %v4257_v44 = vsel %vm12567_vm5, %v4225_v5, %v9794_v43  ;;  %v4350_v31 = vsel %vm2901_vm8, %v4318_v47, %v10146_v28  ;;  %4122 = vrot.lane.b32.xlu0 %v1260_v9, %s5751_s16  ;;  %v4256_v45 = vsel %vm12567_vm5, %v4224_v50, %v9796_v23  ;;  %v13654_v27 = vld [vmem:[#allocation612_spill] sm:$0xff]  ;;  %v13655_v9 = vld [vmem:[#allocation507_spill] sm:$0xff]  ;;  %v13658_v47 = vld [vmem:[#allocation613_spill] sm:$0xff] }
 0x662   : > { %v4383_v36 = vsel %vm2934_vm9, %v4351_v38, %v10152_v0  ;;  %v4289_v25 = vsel %vm2835_vm6, %v4257_v44, %v9928_v24  ;;  %v4382_v35 = vsel %vm2934_vm9, %v4350_v31, %v10154_v15  ;;  %v4288_v28 = vsel %vm2835_vm6, %v4256_v45, %v9930_v12  ;;  %v10762_v62 = vpop.permute.xlu0 %3820  ;;  %v13657_v34 = vld [vmem:[#allocation592_spill] sm:$0xff]  ;;  %v13659_v52 = vld [vmem:[#allocation617_spill] sm:$0xff]  ;;  %v13660_v31 = vld [vmem:[#allocation530_spill] sm:$0xff] }
 0x663   : > { %v4415_v43 = vsel %vm2967_vm10, %v4383_v36, %v10160_v46  ;;  %v4321_v0 = vsel %vm2868_vm7, %v4289_v25, %v10056_v54  ;;  %v4414_v23 = vsel %vm2967_vm10, %v4382_v35, %v10162_v14  ;;  %v4227_v15 = vsel %vm2769_vm4, %v4195_v10, %v9671_v7  ;;  %v13648_v14 = vld [vmem:[#allocation529_spill] sm:$0xff]  ;;  %v13650_v7 = vld [vmem:[#allocation519_spill] sm:$0xff] }
 0x664   : > { %v4447_v24 = vsel %vm3000_vm11, %v4415_v43, %v10178_v60  ;;  %v4320_v46 = vsel %vm2868_vm7, %v4288_v28, %v10058_v42  ;;  %v4446_v12 = vsel %vm3000_vm11, %v4414_v23, %v10170_v33  ;;  %v4353_v54 = vsel %vm2901_vm8, %v4321_v0, %v13647_v40  ;;  %v13651_v42 = vld [vmem:[#allocation611_spill] sm:$0xff]  ;;  %v13652_v33 = vld [vmem:[#allocation557_spill] sm:$0xff]  ;;  %v10791_v57 = vpop.permute.xlu1 %4086  ;;  %v13663_v28 = vld [vmem:[#allocation616_spill] sm:$0xff] }
 0x665   : > { %4512 = vrot.lane.b32.xlu1 %v4447_v24, %s5758_s14  ;;  %v4226_v60 = vsel %vm2769_vm4, %v10627_v56, %v13648_v14  ;;  %v4259_v18 = vsel %vm12567_vm5, %v4227_v15, %v13649_v41  ;;  %v4352_v10 = vsel %vm2901_vm8, %v4320_v46, %v13650_v7  ;;  %v4385_v51 = vsel %vm2934_vm9, %v4353_v54, %v13651_v42  ;;  %v13661_v45 = vld [vmem:[#allocation593_spill] sm:$0xff]  ;;  %v13662_v35 = vld [vmem:[#allocation615_spill] sm:$0xff]  ;;  %v13665_v15 = vld [vmem:[#allocation558_spill] sm:$0xff] }
 0x666   : > { %4510 = vrot.lane.b32.xlu0 %v4446_v12, %s5758_s14  ;;  %v4258_v55 = vsel %vm12567_vm5, %v4226_v60, %v13652_v33  ;;  %v4291_v16 = vsel %vm2835_vm6, %v4259_v18, %v13653_v3  ;;  %v4384_v56 = vsel %vm2934_vm9, %v4352_v10, %v13654_v27  ;;  %v4417_v8 = vsel %vm2967_vm10, %v4385_v51, %v13655_v9  ;;  %v10801_v44 = vpop.permute.xlu0 %3992  ;;  %v13664_v23 = vld [vmem:[#allocation531_spill] sm:$0xff]  ;;  %v13666_v12 = vld [vmem:[#allocation614_spill] sm:$0xff]  ;;  %v13674_v27 = vld [vmem:[#allocation620_spill] sm:$0xff] }
 0x667   : > { %v4290_v17 = vsel %vm2835_vm6, %v4258_v55, %v13656_v20  ;;  %v4323_v5 = vsel %vm2868_vm7, %v4291_v16, %v13657_v34  ;;  %v4416_v38 = vsel %vm2967_vm10, %v4384_v56, %v13658_v47  ;;  %v4449_v50 = vsel %vm3000_vm11, %v4417_v8, %v13659_v52  ;;  %v13667_v40 = vld [vmem:[#allocation618_spill] sm:$0xff]  ;;  %v13668_v14 = vld [vmem:[#allocation559_spill] sm:$0xff] }
 0x668   : > { %v4229_v36 = vsel %vm2769_vm4, %v10631_v48, %v13660_v31  ;;  %v4322_v25 = vsel %vm2868_vm7, %v4290_v17, %v13661_v45  ;;  %v4448_v43 = vsel %vm3000_vm11, %v4416_v38, %v13662_v35  ;;  %v4355_v0 = vsel %vm2901_vm8, %v4323_v5, %v13663_v28  ;;  %v13669_v41 = vld [vmem:[#allocation566_spill] sm:$0xff]  ;;  %v13670_v7 = vld [vmem:[#allocation619_spill] sm:$0xff]  ;;  %v10831_v51 = vpop.permute.xlu1 %3916  ;;  %v13676_v17 = vld [vmem:[#allocation540_spill] sm:$0xff] }
 0x669   : > { %4516 = vrot.lane.b32.xlu1 %v4449_v50, %s5758_s14  ;;  %v4228_v24 = vsel %vm2769_vm4, %v10637_v49, %v13664_v23  ;;  %v4261_v46 = vsel %vm12567_vm5, %v4229_v36, %v13665_v15  ;;  %v4354_v48 = vsel %vm2901_vm8, %v4322_v25, %v13666_v12  ;;  %v4387_v54 = vsel %vm2934_vm9, %v4355_v0, %v13667_v40  ;;  %v13671_v10 = vld [vmem:[#allocation522_spill] sm:$0xff]  ;;  %v13672_v33 = vld [vmem:[#allocation567_spill] sm:$0xff]  ;;  %v13679_v50 = vld [vmem:[#allocation513_spill] sm:$0xff] }
 0x66a   : > { %4514 = vrot.lane.b32.xlu0 %v4448_v43, %s5758_s14  ;;  %v4260_v60 = vsel %vm12567_vm5, %v4228_v24, %v13668_v14  ;;  %v4293_v18 = vsel %vm2835_vm6, %v4261_v46, %v13669_v41  ;;  %v4386_v49 = vsel %vm2934_vm9, %v4354_v48, %v13670_v7  ;;  %v4419_v42 = vsel %vm2967_vm10, %v4387_v54, %v13671_v10  ;;  %v13673_v3 = vld [vmem:[#allocation594_spill] sm:$0xff]  ;;  %v13675_v9 = vld [vmem:[#allocation623_spill] sm:$0xff]  ;;  %v10841_v20 = vpop.permute.xlu0 %3802  ;;  %v13680_v36 = vld [vmem:[#allocation541_spill] sm:$0xff] }
 0x66b   : > { %v4292_v55 = vsel %vm2835_vm6, %v4260_v60, %v13672_v33  ;;  %v4325_v16 = vsel %vm2868_vm7, %v4293_v18, %v13673_v3  ;;  %v4418_v56 = vsel %vm2967_vm10, %v4386_v49, %v13674_v27  ;;  %v4451_v8 = vsel %vm3000_vm11, %v4419_v42, %v13675_v9  ;;  %v13677_v5 = vld [vmem:[#allocation595_spill] sm:$0xff]  ;;  %v13678_v38 = vld [vmem:[#allocation622_spill] sm:$0xff]  ;;  %v13681_v25 = vld [vmem:[#allocation448_spill] sm:$0xff] }
 0x66c   : > { %v4239_v34 = vsel %vm2769_vm4, %v10676_v26, %v13676_v17  ;;  %v4324_v47 = vsel %vm2868_vm7, %v4292_v55, %v13677_v5  ;;  %v4450_v52 = vsel %vm3000_vm11, %v4418_v56, %v13678_v38  ;;  %v4357_v31 = vsel %vm2901_vm8, %v4325_v16, %v13679_v50  ;;  %v13682_v43 = vld [vmem:[#allocation621_spill] sm:$0xff]  ;;  %v13683_v28 = vld [vmem:[#allocation482_spill] sm:$0xff]  ;;  %v13685_v15 = vld [vmem:[#allocation576_spill] sm:$0xff]  ;;  %v10871_v54 = vpop.permute.xlu1 %4088 }
 0x66d   : > { %4520 = vrot.lane.b32.xlu1 %v4451_v8, %s5758_s14  ;;  %v4238_v45 = vsel %vm2769_vm4, %v10680_v11, %v13680_v36  ;;  %v4271_v35 = vsel %vm12567_vm5, %v4239_v34, %v13681_v25  ;;  %v4356_v26 = vsel %vm2901_vm8, %v4324_v47, %v13682_v43  ;;  %v4389_v0 = vsel %vm2934_vm9, %v4357_v31, %v13683_v28  ;;  %v13684_v23 = vld [vmem:[#allocation450_spill] sm:$0xff]  ;;  %v13686_v12 = vld [vmem:[#allocation625_spill] sm:$0xff]  ;;  %v13687_v48 = vld [vmem:[#allocation628_spill] sm:$0xff] }
 0x66e   : > { %4518 = vrot.lane.b32.xlu0 %v4450_v52, %s5758_s14  ;;  %v4270_v24 = vsel %vm12567_vm5, %v4238_v45, %v13684_v23  ;;  %v4303_v46 = vsel %vm2835_vm6, %v4271_v35, %v13685_v15  ;;  %v4388_v11 = vsel %vm2934_vm9, %v4356_v26, %v13686_v12  ;;  %v4421_v40 = vsel %vm2967_vm10, %v4389_v0, %v13687_v48  ;;  %v13688_v14 = vld [vmem:[#allocation577_spill] sm:$0xff]  ;;  %v13689_v41 = vld [vmem:[#allocation604_spill] sm:$0xff]  ;;  %v13690_v7 = vld [vmem:[#allocation511_spill] sm:$0xff]  ;;  %v10881_v33 = vpop.permute.xlu0 %4010 }
 0x66f   : > { %v4302_v60 = vsel %vm2835_vm6, %v4270_v24, %v13688_v14  ;;  %v4335_v18 = vsel %vm2868_vm7, %v4303_v46, %v13689_v41  ;;  %v4420_v49 = vsel %vm2967_vm10, %v4388_v11, %v13690_v7  ;;  %v13691_v10 = vld [vmem:[#allocation631_spill] sm:$0xff]  ;;  %v13692_v55 = vld [vmem:[#allocation532_spill] sm:$0xff]  ;;  %v13693_v16 = vld [vmem:[#allocation605_spill] sm:$0xff] }
 0x670   : > { %v4453_v42 = vsel %vm3000_vm11, %v4421_v40, %v13691_v10  ;;  %v4231_v3 = vsel %vm2769_vm4, %v10646_v6, %v13692_v55  ;;  %v4334_v27 = vsel %vm2868_vm7, %v4302_v60, %v13693_v16  ;;  %v13694_v56 = vld [vmem:[#allocation627_spill] sm:$0xff]  ;;  %v13695_v8 = vld [vmem:[#allocation480_spill] sm:$0xff]  ;;  %v13696_v34 = vld [vmem:[#allocation533_spill] sm:$0xff]  ;;  %v10911_v0 = vpop.permute.xlu1 %3804 }
 0x671   : > { %v4367_v9 = vsel %vm2901_vm8, %v4335_v18, %v13694_v56  ;;  %v4452_v17 = vsel %vm3000_vm11, %v4420_v49, %v13695_v8  ;;  %4524 = vrot.lane.b32.xlu1 %v4453_v42, %s5758_s14  ;;  %v4230_v5 = vsel %vm2769_vm4, %v10650_v32, %v13696_v34  ;;  %v13697_v47 = vld [vmem:[#allocation560_spill] sm:$0xff]  ;;  %v13699_v50 = vld [vmem:[#allocation629_spill] sm:$0xff]  ;;  %v13702_v43 = vld [vmem:[#allocation626_spill] sm:$0xff] }
 0x672   : > { %v4263_v38 = vsel %vm12567_vm5, %v4231_v3, %v13697_v47  ;;  %v13698_v52 = vld [vmem:[#allocation624_spill] sm:$0xff]  ;;  %v4399_v31 = vsel %vm2934_vm9, %v4367_v9, %v13699_v50  ;;  %4522 = vrot.lane.b32.xlu0 %v4452_v17, %s5758_s14  ;;  %v13700_v36 = vld [vmem:[#allocation561_spill] sm:$0xff]  ;;  %v13703_v26 = vld [vmem:[#allocation635_spill] sm:$0xff]  ;;  %v10921_v14 = vpop.permute.xlu0 %3726 }
 0x673   : > { %v4366_v6 = vsel %vm2901_vm8, %v4334_v27, %v13698_v52  ;;  %v4262_v45 = vsel %vm12567_vm5, %v4230_v5, %v13700_v36  ;;  %v13701_v25 = vld [vmem:[#allocation568_spill] sm:$0xff]  ;;  %v4431_v28 = vsel %vm2967_vm10, %v4399_v31, %v13703_v26  ;;  %v13704_v23 = vld [vmem:[#allocation569_spill] sm:$0xff]  ;;  %v13707_v48 = vld [vmem:[#allocation486_spill] sm:$0xff] }
 0x674   : > { %v4295_v35 = vsel %vm2835_vm6, %v4263_v38, %v13701_v25  ;;  %v4398_v32 = vsel %vm2934_vm9, %v4366_v6, %v13702_v43  ;;  %v4294_v24 = vsel %vm2835_vm6, %v4262_v45, %v13704_v23  ;;  %v13705_v15 = vld [vmem:[#allocation596_spill] sm:$0xff]  ;;  %v4463_v40 = vsel %vm3000_vm11, %v4431_v28, %v13707_v48  ;;  %v13708_v60 = vld [vmem:[#allocation542_spill] sm:$0xff]  ;;  %v13709_v18 = vld [vmem:[#allocation597_spill] sm:$0xff]  ;;  %v10951_v31 = vpop.permute.xlu1 %4012 }
 0x675   : > { %v4327_v46 = vsel %vm2868_vm7, %v4295_v35, %v13705_v15  ;;  %v13706_v12 = vld [vmem:[#allocation632_spill] sm:$0xff]  ;;  %v4241_v41 = vsel %vm2769_vm4, %v10684_v63, %v13708_v60  ;;  %v4326_v7 = vsel %vm2868_vm7, %v4294_v24, %v13709_v18  ;;  %v13710_v49 = vld [vmem:[#allocation633_spill] sm:$0xff]  ;;  %v13711_v42 = vld [vmem:[#allocation634_spill] sm:$0xff]  ;;  %4544 = vrot.lane.b32.xlu1 %v4463_v40, %s5758_s14 }
 0x676   : > { %v4430_v11 = vsel %vm2967_vm10, %v4398_v32, %v13706_v12  ;;  %v4359_v10 = vsel %vm2901_vm8, %v4327_v46, %v13710_v49  ;;  %v13712_v3 = vld [vmem:[#allocation543_spill] sm:$0xff]  ;;  %v13713_v27 = vld [vmem:[#allocation452_spill] sm:$0xff]  ;;  %v13714_v9 = vld [vmem:[#allocation630_spill] sm:$0xff]  ;;  %v10961_v23 = vpop.permute.xlu0 %3898 }
 0x677   : > { %v4462_v55 = vsel %vm3000_vm11, %v4430_v11, %v13711_v42  ;;  %v4240_v16 = vsel %vm2769_vm4, %v10691_v53, %v13712_v3  ;;  %v4273_v56 = vsel %vm12567_vm5, %v4241_v41, %v13713_v27  ;;  %v4358_v63 = vsel %vm2901_vm8, %v4326_v7, %v13714_v9  ;;  %v13715_v8 = vld [vmem:[#allocation636_spill] sm:$0xff]  ;;  %v13716_v34 = vld [vmem:[#allocation454_spill] sm:$0xff]  ;;  %v13718_v52 = vld [vmem:[#allocation525_spill] sm:$0xff] }
 0x678   : > { %v4391_v17 = vsel %vm2934_vm9, %v4359_v10, %v13715_v8  ;;  %4542 = vrot.lane.b32.xlu0 %v4462_v55, %s5758_s14  ;;  %v4272_v5 = vsel %vm12567_vm5, %v4240_v16, %v13716_v34  ;;  %v13717_v47 = vld [vmem:[#allocation578_spill] sm:$0xff]  ;;  %v4390_v53 = vsel %vm2934_vm9, %v4358_v63, %v13718_v52  ;;  %v13719_v6 = vld [vmem:[#allocation641_spill] sm:$0xff]  ;;  %v13720_v36 = vld [vmem:[#allocation579_spill] sm:$0xff] }
 0x679   : > { %v4305_v38 = vsel %vm2835_vm6, %v4273_v56, %v13717_v47  ;;  %v4423_v50 = vsel %vm2967_vm10, %v4391_v17, %v13719_v6  ;;  %v4304_v45 = vsel %vm2835_vm6, %v4272_v5, %v13720_v36  ;;  %v13721_v25 = vld [vmem:[#allocation606_spill] sm:$0xff]  ;;  %v13723_v26 = vld [vmem:[#allocation644_spill] sm:$0xff]  ;;  %v13725_v46 = vld [vmem:[#allocation607_spill] sm:$0xff]  ;;  %v10991_v17 = vpop.permute.xlu1 %3728 }
 0x67a   : > { %v4337_v35 = vsel %vm2868_vm7, %v4305_v38, %v13721_v25  ;;  %v13722_v43 = vld [vmem:[#allocation638_spill] sm:$0xff]  ;;  %v4455_v28 = vsel %vm3000_vm11, %v4423_v50, %v13723_v26  ;;  %v4336_v12 = vsel %vm2868_vm7, %v4304_v45, %v13725_v46  ;;  %v13726_v11 = vld [vmem:[#allocation640_spill] sm:$0xff]  ;;  %v13728_v41 = vld [vmem:[#allocation535_spill] sm:$0xff]  ;;  %v11001_v36 = vpop.permute.xlu0 %4106 }
 0x67b   : > { %v4422_v32 = vsel %vm2967_vm10, %v4390_v53, %v13722_v43  ;;  %v13724_v24 = vld [vmem:[#allocation534_spill] sm:$0xff]  ;;  %v4369_v48 = vsel %vm2901_vm8, %v4337_v35, %v13726_v11  ;;  %v13727_v40 = vld [vmem:[#allocation484_spill] sm:$0xff]  ;;  %4528 = vrot.lane.b32.xlu1 %v4455_v28, %s5758_s14  ;;  %v4232_v18 = vsel %vm2769_vm4, %v10662_v13, %v13728_v41  ;;  %v13730_v10 = vld [vmem:[#allocation637_spill] sm:$0xff] }
 0x67c   : > { %v4233_v15 = vsel %vm2769_vm4, %v10658_v58, %v13724_v24  ;;  %v4454_v60 = vsel %vm3000_vm11, %v4422_v32, %v13727_v40  ;;  %v13729_v7 = vld [vmem:[#allocation562_spill] sm:$0xff]  ;;  %v4368_v58 = vsel %vm2901_vm8, %v4336_v12, %v13730_v10  ;;  %v13732_v3 = vld [vmem:[#allocation563_spill] sm:$0xff]  ;;  %v13735_v63 = vld [vmem:[#allocation648_spill] sm:$0xff] }
 0x67d   : > { %v4265_v49 = vsel %vm12567_vm5, %v4233_v15, %v13729_v7  ;;  %v13731_v42 = vld [vmem:[#allocation642_spill] sm:$0xff]  ;;  %4526 = vrot.lane.b32.xlu0 %v4454_v60, %s5758_s14  ;;  %v4264_v16 = vsel %vm12567_vm5, %v4232_v18, %v13732_v3  ;;  %v13734_v9 = vld [vmem:[#allocation639_spill] sm:$0xff]  ;;  %v13738_v52 = vld [vmem:[#allocation645_spill] sm:$0xff] }
 0x67e   : > { %v4401_v55 = vsel %vm2934_vm9, %v4369_v48, %v13731_v42  ;;  %v13733_v27 = vld [vmem:[#allocation570_spill] sm:$0xff]  ;;  %v4400_v13 = vsel %vm2934_vm9, %v4368_v58, %v13734_v9  ;;  %v13736_v34 = vld [vmem:[#allocation571_spill] sm:$0xff]  ;;  %v13740_v45 = vld [vmem:[#allocation544_spill] sm:$0xff] }
 0x67f   : > { %v4297_v56 = vsel %vm2835_vm6, %v4265_v49, %v13733_v27  ;;  %v4433_v8 = vsel %vm2967_vm10, %v4401_v55, %v13735_v63  ;;  %v4296_v5 = vsel %vm2835_vm6, %v4264_v16, %v13736_v34  ;;  %v13737_v47 = vld [vmem:[#allocation598_spill] sm:$0xff]  ;;  %v4432_v53 = vsel %vm2967_vm10, %v4400_v13, %v13738_v52  ;;  %v13741_v35 = vld [vmem:[#allocation599_spill] sm:$0xff]  ;;  %v13744_v15 = vld [vmem:[#allocation545_spill] sm:$0xff]  ;;  %v11031_v55 = vpop.permute.xlu1 %3900  ;;  %v11041_v34 = vpop.permute.xlu0 %3822 }
 0x680   : > { %v4329_v38 = vsel %vm2868_vm7, %v4297_v56, %v13737_v47  ;;  %v13739_v6 = vld [vmem:[#allocation650_spill] sm:$0xff]  ;;  %v4243_v25 = vsel %vm2769_vm4, %v10701_v29, %v13740_v45  ;;  %v4328_v43 = vsel %vm2868_vm7, %v4296_v5, %v13741_v35  ;;  %v13742_v32 = vld [vmem:[#allocation647_spill] sm:$0xff]  ;;  %v4242_v46 = vsel %vm2769_vm4, %v10712_v1, %v13744_v15  ;;  %v13745_v12 = vld [vmem:[#allocation456_spill] sm:$0xff] }
 0x681   : > { %v4465_v50 = vsel %vm3000_vm11, %v4433_v8, %v13739_v6  ;;  %v4361_v26 = vsel %vm2901_vm8, %v4329_v38, %v13742_v32  ;;  %v13743_v28 = vld [vmem:[#allocation490_spill] sm:$0xff]  ;;  %v4275_v11 = vsel %vm12567_vm5, %v4243_v25, %v13745_v12  ;;  %v13746_v48 = vld [vmem:[#allocation643_spill] sm:$0xff]  ;;  %v13747_v40 = vld [vmem:[#allocation488_spill] sm:$0xff] }
 0x682   : > { %v4464_v24 = vsel %vm3000_vm11, %v4432_v53, %v13743_v28  ;;  %4548 = vrot.lane.b32.xlu1 %v4465_v50, %s5758_s14  ;;  %v4360_v29 = vsel %vm2901_vm8, %v4328_v43, %v13746_v48  ;;  %v4393_v60 = vsel %vm2934_vm9, %v4361_v26, %v13747_v40  ;;  %v13748_v41 = vld [vmem:[#allocation458_spill] sm:$0xff]  ;;  %v13749_v7 = vld [vmem:[#allocation580_spill] sm:$0xff]  ;;  %v13751_v58 = vld [vmem:[#allocation655_spill] sm:$0xff] }
 0x683   : > { %4546 = vrot.lane.b32.xlu0 %v4464_v24, %s5758_s14  ;;  %v4274_v18 = vsel %vm12567_vm5, %v4242_v46, %v13748_v41  ;;  %v4307_v49 = vsel %vm2835_vm6, %v4275_v11, %v13749_v7  ;;  %v13750_v10 = vld [vmem:[#allocation646_spill] sm:$0xff]  ;;  %v4425_v42 = vsel %vm2967_vm10, %v4393_v60, %v13751_v58  ;;  %v13752_v3 = vld [vmem:[#allocation581_spill] sm:$0xff]  ;;  %v13753_v27 = vld [vmem:[#allocation504_spill] sm:$0xff]  ;;  %v4109_v40 = vpop.permute.xlu1 %4108  ;;  %v11079_v58 = vpop.permute.xlu0 %3994 }
 0x684   : > { %v4392_v1 = vsel %vm2934_vm9, %v4360_v29, %v13750_v10  ;;  %v4306_v16 = vsel %vm2835_vm6, %v4274_v18, %v13752_v3  ;;  %v4339_v56 = vsel %vm2868_vm7, %v4307_v49, %v13753_v27  ;;  %v13754_v9 = vld [vmem:[#allocation651_spill] sm:$0xff]  ;;  %v13755_v63 = vld [vmem:[#allocation428_spill] sm:$0xff]  ;;  %v13758_v53 = vld [vmem:[#allocation653_spill] sm:$0xff] }
 0x685   : > { %v4424_v13 = vsel %vm2967_vm10, %v4392_v1, %v13754_v9  ;;  %v4457_v8 = vsel %vm3000_vm11, %v4425_v42, %v13755_v63  ;;  %v13756_v5 = vld [vmem:[#allocation536_spill] sm:$0xff]  ;;  %v4371_v6 = vsel %vm2901_vm8, %v4339_v56, %v13758_v53  ;;  %v13759_v50 = vld [vmem:[#allocation654_spill] sm:$0xff]  ;;  %v13760_v25 = vld [vmem:[#allocation537_spill] sm:$0xff] }
 0x686   : > { %v4235_v47 = vsel %vm2769_vm4, %v10666_v37, %v13756_v5  ;;  %v13757_v38 = vld [vmem:[#allocation608_spill] sm:$0xff]  ;;  %v4456_v45 = vsel %vm3000_vm11, %v4424_v13, %v13759_v50  ;;  %4532 = vrot.lane.b32.xlu1 %v4457_v8, %s5758_s14  ;;  %v4234_v35 = vsel %vm2769_vm4, %v10670_v4, %v13760_v25  ;;  %v13762_v26 = vld [vmem:[#allocation649_spill] sm:$0xff]  ;;  %v13764_v15 = vld [vmem:[#allocation442_spill] sm:$0xff] }
 0x687   : > { %v4338_v52 = vsel %vm2868_vm7, %v4306_v16, %v13757_v38  ;;  %v13761_v43 = vld [vmem:[#allocation440_spill] sm:$0xff]  ;;  %4530 = vrot.lane.b32.xlu0 %v4456_v45, %s5758_s14  ;;  %v4266_v46 = vsel %vm12567_vm5, %v4234_v35, %v13764_v15  ;;  %v13767_v60 = vld [vmem:[#allocation573_spill] sm:$0xff]  ;;  %v13770_v42 = vld [vmem:[#allocation546_spill] sm:$0xff]  ;;  %v11109_v35 = vpop.permute.xlu1 %3918 }
 0x688   : > { %v4267_v32 = vsel %vm12567_vm5, %v4235_v47, %v13761_v43  ;;  %v4370_v37 = vsel %vm2901_vm8, %v4338_v52, %v13762_v26  ;;  %v13763_v28 = vld [vmem:[#allocation656_spill] sm:$0xff]  ;;  %v4298_v41 = vsel %vm2835_vm6, %v4266_v46, %v13767_v60  ;;  %v4245_v3 = vsel %vm2769_vm4, %v10716_v21, %v13770_v42  ;;  %v13772_v27 = vld [vmem:[#allocation430_spill] sm:$0xff]  ;;  %v13774_v63 = vld [vmem:[#allocation547_spill] sm:$0xff] }
 0x689   : > { %v4403_v24 = vsel %vm2934_vm9, %v4371_v6, %v13763_v28  ;;  %v13765_v12 = vld [vmem:[#allocation572_spill] sm:$0xff]  ;;  %v13776_v47 = vld [vmem:[#allocation657_spill] sm:$0xff]  ;;  %v13777_v52 = vld [vmem:[#allocation462_spill] sm:$0xff] }
 0x68a   : > { %v4299_v11 = vsel %vm2835_vm6, %v4267_v32, %v13765_v12  ;;  %v13766_v48 = vld [vmem:[#allocation652_spill] sm:$0xff]  ;;  %v4435_v29 = vsel %vm2967_vm10, %v4403_v24, %v10619_v2  ;;  %v13771_v2 = vld [vmem:[#allocation601_spill] sm:$0xff]  ;;  %v13778_v6 = vld [vmem:[#allocation582_spill] sm:$0xff]  ;;  %v11119_v24 = vpop.permute.xlu0 %3824 }
 0x68b   : > { %v4402_v4 = vsel %vm2934_vm9, %v4370_v37, %v13766_v48  ;;  %v13768_v18 = vld [vmem:[#allocation600_spill] sm:$0xff]  ;;  %v4467_v1 = vsel %vm3000_vm11, %v4435_v29, %v10707_v61  ;;  %v4330_v16 = vsel %vm2868_vm7, %v4298_v41, %v13771_v2  ;;  %v4244_v61 = vsel %vm2769_vm4, %v10726_v39, %v13774_v63  ;;  %v13779_v45 = vld [vmem:[#allocation429_spill] sm:$0xff]  ;;  %v13780_v43 = vld [vmem:[#allocation583_spill] sm:$0xff] }
 0x68c   : > { %v4331_v7 = vsel %vm2868_vm7, %v4299_v11, %v13768_v18  ;;  %v13769_v49 = vld [vmem:[#allocation236_spill] sm:$0xff]  ;;  %4552 = vrot.lane.b32.xlu1 %v4467_v1, %s5758_s14  ;;  %v4362_v21 = vsel %vm2901_vm8, %v4330_v16, %v13776_v47  ;;  %v4276_v53 = vsel %vm12567_vm5, %v4244_v61, %v13777_v52  ;;  %v13781_v32 = vld [vmem:[#allocation609_spill] sm:$0xff]  ;;  %v13783_v46 = vld [vmem:[#allocation238_spill] sm:$0xff] }
 0x68d   : > { %v4434_v10 = vsel %vm2967_vm10, %v4402_v4, %v13769_v49  ;;  %v4363_v56 = vsel %vm2901_vm8, %v4331_v7, %v13772_v27  ;;  %v13773_v9 = vld [vmem:[#allocation240_spill] sm:$0xff]  ;;  %v4394_v39 = vsel %vm2934_vm9, %v4362_v21, %v13779_v45  ;;  %v13782_v15 = vld [vmem:[#allocation501_spill] sm:$0xff]  ;;  %v13784_v12 = vld [vmem:[#allocation610_spill] sm:$0xff] }
 0x68e   : > { %v4466_v13 = vsel %vm3000_vm11, %v4434_v10, %v13773_v9  ;;  %v13775_v8 = vld [vmem:[#allocation460_spill] sm:$0xff]  ;;  %v4395_v38 = vsel %vm2934_vm9, %v4363_v56, %v10653_v19  ;;  %v4308_v19 = vsel %vm2835_vm6, %v4276_v53, %v13780_v43  ;;  %v4426_v37 = vsel %vm2967_vm10, %v4394_v39, %v10722_v22  ;;  %v5682_v22 = vld [vmem:[%s5832_s7 + $0x60] sm:$0xff]  ;;  %v13786_v60 = vld [vmem:[#allocation539_spill] sm:$0xff]  ;;  %v3997_v63 = vpop.permute.xlu0 %3996 }
 0x68f   : > { %v4277_v5 = vsel %vm12567_vm5, %v4245_v3, %v13775_v8  ;;  %4550 = vrot.lane.b32.xlu0 %v4466_v13, %s5758_s14  ;;  %v4427_v25 = vsel %vm2967_vm10, %v4395_v38, %v10801_v44  ;;  %v4204_v44 = vsel %vm2736_vm3, %v13783_v46, %v13782_v15  ;;  %v4340_v11 = vsel %vm2868_vm7, %v4308_v19, %v13784_v12  ;;  %v13785_v29 = vld [vmem:[#allocation50_spill] sm:$0xff]  ;;  %v13787_v7 = vld [vmem:[#allocation51_spill] sm:$0xff]  ;;  %v4091_v3 = vpop.permute.xlu1 %4090  ;;  %v13790_v2 = vld [vmem:[#allocation264_spill] sm:$0xff] }
 0x690   : > { %v4309_v50 = vsel %vm2835_vm6, %v4277_v5, %v13778_v6  ;;  %v4459_v28 = vsel %vm3000_vm11, %v4427_v25, %v10871_v54  ;;  %v4458_v4 = vsel %vm3000_vm11, %v4426_v37, %v10791_v57  ;;  %v11134_v54 = vsel %vm2703_vm2, %v5682_v22, %v13785_v29  ;;  %v5683_v57 = vld [vmem:[%s5832_s7 + $0x80] sm:$0xff]  ;;  %v13791_v27 = vld [vmem:[#allocation575_spill] sm:$0xff]  ;;  %v13792_v61 = vld [vmem:[#allocation52_spill] sm:$0xff] }
 0x691   : > { %v4341_v26 = vsel %vm2868_vm7, %v4309_v50, %v13781_v32  ;;  %4536 = vrot.lane.b32.xlu1 %v4459_v28, %s5758_s14  ;;  %v4236_v41 = vsel %vm2769_vm4, %v4204_v44, %v13786_v60  ;;  %v4372_v18 = vsel %vm2901_vm8, %v4340_v11, %v10672_v30  ;;  %v11146_v49 = vsel %vm2703_vm2, %v5683_v57, %v13787_v7  ;;  %v13788_v10 = vld [vmem:[#allocation446_spill] sm:$0xff]  ;;  %v13794_v47 = vld [vmem:[#allocation603_spill] sm:$0xff]  ;;  %v5686_v53 = vld [vmem:[%s5832_s7 + $0x90] sm:$0xff] }
 0x692   : > { %v4373_v48 = vsel %vm2901_vm8, %v4341_v26, %v10762_v62  ;;  %v4268_v1 = vsel %vm12567_vm5, %v4236_v41, %v13788_v10  ;;  %v4404_v42 = vsel %vm2934_vm9, %v4372_v18, %v10752_v59  ;;  %v5684_v59 = vld [vmem:[%s5832_s7 + $0x78] sm:$0xff]  ;;  %v13796_v6 = vld [vmem:[#allocation54_spill] sm:$0xff]  ;;  %v13798_v43 = vld [vmem:[#allocation55_spill] sm:$0xff]  ;;  %v11212_v41 = vpop.permute.xlu0 %3920 }
 0x693   : > { %v4405_v62 = vsel %vm2934_vm9, %v4373_v48, %v10831_v51  ;;  %4534 = vrot.lane.b32.xlu0 %v4458_v4, %s5758_s14  ;;  %v13789_v51 = vld [vmem:[#allocation445_spill] sm:$0xff]  ;;  %v4300_v56 = vsel %vm2835_vm6, %v4268_v1, %v13791_v27  ;;  %v4436_v9 = vsel %vm2967_vm10, %v4404_v42, %v10881_v33  ;;  %v11165_v8 = vsel %vm2703_vm2, %v5684_v59, %v13792_v61  ;;  %v13797_v45 = vld [vmem:[#allocation538_spill] sm:$0xff]  ;;  %v13799_v32 = vld [vmem:[#allocation467_spill] sm:$0xff] }
 0x694   : > { %v4437_v30 = vsel %vm2967_vm10, %v4405_v62, %v10951_v31  ;;  %v4173_v16 = vsel %vm2703_vm2, %v13790_v2, %v13789_v51  ;;  %v13793_v31 = vld [vmem:[#allocation500_spill] sm:$0xff]  ;;  %v4332_v21 = vsel %vm2868_vm7, %v4300_v56, %v13794_v47  ;;  %v4468_v38 = vsel %vm3000_vm11, %v4436_v9, %v11001_v36  ;;  %v5685_v33 = vld [vmem:[%s5832_s7 + $0x98] sm:$0xff]  ;;  %v13800_v26 = vld [vmem:[#allocation286_spill] sm:$0xff] }
 0x695   : > { %v4469_v13 = vsel %vm3000_vm11, %v4437_v30, %v4109_v40  ;;  %v4205_v5 = vsel %vm2736_vm3, %v4173_v16, %v13793_v31  ;;  %v13795_v40 = vld [vmem:[#allocation53_spill] sm:$0xff]  ;;  %v11182_v50 = vsel %vm2703_vm2, %v5686_v53, %v13796_v6  ;;  %v4364_v25 = vsel %vm2901_vm8, %v4332_v21, %v10841_v20  ;;  %v5687_v36 = vld [vmem:[%s5832_s7 + $0xb0] sm:$0xff]  ;;  %v4015_v20 = vpop.permute.xlu1 %4014  ;;  %v5688_v44 = vld [vmem:[%s5832_s7 + $0xa8] sm:$0xff] }
 0x696   : > { %4556 = vrot.lane.b32.xlu1 %v4469_v13, %s5758_s14  ;;  %v11177_v52 = vsel %vm2703_vm2, %v5685_v33, %v13795_v40  ;;  %v4237_v39 = vsel %vm2769_vm4, %v4205_v5, %v13797_v45  ;;  %v11192_v19 = vsel %vm2703_vm2, %v5687_v36, %v13798_v43  ;;  %v4182_v37 = vsel %vm2703_vm2, %v13800_v26, %v13799_v32  ;;  %v13801_v28 = vld [vmem:[#allocation444_spill] sm:$0xff]  ;;  %v13804_v22 = vld [vmem:[#allocation574_spill] sm:$0xff]  ;;  %v13805_v18 = vld [vmem:[#allocation57_spill] sm:$0xff]  ;;  %v4093_v32 = vpop.permute.xlu0 %4092 }
 0x697   : > { %4554 = vrot.lane.b32.xlu0 %v4468_v38, %s5758_s14  ;;  %v4269_v15 = vsel %vm12567_vm5, %v4237_v39, %v13801_v28  ;;  %v4396_v46 = vsel %vm2934_vm9, %v4364_v25, %v10961_v23  ;;  %v13802_v12 = vld [vmem:[#allocation56_spill] sm:$0xff]  ;;  %v5689_v23 = vld [vmem:[%s5832_s7 + $0xc8] sm:$0xff]  ;;  %v13806_v57 = vld [vmem:[#allocation549_spill] sm:$0xff] }
 0x698   : > { %v11204_v11 = vsel %vm2703_vm2, %v5688_v44, %v13802_v12  ;;  %v13803_v48 = vld [vmem:[#allocation516_spill] sm:$0xff]  ;;  %v4301_v29 = vsel %vm2835_vm6, %v4269_v15, %v13804_v22  ;;  %v4428_v60 = vsel %vm2967_vm10, %v4396_v46, %v11079_v58  ;;  %v2721_v62 = vsel %vm2703_vm2, %v5689_v23, %v13805_v18  ;;  %v13807_v10 = vld [vmem:[#allocation602_spill] sm:$0xff]  ;;  %v13809_v16 = vld [vmem:[#allocation59_spill] sm:$0xff] }
 0x699   : > { %v4214_v4 = vsel %vm2736_vm3, %v4182_v37, %v13803_v48  ;;  %v4333_v1 = vsel %vm2868_vm7, %v4301_v29, %v13807_v10  ;;  %v4460_v42 = vsel %vm3000_vm11, %v4428_v60, %v4091_v3  ;;  %v5690_v30 = vld [vmem:[%s5832_s7 + $0xc0] sm:$0xff]  ;;  %v5692_v59 = vld [vmem:[%s5832_s7 + $0xd8] sm:$0xff]  ;;  %v13811_v3 = vld [vmem:[#allocation60_spill] sm:$0xff]  ;;  %v11243_v40 = vpop.permute.xlu1 %3730 }
 0x69a   : > { %v4246_v7 = vsel %vm2769_vm4, %v4214_v4, %v13806_v57  ;;  %v13808_v51 = vld [vmem:[#allocation58_spill] sm:$0xff]  ;;  %v4365_v13 = vsel %vm2901_vm8, %v4333_v1, %v10911_v0  ;;  %v2722_v61 = vsel %vm2703_vm2, %v5692_v59, %v13811_v3  ;;  %v5693_v31 = vld [vmem:[%s5832_s7 + $0xf8] sm:$0xff]  ;;  %v5694_v0 = vld [vmem:[%s5832_s7 + $0xf0] sm:$0xff] }
 0x69b   : > { %v2720_v58 = vsel %vm2703_vm2, %v5690_v30, %v13808_v51  ;;  %v5691_v2 = vld [vmem:[%s5832_s7 + $0xe0] sm:$0xff]  ;;  %4538 = vrot.lane.b32.xlu0 %v4460_v42, %s5758_s14  ;;  %v13812_v5 = vld [vmem:[#allocation61_spill] sm:$0xff]  ;;  %v4397_v33 = vsel %vm2934_vm9, %v4365_v13, %v11031_v55  ;;  %v5695_v45 = vld [vmem:[%s5832_s7 + $0x110] sm:$0xff] }
 0x69c   : > { %v2723_v27 = vsel %vm2703_vm2, %v5691_v2, %v13809_v16  ;;  %v13810_v56 = vld [vmem:[#allocation466_spill] sm:$0xff]  ;;  %v2725_v47 = vsel %vm2703_vm2, %v5693_v31, %v13812_v5  ;;  %v13813_v21 = vld [vmem:[#allocation585_spill] sm:$0xff]  ;;  %v13815_v39 = vld [vmem:[#allocation63_spill] sm:$0xff]  ;;  %v4429_v43 = vsel %vm2967_vm10, %v4397_v33, %v3997_v63 }
 0x69d   : > { %v4278_v9 = vsel %vm12567_vm5, %v4246_v7, %v13810_v56  ;;  %v13814_v53 = vld [vmem:[#allocation62_spill] sm:$0xff]  ;;  %v2727_v25 = vsel %vm2703_vm2, %v5695_v45, %v13815_v39  ;;  %v5696_v26 = vld [vmem:[%s5832_s7 + $0x108] sm:$0xff]  ;;  %v13816_v37 = vld [vmem:[#allocation64_spill] sm:$0xff]  ;;  %v4461_v12 = vsel %vm3000_vm11, %v4429_v43, %v4093_v32 }
 0x69e   : > { %v4310_v38 = vsel %vm2835_vm6, %v4278_v9, %v13813_v21  ;;  %v2724_v6 = vsel %vm2703_vm2, %v5694_v0, %v13814_v53  ;;  %v2726_v55 = vsel %vm2703_vm2, %v5696_v26, %v13816_v37  ;;  %v5697_v28 = vld [vmem:[%s5832_s7 + $0x120] sm:$0xff]  ;;  %v13818_v48 = vld [vmem:[#allocation73_spill] sm:$0xff]  ;;  %v13819_v4 = vld [vmem:[#allocation44_spill] sm:$0xff]  ;;  %4540 = vrot.lane.b32.xlu1 %v4461_v12, %s5758_s14  ;;  %v4111_v9 = vpop.permute.xlu1 %4110  ;;  %v4017_v53 = vpop.permute.xlu0 %4016 }
 0x69f   : > { %v4342_v36 = vsel %vm2868_vm7, %v4310_v38, %v10921_v14  ;;  %v13817_v15 = vld [vmem:[#allocation66_spill] sm:$0xff]  ;;  %v2738_v14 = vsel %vm2736_vm3, %v13819_v4, %v13818_v48  ;;  %v13821_v63 = vld [vmem:[#allocation41_spill] sm:$0xff]  ;;  %v13822_v60 = vld [vmem:[#allocation75_spill] sm:$0xff] }
 0x6a0   : > { %v2728_v46 = vsel %vm2703_vm2, %v5697_v28, %v13817_v15  ;;  %v4374_v44 = vsel %vm2901_vm8, %v4342_v36, %v11041_v34  ;;  %v13820_v22 = vld [vmem:[#allocation74_spill] sm:$0xff]  ;;  %v13824_v34 = vld [vmem:[#allocation76_spill] sm:$0xff]  ;;  %v13825_v7 = vld [vmem:[#allocation39_spill] sm:$0xff] }
 0x6a1   : > { %v2737_v29 = vsel %vm2736_vm3, %v13821_v63, %v13820_v22  ;;  %v13823_v23 = vld [vmem:[#allocation42_spill] sm:$0xff]  ;;  %v4406_v57 = vsel %vm2934_vm9, %v4374_v44, %v11109_v35  ;;  %v2739_v10 = vsel %vm2736_vm3, %v13825_v7, %v13824_v34  ;;  %v13826_v1 = vld [vmem:[#allocation77_spill] sm:$0xff]  ;;  %v13830_v13 = vld [vmem:[#allocation79_spill] sm:$0xff] }
 0x6a2   : > { %v2740_v18 = vsel %vm2736_vm3, %v13823_v23, %v13822_v60  ;;  %v13827_v42 = vld [vmem:[#allocation45_spill] sm:$0xff]  ;;  %v13828_v51 = vld [vmem:[#allocation78_spill] sm:$0xff]  ;;  %v4438_v56 = vsel %vm2967_vm10, %v4406_v57, %v4015_v20  ;;  %v13831_v59 = vld [vmem:[#allocation47_spill] sm:$0xff] }
 0x6a3   : > { %v2742_v30 = vsel %vm2736_vm3, %v13827_v42, %v13826_v1  ;;  %v13829_v2 = vld [vmem:[#allocation46_spill] sm:$0xff]  ;;  %v2744_v35 = vsel %vm2736_vm3, %v13831_v59, %v13830_v13  ;;  %v13832_v3 = vld [vmem:[#allocation80_spill] sm:$0xff]  ;;  %v13834_v21 = vld [vmem:[#allocation465_spill] sm:$0xff]  ;;  %v4470_v0 = vsel %vm3000_vm11, %v4438_v56, %v4111_v9  ;;  %v11328_v1 = vpop.permute.xlu1 %3826  ;;  %v11338_v13 = vpop.permute.xlu0 %3732 }
 0x6a4   : > { %v2741_v16 = vsel %vm2736_vm3, %v13829_v2, %v13828_v51  ;;  %v13833_v31 = vld [vmem:[#allocation48_spill] sm:$0xff]  ;;  %v13836_v45 = vld [vmem:[#allocation81_spill] sm:$0xff]  ;;  %v13838_v36 = vld [vmem:[#allocation82_spill] sm:$0xff]  ;;  %4558 = vrot.lane.b32.xlu0 %v4470_v0, %s5758_s14 }
 0x6a5   : > { %v2743_v5 = vsel %vm2736_vm3, %v13833_v31, %v13832_v3  ;;  %v13835_v38 = vld [vmem:[#allocation284_spill] sm:$0xff]  ;;  %v13837_v39 = vld [vmem:[#allocation49_spill] sm:$0xff]  ;;  %v2745_v43 = vsel %vm2736_vm3, %v11134_v54, %v13838_v36  ;;  %v13839_v32 = vld [vmem:[#allocation83_spill] sm:$0xff] }
 0x6a6   : > { %v4183_v33 = vsel %vm2703_vm2, %v13835_v38, %v13834_v21  ;;  %v2746_v20 = vsel %vm2736_vm3, %v13837_v39, %v13836_v45  ;;  %v2748_v26 = vsel %vm2736_vm3, %v11146_v49, %v13839_v32  ;;  %v13840_v37 = vld [vmem:[#allocation515_spill] sm:$0xff]  ;;  %v13841_v15 = vld [vmem:[#allocation84_spill] sm:$0xff]  ;;  %v13842_v12 = vld [vmem:[#allocation2_spill] sm:$0xff] }
 0x6a7   : > { %v4215_v28 = vsel %vm2736_vm3, %v4183_v33, %v13840_v37  ;;  %v2747_v44 = vsel %vm2736_vm3, %v11165_v8, %v13841_v15  ;;  %v2750_v48 = vsel %vm2736_vm3, %v11177_v52, %v13842_v12  ;;  %v13843_v4 = vld [vmem:[#allocation85_spill] sm:$0xff]  ;;  %v13844_v22 = vld [vmem:[#allocation548_spill] sm:$0xff]  ;;  %v13845_v63 = vld [vmem:[#allocation86_spill] sm:$0xff] }
 0x6a8   : > { %v2749_v54 = vsel %vm2736_vm3, %v11182_v50, %v13843_v4  ;;  %v4247_v49 = vsel %vm2769_vm4, %v4215_v28, %v13844_v22  ;;  %v2752_v60 = vsel %vm2736_vm3, %v11192_v19, %v13845_v63  ;;  %v13846_v23 = vld [vmem:[#allocation87_spill] sm:$0xff]  ;;  %v13847_v8 = vld [vmem:[#allocation88_spill] sm:$0xff]  ;;  %v13849_v50 = vld [vmem:[#allocation89_spill] sm:$0xff]  ;;  %v11364_v28 = vpop.permute.xlu1 %3828 }
 0x6a9   : > { %v2751_v57 = vsel %vm2736_vm3, %v11204_v11, %v13846_v23  ;;  %v2754_v34 = vsel %vm2736_vm3, %v2721_v62, %v13847_v8  ;;  %v13848_v7 = vld [vmem:[#allocation464_spill] sm:$0xff]  ;;  %v2753_v42 = vsel %vm2736_vm3, %v2720_v58, %v13849_v50  ;;  %v13850_v51 = vld [vmem:[#allocation90_spill] sm:$0xff]  ;;  %v13851_v56 = vld [vmem:[#allocation91_spill] sm:$0xff] }
 0x6aa   : > { %v4279_v52 = vsel %vm12567_vm5, %v4247_v49, %v13848_v7  ;;  %v2756_v2 = vsel %vm2736_vm3, %v2723_v27, %v13850_v51  ;;  %v2755_v19 = vsel %vm2736_vm3, %v2722_v61, %v13851_v56  ;;  %v13852_v9 = vld [vmem:[#allocation584_spill] sm:$0xff]  ;;  %v13854_v3 = vld [vmem:[#allocation93_spill] sm:$0xff]  ;;  %v13855_v21 = vld [vmem:[#allocation94_spill] sm:$0xff] }
 0x6ab   : > { %v4311_v11 = vsel %vm2835_vm6, %v4279_v52, %v13852_v9  ;;  %v13853_v62 = vld [vmem:[#allocation92_spill] sm:$0xff]  ;;  %v2757_v31 = vsel %vm2736_vm3, %v2724_v6, %v13854_v3  ;;  %v2760_v58 = vsel %vm2736_vm3, %v2727_v25, %v13855_v21  ;;  %v13856_v38 = vld [vmem:[#allocation95_spill] sm:$0xff]  ;;  %v13857_v33 = vld [vmem:[#allocation97_spill] sm:$0xff] }
 0x6ac   : > { %v2758_v59 = vsel %vm2736_vm3, %v2725_v47, %v13853_v62  ;;  %v4343_v27 = vsel %vm2868_vm7, %v4311_v11, %v10991_v17  ;;  %v2759_v61 = vsel %vm2736_vm3, %v2726_v55, %v13856_v38  ;;  %v2761_v0 = vsel %vm2736_vm3, %v2728_v46, %v13857_v33  ;;  %v13858_v45 = vld [vmem:[#allocation104_spill] sm:$0xff]  ;;  %v13859_v36 = vld [vmem:[#allocation105_spill] sm:$0xff]  ;;  %v13860_v32 = vld [vmem:[#allocation106_spill] sm:$0xff]  ;;  %v11398_v3 = vpop.permute.xlu1 %3924 }
 0x6ad   : > { %v2771_v39 = vsel %vm2769_vm4, %v2738_v14, %v13858_v45  ;;  %v4375_v47 = vsel %vm2901_vm8, %v4343_v27, %v11119_v24  ;;  %v2770_v6 = vsel %vm2769_vm4, %v2737_v29, %v13859_v36  ;;  %v2773_v25 = vsel %vm2769_vm4, %v2740_v18, %v13860_v32  ;;  %v13861_v37 = vld [vmem:[#allocation107_spill] sm:$0xff]  ;;  %v13862_v46 = vld [vmem:[#allocation25_spill] sm:$0xff]  ;;  %v13863_v15 = vld [vmem:[#allocation108_spill] sm:$0xff]  ;;  %v4113_v18 = vpop.permute.xlu0 %4112 }
 0x6ae   : > { %v2772_v17 = vsel %vm2769_vm4, %v2739_v10, %v13861_v37  ;;  %v4407_v55 = vsel %vm2934_vm9, %v4375_v47, %v11212_v41  ;;  %v2775_v14 = vsel %vm2769_vm4, %v2742_v30, %v13862_v46  ;;  %v2774_v24 = vsel %vm2769_vm4, %v2741_v16, %v13863_v15  ;;  %v13864_v12 = vld [vmem:[#allocation109_spill] sm:$0xff]  ;;  %v13865_v22 = vld [vmem:[#allocation110_spill] sm:$0xff]  ;;  %v13866_v49 = vld [vmem:[#allocation111_spill] sm:$0xff] }
 0x6af   : > { %v2777_v29 = vsel %vm2769_vm4, %v2744_v35, %v13864_v12  ;;  %v4439_v4 = vsel %vm2967_vm10, %v4407_v55, %v4017_v53  ;;  %v2776_v10 = vsel %vm2769_vm4, %v2743_v5, %v13865_v22  ;;  %v2779_v41 = vsel %vm2769_vm4, %v2746_v20, %v13866_v49  ;;  %v13867_v63 = vld [vmem:[#allocation112_spill] sm:$0xff]  ;;  %v13868_v8 = vld [vmem:[#allocation113_spill] sm:$0xff]  ;;  %v13869_v7 = vld [vmem:[#allocation114_spill] sm:$0xff] }
 0x6b0   : > { %v2778_v23 = vsel %vm2769_vm4, %v2745_v43, %v13867_v63  ;;  %v4471_v30 = vsel %vm3000_vm11, %v4439_v4, %v4113_v18  ;;  %v2781_v16 = vsel %vm2769_vm4, %v2748_v26, %v13868_v8  ;;  %v2780_v35 = vsel %vm2769_vm4, %v2747_v44, %v13869_v7  ;;  %v13870_v52 = vld [vmem:[#allocation26_spill] sm:$0xff]  ;;  %v13871_v50 = vld [vmem:[#allocation115_spill] sm:$0xff]  ;;  %v13873_v43 = vld [vmem:[#allocation116_spill] sm:$0xff] }
 0x6b1   : > { %v2783_v53 = vsel %vm2769_vm4, %v2750_v48, %v13870_v52  ;;  %v2782_v5 = vsel %vm2769_vm4, %v2749_v54, %v13871_v50  ;;  %4560 = vrot.lane.b32.xlu1 %v4471_v30, %s5758_s14  ;;  %v13872_v20 = vld [vmem:[#allocation27_spill] sm:$0xff]  ;;  %v2784_v56 = vsel %vm2769_vm4, %v2751_v57, %v13873_v43  ;;  %v13874_v9 = vld [vmem:[#allocation117_spill] sm:$0xff]  ;;  %v13876_v62 = vld [vmem:[#allocation290_spill] sm:$0xff]  ;;  %v3923_v45 = vpop.permute.xlu0 %3922  ;;  %v11432_v52 = vpop.permute.xlu1 %3734 }
 0x6b2   : > { %v2785_v51 = vsel %vm2769_vm4, %v2752_v60, %v13872_v20  ;;  %v2787_v26 = vsel %vm2769_vm4, %v2754_v34, %v13874_v9  ;;  %v13875_v11 = vld [vmem:[#allocation471_spill] sm:$0xff]  ;;  %v13877_v48 = vld [vmem:[#allocation118_spill] sm:$0xff]  ;;  %v13879_v38 = vld [vmem:[#allocation120_spill] sm:$0xff] }
 0x6b3   : > { %v4184_v44 = vsel %vm2703_vm2, %v13876_v62, %v13875_v11  ;;  %v2786_v54 = vsel %vm2769_vm4, %v2753_v42, %v13877_v48  ;;  %v13878_v21 = vld [vmem:[#allocation119_spill] sm:$0xff]  ;;  %v2788_v60 = vsel %vm2769_vm4, %v2755_v19, %v13879_v38  ;;  %v13880_v33 = vld [vmem:[#allocation518_spill] sm:$0xff]  ;;  %v13881_v34 = vld [vmem:[#allocation121_spill] sm:$0xff] }
 0x6b4   : > { %v2789_v27 = vsel %vm2769_vm4, %v2756_v2, %v13878_v21  ;;  %v4216_v57 = vsel %vm2736_vm3, %v4184_v44, %v13880_v33  ;;  %v2791_v47 = vsel %vm2769_vm4, %v2758_v59, %v13881_v34  ;;  %v13882_v36 = vld [vmem:[#allocation122_spill] sm:$0xff]  ;;  %v13883_v37 = vld [vmem:[#allocation123_spill] sm:$0xff]  ;;  %v13885_v2 = vld [vmem:[#allocation124_spill] sm:$0xff] }
 0x6b5   : > { %v2790_v32 = vsel %vm2769_vm4, %v2757_v31, %v13882_v36  ;;  %v2793_v55 = vsel %vm2769_vm4, %v2760_v58, %v13883_v37  ;;  %v13884_v42 = vld [vmem:[#allocation551_spill] sm:$0xff]  ;;  %v2792_v15 = vsel %vm2769_vm4, %v2759_v61, %v13885_v2  ;;  %v13886_v19 = vld [vmem:[#allocation126_spill] sm:$0xff]  ;;  %v13887_v4 = vld [vmem:[#allocation40_spill] sm:$0xff]  ;;  %v4019_v9 = vpop.permute.xlu0 %4018 }
 0x6b6   : > { %v4248_v46 = vsel %vm2769_vm4, %v4216_v57, %v13884_v42  ;;  %v2794_v12 = vsel %vm2769_vm4, %v2761_v0, %v13886_v19  ;;  %v2804_v18 = vsel %vm12567_vm5, %v2771_v39, %v13887_v4  ;;  %v13888_v22 = vld [vmem:[#allocation470_spill] sm:$0xff]  ;;  %v13889_v49 = vld [vmem:[#allocation132_spill] sm:$0xff]  ;;  %v13890_v63 = vld [vmem:[#allocation133_spill] sm:$0xff]  ;;  %v4115_v42 = vpop.permute.xlu1 %4114 }
 0x6b7   : > { %v4280_v59 = vsel %vm12567_vm5, %v4248_v46, %v13888_v22  ;;  %v2803_v31 = vsel %vm12567_vm5, %v2770_v6, %v13889_v49  ;;  %v2806_v58 = vsel %vm12567_vm5, %v2773_v25, %v13890_v63  ;;  %v13891_v30 = vld [vmem:[#allocation134_spill] sm:$0xff]  ;;  %v13892_v7 = vld [vmem:[#allocation587_spill] sm:$0xff]  ;;  %v13894_v50 = vld [vmem:[#allocation136_spill] sm:$0xff] }
 0x6b8   : > { %v2805_v8 = vsel %vm12567_vm5, %v2772_v17, %v13891_v30  ;;  %v4312_v61 = vsel %vm2835_vm6, %v4280_v59, %v13892_v7  ;;  %v13893_v0 = vld [vmem:[#allocation135_spill] sm:$0xff]  ;;  %v2807_v20 = vsel %vm12567_vm5, %v2774_v24, %v13894_v50  ;;  %v13895_v43 = vld [vmem:[#allocation137_spill] sm:$0xff]  ;;  %v13896_v11 = vld [vmem:[#allocation138_spill] sm:$0xff] }
 0x6b9   : > { %v2808_v39 = vsel %vm12567_vm5, %v2775_v14, %v13893_v0  ;;  %v2810_v6 = vsel %vm12567_vm5, %v2777_v29, %v13895_v43  ;;  %v4344_v25 = vsel %vm2868_vm7, %v4312_v61, %v11243_v40  ;;  %v2809_v17 = vsel %vm12567_vm5, %v2776_v10, %v13896_v11  ;;  %v13897_v62 = vld [vmem:[#allocation139_spill] sm:$0xff]  ;;  %v13898_v48 = vld [vmem:[#allocation140_spill] sm:$0xff]  ;;  %v13899_v24 = vld [vmem:[#allocation141_spill] sm:$0xff] }
 0x6ba   : > { %v2812_v44 = vsel %vm12567_vm5, %v2779_v41, %v13897_v62  ;;  %v2811_v21 = vsel %vm12567_vm5, %v2778_v23, %v13898_v48  ;;  %v4376_v14 = vsel %vm2901_vm8, %v4344_v25, %v11328_v1  ;;  %v2814_v38 = vsel %vm12567_vm5, %v2781_v16, %v13899_v24  ;;  %v13900_v29 = vld [vmem:[#allocation142_spill] sm:$0xff]  ;;  %v13901_v40 = vld [vmem:[#allocation143_spill] sm:$0xff]  ;;  %v13902_v34 = vld [vmem:[#allocation144_spill] sm:$0xff] }
 0x6bb   : > { %v2813_v33 = vsel %vm12567_vm5, %v2780_v35, %v13900_v29  ;;  %v2816_v57 = vsel %vm12567_vm5, %v2783_v53, %v13901_v40  ;;  %v4408_v10 = vsel %vm2934_vm9, %v4376_v14, %v3923_v45  ;;  %v2815_v41 = vsel %vm12567_vm5, %v2782_v5, %v13902_v34  ;;  %v13903_v36 = vld [vmem:[#allocation145_spill] sm:$0xff]  ;;  %v13904_v37 = vld [vmem:[#allocation146_spill] sm:$0xff]  ;;  %v13905_v46 = vld [vmem:[#allocation147_spill] sm:$0xff] }
 0x6bc   : > { %v11461_v23 = vsel %vm12567_vm5, %v2785_v51, %v13903_v36  ;;  %v2817_v1 = vsel %vm12567_vm5, %v2784_v56, %v13904_v37  ;;  %v4440_v16 = vsel %vm2967_vm10, %v4408_v10, %v4019_v9  ;;  %v2820_v35 = vsel %vm12567_vm5, %v2787_v26, %v13905_v46  ;;  %v13906_v2 = vld [vmem:[#allocation148_spill] sm:$0xff]  ;;  %v13907_v45 = vld [vmem:[#allocation469_spill] sm:$0xff]  ;;  %v4021_v51 = vpop.permute.xlu0 %4020  ;;  %v13910_v56 = vld [vmem:[#allocation150_spill] sm:$0xff] }
 0x6bd   : > { %v2819_v53 = vsel %vm12567_vm5, %v2786_v54, %v13906_v2  ;;  %v13908_v19 = vld [vmem:[#allocation288_spill] sm:$0xff]  ;;  %v4472_v4 = vsel %vm3000_vm11, %v4440_v16, %v4115_v42  ;;  %v13909_v22 = vld [vmem:[#allocation149_spill] sm:$0xff]  ;;  %v2821_v49 = vsel %vm12567_vm5, %v2788_v60, %v13910_v56  ;;  %v13911_v63 = vld [vmem:[#allocation151_spill] sm:$0xff] }
 0x6be   : > { %v4185_v5 = vsel %vm2703_vm2, %v13908_v19, %v13907_v45  ;;  %v2822_v59 = vsel %vm12567_vm5, %v2789_v27, %v13909_v22  ;;  %v2824_v30 = vsel %vm12567_vm5, %v2791_v47, %v13911_v63  ;;  %v13912_v26 = vld [vmem:[#allocation517_spill] sm:$0xff]  ;;  %4562 = vrot.lane.b32.xlu0 %v4472_v4, %s5758_s14  ;;  %v13913_v54 = vld [vmem:[#allocation152_spill] sm:$0xff]  ;;  %v13915_v43 = vld [vmem:[#allocation154_spill] sm:$0xff] }
 0x6bf   : > { %v4217_v7 = vsel %vm2736_vm3, %v4185_v5, %v13912_v26  ;;  %v2823_v61 = vsel %vm12567_vm5, %v2790_v32, %v13913_v54  ;;  %v13914_v0 = vld [vmem:[#allocation153_spill] sm:$0xff]  ;;  %v2825_v27 = vsel %vm12567_vm5, %v2792_v15, %v13915_v43  ;;  %v13916_v25 = vld [vmem:[#allocation550_spill] sm:$0xff]  ;;  %v13917_v9 = vld [vmem:[#allocation156_spill] sm:$0xff] }
 0x6c0   : > { %v2826_v50 = vsel %vm12567_vm5, %v2793_v55, %v13914_v0  ;;  %v4249_v60 = vsel %vm2769_vm4, %v4217_v7, %v13916_v25  ;;  %v11493_v47 = vsel %vm12567_vm5, %v2794_v12, %v13917_v9  ;;  %v13918_v11 = vld [vmem:[#allocation163_spill] sm:$0xff]  ;;  %v13919_v48 = vld [vmem:[#allocation164_spill] sm:$0xff]  ;;  %v11501_v55 = vpop.permute.xlu1 %3830  ;;  %v13921_v29 = vld [vmem:[#allocation165_spill] sm:$0xff]  ;;  %v11511_v37 = vpop.permute.xlu0 %3736 }
 0x6c1   : > { %v2837_v62 = vsel %vm2835_vm6, %v2804_v18, %v13918_v11  ;;  %v2836_v14 = vsel %vm2835_vm6, %v2803_v31, %v13919_v48  ;;  %v13920_v32 = vld [vmem:[#allocation468_spill] sm:$0xff]  ;;  %v2839_v15 = vsel %vm2835_vm6, %v2806_v58, %v13921_v29  ;;  %v13922_v40 = vld [vmem:[#allocation166_spill] sm:$0xff]  ;;  %v13923_v34 = vld [vmem:[#allocation167_spill] sm:$0xff] }
 0x6c2   : > { %v4281_v24 = vsel %vm12567_vm5, %v4249_v60, %v13920_v32  ;;  %v2838_v10 = vsel %vm2835_vm6, %v2805_v8, %v13922_v40  ;;  %v2841_v12 = vsel %vm2835_vm6, %v2808_v39, %v13923_v34  ;;  %v13924_v36 = vld [vmem:[#allocation586_spill] sm:$0xff]  ;;  %v13925_v31 = vld [vmem:[#allocation168_spill] sm:$0xff]  ;;  %v13926_v42 = vld [vmem:[#allocation169_spill] sm:$0xff] }
 0x6c3   : > { %v4313_v18 = vsel %vm2835_vm6, %v4281_v24, %v13924_v36  ;;  %v2840_v16 = vsel %vm2835_vm6, %v2807_v20, %v13925_v31  ;;  %v2843_v46 = vsel %vm2835_vm6, %v2810_v6, %v13926_v42  ;;  %v13927_v2 = vld [vmem:[#allocation170_spill] sm:$0xff]  ;;  %v13928_v45 = vld [vmem:[#allocation171_spill] sm:$0xff]  ;;  %v13929_v19 = vld [vmem:[#allocation172_spill] sm:$0xff] }
 0x6c4   : > { %v2842_v58 = vsel %vm2835_vm6, %v2809_v17, %v13927_v2  ;;  %v4345_v8 = vsel %vm2868_vm7, %v4313_v18, %v11338_v13  ;;  %v2845_v39 = vsel %vm2835_vm6, %v2812_v44, %v13928_v45  ;;  %v2844_v5 = vsel %vm2835_vm6, %v2811_v21, %v13929_v19  ;;  %v13930_v4 = vld [vmem:[#allocation173_spill] sm:$0xff]  ;;  %v13931_v56 = vld [vmem:[#allocation174_spill] sm:$0xff]  ;;  %v13932_v63 = vld [vmem:[#allocation3_spill] sm:$0xff]  ;;  %v11537_v7 = vpop.permute.xlu1 %3832 }
 0x6c5   : > { %v2847_v22 = vsel %vm2835_vm6, %v2814_v38, %v13930_v4  ;;  %v4377_v20 = vsel %vm2901_vm8, %v4345_v8, %v11364_v28  ;;  %v2846_v6 = vsel %vm2835_vm6, %v2813_v33, %v13931_v56  ;;  %v2849_v17 = vsel %vm2835_vm6, %v2816_v57, %v13932_v63  ;;  %v13933_v26 = vld [vmem:[#allocation4_spill] sm:$0xff]  ;;  %v13934_v21 = vld [vmem:[#allocation6_spill] sm:$0xff]  ;;  %v13935_v54 = vld [vmem:[#allocation7_spill] sm:$0xff]  ;;  %v4117_v57 = vpop.permute.xlu0 %4116 }
 0x6c6   : > { %v2848_v13 = vsel %vm2835_vm6, %v2815_v41, %v13933_v26  ;;  %v4409_v44 = vsel %vm2934_vm9, %v4377_v20, %v11398_v3  ;;  %v2850_v38 = vsel %vm2835_vm6, %v2817_v1, %v13934_v21  ;;  %v2853_v28 = vsel %vm2835_vm6, %v2820_v35, %v13935_v54  ;;  %v13936_v0 = vld [vmem:[#allocation8_spill] sm:$0xff]  ;;  %v13937_v25 = vld [vmem:[#allocation9_spill] sm:$0xff]  ;;  %v13938_v60 = vld [vmem:[#allocation10_spill] sm:$0xff] }
 0x6c7   : > { %v2852_v33 = vsel %vm2835_vm6, %v2819_v53, %v13936_v0  ;;  %v4441_v43 = vsel %vm2967_vm10, %v4409_v44, %v4021_v51  ;;  %v2855_v41 = vsel %vm2835_vm6, %v2822_v59, %v13937_v25  ;;  %v2854_v3 = vsel %vm2835_vm6, %v2821_v49, %v13938_v60  ;;  %v13939_v9 = vld [vmem:[#allocation11_spill] sm:$0xff]  ;;  %v13940_v48 = vld [vmem:[#allocation12_spill] sm:$0xff]  ;;  %v13941_v32 = vld [vmem:[#allocation13_spill] sm:$0xff] }
 0x6c8   : > { %v2857_v11 = vsel %vm2835_vm6, %v2824_v30, %v13939_v9  ;;  %v4473_v1 = vsel %vm3000_vm11, %v4441_v43, %v4117_v57  ;;  %v2856_v35 = vsel %vm2835_vm6, %v2823_v61, %v13940_v48  ;;  %v2859_v53 = vsel %vm2835_vm6, %v2826_v50, %v13941_v32  ;;  %v13942_v24 = vld [vmem:[#allocation14_spill] sm:$0xff]  ;;  %v13943_v29 = vld [vmem:[#allocation23_spill] sm:$0xff]  ;;  %v13944_v49 = vld [vmem:[#allocation24_spill] sm:$0xff]  ;;  %v11571_v42 = vpop.permute.xlu1 %3928 }
 0x6c9   : > { %v2858_v51 = vsel %vm2835_vm6, %v2825_v27, %v13942_v24  ;;  %v2870_v59 = vsel %vm2868_vm7, %v2837_v62, %v13943_v29  ;;  %4564 = vrot.lane.b32.xlu1 %v4473_v1, %s5758_s14  ;;  %v2869_v40 = vsel %vm2868_vm7, %v2836_v14, %v13944_v49  ;;  %v13945_v30 = vld [vmem:[#allocation175_spill] sm:$0xff]  ;;  %v13946_v36 = vld [vmem:[#allocation176_spill] sm:$0xff]  ;;  %v13949_v27 = vld [vmem:[#allocation177_spill] sm:$0xff]  ;;  %v3927_v4 = vpop.permute.xlu0 %3926 }
 0x6ca   : > { %v2872_v34 = vsel %vm2868_vm7, %v2839_v15, %v13945_v30  ;;  %v2871_v61 = vsel %vm2868_vm7, %v2838_v10, %v13946_v36  ;;  %v13947_v18 = vld [vmem:[#allocation475_spill] sm:$0xff]  ;;  %v2874_v62 = vsel %vm2868_vm7, %v2841_v12, %v13949_v27  ;;  %v13950_v2 = vld [vmem:[#allocation178_spill] sm:$0xff]  ;;  %v13952_v19 = vld [vmem:[#allocation521_spill] sm:$0xff] }
 0x6cb   : > { %v13948_v31 = vld [vmem:[#allocation387_spill] sm:$0xff]  ;;  %v2873_v8 = vsel %vm2868_vm7, %v2840_v16, %v13950_v2  ;;  %v13953_v10 = vld [vmem:[#allocation180_spill] sm:$0xff]  ;;  %v13954_v56 = vld [vmem:[#allocation181_spill] sm:$0xff] }
 0x6cc   : > { %v4186_v50 = vsel %vm2703_vm2, %v13948_v31, %v13947_v18  ;;  %v13951_v45 = vld [vmem:[#allocation179_spill] sm:$0xff]  ;;  %v2875_v20 = vsel %vm2868_vm7, %v2842_v58, %v13953_v10  ;;  %v2878_v63 = vsel %vm2868_vm7, %v2845_v39, %v13954_v56  ;;  %v13955_v26 = vld [vmem:[#allocation182_spill] sm:$0xff]  ;;  %v13956_v12 = vld [vmem:[#allocation553_spill] sm:$0xff]  ;;  %v11605_v24 = vpop.permute.xlu1 %3738 }
 0x6cd   : > { %v2876_v14 = vsel %vm2868_vm7, %v2843_v46, %v13951_v45  ;;  %v4218_v15 = vsel %vm2736_vm3, %v4186_v50, %v13952_v19  ;;  %v2877_v44 = vsel %vm2868_vm7, %v2844_v5, %v13955_v26  ;;  %v13957_v16 = vld [vmem:[#allocation183_spill] sm:$0xff]  ;;  %v13958_v46 = vld [vmem:[#allocation184_spill] sm:$0xff]  ;;  %v13959_v43 = vld [vmem:[#allocation185_spill] sm:$0xff]  ;;  %v4023_v36 = vpop.permute.xlu0 %4022 }
 0x6ce   : > { %v4250_v21 = vsel %vm2769_vm4, %v4218_v15, %v13956_v12  ;;  %v2880_v54 = vsel %vm2868_vm7, %v2847_v22, %v13957_v16  ;;  %v2879_v0 = vsel %vm2868_vm7, %v2846_v6, %v13958_v46  ;;  %v2882_v57 = vsel %vm2868_vm7, %v2849_v17, %v13959_v43  ;;  %v13960_v25 = vld [vmem:[#allocation474_spill] sm:$0xff]  ;;  %v13962_v9 = vld [vmem:[#allocation187_spill] sm:$0xff]  ;;  %v13963_v1 = vld [vmem:[#allocation29_spill] sm:$0xff] }
 0x6cf   : > { %v4282_v58 = vsel %vm12567_vm5, %v4250_v21, %v13960_v25  ;;  %v13961_v60 = vld [vmem:[#allocation186_spill] sm:$0xff]  ;;  %v2883_v5 = vsel %vm2868_vm7, %v2850_v38, %v13962_v9  ;;  %v2886_v48 = vsel %vm2868_vm7, %v2853_v28, %v13963_v1  ;;  %v13964_v32 = vld [vmem:[#allocation589_spill] sm:$0xff]  ;;  %v13965_v6 = vld [vmem:[#allocation188_spill] sm:$0xff] }
 0x6d0   : > { %v2881_v39 = vsel %vm2868_vm7, %v2848_v13, %v13961_v60  ;;  %v4314_v22 = vsel %vm2835_vm6, %v4282_v58, %v13964_v32  ;;  %v2885_v17 = vsel %vm2868_vm7, %v2852_v33, %v13965_v6  ;;  %v13966_v29 = vld [vmem:[#allocation30_spill] sm:$0xff]  ;;  %v13967_v30 = vld [vmem:[#allocation189_spill] sm:$0xff]  ;;  %v13968_v18 = vld [vmem:[#allocation31_spill] sm:$0xff] }
 0x6d1   : > { %v2888_v49 = vsel %vm2868_vm7, %v2855_v41, %v13966_v29  ;;  %v2887_v13 = vsel %vm2868_vm7, %v2854_v3, %v13967_v30  ;;  %v4346_v38 = vsel %vm2868_vm7, %v4314_v22, %v11432_v52  ;;  %v2890_v28 = vsel %vm2868_vm7, %v2857_v11, %v13968_v18  ;;  %v13969_v31 = vld [vmem:[#allocation190_spill] sm:$0xff]  ;;  %v13970_v27 = vld [vmem:[#allocation32_spill] sm:$0xff]  ;;  %v13971_v41 = vld [vmem:[#allocation33_spill] sm:$0xff]  ;;  %v4025_v25 = vpop.permute.xlu0 %4024 }
 0x6d2   : > { %v2889_v50 = vsel %vm2868_vm7, %v2856_v35, %v13969_v31  ;;  %v2892_v2 = vsel %vm2868_vm7, %v2859_v53, %v13970_v27  ;;  %v4378_v33 = vsel %vm2901_vm8, %v4346_v38, %v11501_v55  ;;  %v2891_v45 = vsel %vm2868_vm7, %v2858_v51, %v13971_v41  ;;  %v13972_v3 = vld [vmem:[#allocation43_spill] sm:$0xff]  ;;  %v13974_v10 = vld [vmem:[#allocation196_spill] sm:$0xff]  ;;  %v13975_v56 = vld [vmem:[#allocation197_spill] sm:$0xff]  ;;  %v4119_v51 = vpop.permute.xlu1 %4118 }
 0x6d3   : > { %v2903_v19 = vsel %vm2901_vm8, %v2870_v59, %v13972_v3  ;;  %v13973_v52 = vld [vmem:[#allocation195_spill] sm:$0xff]  ;;  %v4410_v11 = vsel %vm2934_vm9, %v4378_v33, %v3927_v4  ;;  %v2905_v35 = vsel %vm2901_vm8, %v2872_v34, %v13974_v10  ;;  %v2904_v53 = vsel %vm2901_vm8, %v2871_v61, %v13975_v56  ;;  %v13976_v26 = vld [vmem:[#allocation198_spill] sm:$0xff]  ;;  %v13978_v16 = vld [vmem:[#allocation200_spill] sm:$0xff] }
 0x6d4   : > { %v2902_v15 = vsel %vm2901_vm8, %v2869_v40, %v13973_v52  ;;  %v2907_v55 = vsel %vm2901_vm8, %v2874_v62, %v13976_v26  ;;  %v4442_v12 = vsel %vm2967_vm10, %v4410_v11, %v4023_v36  ;;  %v13977_v21 = vld [vmem:[#allocation199_spill] sm:$0xff]  ;;  %v2909_v40 = vsel %vm2901_vm8, %v2876_v14, %v13978_v16  ;;  %v13979_v46 = vld [vmem:[#allocation473_spill] sm:$0xff]  ;;  %v13982_v58 = vld [vmem:[#allocation202_spill] sm:$0xff] }
 0x6d5   : > { %v2906_v59 = vsel %vm2901_vm8, %v2873_v8, %v13977_v21  ;;  %v13980_v4 = vld [vmem:[#allocation385_spill] sm:$0xff]  ;;  %v4474_v34 = vsel %vm3000_vm11, %v4442_v12, %v4119_v51  ;;  %v2911_v60 = vsel %vm2901_vm8, %v2878_v63, %v13982_v58  ;;  %v13983_v9 = vld [vmem:[#allocation203_spill] sm:$0xff]  ;;  %v13984_v1 = vld [vmem:[#allocation520_spill] sm:$0xff] }
 0x6d6   : > { %v4187_v43 = vsel %vm2703_vm2, %v13980_v4, %v13979_v46  ;;  %v13981_v61 = vld [vmem:[#allocation201_spill] sm:$0xff]  ;;  %v2910_v8 = vsel %vm2901_vm8, %v2877_v44, %v13983_v9  ;;  %4566 = vrot.lane.b32.xlu0 %v4474_v34, %s5758_s14  ;;  %v13985_v32 = vld [vmem:[#allocation204_spill] sm:$0xff]  ;;  %v13987_v30 = vld [vmem:[#allocation206_spill] sm:$0xff]  ;;  %v11672_v41 = vpop.permute.xlu1 %3834 }
 0x6d7   : > { %v2908_v62 = vsel %vm2901_vm8, %v2875_v20, %v13981_v61  ;;  %v4219_v14 = vsel %vm2736_vm3, %v4187_v43, %v13984_v1  ;;  %v2913_v22 = vsel %vm2901_vm8, %v2880_v54, %v13985_v32  ;;  %v13986_v6 = vld [vmem:[#allocation205_spill] sm:$0xff]  ;;  %v2915_v20 = vsel %vm2901_vm8, %v2882_v57, %v13987_v30  ;;  %v13988_v38 = vld [vmem:[#allocation552_spill] sm:$0xff]  ;;  %v13989_v36 = vld [vmem:[#allocation207_spill] sm:$0xff] }
 0x6d8   : > { %v2912_v29 = vsel %vm2901_vm8, %v2879_v0, %v13986_v6  ;;  %v4251_v63 = vsel %vm2769_vm4, %v4219_v14, %v13988_v38  ;;  %v2914_v44 = vsel %vm2901_vm8, %v2881_v39, %v13989_v36  ;;  %v13990_v18 = vld [vmem:[#allocation209_spill] sm:$0xff]  ;;  %v13991_v27 = vld [vmem:[#allocation210_spill] sm:$0xff]  ;;  %v13992_v33 = vld [vmem:[#allocation472_spill] sm:$0xff] }
 0x6d9   : > { %v11666_v31 = vsel %vm2901_vm8, %v2883_v5, %v13990_v18  ;;  %v2919_v54 = vsel %vm2901_vm8, %v2886_v48, %v13991_v27  ;;  %v4283_v0 = vsel %vm12567_vm5, %v4251_v63, %v13992_v33  ;;  %v13993_v57 = vld [vmem:[#allocation211_spill] sm:$0xff]  ;;  %v5698_v52 = vld [vmem:[%s7205_s30 + $0x1a0] sm:$0xff]  ;;  %v13994_v39 = vld [vmem:[#allocation588_spill] sm:$0xff]  ;;  %v3741_v5 = vpop.permute.xlu0 %3740 }
 0x6da   : > { %v2918_v3 = vsel %vm2901_vm8, %v2885_v17, %v13993_v57  ;;  %v988_v11 = vrot.slane %v5698_v52, 1  ;;  %v5699_v10 = vld [vmem:[%s7205_s30 + $0x1a8] sm:$0x3]  ;;  %v4315_v26 = vsel %vm2835_vm6, %v4283_v0, %v13994_v39  ;;  %v13995_v12 = vld [vmem:[#allocation212_spill] sm:$0xff]  ;;  %v13996_v48 = vld [vmem:[#allocation213_spill] sm:$0xff]  ;;  %v3837_v30 = vpop.permute.xlu1 %3836 }
 0x6db   : > { %v990_v56 = vrot.slane %v5699_v10, 1  ;;  %v2921_v51 = vsel %vm2901_vm8, %v2888_v49, %v13995_v12  ;;  %v2920_v21 = vsel %vm2901_vm8, %v2887_v13, %v13996_v48  ;;  %v5700_v16 = vld [vmem:[%s7205_s30 + $0x198] sm:$0xff]  ;;  %v4347_v4 = vsel %vm2868_vm7, %v4315_v26, %v11511_v37  ;;  %v13997_v17 = vld [vmem:[#allocation214_spill] sm:$0xff]  ;;  %v13998_v34 = vld [vmem:[#allocation215_spill] sm:$0xff]  ;;  %s5347_s30 = sshll.u32 %s14349_s19, 4 }
 0x6dc   : > { %v987_v46 = vrot.slane %v5700_v16, 1  ;;  %v2923_v43 = vsel %vm2901_vm8, %v2890_v28, %v13997_v17  ;;  %v2922_v61 = vsel %vm2901_vm8, %v2889_v50, %v13998_v34  ;;  %v13999_v58 = vld [vmem:[#allocation216_spill] sm:$0xff]  ;;  %v4379_v49 = vsel %vm2901_vm8, %v4347_v4, %v11537_v7  ;;  %v14000_v1 = vld [vmem:[#allocation217_spill] sm:$0xff]  ;;  %v14001_v14 = vld [vmem:[#allocation226_spill] sm:$0xff] }
 0x6dd   : > { %v2925_v9 = vsel %vm2901_vm8, %v2892_v2, %v13999_v58  ;;  %v2924_v13 = vsel %vm2901_vm8, %v2891_v45, %v14000_v1  ;;  %v2936_v32 = vsel %vm2934_vm9, %v2903_v19, %v14001_v14  ;;  %v14002_v6 = vld [vmem:[#allocation227_spill] sm:$0xff]  ;;  %v4411_v28 = vsel %vm2934_vm9, %v4379_v49, %v11571_v42  ;;  %v14003_v50 = vld [vmem:[#allocation228_spill] sm:$0xff]  ;;  %v14004_v2 = vld [vmem:[#allocation229_spill] sm:$0xff]  ;;  %v4121_v36 = vpop.permute.xlu0 %4120 }
 0x6de   : > { %v2935_v37 = vsel %vm2934_vm9, %v2902_v15, %v14002_v6  ;;  %v2938_v38 = vsel %vm2934_vm9, %v2905_v35, %v14003_v50  ;;  %v2937_v63 = vsel %vm2934_vm9, %v2904_v53, %v14004_v2  ;;  %v991_v7 = vsel %vm575_vm0, %v988_v11, %v990_v56  ;;  %v14005_v18 = vld [vmem:[#allocation230_spill] sm:$0xff]  ;;  %v14006_v15 = vld [vmem:[#allocation231_spill] sm:$0xff]  ;;  %v14007_v33 = vld [vmem:[#allocation232_spill] sm:$0xff]  ;;  %v3933_v12 = vpop.permute.xlu1 %3932 }
 0x6df   : > { %v4443_v45 = vsel %vm2967_vm10, %v4411_v28, %v4025_v25  ;;  %v11711_v19 = vsel %vm2934_vm9, %v2907_v55, %v14005_v18  ;;  %v11715_v27 = vsel %vm2934_vm9, %v2906_v59, %v14006_v15  ;;  %v989_v42 = vsel %vm575_vm0, %v987_v46, %v988_v11  ;;  %v14008_v0 = vld [vmem:[#allocation233_spill] sm:$0xff]  ;;  %v14009_v57 = vld [vmem:[#allocation234_spill] sm:$0xff]  ;;  %v14010_v52 = vld [vmem:[#allocation235_spill] sm:$0xff] }
 0x6e0   : > { %v4475_v35 = vsel %vm3000_vm11, %v4443_v45, %v4121_v36  ;;  %v11721_v53 = vsel %vm2934_vm9, %v2909_v40, %v14007_v33  ;;  %v11725_v25 = vsel %vm2934_vm9, %v2908_v62, %v14008_v0  ;;  %v11729_v55 = vsel %vm2934_vm9, %v2911_v60, %v14009_v57  ;;  %v14011_v11 = vld [vmem:[#allocation237_spill] sm:$0xff]  ;;  %v14012_v40 = vld [vmem:[#allocation239_spill] sm:$0xff]  ;;  %v14026_v36 = vld [vmem:[#allocation476_spill] sm:$0xff] }
 0x6e1   : > { %v11733_v59 = vsel %vm2934_vm9, %v2910_v8, %v14010_v52  ;;  %4568 = vrot.lane.b32.xlu1 %v4475_v35, %s5758_s14  ;;  %v11738_v10 = vsel %vm2934_vm9, %v2913_v22, %v14011_v11  ;;  %v11742_v56 = vsel %vm2934_vm9, %v2912_v29, %v14012_v40  ;;  %v14013_v62 = vld [vmem:[#allocation241_spill] sm:$0xff]  ;;  %v14015_v8 = vld [vmem:[#allocation243_spill] sm:$0xff]  ;;  %v14030_v0 = vld [vmem:[#allocation590_spill] sm:$0xff]  ;;  %vm14042_vm0 = vcmask 392192  }
 0x6e2   : > { %v11746_v39 = vsel %vm2934_vm9, %v2915_v20, %v14013_v62  ;;  %v14014_v60 = vld [vmem:[#allocation477_spill] sm:$0xff]  ;;  %v11752_v48 = vsel %vm2934_vm9, %v2914_v44, %v14015_v8  ;;  %v14017_v46 = vld [vmem:[#allocation479_spill] sm:$0xff]  ;;  %v3931_v20 = vpop.permute.xlu0 %3930  ;;  %v14021_v44 = vld [vmem:[#allocation524_spill] sm:$0xff]  ;;  %v4029_v57 = vpop.permute.xlu1 %4028 }
 0x6e3   : > { %v4189_v26 = vsel %vm2703_vm2, %v991_v7, %v14014_v60  ;;  %v14016_v16 = vld [vmem:[#allocation249_spill] sm:$0xff]  ;;  %v4188_v29 = vsel %vm2703_vm2, %v989_v42, %v14017_v46  ;;  %v14018_v4 = vld [vmem:[#allocation523_spill] sm:$0xff]  ;;  %vm14044_vm1 = vmmov %vm14042_vm0 }
 0x6e4   : > { %v11756_v22 = vsel %vm2934_vm9, %v2919_v54, %v14016_v16  ;;  %v4221_v17 = vsel %vm2736_vm3, %v4189_v26, %v14018_v4  ;;  %v14019_v34 = vld [vmem:[#allocation251_spill] sm:$0xff]  ;;  %v14020_v49 = vld [vmem:[#allocation253_spill] sm:$0xff]  ;;  %v4220_v14 = vsel %vm2736_vm3, %v4188_v29, %v14021_v44  ;;  %v14022_v54 = vld [vmem:[#allocation554_spill] sm:$0xff] }
 0x6e5   : > { %v11764_v58 = vsel %vm2934_vm9, %v2918_v3, %v14019_v34  ;;  %v11768_v1 = vsel %vm2934_vm9, %v2921_v51, %v14020_v49  ;;  %v4253_v6 = vsel %vm2769_vm4, %v4221_v17, %v14022_v54  ;;  %v14023_v28 = vld [vmem:[#allocation255_spill] sm:$0xff]  ;;  %v14024_v2 = vld [vmem:[#allocation257_spill] sm:$0xff]  ;;  %v14037_v34 = vld [vmem:[#allocation328_spill] sm:$0xff] }
 0x6e6   : > { %v11776_v50 = vsel %vm2934_vm9, %v2920_v21, %v14023_v28  ;;  %v11780_v7 = vsel %vm2934_vm9, %v2923_v43, %v14024_v2  ;;  %v14025_v3 = vld [vmem:[#allocation555_spill] sm:$0xff]  ;;  %v4285_v51 = vsel %vm12567_vm5, %v4253_v6, %v14026_v36  ;;  %v14028_v42 = vld [vmem:[#allocation261_spill] sm:$0xff]  ;;  %v14029_v21 = vld [vmem:[#allocation478_spill] sm:$0xff]  ;;  %v4027_v26 = vpop.permute.xlu0 %4026  ;;  %v4125_v6 = vpop.permute.xlu1 %4124 }
 0x6e7   : > { %v4252_v45 = vsel %vm2769_vm4, %v4220_v14, %v14025_v3  ;;  %v14027_v18 = vld [vmem:[#allocation259_spill] sm:$0xff]  ;;  %v11792_v35 = vsel %vm2934_vm9, %v2925_v9, %v14028_v42  ;;  %v4317_v43 = vsel %vm2835_vm6, %v4285_v51, %v14030_v0  ;;  %v14032_v40 = vld [vmem:[#allocation281_spill] sm:$0xff]  ;;  %v14043_v36 = vld [vmem:[#allocation382_spill] sm:$0xff] }
 0x6e8   : > { %v11788_v15 = vsel %vm2934_vm9, %v2922_v61, %v14027_v18  ;;  %v4284_v33 = vsel %vm12567_vm5, %v4252_v45, %v14029_v21  ;;  %v14031_v52 = vld [vmem:[#allocation263_spill] sm:$0xff]  ;;  %v2969_v62 = vsel %vm2967_vm10, %v2936_v32, %v14032_v40  ;;  %v4349_v9 = vsel %vm2868_vm7, %v4317_v43, %v3741_v5  ;;  %v14035_v46 = vld [vmem:[#allocation285_spill] sm:$0xff]  ;;  %v14045_v18 = vld [vmem:[#allocation72_spill] sm:$0xff] }
 0x6e9   : > { %v11800_v11 = vsel %vm2934_vm9, %v2924_v13, %v14031_v52  ;;  %v14033_v61 = vld [vmem:[#allocation591_spill] sm:$0xff]  ;;  %v2971_v29 = vsel %vm2967_vm10, %v2938_v38, %v14035_v46  ;;  %v4381_v13 = vsel %vm2901_vm8, %v4349_v9, %v3837_v30  ;;  %v3002_v49 = vsel %vm3000_vm11, %v2969_v62, %v14037_v34  ;;  %v14041_v2 = vld [vmem:[#allocation381_spill] sm:$0xff]  ;;  %v14048_v0 = vld [vmem:[#allocation332_spill] sm:$0xff] }
 0x6ea   : > { %v4316_v60 = vsel %vm2835_vm6, %v4284_v33, %v14033_v61  ;;  %v14034_v8 = vld [vmem:[#allocation283_spill] sm:$0xff]  ;;  %v4413_v44 = vsel %vm2934_vm9, %v4381_v13, %v3933_v12  ;;  %v4123_v45 = vpop.permute.xlu0 %4122  ;;  %v14051_v40 = vld [vmem:[#allocation220_spill] sm:$0xff]  ;;  %v14053_v61 = vld [vmem:[#allocation357_spill] sm:$0xff]  ;;  %v4513_v46 = vpop.permute.xlu1 %4512  ;;  %vm4653_vm5 = vcmask 883712  }
 0x6eb   : > { %v2968_v16 = vsel %vm2967_vm10, %v2935_v37, %v14034_v8  ;;  %v4348_v4 = vsel %vm2868_vm7, %v4316_v60, %v11605_v24  ;;  %v14036_v17 = vld [vmem:[#allocation287_spill] sm:$0xff]  ;;  %v14038_v37 = vld [vmem:[#allocation330_spill] sm:$0xff]  ;;  %v4445_v30 = vsel %vm2967_vm10, %v4413_v44, %v4029_v57  ;;  %v14054_v9 = vld [vmem:[#allocation20_spill] sm:$0xff] }
 0x6ec   : > { %v2970_v32 = vsel %vm2967_vm10, %v2937_v63, %v14036_v17  ;;  %v4380_v5 = vsel %vm2901_vm8, %v4348_v4, %v11672_v41  ;;  %v3001_v14 = vsel %vm3000_vm11, %v2968_v16, %v14038_v37  ;;  %v14039_v38 = vld [vmem:[#allocation355_spill] sm:$0xff]  ;;  %v14040_v63 = vld [vmem:[#allocation356_spill] sm:$0xff]  ;;  %v4477_v12 = vsel %vm3000_vm11, %v4445_v30, %v4125_v6  ;;  %v14049_v57 = vld [vmem:[#allocation98_spill] sm:$0xff] }
 0x6ed   : > { %v3035_v54 = vsel %vm3033_vm12, %v3002_v49, %v14039_v38  ;;  %v4412_v24 = vsel %vm2934_vm9, %v4380_v5, %v3931_v20  ;;  %v3034_v28 = vsel %vm3033_vm12, %v3001_v14, %v14040_v63  ;;  %4572 = vrot.lane.b32.xlu1 %v4477_v12, %s5758_s14  ;;  %v14047_v21 = vld [vmem:[#allocation331_spill] sm:$0xff]  ;;  %v3003_v43 = vsel %vm3000_vm11, %v2970_v32, %v14048_v0  ;;  %v14061_v32 = vld [vmem:[#allocation326_spill] sm:$0xff]  ;;  %v14063_v44 = vld [vmem:[#allocation289_spill] sm:$0xff] }
 0x6ee   : > { %v3068_v3 = vsel %vm14042_vm0, %v3035_v54, %v14041_v2  ;;  %v4444_v41 = vsel %vm2967_vm10, %v4412_v24, %v4027_v26  ;;  %v3067_v51 = vsel %vm14044_vm1, %v3034_v28, %v14043_v36  ;;  %v3004_v33 = vsel %vm3000_vm11, %v2971_v29, %v14047_v21  ;;  %v14056_v8 = vld [vmem:[#allocation327_spill] sm:$0xff]  ;;  %v14058_v29 = vld [vmem:[#allocation358_spill] sm:$0xff]  ;;  %v4511_v5 = vpop.permute.xlu0 %4510  ;;  %v14064_v14 = vld [vmem:[#allocation384_spill] sm:$0xff] }
 0x6ef   : > { %v3101_v20 = vsel %vm14046_vm13, %v3068_v3, %v14045_v18  ;;  %v4476_v42 = vsel %vm3000_vm11, %v4444_v41, %v4123_v45  ;;  %v3100_v52 = vsel %vm14050_vm15, %v3067_v51, %v14049_v57  ;;  %vm14052_vm0 = vcmask 457728   ;;  %v14059_v13 = vld [vmem:[#allocation383_spill] sm:$0xff]  ;;  %v14069_v28 = vld [vmem:[#allocation333_spill] sm:$0xff]  ;;  %v14070_v3 = vld [vmem:[#allocation100_spill] sm:$0xff] }
 0x6f0   : > { %v3134_v62 = vsel %vm14052_vm0, %v3101_v20, %v14051_v40  ;;  %4570 = vrot.lane.b32.xlu0 %v4476_v42, %s5758_s14  ;;  %v3037_v60 = vsel %vm3033_vm12, %v3004_v33, %v14053_v61  ;;  %vm14055_vm1 = vmmov %vm14052_vm0  ;;  %vm14057_vm13 = vcmask 490496   ;;  %v3036_v4 = vsel %vm3033_vm12, %v3003_v43, %v14058_v29  ;;  %v14066_v54 = vld [vmem:[#allocation99_spill] sm:$0xff]  ;;  %v14072_v12 = vld [vmem:[#allocation221_spill] sm:$0xff]  ;;  %v4517_v33 = vpop.permute.xlu1 %4516 }
 0x6f1   : > { %v3133_v26 = vsel %vm14055_vm1, %v3100_v52, %v14054_v9  ;;  %v3167_v16 = vsel %vm14057_vm13, %v3134_v62, %v14056_v8  ;;  %vm14060_vm15 = vcmask 392192   ;;  %vm14062_vm0 = vmmov %vm14057_vm13  ;;  %v2973_v37 = vsel %vm2967_vm10, %v11711_v19, %v14063_v44  ;;  %v14068_v6 = vld [vmem:[#allocation291_spill] sm:$0xff]  ;;  %v14074_v45 = vld [vmem:[#allocation334_spill] sm:$0xff] }
 0x6f2   : > { %v3070_v17 = vsel %vm14060_vm15, %v3037_v60, %v14059_v13  ;;  %v3166_v34 = vsel %vm14062_vm0, %v3133_v26, %v14061_v32  ;;  %v4608_v49 = vsel %vm4606_vm14, %v3167_v16, %v4513_v46  ;;  %vm14065_vm1 = vmmov %vm14060_vm15  ;;  %vm14067_vm13 = vcmask 424960   ;;  %v14075_v51 = vld [vmem:[#allocation359_spill] sm:$0xff]  ;;  %v14076_v20 = vld [vmem:[#allocation269_spill] sm:$0xff]  ;;  %v4515_v60 = vpop.permute.xlu0 %4514 }
 0x6f3   : > { %v3069_v38 = vsel %vm14065_vm1, %v3036_v4, %v14064_v14  ;;  %v3103_v24 = vsel %vm14067_vm13, %v3070_v17, %v14066_v54  ;;  %v4607_v30 = vsel %vm4606_vm14, %v3166_v34, %v4511_v5  ;;  %v2972_v63 = vsel %vm2967_vm10, %v11715_v27, %v14068_v6  ;;  %vm14071_vm15 = vmmov %vm14067_vm13  ;;  %v14078_v42 = vld [vmem:[#allocation329_spill] sm:$0xff]  ;;  %v14080_v0 = vld [vmem:[#allocation360_spill] sm:$0xff] }
 0x6f4   : > { %v3006_v2 = vsel %vm3000_vm11, %v2973_v37, %v14069_v28  ;;  %v3102_v41 = vsel %vm14071_vm15, %v3069_v38, %v14070_v3  ;;  %vm14073_vm0 = vcmask 457728   ;;  %5458 = vmatprep.mubr.msk.f32.mxu0 %vm4653_vm5, %v4607_v30  ;;  %v3005_v36 = vsel %vm3000_vm11, %v2972_v63, %v14074_v45  ;;  %v14081_v57 = vld [vmem:[#allocation386_spill] sm:$0xff]  ;;  %v14083_v40 = vld [vmem:[#allocation399_spill] sm:$0xff]  ;;  %v14085_v9 = vld [vmem:[#allocation292_spill] sm:$0xff]  ;;  %v4521_v63 = vpop.permute.xlu1 %4520 }
 0x6f5   : > { %v3136_v19 = vsel %vm14073_vm0, %v3103_v24, %v14072_v12  ;;  %v3039_v18 = vsel %vm3033_vm12, %v3006_v2, %v14075_v51  ;;  %vm14077_vm1 = vmmov %vm14073_vm0  ;;  %vm14079_vm13 = vcmask 490496   ;;  %5459 = vmatmul.mubr.msk.f32.vlgmr.msra.gmra.mrb[0].mxu0 %vm4653_vm5, %v4608_v49  ;;  %v3038_v43 = vsel %vm3033_vm12, %v3005_v36, %v14080_v0  ;;  %v14086_v8 = vld [vmem:[#allocation388_spill] sm:$0xff]  ;;  %v14088_v46 = vld [vmem:[#allocation101_spill] sm:$0xff] }
 0x6f6   : > { %v3135_v27 = vsel %vm14077_vm1, %v3102_v41, %v14076_v20  ;;  %v3169_v21 = vsel %vm14079_vm13, %v3136_v19, %v14078_v42  ;;  %vm14082_vm15 = vcmask 392192   ;;  %vm14084_vm0 = vmmov %vm14079_vm13  ;;  %v2975_v26 = vsel %vm2967_vm10, %v11721_v53, %v14085_v9  ;;  %v14090_v13 = vld [vmem:[#allocation293_spill] sm:$0xff]  ;;  %v14091_v32 = vld [vmem:[#allocation335_spill] sm:$0xff]  ;;  %v4519_v36 = vpop.permute.xlu0 %4518 }
 0x6f7   : > { %v3072_v52 = vsel %vm14082_vm15, %v3039_v18, %v14081_v57  ;;  %v3168_v62 = vsel %vm14084_vm0, %v3135_v27, %v14083_v40  ;;  %v4610_v61 = vsel %vm4606_vm14, %v3169_v21, %v4517_v33  ;;  %vm14087_vm1 = vmmov %vm14082_vm15  ;;  %vm14089_vm13 = vcmask 424960   ;;  %v14092_v49 = vld [vmem:[#allocation102_spill] sm:$0xff]  ;;  %v14094_v44 = vld [vmem:[#allocation37_spill] sm:$0xff] }
 0x6f8   : > { %v3071_v16 = vsel %vm14087_vm1, %v3038_v43, %v14086_v8  ;;  %v3105_v29 = vsel %vm14089_vm13, %v3072_v52, %v14088_v46  ;;  %v4609_v4 = vsel %vm4606_vm14, %v3168_v62, %v4515_v60  ;;  %v2974_v17 = vsel %vm2967_vm10, %v11725_v25, %v14090_v13  ;;  %vm14093_vm15 = vmmov %vm14089_vm13  ;;  %v14096_v37 = vld [vmem:[#allocation336_spill] sm:$0xff]  ;;  %v14097_v38 = vld [vmem:[#allocation361_spill] sm:$0xff] }
 0x6f9   : > { %v3008_v34 = vsel %vm3000_vm11, %v2975_v26, %v14091_v32  ;;  %v3104_v5 = vsel %vm14093_vm15, %v3071_v16, %v14092_v49  ;;  %vm14095_vm0 = vcmask 457728   ;;  %5461 = vmatprep.mubr.msk.f32.mxu0 %vm4653_vm5, %v4609_v4  ;;  %v3007_v14 = vsel %vm3000_vm11, %v2974_v17, %v14096_v37  ;;  %v14098_v24 = vld [vmem:[#allocation271_spill] sm:$0xff]  ;;  %v14100_v30 = vld [vmem:[#allocation400_spill] sm:$0xff]  ;;  %v14102_v28 = vld [vmem:[#allocation362_spill] sm:$0xff]  ;;  %v4525_v4 = vpop.permute.xlu1 %4524 }
 0x6fa   : > { %v3138_v53 = vsel %vm14095_vm0, %v3105_v29, %v14094_v44  ;;  %v3041_v54 = vsel %vm3033_vm12, %v3008_v34, %v14097_v38  ;;  %vm14099_vm1 = vmmov %vm14095_vm0  ;;  %vm14101_vm13 = vcmask 490496   ;;  %5462 = vmatmul.mubr.msk.f32.gmra.mrb[2].mxu0 %vm4653_vm5, %v4610_v61  ;;  %v3040_v2 = vsel %vm3033_vm12, %v3007_v14, %v14102_v28  ;;  %v14103_v3 = vld [vmem:[#allocation389_spill] sm:$0xff]  ;;  %v14107_v51 = vld [vmem:[#allocation304_spill] sm:$0xff] }
 0x6fb   : > { %v3137_v25 = vsel %vm14099_vm1, %v3104_v5, %v14098_v24  ;;  %v3171_v6 = vsel %vm14101_vm13, %v3138_v53, %v14100_v30  ;;  %vm14104_vm15 = vcmask 392192   ;;  %v14105_v12 = vld [vmem:[#allocation401_spill] sm:$0xff]  ;;  %vm14106_vm0 = vmmov %vm14101_vm13  ;;  %v2985_v18 = vsel %vm2967_vm10, %v11756_v22, %v14107_v51  ;;  %v14108_v20 = vld [vmem:[#allocation390_spill] sm:$0xff]  ;;  %v4523_v53 = vpop.permute.xlu0 %4522 }
 0x6fc   : > { %v3074_v41 = vsel %vm14104_vm15, %v3041_v54, %v14103_v3  ;;  %v3170_v19 = vsel %vm14106_vm0, %v3137_v25, %v14105_v12  ;;  %v4612_v45 = vsel %vm4606_vm14, %v3171_v6, %v4521_v63  ;;  %vm14109_vm1 = vmmov %vm14104_vm15  ;;  %v14110_v42 = vld [vmem:[#allocation103_spill] sm:$0xff]  ;;  %vm14111_vm13 = vcmask 424960   ;;  %v14112_v0 = vld [vmem:[#allocation306_spill] sm:$0xff] }
 0x6fd   : > { %v3073_v27 = vsel %vm14109_vm1, %v3040_v2, %v14108_v20  ;;  %v3107_v21 = vsel %vm14111_vm13, %v3074_v41, %v14110_v42  ;;  %v4611_v33 = vsel %vm4606_vm14, %v3170_v19, %v4519_v36  ;;  %v2984_v43 = vsel %vm2967_vm10, %v11764_v58, %v14112_v0  ;;  %v14113_v57 = vld [vmem:[#allocation345_spill] sm:$0xff]  ;;  %v14114_v40 = vld [vmem:[#allocation127_spill] sm:$0xff]  ;;  %vm14115_vm15 = vmmov %vm14111_vm13  ;;  %v4545_v42 = vpop.permute.xlu1 %4544 }
 0x6fe   : > { %v3018_v52 = vsel %vm3000_vm11, %v2985_v18, %v14113_v57  ;;  %v3106_v62 = vsel %vm14115_vm15, %v3073_v27, %v14114_v40  ;;  %v14116_v61 = vld [vmem:[#allocation319_spill] sm:$0xff]  ;;  %vm14117_vm0 = vcmask 457728   ;;  %5464 = vmatprep.mubr.msk.f32.mxu0 %vm4653_vm5, %v4611_v33  ;;  %v14118_v60 = vld [vmem:[#allocation346_spill] sm:$0xff]  ;;  %v14120_v16 = vld [vmem:[#allocation193_spill] sm:$0xff]  ;;  %vm14123_vm13 = vcmask 490496  }
 0x6ff   : > { %v3140_v22 = vsel %vm14117_vm0, %v3107_v21, %v14116_v61  ;;  %v3017_v9 = vsel %vm3000_vm11, %v2984_v43, %v14118_v60  ;;  %v14119_v26 = vld [vmem:[#allocation371_spill] sm:$0xff]  ;;  %vm14121_vm1 = vmmov %vm14117_vm0  ;;  %v14122_v46 = vld [vmem:[#allocation402_spill] sm:$0xff]  ;;  %5465 = vmatmul.mubr.msk.f32.gmra.mrb[4].mxu0 %vm4653_vm5, %v4612_v45  ;;  %vm14126_vm15 = vcmask 392192  }
 0x700   : > { %v3051_v8 = vsel %vm3033_vm12, %v3018_v52, %v14119_v26  ;;  %v3139_v58 = vsel %vm14121_vm1, %v3106_v62, %v14120_v16  ;;  %v3173_v29 = vsel %vm14123_vm13, %v3140_v22, %v14122_v46  ;;  %v14124_v13 = vld [vmem:[#allocation372_spill] sm:$0xff]  ;;  %v14125_v32 = vld [vmem:[#allocation305_spill] sm:$0xff]  ;;  %v14127_v49 = vld [vmem:[#allocation403_spill] sm:$0xff]  ;;  %v4543_v62 = vpop.permute.xlu0 %4542 }
 0x701   : > { %v3050_v17 = vsel %vm3033_vm12, %v3017_v9, %v14124_v13  ;;  %v3084_v34 = vsel %vm14126_vm15, %v3051_v8, %v14125_v32  ;;  %vm14128_vm0 = vmmov %vm14123_vm13  ;;  %v4614_v44 = vsel %vm4606_vm14, %v3173_v29, %v4525_v4  ;;  %v14129_v37 = vld [vmem:[#allocation294_spill] sm:$0xff]  ;;  %v14130_v38 = vld [vmem:[#allocation397_spill] sm:$0xff]  ;;  %vm14133_vm13 = vcmask 424960  }
 0x702   : > { %v3172_v5 = vsel %vm14128_vm0, %v3139_v58, %v14127_v49  ;;  %v2977_v14 = vsel %vm2967_vm10, %v11729_v55, %v14129_v37  ;;  %vm14131_vm1 = vmmov %vm14126_vm15  ;;  %v14132_v24 = vld [vmem:[#allocation159_spill] sm:$0xff]  ;;  %v14135_v28 = vld [vmem:[#allocation337_spill] sm:$0xff]  ;;  %vm14139_vm0 = vcmask 457728  }
 0x703   : > { %v3083_v54 = vsel %vm14131_vm1, %v3050_v17, %v14130_v38  ;;  %v3117_v25 = vsel %vm14133_vm13, %v3084_v34, %v14132_v24  ;;  %v4613_v30 = vsel %vm4606_vm14, %v3172_v5, %v4523_v53  ;;  %v14134_v6 = vld [vmem:[#allocation295_spill] sm:$0xff]  ;;  %v3010_v2 = vsel %vm3000_vm11, %v2977_v14, %v14135_v28  ;;  %v14136_v3 = vld [vmem:[#allocation160_spill] sm:$0xff]  ;;  %vm14137_vm15 = vmmov %vm14133_vm13  ;;  %v4529_v38 = vpop.permute.xlu1 %4528 }
 0x704   : > { %v2976_v63 = vsel %vm2967_vm10, %v11733_v59, %v14134_v6  ;;  %v3116_v41 = vsel %vm14137_vm15, %v3083_v54, %v14136_v3  ;;  %v14138_v12 = vld [vmem:[#allocation22_spill] sm:$0xff]  ;;  %5467 = vmatprep.mubr.msk.f32.mxu0 %vm4653_vm5, %v4613_v30  ;;  %v14141_v36 = vld [vmem:[#allocation363_spill] sm:$0xff]  ;;  %vm14143_vm1 = vmmov %vm14139_vm0  ;;  %vm14145_vm13 = vcmask 490496   ;;  %vm14148_vm15 = vcmask 392192  }
 0x705   : > { %v3150_v55 = vsel %vm14139_vm0, %v3117_v25, %v14138_v12  ;;  %v14140_v19 = vld [vmem:[#allocation338_spill] sm:$0xff]  ;;  %v3043_v51 = vsel %vm3033_vm12, %v3010_v2, %v14141_v36  ;;  %v14144_v20 = vld [vmem:[#allocation412_spill] sm:$0xff]  ;;  %5468 = vmatmul.mubr.msk.f32.gmra.mrb[6].mxu0 %vm4653_vm5, %v4614_v44  ;;  %v14147_v0 = vld [vmem:[#allocation391_spill] sm:$0xff]  ;;  %v4527_v2 = vpop.permute.xlu0 %4526 }
 0x706   : > { %v3009_v45 = vsel %vm3000_vm11, %v2976_v63, %v14140_v19  ;;  %v14142_v18 = vld [vmem:[#allocation38_spill] sm:$0xff]  ;;  %v3183_v27 = vsel %vm14145_vm13, %v3150_v55, %v14144_v20  ;;  %v14146_v21 = vld [vmem:[#allocation364_spill] sm:$0xff]  ;;  %v3076_v43 = vsel %vm14148_vm15, %v3043_v51, %v14147_v0  ;;  %v14149_v57 = vld [vmem:[#allocation413_spill] sm:$0xff] }
 0x707   : > { %v3149_v59 = vsel %vm14143_vm1, %v3116_v41, %v14142_v18  ;;  %v3042_v33 = vsel %vm3033_vm12, %v3009_v45, %v14146_v21  ;;  %vm14150_vm0 = vmmov %vm14145_vm13  ;;  %v4624_v40 = vsel %vm4606_vm14, %v3183_v27, %v4545_v42  ;;  %v14151_v61 = vld [vmem:[#allocation307_spill] sm:$0xff]  ;;  %v14152_v60 = vld [vmem:[#allocation392_spill] sm:$0xff]  ;;  %vm14155_vm13 = vcmask 424960  }
 0x708   : > { %v3182_v52 = vsel %vm14150_vm0, %v3149_v59, %v14149_v57  ;;  %v2987_v22 = vsel %vm2967_vm10, %v11768_v1, %v14151_v61  ;;  %vm14153_vm1 = vmmov %vm14148_vm15  ;;  %v14154_v26 = vld [vmem:[#allocation314_spill] sm:$0xff]  ;;  %v14156_v58 = vld [vmem:[#allocation309_spill] sm:$0xff]  ;;  %vm14161_vm0 = vcmask 457728   ;;  %v4549_v61 = vpop.permute.xlu1 %4548 }
 0x709   : > { %v3075_v9 = vsel %vm14153_vm1, %v3042_v33, %v14152_v60  ;;  %v3109_v8 = vsel %vm14155_vm13, %v3076_v43, %v14154_v26  ;;  %v4623_v16 = vsel %vm4606_vm14, %v3182_v52, %v4543_v62  ;;  %v2986_v46 = vsel %vm2967_vm10, %v11776_v50, %v14156_v58  ;;  %v14157_v29 = vld [vmem:[#allocation347_spill] sm:$0xff]  ;;  %v14158_v13 = vld [vmem:[#allocation128_spill] sm:$0xff]  ;;  %vm14159_vm15 = vmmov %vm14155_vm13 }
 0x70a   : > { %v3020_v4 = vsel %vm3000_vm11, %v2987_v22, %v14157_v29  ;;  %v3108_v17 = vsel %vm14159_vm15, %v3075_v9, %v14158_v13  ;;  %v14160_v32 = vld [vmem:[#allocation321_spill] sm:$0xff]  ;;  %5482 = vmatprep.mubr.msk.f32.mxu1 %vm4653_vm5, %v4623_v16  ;;  %v14162_v34 = vld [vmem:[#allocation348_spill] sm:$0xff]  ;;  %vm14165_vm1 = vmmov %vm14161_vm0  ;;  %vm14167_vm13 = vcmask 490496   ;;  %vm14170_vm15 = vcmask 392192  }
 0x70b   : > { %v3142_v1 = vsel %vm14161_vm0, %v3109_v8, %v14160_v32  ;;  %v3019_v49 = vsel %vm3000_vm11, %v2986_v46, %v14162_v34  ;;  %v14163_v5 = vld [vmem:[#allocation373_spill] sm:$0xff]  ;;  %v14164_v53 = vld [vmem:[#allocation320_spill] sm:$0xff]  ;;  %5483 = vmatmul.mubr.msk.f32.vlgmr.msra.gmra.mrb[0].mxu1 %vm4653_vm5, %v4624_v40  ;;  %v14168_v54 = vld [vmem:[#allocation374_spill] sm:$0xff]  ;;  %v4547_v46 = vpop.permute.xlu0 %4546 }
 0x70c   : > { %v3053_v44 = vsel %vm3033_vm12, %v3020_v4, %v14163_v5  ;;  %v3141_v50 = vsel %vm14165_vm1, %v3108_v17, %v14164_v53  ;;  %v14166_v37 = vld [vmem:[#allocation404_spill] sm:$0xff]  ;;  %v3052_v24 = vsel %vm3033_vm12, %v3019_v49, %v14168_v54  ;;  %v14171_v6 = vld [vmem:[#allocation405_spill] sm:$0xff]  ;;  %vm14172_vm0 = vmmov %vm14167_vm13 }
 0x70d   : > { %v3175_v14 = vsel %vm14167_vm13, %v3142_v1, %v14166_v37  ;;  %v14169_v25 = vld [vmem:[#allocation308_spill] sm:$0xff]  ;;  %v3174_v63 = vsel %vm14172_vm0, %v3141_v50, %v14171_v6  ;;  %v14174_v12 = vld [vmem:[#allocation398_spill] sm:$0xff]  ;;  %vm14175_vm1 = vmmov %vm14170_vm15  ;;  %vm14177_vm13 = vcmask 424960   ;;  %vm14183_vm0 = vcmask 457728  }
 0x70e   : > { %v3086_v30 = vsel %vm14170_vm15, %v3053_v44, %v14169_v25  ;;  %v4616_v28 = vsel %vm4606_vm14, %v3175_v14, %v4529_v38  ;;  %v14173_v3 = vld [vmem:[#allocation296_spill] sm:$0xff]  ;;  %v3085_v55 = vsel %vm14175_vm1, %v3052_v24, %v14174_v12  ;;  %v14176_v19 = vld [vmem:[#allocation161_spill] sm:$0xff]  ;;  %v4615_v36 = vsel %vm4606_vm14, %v3174_v63, %v4527_v2  ;;  %v14179_v59 = vld [vmem:[#allocation339_spill] sm:$0xff] }
 0x70f   : > { %v2979_v41 = vsel %vm2967_vm10, %v11738_v10, %v14173_v3  ;;  %v3119_v45 = vsel %vm14177_vm13, %v3086_v30, %v14176_v19  ;;  %v14178_v51 = vld [vmem:[#allocation297_spill] sm:$0xff]  ;;  %vm14181_vm15 = vmmov %vm14177_vm13  ;;  %v14182_v21 = vld [vmem:[#allocation324_spill] sm:$0xff]  ;;  %5470 = vmatprep.mubr.msk.f32.mxu0 %vm4653_vm5, %v4615_v36  ;;  %vm14189_vm13 = vcmask 490496   ;;  %v4531_v36 = vpop.permute.xlu0 %4530 }
 0x710   : > { %v2978_v18 = vsel %vm2967_vm10, %v11742_v56, %v14178_v51  ;;  %v3012_v20 = vsel %vm3000_vm11, %v2979_v41, %v14179_v59  ;;  %v14180_v27 = vld [vmem:[#allocation17_spill] sm:$0xff]  ;;  %v3152_v10 = vsel %vm14183_vm0, %v3119_v45, %v14182_v21  ;;  %v14184_v33 = vld [vmem:[#allocation340_spill] sm:$0xff]  ;;  %v14186_v52 = vld [vmem:[#allocation323_spill] sm:$0xff]  ;;  %5471 = vmatmul.mubr.msk.f32.gmra.mrb[8].mxu0 %vm4653_vm5, %v4616_v28  ;;  %v4533_v28 = vpop.permute.xlu1 %4532 }
 0x711   : > { %v3118_v42 = vsel %vm14181_vm15, %v3085_v55, %v14180_v27  ;;  %v3011_v0 = vsel %vm3000_vm11, %v2978_v18, %v14184_v33  ;;  %v14185_v43 = vld [vmem:[#allocation365_spill] sm:$0xff]  ;;  %vm14187_vm1 = vmmov %vm14183_vm0  ;;  %v14188_v40 = vld [vmem:[#allocation414_spill] sm:$0xff]  ;;  %vm14192_vm15 = vcmask 392192  }
 0x712   : > { %v3045_v57 = vsel %vm3033_vm12, %v3012_v20, %v14185_v43  ;;  %v3151_v56 = vsel %vm14187_vm1, %v3118_v42, %v14186_v52  ;;  %v3185_v62 = vsel %vm14189_vm13, %v3152_v10, %v14188_v40  ;;  %v14190_v22 = vld [vmem:[#allocation366_spill] sm:$0xff]  ;;  %v14191_v9 = vld [vmem:[#allocation393_spill] sm:$0xff]  ;;  %v14193_v8 = vld [vmem:[#allocation415_spill] sm:$0xff] }
 0x713   : > { %v3044_v60 = vsel %vm3033_vm12, %v3011_v0, %v14190_v22  ;;  %v3078_v26 = vsel %vm14192_vm15, %v3045_v57, %v14191_v9  ;;  %vm14194_vm0 = vmmov %vm14189_vm13  ;;  %v4626_v58 = vsel %vm4606_vm14, %v3185_v62, %v4549_v61  ;;  %v14195_v29 = vld [vmem:[#allocation310_spill] sm:$0xff]  ;;  %v14198_v32 = vld [vmem:[#allocation35_spill] sm:$0xff]  ;;  %vm14199_vm13 = vcmask 424960  }
 0x714   : > { %v3184_v16 = vsel %vm14194_vm0, %v3151_v56, %v14193_v8  ;;  %v2989_v4 = vsel %vm2967_vm10, %v11780_v7, %v14195_v29  ;;  %v14196_v13 = vld [vmem:[#allocation394_spill] sm:$0xff]  ;;  %vm14197_vm1 = vmmov %vm14192_vm15  ;;  %v3111_v1 = vsel %vm14199_vm13, %v3078_v26, %v14198_v32  ;;  %v14200_v49 = vld [vmem:[#allocation312_spill] sm:$0xff]  ;;  %vm14205_vm0 = vcmask 457728   ;;  %v4553_v8 = vpop.permute.xlu1 %4552  ;;  %v4551_v32 = vpop.permute.xlu0 %4550 }
 0x715   : > { %v3077_v17 = vsel %vm14197_vm1, %v3044_v60, %v14196_v13  ;;  %v4625_v34 = vsel %vm4606_vm14, %v3184_v16, %v4547_v46  ;;  %v2988_v5 = vsel %vm2967_vm10, %v11788_v15, %v14200_v49  ;;  %v14201_v44 = vld [vmem:[#allocation349_spill] sm:$0xff]  ;;  %vm14203_vm15 = vmmov %vm14199_vm13  ;;  %v14204_v14 = vld [vmem:[#allocation222_spill] sm:$0xff]  ;;  %vm14211_vm13 = vcmask 490496  }
 0x716   : > { %v3022_v53 = vsel %vm3000_vm11, %v2989_v4, %v14201_v44  ;;  %v14202_v50 = vld [vmem:[#allocation129_spill] sm:$0xff]  ;;  %v3144_v7 = vsel %vm14205_vm0, %v3111_v1, %v14204_v14  ;;  %5485 = vmatprep.mubr.msk.f32.mxu1 %vm4653_vm5, %v4625_v34  ;;  %v14206_v38 = vld [vmem:[#allocation350_spill] sm:$0xff]  ;;  %v14207_v24 = vld [vmem:[#allocation375_spill] sm:$0xff] }
 0x717   : > { %v3110_v37 = vsel %vm14203_vm15, %v3077_v17, %v14202_v50  ;;  %v3021_v54 = vsel %vm3000_vm11, %v2988_v5, %v14206_v38  ;;  %v3055_v25 = vsel %vm3033_vm12, %v3022_v53, %v14207_v24  ;;  %v14208_v30 = vld [vmem:[#allocation223_spill] sm:$0xff]  ;;  %vm14209_vm1 = vmmov %vm14205_vm0  ;;  %v14210_v6 = vld [vmem:[#allocation406_spill] sm:$0xff]  ;;  %5486 = vmatmul.mubr.msk.f32.gmra.mrb[2].mxu1 %vm4653_vm5, %v4626_v58  ;;  %vm14214_vm15 = vcmask 392192  }
 0x718   : > { %v3143_v15 = vsel %vm14209_vm1, %v3110_v37, %v14208_v30  ;;  %v3177_v63 = vsel %vm14211_vm13, %v3144_v7, %v14210_v6  ;;  %v14212_v2 = vld [vmem:[#allocation376_spill] sm:$0xff]  ;;  %v14213_v41 = vld [vmem:[#allocation311_spill] sm:$0xff]  ;;  %vm14216_vm0 = vmmov %vm14211_vm13  ;;  %vm14221_vm13 = vcmask 424960  }
 0x719   : > { %v3054_v3 = vsel %vm3033_vm12, %v3021_v54, %v14212_v2  ;;  %v3088_v12 = vsel %vm14214_vm15, %v3055_v25, %v14213_v41  ;;  %v14215_v55 = vld [vmem:[#allocation407_spill] sm:$0xff]  ;;  %v4618_v45 = vsel %vm4606_vm14, %v3177_v63, %v4533_v28  ;;  %v14217_v51 = vld [vmem:[#allocation298_spill] sm:$0xff]  ;;  %vm14219_vm1 = vmmov %vm14214_vm15  ;;  %v4537_v41 = vpop.permute.xlu1 %4536 }
 0x71a   : > { %v3176_v19 = vsel %vm14216_vm0, %v3143_v15, %v14215_v55  ;;  %v2981_v18 = vsel %vm2967_vm10, %v11746_v39, %v14217_v51  ;;  %v14218_v59 = vld [vmem:[#allocation67_spill] sm:$0xff]  ;;  %v14220_v27 = vld [vmem:[#allocation162_spill] sm:$0xff]  ;;  %v14222_v10 = vld [vmem:[#allocation300_spill] sm:$0xff]  ;;  %vm14227_vm0 = vcmask 457728  }
 0x71b   : > { %v3087_v20 = vsel %vm14219_vm1, %v3054_v3, %v14218_v59  ;;  %v3121_v42 = vsel %vm14221_vm13, %v3088_v12, %v14220_v27  ;;  %v4617_v21 = vsel %vm4606_vm14, %v3176_v19, %v4531_v36  ;;  %v2980_v33 = vsel %vm2967_vm10, %v11752_v48, %v14222_v10  ;;  %v14223_v0 = vld [vmem:[#allocation341_spill] sm:$0xff]  ;;  %v14224_v57 = vld [vmem:[#allocation18_spill] sm:$0xff]  ;;  %vm14225_vm15 = vmmov %vm14221_vm13  ;;  %v4535_v59 = vpop.permute.xlu0 %4534 }
 0x71c   : > { %v3014_v43 = vsel %vm3000_vm11, %v2981_v18, %v14223_v0  ;;  %v3120_v52 = vsel %vm14225_vm15, %v3087_v20, %v14224_v57  ;;  %v14226_v56 = vld [vmem:[#allocation194_spill] sm:$0xff]  ;;  %5473 = vmatprep.mubr.msk.f32.mxu0 %vm4653_vm5, %v4617_v21  ;;  %v14229_v61 = vld [vmem:[#allocation367_spill] sm:$0xff]  ;;  %v14230_v60 = vld [vmem:[#allocation224_spill] sm:$0xff]  ;;  %vm14233_vm13 = vcmask 490496   ;;  %vm14236_vm15 = vcmask 392192  }
 0x71d   : > { %v3154_v39 = vsel %vm14227_vm0, %v3121_v42, %v14226_v56  ;;  %v14228_v40 = vld [vmem:[#allocation342_spill] sm:$0xff]  ;;  %v3047_v22 = vsel %vm3033_vm12, %v3014_v43, %v14229_v61  ;;  %vm14231_vm1 = vmmov %vm14227_vm0  ;;  %v14232_v9 = vld [vmem:[#allocation416_spill] sm:$0xff]  ;;  %5474 = vmatmul.mubr.msk.f32.gmra.mrb[10].mxu0 %vm4653_vm5, %v4618_v45 }
 0x71e   : > { %v3013_v62 = vsel %vm3000_vm11, %v2980_v33, %v14228_v40  ;;  %v3153_v48 = vsel %vm14231_vm1, %v3120_v52, %v14230_v60  ;;  %v3187_v26 = vsel %vm14233_vm13, %v3154_v39, %v14232_v9  ;;  %v14234_v16 = vld [vmem:[#allocation368_spill] sm:$0xff]  ;;  %v14235_v46 = vld [vmem:[#allocation299_spill] sm:$0xff]  ;;  %v14237_v4 = vld [vmem:[#allocation417_spill] sm:$0xff] }
 0x71f   : > { %v3046_v58 = vsel %vm3033_vm12, %v3013_v62, %v14234_v16  ;;  %v3080_v29 = vsel %vm14236_vm15, %v3047_v22, %v14235_v46  ;;  %vm14238_vm0 = vmmov %vm14233_vm13  ;;  %v4628_v17 = vsel %vm4606_vm14, %v3187_v26, %v4553_v8  ;;  %v14239_v1 = vld [vmem:[#allocation313_spill] sm:$0xff]  ;;  %v14240_v49 = vld [vmem:[#allocation395_spill] sm:$0xff]  ;;  %vm14243_vm13 = vcmask 424960   ;;  %v4557_v16 = vpop.permute.xlu1 %4556 }
 0x720   : > { %v3186_v13 = vsel %vm14238_vm0, %v3153_v48, %v14237_v4  ;;  %v2991_v34 = vsel %vm2967_vm10, %v11792_v35, %v14239_v1  ;;  %vm14241_vm1 = vmmov %vm14236_vm15  ;;  %v14242_v44 = vld [vmem:[#allocation130_spill] sm:$0xff]  ;;  %v14244_v37 = vld [vmem:[#allocation315_spill] sm:$0xff]  ;;  %vm14249_vm0 = vcmask 457728   ;;  %v4555_v1 = vpop.permute.xlu0 %4554 }
 0x721   : > { %v3079_v5 = vsel %vm14241_vm1, %v3046_v58, %v14240_v49  ;;  %v3113_v53 = vsel %vm14243_vm13, %v3080_v29, %v14242_v44  ;;  %v4627_v50 = vsel %vm4606_vm14, %v3186_v13, %v4551_v32  ;;  %v2990_v14 = vsel %vm2967_vm10, %v11800_v11, %v14244_v37  ;;  %v14245_v7 = vld [vmem:[#allocation351_spill] sm:$0xff]  ;;  %vm14247_vm15 = vmmov %vm14243_vm13  ;;  %v14248_v25 = vld [vmem:[#allocation273_spill] sm:$0xff] }
 0x722   : > { %v3024_v38 = vsel %vm3000_vm11, %v2991_v34, %v14245_v7  ;;  %v14246_v54 = vld [vmem:[#allocation131_spill] sm:$0xff]  ;;  %v3146_v35 = vsel %vm14249_vm0, %v3113_v53, %v14248_v25  ;;  %5488 = vmatprep.mubr.msk.f32.mxu1 %vm4653_vm5, %v4627_v50  ;;  %v14250_v30 = vld [vmem:[#allocation352_spill] sm:$0xff]  ;;  %v14251_v6 = vld [vmem:[#allocation377_spill] sm:$0xff]  ;;  %vm14255_vm13 = vcmask 490496  }
 0x723   : > { %v3112_v24 = vsel %vm14247_vm15, %v3079_v5, %v14246_v54  ;;  %v3023_v15 = vsel %vm3000_vm11, %v2990_v14, %v14250_v30  ;;  %v3057_v63 = vsel %vm3033_vm12, %v3024_v38, %v14251_v6  ;;  %v14252_v28 = vld [vmem:[#allocation21_spill] sm:$0xff]  ;;  %vm14253_vm1 = vmmov %vm14249_vm0  ;;  %v14254_v2 = vld [vmem:[#allocation408_spill] sm:$0xff]  ;;  %5489 = vmatmul.mubr.msk.f32.gmra.mrb[4].mxu1 %vm4653_vm5, %v4628_v17  ;;  %vm14258_vm15 = vcmask 392192  }
 0x724   : > { %v3145_v11 = vsel %vm14253_vm1, %v3112_v24, %v14252_v28  ;;  %v3179_v3 = vsel %vm14255_vm13, %v3146_v35, %v14254_v2  ;;  %v14256_v12 = vld [vmem:[#allocation378_spill] sm:$0xff]  ;;  %v14257_v19 = vld [vmem:[#allocation68_spill] sm:$0xff]  ;;  %v14259_v36 = vld [vmem:[#allocation409_spill] sm:$0xff] }
 0x725   : > { %v3056_v55 = vsel %vm3033_vm12, %v3023_v15, %v14256_v12  ;;  %v3090_v45 = vsel %vm14258_vm15, %v3057_v63, %v14257_v19  ;;  %vm14260_vm0 = vmmov %vm14255_vm13  ;;  %v4620_v18 = vsel %vm4606_vm14, %v3179_v3, %v4537_v41  ;;  %v14261_v20 = vld [vmem:[#allocation247_spill] sm:$0xff]  ;;  %v14262_v42 = vld [vmem:[#allocation69_spill] sm:$0xff]  ;;  %vm14265_vm13 = vcmask 424960  }
 0x726   : > { %v3178_v51 = vsel %vm14260_vm0, %v3145_v11, %v14259_v36  ;;  %v2949_v27 = vsel %vm2934_vm9, %v11666_v31, %v14261_v20  ;;  %vm14263_vm1 = vmmov %vm14258_vm15  ;;  %v14264_v10 = vld [vmem:[#allocation36_spill] sm:$0xff]  ;;  %v14266_v43 = vld [vmem:[#allocation5_spill] sm:$0xff]  ;;  %vm14271_vm0 = vcmask 457728  }
 0x727   : > { %v3089_v21 = vsel %vm14263_vm1, %v3056_v55, %v14262_v42  ;;  %v3123_v33 = vsel %vm14265_vm13, %v3090_v45, %v14264_v10  ;;  %v4619_v0 = vsel %vm4606_vm14, %v3178_v51, %v4535_v59  ;;  %v2851_v57 = vsel %vm2835_vm6, %v11461_v23, %v14266_v43  ;;  %v14267_v52 = vld [vmem:[#allocation303_spill] sm:$0xff]  ;;  %v14268_v39 = vld [vmem:[#allocation317_spill] sm:$0xff]  ;;  %vm14269_vm15 = vmmov %vm14265_vm13  ;;  %v4539_v55 = vpop.permute.xlu0 %4538 }
 0x728   : > { %v2982_v56 = vsel %vm2967_vm10, %v2949_v27, %v14267_v52  ;;  %v3122_v40 = vsel %vm14269_vm15, %v3089_v21, %v14268_v39  ;;  %v14270_v62 = vld [vmem:[#allocation225_spill] sm:$0xff]  ;;  %5476 = vmatprep.mubr.msk.f32.mxu0 %vm4653_vm5, %v4619_v0  ;;  %v14272_v61 = vld [vmem:[#allocation28_spill] sm:$0xff]  ;;  %vm14275_vm1 = vmmov %vm14271_vm0  ;;  %vm14277_vm13 = vcmask 490496  }
 0x729   : > { %v3156_v31 = vsel %vm14271_vm0, %v3123_v33, %v14270_v62  ;;  %v2884_v22 = vsel %vm2868_vm7, %v2851_v57, %v14272_v61  ;;  %v14273_v60 = vld [vmem:[#allocation344_spill] sm:$0xff]  ;;  %v14274_v9 = vld [vmem:[#allocation277_spill] sm:$0xff]  ;;  %v14276_v26 = vld [vmem:[#allocation418_spill] sm:$0xff]  ;;  %5477 = vmatmul.mubr.msk.f32.gmra.mrb[12].mxu0 %vm4653_vm5, %v4620_v18  ;;  %vm14285_vm0 = vcmask 392192  }
 0x72a   : > { %v3015_v48 = vsel %vm3000_vm11, %v2982_v56, %v14273_v60  ;;  %v3155_v23 = vsel %vm14275_vm1, %v3122_v40, %v14274_v9  ;;  %v3189_v8 = vsel %vm14277_vm13, %v3156_v31, %v14276_v26  ;;  %v14278_v58 = vld [vmem:[#allocation208_spill] sm:$0xff]  ;;  %v14279_v29 = vld [vmem:[#allocation370_spill] sm:$0xff]  ;;  %v14280_v13 = vld [vmem:[#allocation419_spill] sm:$0xff]  ;;  %vm14289_vm1 = vcmask 424960  }
 0x72b   : > { %v2917_v46 = vsel %vm2901_vm8, %v2884_v22, %v14278_v58  ;;  %v3048_v4 = vsel %vm3033_vm12, %v3015_v48, %v14279_v29  ;;  %vm14281_vm15 = vmmov %vm14277_vm13  ;;  %v4630_v32 = vsel %vm4606_vm14, %v3189_v8, %v4557_v16  ;;  %v14282_v34 = vld [vmem:[#allocation16_spill] sm:$0xff]  ;;  %v14283_v5 = vld [vmem:[#allocation245_spill] sm:$0xff]  ;;  %vm14293_vm13 = vcmask 457728   ;;  %v4541_v48 = vpop.permute.xlu1 %4540 }
 0x72c   : > { %v3188_v17 = vsel %vm14281_vm15, %v3155_v23, %v14280_v13  ;;  %v2860_v49 = vsel %vm2835_vm6, %v11493_v47, %v14282_v34  ;;  %v2950_v44 = vsel %vm2934_vm9, %v2917_v46, %v14283_v5  ;;  %v14284_v53 = vld [vmem:[#allocation396_spill] sm:$0xff]  ;;  %v14286_v14 = vld [vmem:[#allocation191_spill] sm:$0xff]  ;;  %v14287_v38 = vld [vmem:[#allocation301_spill] sm:$0xff]  ;;  %v4559_v34 = vpop.permute.xlu0 %4558 }
 0x72d   : > { %v3081_v50 = vsel %vm14285_vm0, %v3048_v4, %v14284_v53  ;;  %v4629_v37 = vsel %vm4606_vm14, %v3188_v17, %v4555_v1  ;;  %v2893_v7 = vsel %vm2868_vm7, %v2860_v49, %v14286_v14  ;;  %v2983_v54 = vsel %vm2967_vm10, %v2950_v44, %v14287_v38  ;;  %v14288_v24 = vld [vmem:[#allocation158_spill] sm:$0xff]  ;;  %v14290_v47 = vld [vmem:[#allocation219_spill] sm:$0xff]  ;;  %v14295_v2 = vld [vmem:[#allocation369_spill] sm:$0xff] }
 0x72e   : > { %v3114_v25 = vsel %vm14289_vm1, %v3081_v50, %v14288_v24  ;;  %5491 = vmatprep.mubr.msk.f32.mxu1 %vm4653_vm5, %v4629_v37  ;;  %v2926_v35 = vsel %vm2901_vm8, %v2893_v7, %v14290_v47  ;;  %v14291_v30 = vld [vmem:[#allocation343_spill] sm:$0xff]  ;;  %v14292_v6 = vld [vmem:[#allocation322_spill] sm:$0xff]  ;;  %v14299_v20 = vld [vmem:[#allocation65_spill] sm:$0xff] }
 0x72f   : > { %v3016_v15 = vsel %vm3000_vm11, %v2983_v54, %v14291_v30  ;;  %v3147_v63 = vsel %vm14293_vm13, %v3114_v25, %v14292_v6  ;;  %5492 = vmatmul.mubr.msk.f32.gmra.mrb[6].mxu1 %vm4653_vm5, %v4630_v32  ;;  %v14294_v28 = vld [vmem:[#allocation267_spill] sm:$0xff]  ;;  %v14297_v19 = vld [vmem:[#allocation318_spill] sm:$0xff]  ;;  %v14301_v10 = vld [vmem:[#allocation157_spill] sm:$0xff] }
 0x730   : > { %v2959_v11 = vsel %vm2934_vm9, %v2926_v35, %v14294_v28  ;;  %v3049_v3 = vsel %vm3033_vm12, %v3016_v15, %v14295_v2  ;;  %v14296_v41 = vld [vmem:[#allocation411_spill] sm:$0xff]  ;;  %v14298_v36 = vld [vmem:[#allocation302_spill] sm:$0xff]  ;;  %v14302_v0 = vld [vmem:[#allocation96_spill] sm:$0xff] }
 0x731   : > { %v3180_v12 = vsel %vm14281_vm15, %v3147_v63, %v14296_v41  ;;  %v2992_v45 = vsel %vm2967_vm10, %v2959_v11, %v14297_v19  ;;  %v3082_v51 = vsel %vm14285_vm0, %v3049_v3, %v14298_v36  ;;  %v5701_v59 = vld [vmem:[%s5832_s7 + $0x128] sm:$0xff]  ;;  %v14300_v42 = vld [vmem:[#allocation354_spill] sm:$0xff]  ;;  %v14303_v57 = vld [vmem:[#allocation380_spill] sm:$0xff]  ;;  %v4561_v11 = vpop.permute.xlu1 %4560  ;;  %v4563_v3 = vpop.permute.xlu0 %4562  ;;  %s5344_s7 = sshll.u32 %s5724_s18, 1  ;;  %s14357_s18 = smov (!%p359_p10, %s5724_s18), 15 }
 0x732   : > { %v4621_v18 = vsel %vm4606_vm14, %v3180_v12, %v4539_v55  ;;  %v2729_v27 = vsel %vm2703_vm2, %v5701_v59, %v14299_v20  ;;  %v3025_v21 = vsel %vm3000_vm11, %v2992_v45, %v14300_v42  ;;  %v3115_v33 = vsel %vm14289_vm1, %v3082_v51, %v14301_v10  ;;  %v14304_v56 = vld [vmem:[#allocation275_spill] sm:$0xff]  ;;  %v14305_v40 = vld [vmem:[#allocation125_spill] sm:$0xff]  ;;  %vm14307_vm2 = vmmov %vm14285_vm0  ;;  %p350_p9 = scmp.lt.s32.totalorder %s5344_s7, 31  ;;  %s362_s16 = sadd.s32 %s5347_s30, %s14357_s18 }
 0x733   : > { %5479 = vmatprep.mubr.msk.f32.mxu0 %vm4653_vm5, %v4621_v18  ;;  %v2762_v43 = vsel %vm2736_vm3, %v2729_v27, %v14302_v0  ;;  %v3058_v52 = vsel %vm3033_vm12, %v3025_v21, %v14303_v57  ;;  %v3148_v39 = vsel %vm14293_vm13, %v3115_v33, %v14304_v56  ;;  %v14306_v31 = vld [vmem:[#allocation71_spill] sm:$0xff]  ;;  %v14308_v22 = vld [vmem:[#allocation410_spill] sm:$0xff]  ;;  %vm14310_vm0 = vcmask 130048   ;;  %v14311_v26 = vld [vmem:[#allocation192_spill] sm:$0xff]  ;;  %s5348_s28 = sshll.u32 %s362_s16, 1 }
 0x734   : > { %v2795_v62 = vsel %vm2769_vm4, %v2762_v43, %v14305_v40  ;;  %v3091_v61 = vsel %vm14307_vm2, %v3058_v52, %v14306_v31  ;;  %v3181_v60 = vsel %vm14281_vm15, %v3148_v39, %v14308_v22  ;;  %v14309_v9 = vld [vmem:[#allocation155_spill] sm:$0xff]  ;;  %vm14312_vm3 = vmmov %vm14289_vm1  ;;  %v14314_v29 = vld [vmem:[#allocation325_spill] sm:$0xff]  ;;  %s14355_s7 = smov (!%p350_p9, %s5344_s7), 31  ;;  %s364_s19 = scalar_lea.vmem %s12345_s5, %s5348_s28 }
 0x735   : > { %v2828_v23 = vsel %vm14310_vm0, %v2795_v62, %v14309_v9  ;;  %v3124_v8 = vsel %vm14312_vm3, %v3091_v61, %v14311_v26  ;;  %v4622_v16 = vsel %vm4606_vm14, %v3181_v60, %v4541_v48  ;;  %v14313_v58 = vld [vmem:[#allocation15_spill] sm:$0xff]  ;;  %vm14315_vm4 = vmmov %vm14293_vm13  ;;  %v14316_v13 = vld [vmem:[#allocation34_spill] sm:$0xff]  ;;  %s353_s6 = sadd.s32 %s5345_s15, %s14355_s7 }
 0x736   : > { %v2861_v46 = vsel %vm2835_vm6, %v2828_v23, %v14313_v58  ;;  %v3157_v4 = vsel %vm14315_vm4, %v3124_v8, %v14314_v29  ;;  %5480 = vmatmul.mubr.msk.f32.gmra.mrb[14].mxu0 %vm4653_vm5, %v4622_v16  ;;  %v14317_v32 = vld [vmem:[#allocation421_spill] sm:$0xff]  ;;  %vm14318_vm1 = vmmov %vm14281_vm15  ;;  %v14319_v49 = vld [vmem:[#allocation218_spill] sm:$0xff]  ;;  %s5346_s17 = sshll.u32 %s353_s6, 3 }
 0x737   : > { %v2894_v17 = vsel %vm2868_vm7, %v2861_v46, %v14316_v13  ;;  %v3190_v1 = vsel %vm14318_vm1, %v3157_v4, %v14317_v32  ;;  %v14320_v53 = vld [vmem:[#allocation265_spill] sm:$0xff]  ;;  %v14321_v37 = vld [vmem:[#allocation316_spill] sm:$0xff]  ;;  %v14323_v54 = vld [vmem:[#allocation379_spill] sm:$0xff]  ;;  %s355_s8 = scalar_lea.vmem %s12344_s4, %s5346_s17 }
 0x738   : > { %v2927_v5 = vsel %vm2901_vm8, %v2894_v17, %v14319_v49  ;;  %v4631_v44 = vsel %vm4606_vm14, %v3190_v1, %v4559_v34  ;;  %v14322_v7 = vld [vmem:[#allocation353_spill] sm:$0xff]  ;;  %v14324_v25 = vld [vmem:[#allocation70_spill] sm:$0xff]  ;;  %vm14325_vm6 = vmmov %vm14307_vm2 }
 0x739   : > { %v2960_v50 = vsel %vm2934_vm9, %v2927_v5, %v14320_v53  ;;  %5494 = vmatprep.mubr.msk.f32.mxu1 %vm4653_vm5, %v4631_v44  ;;  %v14326_v35 = vld [vmem:[#allocation19_spill] sm:$0xff]  ;;  %vm14327_vm7 = vmmov %vm14312_vm3  ;;  %v14330_v63 = vld [vmem:[#allocation420_spill] sm:$0xff] }
 0x73a   : > { %v2993_v14 = vsel %vm2967_vm10, %v2960_v50, %v14321_v37  ;;  %v14328_v15 = vld [vmem:[#allocation279_spill] sm:$0xff]  ;;  %vm14329_vm8 = vmmov %vm14315_vm4  ;;  %v14333_v19 = vld [vmem:[#allocation422_spill] sm:$0xff] }
 0x73b   : > { %v3026_v38 = vsel %vm3000_vm11, %v2993_v14, %v14322_v7  ;;  %vm14331_vm9 = vmmov %vm14318_vm1  ;;  %v14332_v41 = vld [vmem:[#allocation423_spill] sm:$0xff]  ;;  %v4565_v55 = vpop.permute.xlu1 %4564  ;;  %v14334_v51 = vld [vmem:[#allocation425_spill] sm:$0xff] }
 0x73c   : > { %v3059_v24 = vsel %vm3033_vm12, %v3026_v38, %v14323_v54  ;;  %v4633_v12 = vsel %vm4606_vm14, %v14332_v41, %v4563_v3  ;;  %v4634_v45 = vsel %vm4606_vm14, %v14333_v19, %v4565_v55  ;;  %v14335_v20 = vld [vmem:[#allocation424_spill] sm:$0xff]  ;;  %v14336_v21 = vld [vmem:[#allocation426_spill] sm:$0xff]  ;;  %v14337_v0 = vld [vmem:[#allocation427_spill] sm:$0xff] }
 0x73d   : > { %v3092_v47 = vsel %vm14325_vm6, %v3059_v24, %v14324_v25 }
 0x73e   : > { %v3125_v30 = vsel %vm14327_vm7, %v3092_v47, %v14326_v35 }
 0x73f   : > { %v3158_v6 = vsel %vm14329_vm8, %v3125_v30, %v14328_v15 }
 0x740   : > { %v3191_v28 = vsel %vm14331_vm9, %v3158_v6, %v14330_v63 }
 0x741   : > { %v4632_v2 = vsel %vm4606_vm14, %v3191_v28, %v4561_v11 }
 0x742   : > { %5495 = vmatmul.mubr.msk.f32.gmra.mrb[8].mxu1 %vm4653_vm5, %v4632_v2 }
 0x743   : > { %5497 = vmatprep.mubr.msk.f32.mxu1 %vm4653_vm5, %v4633_v12 }
 0x746   : > { %5498 = vmatmul.mubr.msk.f32.gmra.mrb[10].mxu1 %vm4653_vm5, %v4634_v45 }
 0x748   : > { %v4567_v36 = vpop.permute.xlu0 %4566 }
 0x749   : > { %v4635_v18 = vsel %vm4606_vm14, %v14334_v51, %v4567_v36 }
 0x74a   : > { %5500 = vmatprep.mubr.msk.f32.mxu1 %vm4653_vm5, %v4635_v18 }
 0x753   : > { %v4569_v59 = vpop.permute.xlu1 %4568 }
 0x754   : > { %v4636_v27 = vsel %vm4606_vm14, %v14335_v20, %v4569_v59 }
 0x755   : > { %5501 = vmatmul.mubr.msk.f32.gmra.mrb[12].mxu1 %vm4653_vm5, %v4636_v27 }
 0x75f   : > { %v4573_v42 = vpop.permute.xlu1 %4572 }
 0x760   : > { %v4638_v10 = vsel %vm4606_vm14, %v14336_v21, %v4573_v42 }
 0x762   : > { %v4571_v33 = vpop.permute.xlu0 %4570 }
 0x763   : > { %v4637_v43 = vsel %vm4606_vm14, %v14337_v0, %v4571_v33 }
 0x764   : > { %5503 = vmatprep.mubr.msk.f32.mxu1 %vm4653_vm5, %v4637_v43 }
 0x765   : > { %5504 = vmatmul.mubr.msk.f32.gmra.mrb[14].mxu1 %vm4653_vm5, %v4638_v10  ;;  %vm5085_vm5 = vcmask 1040384  }
 0x7c8   : > { %v5460_v57 = vpop.f32.mrb[0].mxu0 }
 0x7c9   : > { %v5017_v52 = vmul.f32 %v5460_v57, %v5460_v57  ;;  %v4820_v56 = vpop.f32.mrb[1].mxu0 }
 0x7ca   : > { %v4979_v39 = vadd.f32 %v5460_v57, %v4820_v56  ;;  %v5016_v40 = vmul.f32 %v4820_v56, %v4820_v56  ;;  %5088 = vxpose.xlu0.b32.start [1/16] (narrow) %v4820_v56, 8 }
 0x7cc   : > { %v5048_v62 = vadd.f32 %v5017_v52, %v5016_v40 }
 0x7cd   : > { %v5463_v31 = vpop.f32.mrb[2].mxu0 }
 0x7ce   : > { %v4830_v61 = vpop.f32.mrb[3].mxu0  ;;  %5089 = vxpose.xlu0.b32.cont [2/16] (narrow) %v5460_v57, 8  ;;  %v5019_v48 = vmul.f32 %v5463_v31, %v5463_v31 }
 0x7cf   : > { %v4980_v22 = vadd.f32 %v4979_v39, %v4830_v61  ;;  %v5018_v60 = vmul.f32 %v4830_v61, %v4830_v61 }
 0x7d1   : > { %v5049_v9 = vadd.f32 %v5048_v62, %v5018_v60  ;;  %v4981_v26 = vadd.f32 %v5463_v31, %v4980_v22 }
 0x7d2   : > { %v5466_v23 = vpop.f32.mrb[4].mxu0  ;;  %5090 = vxpose.xlu0.b32.cont [3/16] (narrow) %v4830_v61, 8 }
 0x7d3   : > { %v4840_v8 = vpop.f32.mrb[5].mxu0  ;;  %v5050_v46 = vadd.f32 %v5049_v9, %v5019_v48  ;;  %v5021_v29 = vmul.f32 %v5466_v23, %v5466_v23 }
 0x7d4   : > { %v4982_v16 = vadd.f32 %v4981_v26, %v4840_v8  ;;  %v5020_v58 = vmul.f32 %v4840_v8, %v4840_v8 }
 0x7d6   : > { %v5051_v4 = vadd.f32 %v5050_v46, %v5020_v58  ;;  %v4983_v17 = vadd.f32 %v5466_v23, %v4982_v16  ;;  %5091 = vxpose.xlu0.b32.cont [4/16] (narrow) %v5463_v31, 8 }
 0x7d8   : > { %v5469_v13 = vpop.f32.mrb[6].mxu0  ;;  %v5052_v49 = vadd.f32 %v5051_v4, %v5021_v29 }
 0x7d9   : > { %v4850_v32 = vpop.f32.mrb[7].mxu0  ;;  %v5023_v5 = vmul.f32 %v5469_v13, %v5469_v13 }
 0x7da   : > { %v4984_v1 = vadd.f32 %v4983_v17, %v4850_v32  ;;  %v5022_v34 = vmul.f32 %v4850_v32, %v4850_v32  ;;  %5092 = vxpose.xlu0.b32.cont [5/16] (narrow) %v4840_v8, 8 }
 0x7dc   : > { %v5053_v44 = vadd.f32 %v5052_v49, %v5022_v34  ;;  %v4985_v50 = vadd.f32 %v5469_v13, %v4984_v1 }
 0x7de   : > { %v12308_v53 = vpop.f32.mrb[0].mxu1  ;;  %v5054_v14 = vadd.f32 %v5053_v44, %v5023_v5  ;;  %5093 = vxpose.xlu0.b32.cont [6/16] (narrow) %v5466_v23, 8 }
 0x7df   : > { %v4900_v37 = vpop.f32.mrb[1].mxu1  ;;  %v5033_v22 = vmul.f32 %v12308_v53, %v12308_v53 }
 0x7e0   : > { %5120 = vxpose.xlu1.b32.start [1/16] (narrow) %v4900_v37, 8  ;;  %v5032_v62 = vmul.f32 %v4900_v37, %v4900_v37 }
 0x7e2   : > { %5094 = vxpose.xlu0.b32.cont [7/16] (narrow) %v4850_v32, 8 }
 0x7e3   : > { %v5472_v7 = vpop.f32.mrb[8].mxu0 }
 0x7e4   : > { %v4860_v38 = vpop.f32.mrb[9].mxu0  ;;  %5121 = vxpose.xlu1.b32.cont [2/16] (narrow) %v12308_v53, 8  ;;  %v5025_v25 = vmul.f32 %v5472_v7, %v5472_v7 }
 0x7e5   : > { %v4986_v54 = vadd.f32 %v4985_v50, %v4860_v38  ;;  %v5024_v24 = vmul.f32 %v4860_v38, %v4860_v38 }
 0x7e6   : > { %5095 = vxpose.xlu0.b32.cont [8/16] (narrow) %v5469_v13, 8 }
 0x7e7   : > { %v5055_v47 = vadd.f32 %v5054_v14, %v5024_v24  ;;  %v4987_v30 = vadd.f32 %v5472_v7, %v4986_v54 }
 0x7e9   : > { %v5056_v6 = vadd.f32 %v5055_v47, %v5025_v25 }
 0x7ea   : > { %v5487_v35 = vpop.f32.mrb[2].mxu1  ;;  %5096 = vxpose.xlu0.b32.cont [9/16] (narrow) %v4860_v38, 8 }
 0x7eb   : > { %v4910_v15 = vpop.f32.mrb[3].mxu1  ;;  %v5035_v8 = vmul.f32 %v5487_v35, %v5487_v35 }
 0x7ec   : > { %5122 = vxpose.xlu1.b32.cont [3/16] (narrow) %v4910_v15, 8  ;;  %v5034_v9 = vmul.f32 %v4910_v15, %v4910_v15 }
 0x7ee   : > { %5097 = vxpose.xlu0.b32.cont [10/16] (narrow) %v5472_v7, 8 }
 0x7f0   : > { %v5475_v63 = vpop.f32.mrb[10].mxu0  ;;  %5123 = vxpose.xlu1.b32.cont [4/16] (narrow) %v5487_v35, 8 }
 0x7f1   : > { %v4870_v28 = vpop.f32.mrb[11].mxu0  ;;  %v5027_v3 = vmul.f32 %v5475_v63, %v5475_v63 }
 0x7f2   : > { %v4988_v11 = vadd.f32 %v4987_v30, %v4870_v28  ;;  %v5026_v2 = vmul.f32 %v4870_v28, %v4870_v28  ;;  %5098 = vxpose.xlu0.b32.cont [11/16] (narrow) %v4870_v28, 8 }
 0x7f4   : > { %v5057_v41 = vadd.f32 %v5056_v6, %v5026_v2  ;;  %v4989_v55 = vadd.f32 %v5475_v63, %v4988_v11 }
 0x7f6   : > { %v5490_v12 = vpop.f32.mrb[4].mxu1  ;;  %v5058_v45 = vadd.f32 %v5057_v41, %v5027_v3  ;;  %5099 = vxpose.xlu0.b32.cont [12/16] (narrow) %v5475_v63, 8 }
 0x7f7   : > { %v4920_v19 = vpop.f32.mrb[5].mxu1  ;;  %v5037_v32 = vmul.f32 %v5490_v12, %v5490_v12 }
 0x7f8   : > { %5124 = vxpose.xlu1.b32.cont [5/16] (narrow) %v4920_v19, 8  ;;  %v5036_v4 = vmul.f32 %v4920_v19, %v4920_v19 }
 0x7fc   : > { %v5478_v36 = vpop.f32.mrb[12].mxu0  ;;  %5125 = vxpose.xlu1.b32.cont [6/16] (narrow) %v5490_v12, 8 }
 0x7fd   : > { %v4880_v51 = vpop.f32.mrb[13].mxu0  ;;  %v5029_v20 = vmul.f32 %v5478_v36, %v5478_v36 }
 0x7fe   : > { %v4990_v18 = vadd.f32 %v4989_v55, %v4880_v51  ;;  %v5028_v59 = vmul.f32 %v4880_v51, %v4880_v51  ;;  %5100 = vxpose.xlu0.b32.cont [13/16] (narrow) %v4880_v51, 8 }
 0x800   : > { %v5059_v27 = vadd.f32 %v5058_v45, %v5028_v59  ;;  %v4991_v21 = vadd.f32 %v5478_v36, %v4990_v18 }
 0x802   : > { %v5493_v42 = vpop.f32.mrb[6].mxu1  ;;  %v5060_v33 = vadd.f32 %v5059_v27, %v5029_v20  ;;  %5101 = vxpose.xlu0.b32.cont [14/16] (narrow) %v5478_v36, 8 }
 0x803   : > { %v4930_v10 = vpop.f32.mrb[7].mxu1 }
 0x804   : > { %5126 = vxpose.xlu1.b32.cont [7/16] (narrow) %v4930_v10, 8  ;;  %v5038_v49 = vmul.f32 %v4930_v10, %v4930_v10 }
 0x808   : > { %5127 = vxpose.xlu1.b32.cont [8/16] (narrow) %v5493_v42, 8 }
 0x809   : > { %v5481_v0 = vpop.f32.mrb[14].mxu0 }
 0x80a   : > { %v4890_v43 = vpop.f32.mrb[15].mxu0  ;;  %v5031_v56 = vmul.f32 %v5481_v0, %v5481_v0 }
 0x80b   : > { %v4992_v57 = vadd.f32 %v4991_v21, %v4890_v43  ;;  %v5030_v52 = vmul.f32 %v4890_v43, %v4890_v43  ;;  %5102 = vxpose.xlu0.b32.cont [15/16] (narrow) %v4890_v43, 8 }
 0x80d   : > { %v4993_v39 = vadd.f32 %v5481_v0, %v4992_v57  ;;  %v5061_v40 = vadd.f32 %v5060_v33, %v5030_v52 }
 0x80f   : > { %v4994_v31 = vadd.f32 %v4993_v39, %v4900_v37  ;;  %v5062_v61 = vadd.f32 %v5061_v40, %v5031_v56  ;;  %5103 = vxpose.xlu0.b32.end [16/16] (narrow) %v5481_v0, 8 }
 0x811   : > { %v4995_v60 = vadd.f32 %v12308_v53, %v4994_v31  ;;  %v5063_v48 = vadd.f32 %v5062_v61, %v5032_v62  ;;  %v5039_v53 = vmul.f32 %v5493_v42, %v5493_v42 }
 0x813   : > { %v4996_v23 = vadd.f32 %v4995_v60, %v4910_v15  ;;  %v5064_v26 = vadd.f32 %v5063_v48, %v5033_v22 }
 0x815   : > { %v4997_v16 = vadd.f32 %v5487_v35, %v4996_v23  ;;  %v5065_v58 = vadd.f32 %v5064_v26, %v5034_v9  ;;  %v5496_v46 = vpop.f32.mrb[8].mxu1 }
 0x816   : > { %v4940_v29 = vpop.f32.mrb[9].mxu1  ;;  %v5041_v54 = vmul.f32 %v5496_v46, %v5496_v46 }
 0x817   : > { %v5066_v13 = vadd.f32 %v5065_v58, %v5035_v8  ;;  %v4998_v17 = vadd.f32 %v4997_v16, %v4920_v19  ;;  %5128 = vxpose.xlu1.b32.cont [9/16] (narrow) %v4940_v29, 8  ;;  %v5040_v7 = vmul.f32 %v4940_v29, %v4940_v29 }
 0x819   : > { %v4999_v1 = vadd.f32 %v5490_v12, %v4998_v17  ;;  %v5067_v34 = vadd.f32 %v5066_v13, %v5036_v4  ;;  %v5499_v35 = vpop.f32.mrb[10].mxu1 }
 0x81a   : > { %v4950_v30 = vpop.f32.mrb[11].mxu1  ;;  %v5043_v63 = vmul.f32 %v5499_v35, %v5499_v35 }
 0x81b   : > { %v5000_v5 = vadd.f32 %v4999_v1, %v4930_v10  ;;  %v5068_v44 = vadd.f32 %v5067_v34, %v5037_v32  ;;  %5129 = vxpose.xlu1.b32.cont [10/16] (narrow) %v5496_v46, 8  ;;  %v5042_v6 = vmul.f32 %v4950_v30, %v4950_v30 }
 0x81d   : > { %v5001_v50 = vadd.f32 %v5493_v42, %v5000_v5  ;;  %v5069_v37 = vadd.f32 %v5068_v44, %v5038_v49 }
 0x81f   : > { %v5002_v14 = vadd.f32 %v5001_v50, %v4940_v29  ;;  %v5070_v38 = vadd.f32 %v5069_v37, %v5039_v53  ;;  %5130 = vxpose.xlu1.b32.cont [11/16] (narrow) %v4950_v30, 8 }
 0x821   : > { %v5071_v24 = vadd.f32 %v5070_v38, %v5040_v7  ;;  %v5003_v25 = vadd.f32 %v5496_v46, %v5002_v14 }
 0x823   : > { %v5072_v47 = vadd.f32 %v5071_v24, %v5041_v54  ;;  %v5004_v15 = vadd.f32 %v5003_v25, %v4950_v30  ;;  %5131 = vxpose.xlu1.b32.cont [12/16] (narrow) %v5499_v35, 8 }
 0x825   : > { %v5073_v28 = vadd.f32 %v5072_v47, %v5042_v6  ;;  %v5005_v11 = vadd.f32 %v5499_v35, %v5004_v15 }
 0x827   : > { %v5074_v2 = vadd.f32 %v5073_v28, %v5043_v63 }
 0x828   : > { %v5502_v3 = vpop.f32.mrb[12].mxu1 }
 0x829   : > { %v4960_v41 = vpop.f32.mrb[13].mxu1  ;;  %v5045_v19 = vmul.f32 %v5502_v3, %v5502_v3 }
 0x82a   : > { %v5006_v12 = vadd.f32 %v5005_v11, %v4960_v41  ;;  %v5044_v55 = vmul.f32 %v4960_v41, %v4960_v41  ;;  %5132 = vxpose.xlu1.b32.cont [13/16] (narrow) %v4960_v41, 8 }
 0x82c   : > { %v5075_v45 = vadd.f32 %v5074_v2, %v5044_v55  ;;  %v5007_v36 = vadd.f32 %v5502_v3, %v5006_v12 }
 0x82e   : > { %5133 = vxpose.xlu1.b32.cont [14/16] (narrow) %v5502_v3, 8  ;;  %v5076_v51 = vadd.f32 %v5075_v45, %v5045_v19 }
 0x838   : > { %v5505_v18 = vpop.f32.mrb[14].mxu1 }
 0x839   : > { %v4970_v59 = vpop.f32.mrb[15].mxu1  ;;  %v5047_v42 = vmul.f32 %v5505_v18, %v5505_v18 }
 0x83a   : > { %v5008_v20 = vadd.f32 %v5007_v36, %v4970_v59  ;;  %v5046_v27 = vmul.f32 %v4970_v59, %v4970_v59  ;;  %5134 = vxpose.xlu1.b32.cont [15/16] (narrow) %v4970_v59, 8 }
 0x83c   : > { %v5009_v21 = vadd.f32 %v5505_v18, %v5008_v20  ;;  %v5077_v10 = vadd.f32 %v5076_v51, %v5046_v27 }
 0x83e   : > { %v5010_v33 = vrot.slane %v5009_v21, 4  ;;  %v5078_v0 = vadd.f32 %v5077_v10, %v5047_v42  ;;  %5135 = vxpose.xlu1.b32.end [16/16] (narrow) %v5505_v18, 8 }
 0x840   : > { %v5011_v43 = vadd.f32 %v5010_v33, %v5009_v21  ;;  %v5079_v57 = vrot.slane %v5078_v0, 4 }
 0x842   : > { %v5012_v52 = vrot.slane %v5011_v43, 2  ;;  %v5080_v56 = vadd.f32 %v5079_v57, %v5078_v0 }
 0x844   : > { %v5013_v39 = vadd.f32 %v5012_v52, %v5011_v43  ;;  %v5081_v40 = vrot.slane %v5080_v56, 2 }
 0x846   : > { %v5014_v62 = vrot.slane %v5013_v39, 1  ;;  %v5082_v31 = vadd.f32 %v5081_v40, %v5080_v56 }
 0x848   : > { %v5083_v61 = vrot.slane %v5082_v31, 1  ;;  %v5015_v22 = vadd.f32 %v5014_v62, %v5013_v39 }
 0x84a   : > { %v5084_v60 = vadd.f32 %v5083_v61, %v5082_v31 }
 0x84c   : > { %v5086_v9 = vsel %vm5085_vm5, %v5015_v22, %v5084_v60 }
 0x84d   : > { %5087 = vst [vmem:[%s364_s19] sm:$0x3] %v5086_v9 }
 0x853   : > { %v5104_v48 = vpop.trf.xlu0 }
 0x854   : > { %5152 = vst [vmem:[%s355_s8] sm:$0xff] %v5104_v48 }
 0x882   : > { %v5136_v23 = vpop.trf.xlu1 }
 0x883   : > { %5153 = vst [vmem:[%s355_s8 + $0x8] sm:$0xff] %v5136_v23 }
 0x884 PF: > { %s16_s22 = sadd.s32 1, %s5740_s22   ;;  %s14338_s18 = smov %s5732_s20 }
 0x885   : > { %p13_p11 = scmp.ge.s32.totalorder %s16_s22, 34   ;;  %s14339_s19 = smov %s5736_s21 }
 0x886   : > { %s14340_s20 = smov %s14343_s23  ;;  %s14341_s21 = smov %s14347_s24 }
 0x887   :  { %15 = sbr.rel (!%p13_p11) target bundleno = 3 (0x3), region = 84 }

</bundles_post_ra>
